<compile_context>
chip_gen: v5e
topology: v5e:2x2
jax: 0.10.0
libtpu: 0.0.40
codegen_flags: <defaults>
</compile_context>

<pallas_src>
import functools

import jax
import jax.numpy as jnp
from jax.experimental import pallas as pl
from jax.experimental.pallas import tpu as pltpu

# ----------------------------- model dimensions ------------------------------
NUM_GROUPS = 3            # rs / gs / bgs
NUGGETS_PER_GROUP = 3     # magic_number
NUM_NUGGETS = NUM_GROUPS * NUGGETS_PER_GROUP
HID0 = 10                 # outer Nugget conv output channels
IDX_HID = 64              # CheapLab LearnedIndices intermediate channels
IDX_OUT = 32              # CheapLab LearnedIndices output channels
CLS1, CLS2, CLS3 = 16, 8, 4
OUT_CH = 1

# fused (all-9-nuggets) widths (channel-major: these are row counts)
H0_ALL = NUM_NUGGETS * HID0      # 90
Z_ALL = NUM_NUGGETS * IDX_HID    # 576
ND_ALL = NUM_NUGGETS * IDX_OUT   # 288
C1_ALL = NUM_NUGGETS * CLS1      # 144
C2_ALL = NUM_NUGGETS * CLS2      # 72
C3_ALL = NUM_NUGGETS * CLS3      # 36
O_ALL = NUM_NUGGETS * OUT_CH     # 9

# super-block grouping of the num/den stage (MXU-tile aligned: 4+4+1 nuggets)
SB_Z = 4 * IDX_HID               # 256 z rows per full super-block
SB_ND = 4 * IDX_OUT              # 128 num (or den) rows per full super-block


def _align8(n):
    return (n + 7) // 8 * 8


# packed-bias sublane offsets (all 8-aligned so in-kernel slices stay aligned)
OFF_C0 = 0                               # (90, 1)
OFF_BDA = _align8(OFF_C0 + H0_ALL)       # 96  : den bias, nuggets 0-3  (128, 1)
OFF_BDB = OFF_BDA + SB_ND                # 224 : den bias, nuggets 4-7  (128, 1)
OFF_BDC = OFF_BDB + SB_ND                # 352 : den bias, nugget 8     (32, 1)
OFF_C1 = _align8(OFF_BDC + IDX_OUT)      # 384 : classifier stage-1 bias (144, 1)
OFF_C2 = _align8(OFF_C1 + C1_ALL)        # 528 : stage-2 bias            (72, 1)
OFF_C3 = _align8(OFF_C2 + C2_ALL)        # 600 : stage-3 bias            (36, 1)
OFF_BF = _align8(OFF_C3 + C3_ALL)        # 640 : final conv bias         (9, 1)
BIAS_ROWS = _align8(OFF_BF + O_ALL)      # 656

# (name, per-nugget shape, init kind) -- raw (unfused) parameters
PARAM_SPEC = [
    ('W0',   lambda c: (c, HID0),          'w'),   # outer conv1x1 weight
    ('b0',   lambda c: (1, HID0),          'b'),   # outer conv1x1 bias
    ('s0',   lambda c: (1, HID0),          's'),   # outer BN scale (eval-folded)
    ('t0',   lambda c: (1, HID0),          't'),   # outer BN shift
    ('Wc1',  lambda c: (HID0, IDX_HID),    'w'),   # LearnedIndices conv1 (no bias)
    ('Wnum', lambda c: (IDX_HID, IDX_OUT), 'w'),   # numerator conv (no bias)
    ('Wden', lambda c: (IDX_HID, IDX_OUT), 'w'),   # denominator conv
    ('bden', lambda c: (1, IDX_OUT),       'db'),  # denominator bias
    ('sq',   lambda c: (1, IDX_OUT),       's'),   # BN on quotient: scale
    ('tq',   lambda c: (1, IDX_OUT),       't'),   # BN on quotient: shift
    ('Wn1q', lambda c: (IDX_OUT, CLS1),    'w'),   # classifier conv1 (indices part)
    ('Wn1x', lambda c: (HID0, CLS1),       'w'),   # classifier conv1 (skip part)
    ('b1',   lambda c: (1, CLS1),          'b'),
    ('s1',   lambda c: (1, CLS1),          's'),
    ('t1',   lambda c: (1, CLS1),          't'),
    ('Wn2',  lambda c: (CLS1, CLS2),       'w'),
    ('b2',   lambda c: (1, CLS2),          'b'),
    ('s2',   lambda c: (1, CLS2),          's'),
    ('t2',   lambda c: (1, CLS2),          't'),
    ('Wn3',  lambda c: (CLS2, CLS3),       'w'),
    ('b3',   lambda c: (1, CLS3),          'b'),
    ('s3',   lambda c: (1, CLS3),          's'),
    ('t3',   lambda c: (1, CLS3),          't'),
    ('Wfin', lambda c: (CLS3, OUT_CH),     'w'),   # final conv1x1 (4 -> 1)
    ('bfin', lambda c: (1, OUT_CH),        'b'),
]


# --------------------------- parameter fusion ---------------------------------
def _block_diag(blocks):
    rows = sum(b.shape[0] for b in blocks)
    cols = sum(b.shape[1] for b in blocks)
    out = jnp.zeros((rows, cols), blocks[0].dtype)
    r = c = 0
    for b in blocks:
        out = out.at[r:r + b.shape[0], c:c + b.shape[1]].set(b)
        r += b.shape[0]
        c += b.shape[1]
    return out


def prepare_fused_params(p):
    """Fold eval-mode BN into the weights, transpose to channel-major
    (weight @ activation), fuse the 9 nuggets, and build MXU-tile aligned
    super-blocks for the num/den stage.  Call once; reuse across forwards."""
    W0s, c0s, Wc1s = [], [], []
    Wnum_cm, Wden_cm, bden_cm = [], [], []
    Wn1qs, Wn1xs, c1s = [], [], []
    Wn2s, c2s, Wn3s, c3s = [], [], [], []
    for n in range(NUM_NUGGETS):
        s0, t0 = p['s0'][n], p['t0'][n]
        W0s.append((p['W0'][n] * s0).T)                      # (10, C)  BN scale folded
        c0s.append((p['b0'][n] * s0 + t0).T)                 # (10, 1)  BN shift folded
        Wc1s.append(p['Wc1'][n].T)                           # (64, 10)
        sq, tq = p['sq'][n], p['tq'][n]
        Wnum_cm.append((p['Wnum'][n] * sq).T)                # (32, 64) quotient-BN scale
        Wden_cm.append(p['Wden'][n].T)                       # (32, 64)
        bden_cm.append((p['bden'][n] + 1e-7).T)              # (32, 1)  divide eps folded
        s1, t1 = p['s1'][n], p['t1'][n]
        Wn1qs.append((p['Wn1q'][n] * s1).T)                  # (16, 32)
        Wn1xs.append((p['Wn1x'][n] * s1).T)                  # (16, 10)
        c1s.append(((p['b1'][n] + tq @ p['Wn1q'][n]) * s1 + t1).T)   # quotient-BN shift
        s2, t2 = p['s2'][n], p['t2'][n]
        Wn2s.append((p['Wn2'][n] * s2).T)                    # (8, 16)
        c2s.append((p['b2'][n] * s2 + t2).T)                 # (8, 1)
        s3, t3 = p['s3'][n], p['t3'][n]
        Wn3s.append((p['Wn3'][n] * s3).T)                    # (4, 8)
        c3s.append((p['b3'][n] * s3 + t3).T)                 # (4, 1)

    # Final 4->1 convs, group-major row ordering: rows 0-2 = rs, 3-5 = gs, 6-8 = bgs.
    Wfink = jnp.zeros((O_ALL, C3_ALL), jnp.float32)
    bfin = jnp.zeros((O_ALL, 1), jnp.float32)
    for n in range(NUM_NUGGETS):
        Wfink = Wfink.at[n, n * CLS3:(n + 1) * CLS3].set(p['Wfin'][n][:, 0])
        bfin = bfin.at[n, 0].set(p['bfin'][n][0, 0])

    # num/den super-blocks: top half = numerators, bottom half = denominators.
    def numden_block(idx):
        return jnp.concatenate([_block_diag([Wnum_cm[n] for n in idx]),
                                _block_diag([Wden_cm[n] for n in idx])], axis=0)

    WA = numden_block(range(0, 4))                           # (256, 256)
    WB = numden_block(range(4, 8))                           # (256, 256)
    WnumC, WdenC = Wnum_cm[8], Wden_cm[8]                    # (32, 64) each

    weights = [
        jnp.concatenate(W0s, axis=0),   # (90, C)
        _block_diag(Wc1s),              # (576, 90)
        WA, WB,                         # (256, 256) x2   num/den super-blocks
        WnumC, WdenC,                   # (32, 64)  x2   9th nugget
        _block_diag(Wn1qs),             # (144, 288)
        _block_diag(Wn1xs),             # (144, 90)
        _block_diag(Wn2s),              # (72, 144)
        _block_diag(Wn3s),              # (36, 72)
        Wfink,                          # (9, 36)
    ]
    weights = [w.astype(jnp.bfloat16) for w in weights]

    bias_pack = jnp.zeros((BIAS_ROWS, 1), jnp.float32)

    def put(bp, off, vecs):
        v = jnp.concatenate(vecs, axis=0)
        return bp.at[off:off + v.shape[0], :].set(v)

    bias_pack = put(bias_pack, OFF_C0, c0s)
    bias_pack = put(bias_pack, OFF_BDA, bden_cm[0:4])
    bias_pack = put(bias_pack, OFF_BDB, bden_cm[4:8])
    bias_pack = put(bias_pack, OFF_BDC, bden_cm[8:9])
    bias_pack = put(bias_pack, OFF_C1, c1s)
    bias_pack = put(bias_pack, OFF_C2, c2s)
    bias_pack = put(bias_pack, OFF_C3, c3s)
    bias_pack = put(bias_pack, OFF_BF, [bfin])
    return weights, bias_pack


# ------------------------------- kernel body -----------------------------------
def cloud_kernel(x_ref, w0_ref, wc1_ref, wa_ref, wb_ref, wnc_ref, wdc_ref,
                 wn1q_ref, wn1x_ref, wn2_ref, wn3_ref, wfin_ref, bias_ref,
                 out_ref, sums_ref):
    bf16 = jnp.bfloat16
    mm = lambda w, a: jnp.dot(w, a, preferred_element_type=jnp.float32)

    c0 = bias_ref[OFF_C0:OFF_C0 + H0_ALL, :]
    bdA = bias_ref[OFF_BDA:OFF_BDA + SB_ND, :]
    bdB = bias_ref[OFF_BDB:OFF_BDB + SB_ND, :]
    bdC = bias_ref[OFF_BDC:OFF_BDC + IDX_OUT, :]
    c1 = bias_ref[OFF_C1:OFF_C1 + C1_ALL, :]
    c2 = bias_ref[OFF_C2:OFF_C2 + C2_ALL, :]
    c3 = bias_ref[OFF_C3:OFF_C3 + C3_ALL, :]
    bfin = bias_ref[OFF_BF:OFF_BF + O_ALL, :]

    # x[x < 0] = 0; all 9 outer 1x1 convs (+BN+ReLU) as one fused matmul.
    xb = jnp.maximum(x_ref[...], 0.0).astype(bf16)                 # (C, tp)
    h0 = jnp.maximum(mm(w0_ref[...], xb) + c0, 0.0)                # (90, tp)
    h0b = h0.astype(bf16)

    # CheapLab LearnedIndices conv1 (block-diagonal over the 9 nuggets).
    z = mm(wc1_ref[...], h0b).astype(bf16)                         # (576, tp)

    # num/den stage as dense MXU-tile aligned super-blocks (4 + 4 + 1 nuggets).
    rA = mm(wa_ref[...], z[0:SB_Z, :])                             # (256, tp)
    rB = mm(wb_ref[...], z[SB_Z:2 * SB_Z, :])                      # (256, tp)
    zC = z[2 * SB_Z:2 * SB_Z + IDX_HID, :]                         # (64, tp)
    numC = mm(wnc_ref[...], zC)                                    # (32, tp)
    denC = mm(wdc_ref[...], zC) + bdC

    # exact divide (correctness review: den not bounded away from zero).
    qA = (rA[0:SB_ND, :] / (rA[SB_ND:2 * SB_ND, :] + bdA)).astype(bf16)
    qB = (rB[0:SB_ND, :] / (rB[SB_ND:2 * SB_ND, :] + bdB)).astype(bf16)
    qC = (numC / denC).astype(bf16)
    q = jnp.concatenate([qA, qB, qC], axis=0)                      # (288, tp)

    # CheapLab classifier: conv(cat([indices, x])) == Wn1q@q + Wn1x@h0.
    h1 = jnp.maximum(mm(wn1q_ref[...], q) + mm(wn1x_ref[...], h0b) + c1, 0.0)
    h2 = jnp.maximum(mm(wn2_ref[...], h1.astype(bf16)) + c2, 0.0)
    h3 = jnp.maximum(mm(wn3_ref[...], h2.astype(bf16)) + c3, 0.0)
    o = mm(wfin_ref[...], h3.astype(bf16)) + bfin                  # (9, tp), group-major rows

    # per-group amax over the 3 nuggets of each group (single-row slices).
    m_rs = jnp.maximum(jnp.maximum(o[0:1, :], o[1:2, :]), o[2:3, :])
    m_gs = jnp.maximum(jnp.maximum(o[3:4, :], o[4:5, :]), o[5:6, :])
    m_bgs = jnp.maximum(jnp.maximum(o[6:7, :], o[7:8, :]), o[8:9, :])
    out_ref[0:1, :] = m_rs
    out_ref[1:2, :] = m_gs
    out_ref[2:3, :] = m_bgs

    # entropy_function(out[:,0] - out[:,1]) : per-tile partial sums.
    s = jax.nn.sigmoid(m_rs - m_gs)                                # (1, tp)
    tno = s - 0.25
    tys = s - 0.75
    wide_no = jnp.exp(tno * tno * (-64.0))                         # eps = 1/8
    wide_yes = jnp.exp(tys * tys * (-64.0))
    wn2 = wide_no * wide_no
    wy2 = wide_yes * wide_yes
    narrow_no = wn2 * wn2                                          # eps = 1/16 == wide**4
    narrow_yes = wy2 * wy2
    sums = jnp.concatenate(
        [jnp.sum(narrow_no, axis=1, keepdims=True),
         jnp.sum(wide_no, axis=1, keepdims=True),
         jnp.sum(narrow_yes, axis=1, keepdims=True),
         jnp.sum(wide_yes, axis=1, keepdims=True)], axis=1)        # (1, 4)
    sums_ref[...] = jnp.broadcast_to(sums.reshape(1, 1, 4), (1, 8, 4))


# ------------------------------- host wrapper ----------------------------------
def cloud_model_forward(x, weights, bias_pack, tile_p=2048):
    """x: (B, C, H, W) float32 -> (out (B, 3, H, W), goodness scalar)."""
    B, C, H, W = x.shape
    P = B * H * W
    tile_p = min(tile_p, P)
    # ensure >= 2 parallel tiles when possible (v7x has 2 TensorCores per chip)
    if P // tile_p < 2 and P % 2 == 0 and (P // 2) % 128 == 0:
        tile_p = P // 2
    # TODO(synk): arbitrary B*H*W would need padding or a remainder tile.
    assert P % tile_p == 0, "pixel count must be divisible by the tile size"
    assert tile_p == P or tile_p % 128 == 0
    num_tiles = P // tile_p

    # NCHW -> channel-major (C, P): a cheap leading-dim permute, lane-dense blocks.
    xp = jnp.transpose(x, (1, 0, 2, 3)).reshape(C, P)

    w_specs = [pl.BlockSpec(w.shape, lambda i: (0, 0)) for w in weights]
    b_spec = pl.BlockSpec(bias_pack.shape, lambda i: (0, 0))

    out_cm, partial = pl.pallas_call(
        cloud_kernel,
        out_shape=(jax.ShapeDtypeStruct((NUM_GROUPS, P), jnp.float32),
                   jax.ShapeDtypeStruct((num_tiles, 8, 4), jnp.float32)),
        grid=(num_tiles,),
        in_specs=[pl.BlockSpec((C, tile_p), lambda i: (0, i))] + w_specs + [b_spec],
        out_specs=(pl.BlockSpec((NUM_GROUPS, tile_p), lambda i: (0, i)),
                   pl.BlockSpec((1, 8, 4), lambda i: (i, 0, 0))),
        compiler_params=pltpu.CompilerParams(
            dimension_semantics=("parallel",),
            vmem_limit_bytes=48 * 1024 * 1024),
    )(xp, *weights, bias_pack)

    sums = partial[:, 0, :].sum(axis=0) / float(P)          # four means
    pno_narrow, pno_wide, pyes_narrow, pyes_wide = sums[0], sums[1], sums[2], sums[3]
    goodness = pyes_narrow * jnp.log(pyes_wide) + pno_narrow * jnp.log(pno_wide)

    # (3, P) -> (B, 3, H, W): cheap leading-dim permute.
    out = jnp.transpose(out_cm.reshape(NUM_GROUPS, B, H, W), (1, 0, 2, 3))
    return out, goodness


# --------------------------- deterministic parameters ---------------------------
def init_params(key, c_in):
    """Synthetic deterministic weights (BatchNorm folded into eval-mode scale/shift)."""
    params = {}
    keys = jax.random.split(key, len(PARAM_SPEC))
    for k, (name, shape_fn, kind) in zip(keys, PARAM_SPEC):
        shp = (NUM_NUGGETS,) + shape_fn(c_in)
        z = jax.random.normal(k, shp, dtype=jnp.float32)
        if kind == 'w':          # conv1x1 weight, fan-in scaled
            params[name] = z / jnp.sqrt(float(shp[1]))
        elif kind == 'b':        # conv bias
            params[name] = 0.1 * z
        elif kind == 's':        # folded BN scale  gamma/sqrt(var+eps)
            params[name] = 1.0 + 0.1 * z
        elif kind == 't':        # folded BN shift  beta - mean*scale
            params[name] = 0.05 * z
        elif kind == 'db':       # denominator-conv bias, kept away from zero
            params[name] = 1.0 + 0.1 * z
    return params


# TODO(synk): CheapLab's F.interpolate (bilinear) is only implemented for
#   preshrink=1 (identity); preshrink>1 would need a resize kernel.
# TODO(synk): BatchNorm is eval-mode (running stats folded); training-mode batch
#   statistics are not implemented.
# TODO(synk): v5e would prefer 2-nugget (128-wide) num/den super-blocks; this
#   version uses the 4+4+1 (256-wide) grouping tuned for v6e/v7x MXU tiles.

if __name__ == "__main__":
    key = jax.random.PRNGKey(0)
    kx, kp = jax.random.split(key)
    B, C, H, W = 2, 4, 16, 16          # in_channels = [4]
    x = jax.random.normal(kx, (B, C, H, W), dtype=jnp.float32)
    params = init_params(kp, C)

    # fuse / fold parameters once, outside the per-call path
    weights, bias_pack = prepare_fused_params(params)
    forward = jax.jit(functools.partial(cloud_model_forward, tile_p=2048))

    out, goodness = forward(x, weights, bias_pack)
    out = jax.block_until_ready(out)
    goodness = jax.block_until_ready(goodness)

    assert out.shape == (B, 3, H, W) and out.dtype == jnp.float32
    assert goodness.shape == () and jnp.isfinite(goodness)
    print("KERNEL_OK")
</pallas_src>

<mosaic_0001>
module attributes {stable_mosaic.version = 11 : i64} {
  func.func @cloud_kernel(%arg0: i32, %arg1: memref<4x256xf32, #tpu.memory_space<vmem>>, %arg2: memref<90x4xbf16, #tpu.memory_space<vmem>>, %arg3: memref<576x90xbf16, #tpu.memory_space<vmem>>, %arg4: memref<256x256xbf16, #tpu.memory_space<vmem>>, %arg5: memref<256x256xbf16, #tpu.memory_space<vmem>>, %arg6: memref<32x64xbf16, #tpu.memory_space<vmem>>, %arg7: memref<32x64xbf16, #tpu.memory_space<vmem>>, %arg8: memref<144x288xbf16, #tpu.memory_space<vmem>>, %arg9: memref<144x90xbf16, #tpu.memory_space<vmem>>, %arg10: memref<72x144xbf16, #tpu.memory_space<vmem>>, %arg11: memref<36x72xbf16, #tpu.memory_space<vmem>>, %arg12: memref<9x36xbf16, #tpu.memory_space<vmem>>, %arg13: memref<656x1xf32, #tpu.memory_space<vmem>>, %arg14: memref<3x256xf32, #tpu.memory_space<vmem>>, %arg15: memref<1x8x4xf32, #tpu.memory_space<vmem>>) attributes {dimension_semantics = [#tpu.dimension_semantics<parallel>], iteration_bounds = array<i64: 2>, scalar_prefetch = 0 : i64, scratch_operands = 0 : i64, tpu.core_type = #tpu.core_type<tc>, window_params = [{transform_indices = @transform_0, window_bounds = array<i64: 4, 256>}, {pipeline_mode = #tpu.pipeline_mode<synchronous>, transform_indices = @transform_1, window_bounds = array<i64: 90, 4>}, {pipeline_mode = #tpu.pipeline_mode<synchronous>, transform_indices = @transform_2, window_bounds = array<i64: 576, 90>}, {pipeline_mode = #tpu.pipeline_mode<synchronous>, transform_indices = @transform_3, window_bounds = array<i64: 256, 256>}, {pipeline_mode = #tpu.pipeline_mode<synchronous>, transform_indices = @transform_4, window_bounds = array<i64: 256, 256>}, {pipeline_mode = #tpu.pipeline_mode<synchronous>, transform_indices = @transform_5, window_bounds = array<i64: 32, 64>}, {pipeline_mode = #tpu.pipeline_mode<synchronous>, transform_indices = @transform_6, window_bounds = array<i64: 32, 64>}, {pipeline_mode = #tpu.pipeline_mode<synchronous>, transform_indices = @transform_7, window_bounds = array<i64: 144, 288>}, {pipeline_mode = #tpu.pipeline_mode<synchronous>, transform_indices = @transform_8, window_bounds = array<i64: 144, 90>}, {pipeline_mode = #tpu.pipeline_mode<synchronous>, transform_indices = @transform_9, window_bounds = array<i64: 72, 144>}, {pipeline_mode = #tpu.pipeline_mode<synchronous>, transform_indices = @transform_10, window_bounds = array<i64: 36, 72>}, {pipeline_mode = #tpu.pipeline_mode<synchronous>, transform_indices = @transform_11, window_bounds = array<i64: 9, 36>}, {pipeline_mode = #tpu.pipeline_mode<synchronous>, transform_indices = @transform_12, window_bounds = array<i64: 656, 1>}, {transform_indices = @transform_13, window_bounds = array<i64: 3, 256>}, {transform_indices = @transform_14, window_bounds = array<i64: 1, 8, 4>}]} {
    %c0 = arith.constant 0 : index
    %c0_0 = arith.constant 0 : index
    %0 = vector.load %arg13[%c0, %c0_0] : memref<656x1xf32, #tpu.memory_space<vmem>>, vector<90x1xf32>
    %c96 = arith.constant 96 : index
    %c0_1 = arith.constant 0 : index
    %1 = vector.load %arg13[%c96, %c0_1] : memref<656x1xf32, #tpu.memory_space<vmem>>, vector<128x1xf32>
    %c224 = arith.constant 224 : index
    %c0_2 = arith.constant 0 : index
    %2 = vector.load %arg13[%c224, %c0_2] : memref<656x1xf32, #tpu.memory_space<vmem>>, vector<128x1xf32>
    %c352 = arith.constant 352 : index
    %c0_3 = arith.constant 0 : index
    %3 = vector.load %arg13[%c352, %c0_3] : memref<656x1xf32, #tpu.memory_space<vmem>>, vector<32x1xf32>
    %c384 = arith.constant 384 : index
    %c0_4 = arith.constant 0 : index
    %4 = vector.load %arg13[%c384, %c0_4] : memref<656x1xf32, #tpu.memory_space<vmem>>, vector<144x1xf32>
    %c528 = arith.constant 528 : index
    %c0_5 = arith.constant 0 : index
    %5 = vector.load %arg13[%c528, %c0_5] : memref<656x1xf32, #tpu.memory_space<vmem>>, vector<72x1xf32>
    %c600 = arith.constant 600 : index
    %c0_6 = arith.constant 0 : index
    %6 = vector.load %arg13[%c600, %c0_6] : memref<656x1xf32, #tpu.memory_space<vmem>>, vector<36x1xf32>
    %c640 = arith.constant 640 : index
    %c0_7 = arith.constant 0 : index
    %7 = vector.load %arg13[%c640, %c0_7] : memref<656x1xf32, #tpu.memory_space<vmem>>, vector<9x1xf32>
    %c0_8 = arith.constant 0 : index
    %c0_9 = arith.constant 0 : index
    %8 = vector.load %arg1[%c0_8, %c0_9] : memref<4x256xf32, #tpu.memory_space<vmem>>, vector<4x256xf32>
    %cst = arith.constant 0.000000e+00 : f32
    %9 = vector.broadcast %cst : f32 to vector<4x256xf32>
    %10 = arith.maximumf %8, %9 : vector<4x256xf32>
    %11 = arith.truncf %10 : vector<4x256xf32> to vector<4x256xbf16>
    %c0_10 = arith.constant 0 : index
    %c0_11 = arith.constant 0 : index
    %12 = vector.load %arg2[%c0_10, %c0_11] : memref<90x4xbf16, #tpu.memory_space<vmem>>, vector<90x4xbf16>
    %cst_12 = arith.constant dense<0.000000e+00> : vector<90x256xf32>
    %13 = tpu.matmul %12, %11, %cst_12 {dimension_numbers = #tpu.dot_dimension_numbers<[1], [0], [0], [1], [0, 0, 1, 1], [], []>} : vector<90x4xbf16>, vector<4x256xbf16>, vector<90x256xf32> -> vector<90x256xf32>
    %14 = vector.broadcast %0 : vector<90x1xf32> to vector<90x256xf32>
    %15 = arith.addf %13, %14 : vector<90x256xf32>
    %cst_13 = arith.constant 0.000000e+00 : f32
    %16 = vector.broadcast %cst_13 : f32 to vector<90x256xf32>
    %17 = arith.maximumf %15, %16 : vector<90x256xf32>
    %18 = arith.truncf %17 : vector<90x256xf32> to vector<90x256xbf16>
    %c0_14 = arith.constant 0 : index
    %c0_15 = arith.constant 0 : index
    %19 = vector.load %arg3[%c0_14, %c0_15] : memref<576x90xbf16, #tpu.memory_space<vmem>>, vector<576x90xbf16>
    %cst_16 = arith.constant dense<0.000000e+00> : vector<576x256xf32>
    %20 = tpu.matmul %19, %18, %cst_16 {dimension_numbers = #tpu.dot_dimension_numbers<[1], [0], [0], [1], [0, 0, 1, 1], [], []>} : vector<576x90xbf16>, vector<90x256xbf16>, vector<576x256xf32> -> vector<576x256xf32>
    %21 = arith.truncf %20 : vector<576x256xf32> to vector<576x256xbf16>
    %c0_17 = arith.constant 0 : index
    %c0_18 = arith.constant 0 : index
    %22 = vector.load %arg4[%c0_17, %c0_18] : memref<256x256xbf16, #tpu.memory_space<vmem>>, vector<256x256xbf16>
    %23 = vector.extract_strided_slice %21 {offsets = [0, 0], sizes = [256, 256], strides = [1, 1]} : vector<576x256xbf16> to vector<256x256xbf16>
    %cst_19 = arith.constant dense<0.000000e+00> : vector<256x256xf32>
    %24 = tpu.matmul %22, %23, %cst_19 {dimension_numbers = #tpu.dot_dimension_numbers<[1], [0], [0], [1], [0, 0, 1, 1], [], []>} : vector<256x256xbf16>, vector<256x256xbf16>, vector<256x256xf32> -> vector<256x256xf32>
    %c0_20 = arith.constant 0 : index
    %c0_21 = arith.constant 0 : index
    %25 = vector.load %arg5[%c0_20, %c0_21] : memref<256x256xbf16, #tpu.memory_space<vmem>>, vector<256x256xbf16>
    %26 = vector.extract_strided_slice %21 {offsets = [256, 0], sizes = [256, 256], strides = [1, 1]} : vector<576x256xbf16> to vector<256x256xbf16>
    %cst_22 = arith.constant dense<0.000000e+00> : vector<256x256xf32>
    %27 = tpu.matmul %25, %26, %cst_22 {dimension_numbers = #tpu.dot_dimension_numbers<[1], [0], [0], [1], [0, 0, 1, 1], [], []>} : vector<256x256xbf16>, vector<256x256xbf16>, vector<256x256xf32> -> vector<256x256xf32>
    %28 = vector.extract_strided_slice %21 {offsets = [512, 0], sizes = [64, 256], strides = [1, 1]} : vector<576x256xbf16> to vector<64x256xbf16>
    %c0_23 = arith.constant 0 : index
    %c0_24 = arith.constant 0 : index
    %29 = vector.load %arg6[%c0_23, %c0_24] : memref<32x64xbf16, #tpu.memory_space<vmem>>, vector<32x64xbf16>
    %cst_25 = arith.constant dense<0.000000e+00> : vector<32x256xf32>
    %30 = tpu.matmul %29, %28, %cst_25 {dimension_numbers = #tpu.dot_dimension_numbers<[1], [0], [0], [1], [0, 0, 1, 1], [], []>} : vector<32x64xbf16>, vector<64x256xbf16>, vector<32x256xf32> -> vector<32x256xf32>
    %c0_26 = arith.constant 0 : index
    %c0_27 = arith.constant 0 : index
    %31 = vector.load %arg7[%c0_26, %c0_27] : memref<32x64xbf16, #tpu.memory_space<vmem>>, vector<32x64xbf16>
    %cst_28 = arith.constant dense<0.000000e+00> : vector<32x256xf32>
    %32 = tpu.matmul %31, %28, %cst_28 {dimension_numbers = #tpu.dot_dimension_numbers<[1], [0], [0], [1], [0, 0, 1, 1], [], []>} : vector<32x64xbf16>, vector<64x256xbf16>, vector<32x256xf32> -> vector<32x256xf32>
    %33 = vector.broadcast %3 : vector<32x1xf32> to vector<32x256xf32>
    %34 = arith.addf %32, %33 : vector<32x256xf32>
    %35 = vector.extract_strided_slice %24 {offsets = [0, 0], sizes = [128, 256], strides = [1, 1]} : vector<256x256xf32> to vector<128x256xf32>
    %36 = vector.extract_strided_slice %24 {offsets = [128, 0], sizes = [128, 256], strides = [1, 1]} : vector<256x256xf32> to vector<128x256xf32>
    %37 = vector.broadcast %1 : vector<128x1xf32> to vector<128x256xf32>
    %38 = arith.addf %36, %37 : vector<128x256xf32>
    %39 = arith.divf %35, %38 : vector<128x256xf32>
    %40 = arith.truncf %39 : vector<128x256xf32> to vector<128x256xbf16>
    %41 = vector.extract_strided_slice %27 {offsets = [0, 0], sizes = [128, 256], strides = [1, 1]} : vector<256x256xf32> to vector<128x256xf32>
    %42 = vector.extract_strided_slice %27 {offsets = [128, 0], sizes = [128, 256], strides = [1, 1]} : vector<256x256xf32> to vector<128x256xf32>
    %43 = vector.broadcast %2 : vector<128x1xf32> to vector<128x256xf32>
    %44 = arith.addf %42, %43 : vector<128x256xf32>
    %45 = arith.divf %41, %44 : vector<128x256xf32>
    %46 = arith.truncf %45 : vector<128x256xf32> to vector<128x256xbf16>
    %47 = arith.divf %30, %34 : vector<32x256xf32>
    %48 = arith.truncf %47 : vector<32x256xf32> to vector<32x256xbf16>
    %49 = tpu.concatenate %40, %46, %48 in 0 : vector<128x256xbf16>, vector<128x256xbf16>, vector<32x256xbf16> -> vector<288x256xbf16>
    %c0_29 = arith.constant 0 : index
    %c0_30 = arith.constant 0 : index
    %50 = vector.load %arg8[%c0_29, %c0_30] : memref<144x288xbf16, #tpu.memory_space<vmem>>, vector<144x288xbf16>
    %cst_31 = arith.constant dense<0.000000e+00> : vector<144x256xf32>
    %51 = tpu.matmul %50, %49, %cst_31 {dimension_numbers = #tpu.dot_dimension_numbers<[1], [0], [0], [1], [0, 0, 1, 1], [], []>} : vector<144x288xbf16>, vector<288x256xbf16>, vector<144x256xf32> -> vector<144x256xf32>
    %c0_32 = arith.constant 0 : index
    %c0_33 = arith.constant 0 : index
    %52 = vector.load %arg9[%c0_32, %c0_33] : memref<144x90xbf16, #tpu.memory_space<vmem>>, vector<144x90xbf16>
    %cst_34 = arith.constant dense<0.000000e+00> : vector<144x256xf32>
    %53 = tpu.matmul %52, %18, %cst_34 {dimension_numbers = #tpu.dot_dimension_numbers<[1], [0], [0], [1], [0, 0, 1, 1], [], []>} : vector<144x90xbf16>, vector<90x256xbf16>, vector<144x256xf32> -> vector<144x256xf32>
    %54 = arith.addf %51, %53 : vector<144x256xf32>
    %55 = vector.broadcast %4 : vector<144x1xf32> to vector<144x256xf32>
    %56 = arith.addf %54, %55 : vector<144x256xf32>
    %cst_35 = arith.constant 0.000000e+00 : f32
    %57 = vector.broadcast %cst_35 : f32 to vector<144x256xf32>
    %58 = arith.maximumf %56, %57 : vector<144x256xf32>
    %c0_36 = arith.constant 0 : index
    %c0_37 = arith.constant 0 : index
    %59 = vector.load %arg10[%c0_36, %c0_37] : memref<72x144xbf16, #tpu.memory_space<vmem>>, vector<72x144xbf16>
    %60 = arith.truncf %58 : vector<144x256xf32> to vector<144x256xbf16>
    %cst_38 = arith.constant dense<0.000000e+00> : vector<72x256xf32>
    %61 = tpu.matmul %59, %60, %cst_38 {dimension_numbers = #tpu.dot_dimension_numbers<[1], [0], [0], [1], [0, 0, 1, 1], [], []>} : vector<72x144xbf16>, vector<144x256xbf16>, vector<72x256xf32> -> vector<72x256xf32>
    %62 = vector.broadcast %5 : vector<72x1xf32> to vector<72x256xf32>
    %63 = arith.addf %61, %62 : vector<72x256xf32>
    %cst_39 = arith.constant 0.000000e+00 : f32
    %64 = vector.broadcast %cst_39 : f32 to vector<72x256xf32>
    %65 = arith.maximumf %63, %64 : vector<72x256xf32>
    %c0_40 = arith.constant 0 : index
    %c0_41 = arith.constant 0 : index
    %66 = vector.load %arg11[%c0_40, %c0_41] : memref<36x72xbf16, #tpu.memory_space<vmem>>, vector<36x72xbf16>
    %67 = arith.truncf %65 : vector<72x256xf32> to vector<72x256xbf16>
    %cst_42 = arith.constant dense<0.000000e+00> : vector<36x256xf32>
    %68 = tpu.matmul %66, %67, %cst_42 {dimension_numbers = #tpu.dot_dimension_numbers<[1], [0], [0], [1], [0, 0, 1, 1], [], []>} : vector<36x72xbf16>, vector<72x256xbf16>, vector<36x256xf32> -> vector<36x256xf32>
    %69 = vector.broadcast %6 : vector<36x1xf32> to vector<36x256xf32>
    %70 = arith.addf %68, %69 : vector<36x256xf32>
    %cst_43 = arith.constant 0.000000e+00 : f32
    %71 = vector.broadcast %cst_43 : f32 to vector<36x256xf32>
    %72 = arith.maximumf %70, %71 : vector<36x256xf32>
    %c0_44 = arith.constant 0 : index
    %c0_45 = arith.constant 0 : index
    %73 = vector.load %arg12[%c0_44, %c0_45] : memref<9x36xbf16, #tpu.memory_space<vmem>>, vector<9x36xbf16>
    %74 = arith.truncf %72 : vector<36x256xf32> to vector<36x256xbf16>
    %cst_46 = arith.constant dense<0.000000e+00> : vector<9x256xf32>
    %75 = tpu.matmul %73, %74, %cst_46 {dimension_numbers = #tpu.dot_dimension_numbers<[1], [0], [0], [1], [0, 0, 1, 1], [], []>} : vector<9x36xbf16>, vector<36x256xbf16>, vector<9x256xf32> -> vector<9x256xf32>
    %76 = vector.broadcast %7 : vector<9x1xf32> to vector<9x256xf32>
    %77 = arith.addf %75, %76 : vector<9x256xf32>
    %78 = vector.extract_strided_slice %77 {offsets = [0, 0], sizes = [1, 256], strides = [1, 1]} : vector<9x256xf32> to vector<1x256xf32>
    %79 = vector.extract_strided_slice %77 {offsets = [1, 0], sizes = [1, 256], strides = [1, 1]} : vector<9x256xf32> to vector<1x256xf32>
    %80 = arith.maximumf %78, %79 : vector<1x256xf32>
    %81 = vector.extract_strided_slice %77 {offsets = [2, 0], sizes = [1, 256], strides = [1, 1]} : vector<9x256xf32> to vector<1x256xf32>
    %82 = arith.maximumf %80, %81 : vector<1x256xf32>
    %83 = vector.extract_strided_slice %77 {offsets = [3, 0], sizes = [1, 256], strides = [1, 1]} : vector<9x256xf32> to vector<1x256xf32>
    %84 = vector.extract_strided_slice %77 {offsets = [4, 0], sizes = [1, 256], strides = [1, 1]} : vector<9x256xf32> to vector<1x256xf32>
    %85 = arith.maximumf %83, %84 : vector<1x256xf32>
    %86 = vector.extract_strided_slice %77 {offsets = [5, 0], sizes = [1, 256], strides = [1, 1]} : vector<9x256xf32> to vector<1x256xf32>
    %87 = arith.maximumf %85, %86 : vector<1x256xf32>
    %88 = vector.extract_strided_slice %77 {offsets = [6, 0], sizes = [1, 256], strides = [1, 1]} : vector<9x256xf32> to vector<1x256xf32>
    %89 = vector.extract_strided_slice %77 {offsets = [7, 0], sizes = [1, 256], strides = [1, 1]} : vector<9x256xf32> to vector<1x256xf32>
    %90 = arith.maximumf %88, %89 : vector<1x256xf32>
    %91 = vector.extract_strided_slice %77 {offsets = [8, 0], sizes = [1, 256], strides = [1, 1]} : vector<9x256xf32> to vector<1x256xf32>
    %92 = arith.maximumf %90, %91 : vector<1x256xf32>
    %c0_47 = arith.constant 0 : index
    %c0_48 = arith.constant 0 : index
    %93 = vector.load %arg14[%c0_47, %c0_48] : memref<3x256xf32, #tpu.memory_space<vmem>>, vector<1x256xf32>
    tpu.vector_store %arg14[%c0_47, %c0_48], %82 {strides = array<i32>} : memref<3x256xf32, #tpu.memory_space<vmem>>, vector<1x256xf32>,
    %c1 = arith.constant 1 : index
    %c0_49 = arith.constant 0 : index
    %94 = vector.load %arg14[%c1, %c0_49] : memref<3x256xf32, #tpu.memory_space<vmem>>, vector<1x256xf32>
    tpu.vector_store %arg14[%c1, %c0_49], %87 {strides = array<i32>} : memref<3x256xf32, #tpu.memory_space<vmem>>, vector<1x256xf32>,
    %c2 = arith.constant 2 : index
    %c0_50 = arith.constant 0 : index
    %95 = vector.load %arg14[%c2, %c0_50] : memref<3x256xf32, #tpu.memory_space<vmem>>, vector<1x256xf32>
    tpu.vector_store %arg14[%c2, %c0_50], %92 {strides = array<i32>} : memref<3x256xf32, #tpu.memory_space<vmem>>, vector<1x256xf32>,
    %96 = arith.subf %82, %87 : vector<1x256xf32>
    %97 = arith.negf %96 : vector<1x256xf32>
    %98 = math.exp %97 : vector<1x256xf32>
    %cst_51 = arith.constant 1.000000e+00 : f32
    %99 = vector.broadcast %cst_51 : f32 to vector<1x256xf32>
    %100 = arith.addf %99, %98 : vector<1x256xf32>
    %101 = arith.divf %99, %100 : vector<1x256xf32>
    %cst_52 = arith.constant 2.500000e-01 : f32
    %102 = vector.broadcast %cst_52 : f32 to vector<1x256xf32>
    %103 = arith.subf %101, %102 : vector<1x256xf32>
    %cst_53 = arith.constant 7.500000e-01 : f32
    %104 = vector.broadcast %cst_53 : f32 to vector<1x256xf32>
    %105 = arith.subf %101, %104 : vector<1x256xf32>
    %106 = arith.mulf %103, %103 : vector<1x256xf32>
    %cst_54 = arith.constant -6.400000e+01 : f32
    %107 = vector.broadcast %cst_54 : f32 to vector<1x256xf32>
    %108 = arith.mulf %106, %107 : vector<1x256xf32>
    %109 = math.exp %108 : vector<1x256xf32>
    %110 = arith.mulf %105, %105 : vector<1x256xf32>
    %cst_55 = arith.constant -6.400000e+01 : f32
    %111 = vector.broadcast %cst_55 : f32 to vector<1x256xf32>
    %112 = arith.mulf %110, %111 : vector<1x256xf32>
    %113 = math.exp %112 : vector<1x256xf32>
    %114 = arith.mulf %109, %109 : vector<1x256xf32>
    %115 = arith.mulf %113, %113 : vector<1x256xf32>
    %116 = arith.mulf %114, %114 : vector<1x256xf32>
    %117 = arith.mulf %115, %115 : vector<1x256xf32>
    %cst_56 = arith.constant dense<0.000000e+00> : vector<1xf32>
    %118 = vector.multi_reduction <add>, %116, %cst_56 [1] : vector<1x256xf32> to vector<1xf32>
    %119 = vector.shape_cast %118 : vector<1xf32> to vector<1x1xf32>
    %cst_57 = arith.constant dense<0.000000e+00> : vector<1xf32>
    %120 = vector.multi_reduction <add>, %109, %cst_57 [1] : vector<1x256xf32> to vector<1xf32>
    %121 = vector.shape_cast %120 : vector<1xf32> to vector<1x1xf32>
    %cst_58 = arith.constant dense<0.000000e+00> : vector<1xf32>
    %122 = vector.multi_reduction <add>, %117, %cst_58 [1] : vector<1x256xf32> to vector<1xf32>
    %123 = vector.shape_cast %122 : vector<1xf32> to vector<1x1xf32>
    %cst_59 = arith.constant dense<0.000000e+00> : vector<1xf32>
    %124 = vector.multi_reduction <add>, %113, %cst_59 [1] : vector<1x256xf32> to vector<1xf32>
    %125 = vector.shape_cast %124 : vector<1xf32> to vector<1x1xf32>
    %126 = tpu.concatenate %119, %121, %123, %125 in 1 : vector<1x1xf32>, vector<1x1xf32>, vector<1x1xf32>, vector<1x1xf32> -> vector<1x4xf32>
    %127 = vector.shape_cast %126 : vector<1x4xf32> to vector<1x1x4xf32>
    %128 = vector.shape_cast %127 : vector<1x1x4xf32> to vector<1x1x4xf32>
    %129 = vector.broadcast %128 : vector<1x1x4xf32> to vector<1x8x4xf32>
    %c0_60 = arith.constant 0 : index
    %c0_61 = arith.constant 0 : index
    %c0_62 = arith.constant 0 : index
    %130 = vector.load %arg15[%c0_60, %c0_61, %c0_62] : memref<1x8x4xf32, #tpu.memory_space<vmem>>, vector<1x8x4xf32>
    tpu.vector_store %arg15[%c0_60, %c0_61, %c0_62], %129 {strides = array<i32>} : memref<1x8x4xf32, #tpu.memory_space<vmem>>, vector<1x8x4xf32>,
    return
  }
  func.func @transform_0(%arg0: i32) -> (i32, i32) {
    %c0_i32 = arith.constant 0 : i32
    %c0_i32_0 = arith.constant 0 : i32
    return %c0_i32, %arg0 : i32, i32
  }
  func.func @transform_1(%arg0: i32) -> (i32, i32) {
    %c0_i32 = arith.constant 0 : i32
    %c0_i32_0 = arith.constant 0 : i32
    %c0_i32_1 = arith.constant 0 : i32
    return %c0_i32, %c0_i32_0 : i32, i32
  }
  func.func @transform_2(%arg0: i32) -> (i32, i32) {
    %c0_i32 = arith.constant 0 : i32
    %c0_i32_0 = arith.constant 0 : i32
    %c0_i32_1 = arith.constant 0 : i32
    return %c0_i32, %c0_i32_0 : i32, i32
  }
  func.func @transform_3(%arg0: i32) -> (i32, i32) {
    %c0_i32 = arith.constant 0 : i32
    %c0_i32_0 = arith.constant 0 : i32
    %c0_i32_1 = arith.constant 0 : i32
    return %c0_i32, %c0_i32_0 : i32, i32
  }
  func.func @transform_4(%arg0: i32) -> (i32, i32) {
    %c0_i32 = arith.constant 0 : i32
    %c0_i32_0 = arith.constant 0 : i32
    %c0_i32_1 = arith.constant 0 : i32
    return %c0_i32, %c0_i32_0 : i32, i32
  }
  func.func @transform_5(%arg0: i32) -> (i32, i32) {
    %c0_i32 = arith.constant 0 : i32
    %c0_i32_0 = arith.constant 0 : i32
    %c0_i32_1 = arith.constant 0 : i32
    return %c0_i32, %c0_i32_0 : i32, i32
  }
  func.func @transform_6(%arg0: i32) -> (i32, i32) {
    %c0_i32 = arith.constant 0 : i32
    %c0_i32_0 = arith.constant 0 : i32
    %c0_i32_1 = arith.constant 0 : i32
    return %c0_i32, %c0_i32_0 : i32, i32
  }
  func.func @transform_7(%arg0: i32) -> (i32, i32) {
    %c0_i32 = arith.constant 0 : i32
    %c0_i32_0 = arith.constant 0 : i32
    %c0_i32_1 = arith.constant 0 : i32
    return %c0_i32, %c0_i32_0 : i32, i32
  }
  func.func @transform_8(%arg0: i32) -> (i32, i32) {
    %c0_i32 = arith.constant 0 : i32
    %c0_i32_0 = arith.constant 0 : i32
    %c0_i32_1 = arith.constant 0 : i32
    return %c0_i32, %c0_i32_0 : i32, i32
  }
  func.func @transform_9(%arg0: i32) -> (i32, i32) {
    %c0_i32 = arith.constant 0 : i32
    %c0_i32_0 = arith.constant 0 : i32
    %c0_i32_1 = arith.constant 0 : i32
    return %c0_i32, %c0_i32_0 : i32, i32
  }
  func.func @transform_10(%arg0: i32) -> (i32, i32) {
    %c0_i32 = arith.constant 0 : i32
    %c0_i32_0 = arith.constant 0 : i32
    %c0_i32_1 = arith.constant 0 : i32
    return %c0_i32, %c0_i32_0 : i32, i32
  }
  func.func @transform_11(%arg0: i32) -> (i32, i32) {
    %c0_i32 = arith.constant 0 : i32
    %c0_i32_0 = arith.constant 0 : i32
    %c0_i32_1 = arith.constant 0 : i32
    return %c0_i32, %c0_i32_0 : i32, i32
  }
  func.func @transform_12(%arg0: i32) -> (i32, i32) {
    %c0_i32 = arith.constant 0 : i32
    %c0_i32_0 = arith.constant 0 : i32
    %c0_i32_1 = arith.constant 0 : i32
    return %c0_i32, %c0_i32_0 : i32, i32
  }
  func.func @transform_13(%arg0: i32) -> (i32, i32) {
    %c0_i32 = arith.constant 0 : i32
    %c0_i32_0 = arith.constant 0 : i32
    return %c0_i32, %arg0 : i32, i32
  }
  func.func @transform_14(%arg0: i32) -> (i32, i32, i32) {
    %c0_i32 = arith.constant 0 : i32
    %c0_i32_0 = arith.constant 0 : i32
    %c0_i32_1 = arith.constant 0 : i32
    return %arg0, %c0_i32, %c0_i32_0 : i32, i32, i32
  }
}

</mosaic_0001>

<bundles_post_ra>
// kernel: cloud_model_forward.1
= control target key start
LH: loop header
LB: loop body
LE: loop exit
PB: predicated region body
PF: predicated region fallthrough
CT: control target
= control target key end

     0   :  { %s7541_s29 = smov 0   ;;  %s11940_s0 = inlined_call_operand.vmem [shape: f32[4,512], index: 0, kind: input, shape index: {}]   ;;  %s11941_s1 = inlined_call_operand.vmem [shape: bf16[90,4], index: 1, kind: input, shape index: {}]   ;;  %s11942_s2 = inlined_call_operand.vmem [shape: bf16[576,90], index: 2, kind: input, shape index: {}]   ;;  %s11943_s3 = inlined_call_operand.vmem [shape: bf16[256,256], index: 3, kind: input, shape index: {}]   ;;  %s11944_s4 = inlined_call_operand.vmem [shape: bf16[256,256], index: 4, kind: input, shape index: {}]   ;;  %s11945_s5 = inlined_call_operand.vmem [shape: bf16[32,64], index: 5, kind: input, shape index: {}]   ;;  %s11946_s6 = inlined_call_operand.vmem [shape: bf16[32,64], index: 6, kind: input, shape index: {}]   ;;  %s11947_s7 = inlined_call_operand.vmem [shape: bf16[144,288], index: 7, kind: input, shape index: {}]   ;;  %s11948_s8 = inlined_call_operand.vmem [shape: bf16[144,90], index: 8, kind: input, shape index: {}]   ;;  %s11949_s9 = inlined_call_operand.vmem [shape: bf16[72,144], index: 9, kind: input, shape index: {}]   ;;  %s11950_s10 = inlined_call_operand.vmem [shape: bf16[36,72], index: 10, kind: input, shape index: {}]   ;;  %s11951_s11 = inlined_call_operand.vmem [shape: bf16[9,36], index: 11, kind: input, shape index: {}]   ;;  %s11952_s12 = inlined_call_operand.vmem [shape: f32[656,1], index: 12, kind: input, shape index: {}]   ;;  %s11953_s13 = inlined_call_operand.vmem [shape: f32[3,512], index: 13, kind: output, shape index: {0}]   ;;  %s11954_s14 = inlined_call_operand.vmem [shape: f32[2,8,4], index: 14, kind: output, shape index: {1}]  }
   0x1 LB: > { %s7547_s30 = sadd.s32 4294967295, %s7463_s29   ;;  %p6338_p0 = scmp.ge.s32.totalorder %s7463_s29, 1  ;;  %s7463_s29 = sphi %s7541_s29, %s25_s29  }
   0x2   : > { %p416_p1 = scmp.lt.s32.totalorder %s7463_s29, 3 }
   0x4   : > { %p417_p2 = pnand %p6338_p0, %p416_p1 }
   0x6   : > { %420 = sbr.rel (%p417_p2) target bundleno = 2793 (0xae9), region = 72 }
   0xb   : > { %v493_v0 = vld [vmem:[%s11952_s12 + $0x50] sm:$0xff]  ;;  %v491_v1 = vld [vmem:[%s11952_s12 + $0x40] sm:$0xff]  ;;  %s6339_s21 = sshll.u32 %s7547_s30, 1  ;;  %v7465_v3 = vmov 0   ;;  %v492_v4 = vld [vmem:[%s11952_s12 + $0x48] sm:$0xff]  ;;  %vm696_vm0 = vcmask 1041408  }
   0xc   : > { %v489_v2 = vld [vmem:[%s11952_s12 + $0x30] sm:$0xff]  ;;  %7296 = vset.pattern.permute.xlu2 %v7465_v3  ;;  %7295 = vset.pattern.permute.xlu1 %v7465_v3  ;;  %p467_p3 = scmp.lt.s32.totalorder %s6339_s21, 3  ;;  %v494_v6 = vld [vmem:[%s11952_s12 + $0x58] sm:$0x3]  ;;  %v488_v9 = vld [vmem:[%s11952_s12 + $0x28] sm:$0xff]  ;;  %vm677_vm1 = vcmask 31744  }
   0xd   : > { %7294 = vset.pattern.permute.xlu0 %v7465_v3  ;;  %629 = vperm.xlu1 %7295, %v491_v1   ;;  %v490_v7 = vld [vmem:[%s11952_s12 + $0x38] sm:$0xff]  ;;  %v487_v10 = vld [vmem:[%s11952_s12 + $0x20] sm:$0xff]  ;;  %v485_v11 = vld [vmem:[%s11952_s12 + $0x10] sm:$0xff]  ;;  %vm1178_vm2 = vcmask 1044480   ;;  %vm1069_vm3 = vcmask 736256   ;;  %p478_p4 = scmp.lt.s32.totalorder %s7547_s30, 1 }
   0xe   : > { %639 = vperm.xlu0 %7294, %v493_v0   ;;  %619 = vperm.xlu2 %7296, %v489_v2   ;;  %s12698_s21 = smov (!%p467_p3, %s6339_s21), 3  ;;  %v7128_v18 = vld [vmem:[%s11941_s1] sm:$0xff]  ;;  %v486_v20 = vld [vmem:[%s11952_s12 + $0x18] sm:$0xff]  ;;  %v484_v21 = vld [vmem:[%s11952_s12 + $0x8] sm:$0xff] }
   0xf   : > { %s6340_s22 = sshll.u32 %s12698_s21, 2  ;;  %v483_v19 = vld [vmem:[%s11952_s12] sm:$0xff]  ;;  %v510_v22 = vld [vmem:[%s11952_s12 + $0xd8] sm:$0xff]  ;;  %v509_v23 = vld [vmem:[%s11952_s12 + $0xd0] sm:$0xff]  ;;  %s12700_s30 = smov (!%p478_p4, %s7547_s30), 1 }
  0x10   : > { %s470_s25 = scalar_lea.vmem %s11940_s0, %s6340_s22  ;;  %v525_v24 = vld [vmem:[%s11952_s12 + $0x150] sm:$0xff]  ;;  %v7129_v25 = vld [vmem:[%s11941_s1 + $0x8] sm:$0xff]  ;;  %v507_v26 = vld [vmem:[%s11952_s12 + $0xc0] sm:$0xff]  ;;  %s11911_s20 = scalar_lea.vmem %s11953_s13, %s6340_s22 }
  0x11   : > { %v565_v5 = vld [vmem:[%s470_s25] sm:$0xff]  ;;  %v526_v27 = vld [vmem:[%s11952_s12 + $0x158] sm:$0xff]  ;;  %v508_v28 = vld [vmem:[%s11952_s12 + $0xc8] sm:$0xff]  ;;  %s6343_s21 = sshll.u32 %s12700_s30, 3 }
  0x12   : > { %v566_v8 = vmax.f32 %v565_v5, 0.0  ;;  %v524_v29 = vld [vmem:[%s11952_s12 + $0x148] sm:$0xff]  ;;  %v523_v30 = vld [vmem:[%s11952_s12 + $0x140] sm:$0xff]  ;;  %v505_v31 = vld [vmem:[%s11952_s12 + $0xb0] sm:$0xff]  ;;  %s481_s24 = scalar_lea.vmem %s11954_s14, %s6343_s21 }
  0x13   : > { %v7130_v32 = vld [vmem:[%s11941_s1 + $0x10] sm:$0xff]  ;;  %v506_v34 = vld [vmem:[%s11952_s12 + $0xb8] sm:$0xff]  ;;  %v504_v36 = vld [vmem:[%s11952_s12 + $0xa8] sm:$0xff] }
  0x14   : > { %568 = vst [vmem:[#allocation1] ss:$2 sm:$0xff] %v566_v8  ;;  %v521_v33 = vld [vmem:[%s11952_s12 + $0x130] sm:$0xff]  ;;  %v522_v35 = vld [vmem:[%s11952_s12 + $0x138] sm:$0xff]  ;;  %v503_v37 = vld [vmem:[%s11952_s12 + $0xa0] sm:$0xff] }
  0x15   : > { %634 = vperm.xlu1 %7295, %v492_v4   ;;  %v519_v38 = vld [vmem:[%s11952_s12 + $0x120] sm:$0xff]  ;;  %v7131_v39 = vld [vmem:[%s11941_s1 + $0x18] sm:$0xff]  ;;  %v501_v40 = vld [vmem:[%s11952_s12 + $0x90] sm:$0xff] }
  0x16   : > { %644 = vperm.xlu0 %7294, %v494_v6   ;;  %624 = vperm.xlu2 %7296, %v490_v7   ;;  %v520_v41 = vld [vmem:[%s11952_s12 + $0x128] sm:$0xff]  ;;  %v502_v42 = vld [vmem:[%s11952_s12 + $0x98] sm:$0xff]  ;;  %v517_v44 = vld [vmem:[%s11952_s12 + $0x110] sm:$0xff] }
  0x17   : > { %v518_v43 = vld [vmem:[%s11952_s12 + $0x118] sm:$0xff]  ;;  %v499_v45 = vld [vmem:[%s11952_s12 + $0x80] sm:$0xff]  ;;  %v500_v48 = vld [vmem:[%s11952_s12 + $0x88] sm:$0xff] }
  0x18   : > { %v7132_v46 = vld [vmem:[%s11941_s1 + $0x20] sm:$0xff]  ;;  %v516_v49 = vld [vmem:[%s11952_s12 + $0x108] sm:$0xff]  ;;  %v498_v50 = vld [vmem:[%s11952_s12 + $0x78] sm:$0xff] }
  0x19   : > { %v515_v47 = vld [vmem:[%s11952_s12 + $0x100] sm:$0xff]  ;;  %v497_v51 = vld [vmem:[%s11952_s12 + $0x70] sm:$0xff]  ;;  %v6366_v53 = vld [vmem:[%s11941_s1 + $0x28] sm:$0xf] }
  0x1a   : > { %v513_v52 = vld [vmem:[%s11952_s12 + $0xf0] sm:$0xff]  ;;  %v7133_v54 = vld [vmem:[%s11941_s1 + $0x28] sm:$0x10]  ;;  %v495_v56 = vld [vmem:[%s11952_s12 + $0x60] sm:$0xff] }
  0x1b   : > { %v569_v12 = vld.sshfl [vmem:[#allocation1] sm:$0xff pattern:$0x75316420]  ;;  %v570_v13 = vld.sshfl [vmem:[#allocation1 + $0x8] sm:$0xff pattern:$0x75316420]  ;;  %v6367_v55 = vor.u32 %v7133_v54, %v6366_v53 }
  0x1c   : > { %v573_v14 = vpack.c.bf16 %v569_v12, %v569_v12  ;;  %v574_v15 = vpack.c.bf16 %v570_v13, %v570_v13  ;;  %v514_v57 = vld [vmem:[%s11952_s12 + $0xf8] sm:$0xff]  ;;  %v496_v58 = vld [vmem:[%s11952_s12 + $0x68] sm:$0xff]  ;;  %v511_v60 = vld [vmem:[%s11952_s12 + $0xe0] sm:$0xff] }
  0x1d   : > { %614 = vperm.xlu1 %7295, %v488_v9   ;;  %v512_v59 = vld [vmem:[%s11952_s12 + $0xe8] sm:$0xff]  ;;  %v529_v61 = vld [vmem:[%s11952_s12 + $0x170] sm:$0xff]  ;;  %v527_v62 = vld [vmem:[%s11952_s12 + $0x160] sm:$0xff] }
  0x1e   : > { %609 = vperm.xlu0 %7294, %v487_v10   ;;  %599 = vperm.xlu2 %7296, %v485_v11   ;;  %v698_v16 = vsel %vm696_vm0, %v573_v14, 0  ;;  %v701_v17 = vsel %vm696_vm0, %v574_v15, 0  ;;  %v530_v63 = vld [vmem:[%s11952_s12 + $0x178] sm:$0xff]  ;;  %v528_v0 = vld [vmem:[%s11952_s12 + $0x168] sm:$0xff]  ;;  %v545_v2 = vld [vmem:[%s11952_s12 + $0x1f0] sm:$0xff] }
  0x1f   : > { %710 = vmatpush.bf16.msra.mxu0 %v698_v16  ;;  %749 = vmatpush.bf16.msra.mxu1 %v701_v17  ;;  %v546_v1 = vld [vmem:[%s11952_s12 + $0x1f8] sm:$0xff]  ;;  %v543_v3 = vld [vmem:[%s11952_s12 + $0x1e0] sm:$0xff]  ;;  %v541_v4 = vld [vmem:[%s11952_s12 + $0x1d0] sm:$0xff] }
  0x20   : > { %v544_v5 = vld [vmem:[%s11952_s12 + $0x1e8] sm:$0xff]  ;;  %v542_v6 = vld [vmem:[%s11952_s12 + $0x1d8] sm:$0xff]  ;;  %v539_v8 = vld [vmem:[%s11952_s12 + $0x1c0] sm:$0xff] }
  0x21   : > { %v540_v7 = vld [vmem:[%s11952_s12 + $0x1c8] sm:$0xff]  ;;  %v537_v9 = vld [vmem:[%s11952_s12 + $0x1b0] sm:$0xff]  ;;  %v535_v12 = vld [vmem:[%s11952_s12 + $0x1a0] sm:$0xff] }
  0x22   : > { %6368 = vmatmul.msk.bf16.vlgmr.msra.gmra.mxu0 %vm677_vm1, %v7128_v18  ;;  %6374 = vmatmul.msk.bf16.vlgmr.msra.gmra.mxu1 %vm677_vm1, %v7128_v18  ;;  %v538_v13 = vld [vmem:[%s11952_s12 + $0x1b8] sm:$0xff]  ;;  %v536_v14 = vld [vmem:[%s11952_s12 + $0x1a8] sm:$0xff]  ;;  %v533_v18 = vld [vmem:[%s11952_s12 + $0x190] sm:$0xff] }
  0x23   : > { %v534_v17 = vld [vmem:[%s11952_s12 + $0x198] sm:$0xff] }
  0x25   : > { %589 = vperm.xlu1 %7295, %v483_v19   ;;  %v531_v19 = vld [vmem:[%s11952_s12 + $0x180] sm:$0xff] }
  0x26   : > { %604 = vperm.xlu0 %7294, %v486_v20   ;;  %594 = vperm.xlu2 %7296, %v484_v21  }
  0x2d   : > { %3305 = vperm.xlu1 %7295, %v510_v22   ;;  %v547_v22 = vld [vmem:[%s11952_s12 + $0x200] sm:$0xff] }
  0x2e   : > { %3300 = vperm.xlu0 %7294, %v509_v23   ;;  %3908 = vperm.xlu2 %7296, %v525_v24   ;;  %v532_v23 = vld [vmem:[%s11952_s12 + $0x188] sm:$0xff] }
  0x2f   : > { %v548_v24 = vld [vmem:[%s11952_s12 + $0x208] sm:$0xff] }
  0x32   : > { %6369 = vmatmul.msk.bf16.gmra.mxu0 %vm677_vm1, %v7129_v25  ;;  %6375 = vmatmul.msk.bf16.gmra.mxu1 %vm677_vm1, %v7129_v25 }
  0x35   : > { %3290 = vperm.xlu1 %7295, %v507_v26  }
  0x36   : > { %3913 = vperm.xlu0 %7294, %v526_v27   ;;  %3295 = vperm.xlu2 %7296, %v508_v28   ;;  %v555_v27 = vld [vmem:[%s11952_s12 + $0x240] sm:$0xff]  ;;  %v557_v28 = vld [vmem:[%s11952_s12 + $0x250] sm:$0xff] }
  0x3d   : > { %3903 = vperm.xlu1 %7295, %v524_v29   ;;  %v556_v29 = vld [vmem:[%s11952_s12 + $0x248] sm:$0xff] }
  0x3e   : > { %3898 = vperm.xlu0 %7294, %v523_v30   ;;  %3280 = vperm.xlu2 %7296, %v505_v31  }
  0x42   : > { %6370 = vmatmul.msk.bf16.gmra.mxu0 %vm677_vm1, %v7130_v32  ;;  %6376 = vmatmul.msk.bf16.gmra.mxu1 %vm677_vm1, %v7130_v32  ;;  %v554_v32 = vld [vmem:[%s11952_s12 + $0x238] sm:$0xff] }
  0x45   : > { %3888 = vperm.xlu1 %7295, %v521_v33   ;;  %v553_v33 = vld [vmem:[%s11952_s12 + $0x230] sm:$0xff] }
  0x46   : > { %3285 = vperm.xlu0 %7294, %v506_v34   ;;  %3893 = vperm.xlu2 %7296, %v522_v35   ;;  %v551_v34 = vld [vmem:[%s11952_s12 + $0x220] sm:$0xff] }
  0x4d   : > { %3275 = vperm.xlu1 %7295, %v504_v36  }
  0x4e   : > { %3270 = vperm.xlu0 %7294, %v503_v37   ;;  %3878 = vperm.xlu2 %7296, %v519_v38   ;;  %v549_v37 = vld [vmem:[%s11952_s12 + $0x210] sm:$0xff]  ;;  %v552_v38 = vld [vmem:[%s11952_s12 + $0x228] sm:$0xff] }
  0x52   : > { %6371 = vmatmul.msk.bf16.gmra.mxu0 %vm677_vm1, %v7131_v39  ;;  %6377 = vmatmul.msk.bf16.gmra.mxu1 %vm677_vm1, %v7131_v39  ;;  %v550_v39 = vld [vmem:[%s11952_s12 + $0x218] sm:$0xff] }
  0x55   : > { %3260 = vperm.xlu1 %7295, %v501_v40  }
  0x56   : > { %3883 = vperm.xlu0 %7294, %v520_v41   ;;  %3265 = vperm.xlu2 %7296, %v502_v42   ;;  %v560_v42 = vld [vmem:[%s11952_s12 + $0x268] sm:$0xff] }
  0x5d   : > { %3873 = vperm.xlu1 %7295, %v518_v43   ;;  %v562_v43 = vld [vmem:[%s11952_s12 + $0x278] sm:$0xf] }
  0x5e   : > { %3868 = vperm.xlu0 %7294, %v517_v44   ;;  %3250 = vperm.xlu2 %7296, %v499_v45   ;;  %v561_v44 = vld [vmem:[%s11952_s12 + $0x270] sm:$0xff] }
  0x62   : > { %6372 = vmatmul.msk.bf16.gmra.mxu0 %vm677_vm1, %v7132_v46  ;;  %6378 = vmatmul.msk.bf16.gmra.mxu1 %vm677_vm1, %v7132_v46 }
  0x65   : > { %3858 = vperm.xlu1 %7295, %v515_v47   ;;  %v559_v47 = vld [vmem:[%s11952_s12 + $0x260] sm:$0xff] }
  0x66   : > { %3255 = vperm.xlu0 %7294, %v500_v48   ;;  %3863 = vperm.xlu2 %7296, %v516_v49   ;;  %v558_v48 = vld [vmem:[%s11952_s12 + $0x258] sm:$0xff]  ;;  %v563_v49 = vld [vmem:[%s11952_s12 + $0x280] sm:$0xff] }
  0x6d   : > { %3245 = vperm.xlu1 %7295, %v498_v50  }
  0x6e   : > { %3240 = vperm.xlu0 %7294, %v497_v51   ;;  %3848 = vperm.xlu2 %7296, %v513_v52   ;;  %v564_v52 = vld [vmem:[%s11952_s12 + $0x288] sm:$0x1] }
  0x72   : > { %6373 = vmatmul.msk.bf16.gmra.mxu0 %vm677_vm1, %v6367_v55  ;;  %6379 = vmatmul.msk.bf16.gmra.mxu1 %vm677_vm1, %v6367_v55 }
  0x75   : > { %3230 = vperm.xlu1 %7295, %v495_v56   ;;  %v620_v56 = vpop.permute.xlu2 %619 }
  0x76   : > { %3853 = vperm.xlu0 %7294, %v514_v57   ;;  %3235 = vperm.xlu2 %7296, %v496_v58  }
  0x7d   : > { %3843 = vperm.xlu1 %7295, %v512_v59  }
  0x7e   : > { %3838 = vperm.xlu0 %7294, %v511_v60   ;;  %3166 = vperm.xlu2 %7296, %v529_v61   ;;  %v625_v61 = vpop.permute.xlu2 %624 }
  0x7f   : > { %v630_v57 = vpop.permute.xlu1 %629 }
  0x80   : > { %v640_v53 = vpop.permute.xlu0 %639 }
  0x85   : > { %3156 = vperm.xlu1 %7295, %v527_v62  }
  0x86   : > { %3171 = vperm.xlu0 %7294, %v530_v63   ;;  %3161 = vperm.xlu2 %7296, %v528_v0  }
  0x87   : > { %v635_v62 = vpop.permute.xlu1 %634 }
  0x88   : > { %v645_v58 = vpop.permute.xlu0 %644 }
  0x8d   : > { %5546 = vperm.xlu1 %7295, %v546_v1  }
  0x8e   : > { %5541 = vperm.xlu0 %7294, %v545_v2   ;;  %5531 = vperm.xlu2 %7296, %v543_v3  }
  0x95   : > { %5521 = vperm.xlu1 %7295, %v541_v4  }
  0x96   : > { %5536 = vperm.xlu0 %7294, %v544_v5   ;;  %5526 = vperm.xlu2 %7296, %v542_v6   ;;  %v610_v5 = vpop.permute.xlu0 %609 }
  0x9d   : > { %5516 = vperm.xlu1 %7295, %v540_v7  }
  0x9e   : > { %5511 = vperm.xlu0 %7294, %v539_v8   ;;  %5501 = vperm.xlu2 %7296, %v537_v9  }
  0x9f   : > { %v7766_v10 = vpop.f32.mrf.mxu0  ;;  %v7768_v11 = vpop.f32.mrf.mxu1 }
  0xa5   : > { %5491 = vperm.xlu1 %7295, %v535_v12  }
  0xa6   : > { %5506 = vperm.xlu0 %7294, %v538_v13   ;;  %5496 = vperm.xlu2 %7296, %v536_v14  }
  0xa7   : > { %v7779_v15 = vpop.f32.mrf.mxu0  ;;  %v7781_v16 = vpop.f32.mrf.mxu1 }
  0xad   : > { %5486 = vperm.xlu1 %7295, %v534_v17  }
  0xae   : > { %5481 = vperm.xlu0 %7294, %v533_v18   ;;  %5471 = vperm.xlu2 %7296, %v531_v19  }
  0xaf   : > { %v7792_v20 = vpop.f32.mrf.mxu0  ;;  %v7794_v21 = vpop.f32.mrf.mxu1 }
  0xb5   : > { %5551 = vperm.xlu1 %7295, %v547_v22   ;;  %v600_v22 = vpop.permute.xlu2 %599 }
  0xb6   : > { %5476 = vperm.xlu0 %7294, %v532_v23   ;;  %5556 = vperm.xlu2 %7296, %v548_v24  }
  0xb7   : > { %v7805_v25 = vpop.f32.mrf.mxu0  ;;  %v7807_v26 = vpop.f32.mrf.mxu1 }
  0xbd   : > { %5690 = vperm.xlu1 %7295, %v555_v27  }
  0xbe   : > { %5700 = vperm.xlu0 %7294, %v557_v28   ;;  %5695 = vperm.xlu2 %7296, %v556_v29  }
  0xbf   : > { %v7818_v30 = vpop.f32.mrf.mxu0  ;;  %v7820_v31 = vpop.f32.mrf.mxu1 }
  0xc5   : > { %5685 = vperm.xlu1 %7295, %v554_v32  }
  0xc6   : > { %5680 = vperm.xlu0 %7294, %v553_v33   ;;  %5670 = vperm.xlu2 %7296, %v551_v34   ;;  %v615_v33 = vpop.permute.xlu1 %614 }
  0xc7   : > { %v7831_v35 = vpop.f32.mrf.mxu0  ;;  %v7833_v36 = vpop.f32.mrf.mxu1 }
  0xcd   : > { %5660 = vperm.xlu1 %7295, %v549_v37  }
  0xce   : > { %5675 = vperm.xlu0 %7294, %v552_v38   ;;  %5665 = vperm.xlu2 %7296, %v550_v39  }
  0xcf   : > { %v727_v40 = vpop.f32.mrf.mxu0  ;;  %v766_v41 = vpop.f32.mrf.mxu1 }
  0xd0   : > { %v728_v34 = vadd.f32 %v727_v40, %v620_v56  ;;  %v767_v37 = vadd.f32 %v766_v41, %v620_v56  ;;  %v723_v40 = vadd.f32 %v7818_v30, %v610_v5  ;;  %v762_v41 = vadd.f32 %v7820_v31, %v610_v5  ;;  %v7134_v5 = vld [vmem:[%s11942_s2] sm:$0xff] }
  0xd1   : > { %v718_v30 = vadd.f32 %v7792_v20, %v600_v22  ;;  %v757_v31 = vadd.f32 %v7794_v21, %v600_v22 }
  0xd2   : > { %v789_v56 = vmax.f32 %v723_v40, 0.0 }
  0xd5   : > { %5938 = vperm.xlu1 %7295, %v560_v42   ;;  %v725_v42 = vadd.f32 %v7831_v35, %v615_v33 }
  0xd6   : > { %5948 = vperm.xlu0 %7294, %v562_v43   ;;  %5943 = vperm.xlu2 %7296, %v561_v44   ;;  %v764_v43 = vadd.f32 %v7833_v36, %v615_v33 }
  0xd7   : > { %v729_v45 = vpop.f32.mrf.mxu0  ;;  %v768_v46 = vpop.f32.mrf.mxu1 }
  0xd8   : > { %v730_v23 = vadd.f32 %v729_v45, %v625_v61  ;;  %v769_v24 = vadd.f32 %v768_v46, %v625_v61 }
  0xda   : > { %v795_v44 = vmax.f32 %v730_v23, 0.0  ;;  %v796_v45 = vmax.f32 %v769_v24, 0.0 }
  0xdd   : > { %5933 = vperm.xlu1 %7295, %v559_v47  }
  0xde   : > { %5928 = vperm.xlu0 %7294, %v558_v48   ;;  %6047 = vperm.xlu2 %7296, %v563_v49   ;;  %v605_v48 = vpop.permute.xlu0 %604  ;;  %v793_v49 = vmax.f32 %v728_v34, 0.0 }
  0xdf   : > { %v732_v50 = vpop.f32.mrf.mxu0  ;;  %v771_v51 = vpop.f32.mrf.mxu1  ;;  %v720_v35 = vadd.f32 %v7805_v25, %v605_v48  ;;  %v759_v36 = vadd.f32 %v7807_v26, %v605_v48 }
  0xe0   : > { %v733_v14 = vadd.f32 %v732_v50, %v630_v57  ;;  %v772_v17 = vadd.f32 %v771_v51, %v630_v57  ;;  %v794_v50 = vmax.f32 %v767_v37, 0.0  ;;  %v791_v51 = vmax.f32 %v725_v42, 0.0 }
  0xe1   : > { %v790_v57 = vmax.f32 %v762_v41, 0.0 }
  0xe2   : > { %v797_v38 = vmax.f32 %v733_v14, 0.0  ;;  %v798_v39 = vmax.f32 %v772_v17, 0.0  ;;  %v7141_v14 = vld [vmem:[%s11942_s2 + $0x38] sm:$0xff]  ;;  %v7142_v17 = vld [vmem:[%s11942_s2 + $0x40] sm:$0xff] }
  0xe6   : > { %6052 = vperm.xlu0 %7294, %v564_v52   ;;  %v792_v52 = vmax.f32 %v764_v43, 0.0 }
  0xe7   : > { %v734_v54 = vpop.f32.mrf.mxu0  ;;  %v773_v55 = vpop.f32.mrf.mxu1 }
  0xe8   : > { %v735_v6 = vadd.f32 %v734_v54, %v635_v62  ;;  %v774_v7 = vadd.f32 %v773_v55, %v635_v62  ;;  %v7885_v54 = vpack.c.bf16 %v796_v45, %v794_v50  ;;  %v595_v55 = vpop.permute.xlu2 %594  ;;  %v7895_v61 = vpack.c.bf16 %v792_v52, %v790_v57  ;;  %v590_v62 = vpop.permute.xlu1 %589 }
  0xe9   : > { %v715_v25 = vadd.f32 %v7779_v15, %v595_v55  ;;  %v754_v26 = vadd.f32 %v7781_v16, %v595_v55  ;;  %v713_v20 = vadd.f32 %v7766_v10, %v590_v62  ;;  %v752_v21 = vadd.f32 %v7768_v11, %v590_v62 }
  0xea   : > { %v799_v27 = vmax.f32 %v735_v6, 0.0  ;;  %v800_v28 = vmax.f32 %v774_v7, 0.0  ;;  %12062 = vst [vmem:[#allocation7_spill] sm:$0xff] %v7885_v54  ;;  %v7135_v6 = vld [vmem:[%s11942_s2 + $0x8] sm:$0xff]  ;;  %v7136_v7 = vld [vmem:[%s11942_s2 + $0x10] sm:$0xff] }
  0xeb   : > { %12064 = vst [vmem:[#allocation9_spill] sm:$0xff] %v7895_v61  ;;  %v783_v15 = vmax.f32 %v715_v25, 0.0 }
  0xec   : > { %v7873_v46 = vpack.c.bf16 %v799_v27, %v797_v38  ;;  %v7875_v47 = vpack.c.bf16 %v800_v28, %v798_v39  ;;  %v7143_v28 = vld [vmem:[%s11942_s2 + $0x48] sm:$0xff] }
  0xee   : > { %12059 = vst [vmem:[#allocation4_spill] sm:$0xff] %v7873_v46 }
  0xef   : > { %v737_v59 = vpop.f32.mrf.mxu0  ;;  %v776_v60 = vpop.f32.mrf.mxu1  ;;  %12060 = vst [vmem:[#allocation5_spill] sm:$0xff] %v7875_v47 }
  0xf0   : > { %v738_v63 = vadd.f32 %v737_v59, %v640_v53  ;;  %v777_v0 = vadd.f32 %v776_v60, %v640_v53  ;;  %v7883_v53 = vpack.c.bf16 %v795_v44, %v793_v49  ;;  %v788_v59 = vmax.f32 %v759_v36, 0.0  ;;  %v7144_v49 = vld [vmem:[%s11942_s2 + $0x50] sm:$0xff] }
  0xf1   : > { %v7893_v60 = vpack.c.bf16 %v791_v51, %v789_v56 }
  0xf2   : > { %v801_v8 = vmax.f32 %v738_v63, 0.0  ;;  %v802_v9 = vmax.f32 %v777_v0, 0.0  ;;  %12061 = vst [vmem:[#allocation6_spill] sm:$0xff] %v7883_v53  ;;  %v785_v63 = vmax.f32 %v718_v30, 0.0  ;;  %v786_v0 = vmax.f32 %v757_v31, 0.0 }
  0xf3   : > { %12063 = vst [vmem:[#allocation8_spill] sm:$0xff] %v7893_v60 }
  0xf7   : > { %v739_v1 = vpop.f32.mrf.mxu0  ;;  %v778_v2 = vpop.f32.mrf.mxu1 }
  0xf8   : > { %v740_v3 = vadd.f32 %v739_v1, %v645_v58  ;;  %v779_v4 = vadd.f32 %v778_v2, %v645_v58  ;;  %v787_v58 = vmax.f32 %v720_v35, 0.0  ;;  %v784_v1 = vmax.f32 %v754_v26, 0.0 }
  0xf9   : > { %v7903_v2 = vpack.c.bf16 %v788_v59, %v786_v0 }
  0xfa   : > { %v803_v12 = vmax.f32 %v740_v3, 0.0  ;;  %v804_v13 = vmax.f32 %v779_v4, 0.0  ;;  %v7901_v16 = vpack.c.bf16 %v787_v58, %v785_v63  ;;  %v781_v3 = vmax.f32 %v713_v20, 0.0  ;;  %v7145_v58 = vld [vmem:[%s11942_s2 + $0x58] sm:$0xff] }
  0xfb   : > { %12066 = vst [vmem:[#allocation11_spill] sm:$0xff] %v7903_v2  ;;  %v782_v4 = vmax.f32 %v752_v21, 0.0 }
  0xfc   : > { %v815_v18 = vpack.c.bf16 %v803_v12, %v801_v8  ;;  %v816_v19 = vpack.c.bf16 %v804_v13, %v802_v9  ;;  %12065 = vst [vmem:[#allocation10_spill] sm:$0xff] %v7901_v16  ;;  %v7907_v10 = vpack.c.bf16 %v783_v15, %v781_v3  ;;  %v7137_v8 = vld [vmem:[%s11942_s2 + $0x18] sm:$0xff]  ;;  %v7138_v9 = vld [vmem:[%s11942_s2 + $0x20] sm:$0xff]  ;;  %v7139_v12 = vld [vmem:[%s11942_s2 + $0x28] sm:$0xff] }
  0xfd   : > { %v7909_v11 = vpack.c.bf16 %v784_v1, %v782_v4  ;;  %v7140_v13 = vld [vmem:[%s11942_s2 + $0x30] sm:$0xff] }
  0xfe   : > { %v7865_v29 = vsel %vm1178_vm2, %v815_v18, 0  ;;  %v7867_v32 = vsel %vm1178_vm2, %v816_v19, 0  ;;  %12067 = vst [vmem:[#allocation12_spill] sm:$0xff] %v7907_v10 }
  0xff   : > { %12057 = vst [vmem:[#allocation2_spill] sm:$0xff] %v7865_v29  ;;  %1187 = vmatpush.bf16.msra.mxu2 %v7865_v29  ;;  %1376 = vmatpush.bf16.msra.mxu3 %v7867_v32 }
 0x100   : > { %12058 = vst [vmem:[#allocation3_spill] sm:$0xff] %v7867_v32 }
 0x101   : > { %12068 = vst [vmem:[#allocation13_spill] sm:$0xff] %v7909_v11 }
 0x103   : > { %1188 = vmatpush.bf16.msra.mxu2 %v7873_v46  ;;  %1377 = vmatpush.bf16.msra.mxu3 %v7875_v47 }
 0x107   : > { %1189 = vmatpush.bf16.msra.mxu2 %v7883_v53  ;;  %1378 = vmatpush.bf16.msra.mxu3 %v7885_v54 }
 0x10b   : > { %1190 = vmatpush.bf16.msra.mxu2 %v7893_v60  ;;  %1379 = vmatpush.bf16.msra.mxu3 %v7895_v61 }
 0x10f   : > { %1191 = vmatpush.bf16.msra.mxu2 %v7901_v16  ;;  %1380 = vmatpush.bf16.msra.mxu3 %v7903_v2 }
 0x113   : > { %1192 = vmatpush.bf16.msra.mxu2 %v7907_v10  ;;  %1381 = vmatpush.bf16.msra.mxu3 %v7909_v11 }
 0x116   : > { %6524 = vmatmul.msk.bf16.vlgmr.msra.gmra.mxu2 %vm1069_vm3, %v7134_v5  ;;  %6560 = vmatmul.msk.bf16.vlgmr.msra.gmra.mxu3 %vm1069_vm3, %v7134_v5 }
 0x126   : > { %6525 = vmatmul.msk.bf16.gmra.mxu2 %vm1069_vm3, %v7135_v6  ;;  %6561 = vmatmul.msk.bf16.gmra.mxu3 %vm1069_vm3, %v7135_v6 }
 0x136   : > { %6526 = vmatmul.msk.bf16.gmra.mxu2 %vm1069_vm3, %v7136_v7  ;;  %6562 = vmatmul.msk.bf16.gmra.mxu3 %vm1069_vm3, %v7136_v7  ;;  %v7146_v7 = vld [vmem:[%s11942_s2 + $0x60] sm:$0xff] }
 0x146   : > { %6527 = vmatmul.msk.bf16.gmra.mxu2 %vm1069_vm3, %v7137_v8  ;;  %6563 = vmatmul.msk.bf16.gmra.mxu3 %vm1069_vm3, %v7137_v8 }
 0x156   : > { %6528 = vmatmul.msk.bf16.gmra.mxu2 %vm1069_vm3, %v7138_v9  ;;  %6564 = vmatmul.msk.bf16.gmra.mxu3 %vm1069_vm3, %v7138_v9 }
 0x166   : > { %6529 = vmatmul.msk.bf16.gmra.mxu2 %vm1069_vm3, %v7139_v12  ;;  %6565 = vmatmul.msk.bf16.gmra.mxu3 %vm1069_vm3, %v7139_v12 }
 0x176   : > { %6530 = vmatmul.msk.bf16.gmra.mxu2 %vm1069_vm3, %v7140_v13  ;;  %6566 = vmatmul.msk.bf16.gmra.mxu3 %vm1069_vm3, %v7140_v13 }
 0x186   : > { %6531 = vmatmul.msk.bf16.gmra.mxu2 %vm1069_vm3, %v7141_v14  ;;  %6567 = vmatmul.msk.bf16.gmra.mxu3 %vm1069_vm3, %v7141_v14 }
 0x196   : > { %6532 = vmatmul.msk.bf16.gmra.mxu2 %vm1069_vm3, %v7142_v17  ;;  %6568 = vmatmul.msk.bf16.gmra.mxu3 %vm1069_vm3, %v7142_v17 }
 0x199   : > { %v1194_v18 = vpop.f32.mrf.mxu2  ;;  %v1383_v19 = vpop.f32.mrf.mxu3 }
 0x19a   : > { %v1563_v22 = vpack.c.bf16 %v1383_v19, %v1194_v18 }
 0x19c   : > { %v1859_v33 = vunpack.c.l.b16 %v1563_v22  ;;  %v1860_v34 = vunpack.c.h.b16 %v1563_v22 }
 0x1a1   : > { %v1196_v23 = vpop.f32.mrf.mxu2  ;;  %v1385_v24 = vpop.f32.mrf.mxu3 }
 0x1a2   : > { %v1564_v27 = vpack.c.bf16 %v1385_v24, %v1196_v23 }
 0x1a4   : > { %v1862_v37 = vunpack.c.h.b16 %v1564_v27  ;;  %v1861_v38 = vunpack.c.l.b16 %v1564_v27  ;;  %v7147_v27 = vld [vmem:[%s11942_s2 + $0x68] sm:$0xff] }
 0x1a6   : > { %6533 = vmatmul.msk.bf16.gmra.mxu2 %vm1069_vm3, %v7143_v28  ;;  %6569 = vmatmul.msk.bf16.gmra.mxu3 %vm1069_vm3, %v7143_v28  ;;  %v7963_v39 = vpack.c.b16 %v1861_v38, %v1859_v33  ;;  %v7965_v42 = vpack.c.b16 %v1862_v37, %v1860_v34  ;;  %v7148_v38 = vld [vmem:[%s11942_s2 + $0x70] sm:$0xff] }
 0x1a9   : > { %v1199_v43 = vpop.f32.mrf.mxu2  ;;  %v1388_v44 = vpop.f32.mrf.mxu3 }
 0x1aa   : > { %v1565_v45 = vpack.c.bf16 %v1388_v44, %v1199_v43 }
 0x1ac   : > { %v1863_v50 = vunpack.c.l.b16 %v1565_v45  ;;  %v1864_v35 = vunpack.c.h.b16 %v1565_v45 }
 0x1b1   : > { %v1201_v48 = vpop.f32.mrf.mxu2  ;;  %v1390_v40 = vpop.f32.mrf.mxu3 }
 0x1b2   : > { %v1566_v41 = vpack.c.bf16 %v1390_v40, %v1201_v48  ;;  %v7149_v40 = vld [vmem:[%s11942_s2 + $0x78] sm:$0xff] }
 0x1b4   : > { %v1866_v36 = vunpack.c.h.b16 %v1566_v41  ;;  %v1865_v51 = vunpack.c.l.b16 %v1566_v41 }
 0x1b6   : > { %6534 = vmatmul.msk.bf16.gmra.mxu2 %vm1069_vm3, %v7144_v49  ;;  %6570 = vmatmul.msk.bf16.gmra.mxu3 %vm1069_vm3, %v7144_v49  ;;  %v7972_v52 = vpack.c.b16 %v1865_v51, %v1863_v50  ;;  %v7974_v55 = vpack.c.b16 %v1866_v36, %v1864_v35 }
 0x1b9   : > { %v1204_v30 = vpop.f32.mrf.mxu2  ;;  %v1393_v31 = vpop.f32.mrf.mxu3 }
 0x1ba   : > { %v1567_v56 = vpack.c.bf16 %v1393_v31, %v1204_v30  ;;  %v7150_v31 = vld [vmem:[%s11942_s2 + $0x80] sm:$0xff] }
 0x1bc   : > { %v1867_v59 = vunpack.c.l.b16 %v1567_v56  ;;  %v1868_v62 = vunpack.c.h.b16 %v1567_v56 }
 0x1c1   : > { %v1206_v57 = vpop.f32.mrf.mxu2  ;;  %v1395_v25 = vpop.f32.mrf.mxu3 }
 0x1c2   : > { %v1568_v26 = vpack.c.bf16 %v1395_v25, %v1206_v57 }
 0x1c4   : > { %v1870_v20 = vunpack.c.h.b16 %v1568_v26  ;;  %v1869_v21 = vunpack.c.l.b16 %v1568_v26 }
 0x1c6   : > { %6535 = vmatmul.msk.bf16.gmra.mxu2 %vm1069_vm3, %v7145_v58  ;;  %6571 = vmatmul.msk.bf16.gmra.mxu3 %vm1069_vm3, %v7145_v58  ;;  %v7981_v63 = vpack.c.b16 %v1869_v21, %v1867_v59  ;;  %v7983_v0 = vpack.c.b16 %v1870_v20, %v1868_v62 }
 0x1c9   : > { %v1209_v15 = vpop.f32.mrf.mxu2  ;;  %v1398_v1 = vpop.f32.mrf.mxu3 }
 0x1ca   : > { %v1569_v3 = vpack.c.bf16 %v1398_v1, %v1209_v15 }
 0x1cc   : > { %v1871_v8 = vunpack.c.l.b16 %v1569_v3  ;;  %v1872_v9 = vunpack.c.h.b16 %v1569_v3 }
 0x1d1   : > { %v1211_v4 = vpop.f32.mrf.mxu2  ;;  %v1400_v5 = vpop.f32.mrf.mxu3 }
 0x1d2   : > { %v1570_v6 = vpack.c.bf16 %v1400_v5, %v1211_v4 }
 0x1d4   : > { %v1874_v12 = vunpack.c.h.b16 %v1570_v6  ;;  %v1873_v13 = vunpack.c.l.b16 %v1570_v6 }
 0x1d6   : > { %6536 = vmatmul.msk.bf16.gmra.mxu2 %vm1069_vm3, %v7146_v7  ;;  %6572 = vmatmul.msk.bf16.gmra.mxu3 %vm1069_vm3, %v7146_v7  ;;  %v7990_v14 = vpack.c.b16 %v1873_v13, %v1871_v8  ;;  %v7992_v17 = vpack.c.b16 %v1874_v12, %v1872_v9 }
 0x1d9   : > { %v1214_v18 = vpop.f32.mrf.mxu2  ;;  %v1403_v19 = vpop.f32.mrf.mxu3 }
 0x1da   : > { %v7994_v22 = vpack.c.bf16 %v1403_v19, %v1214_v18 }
 0x1dc   : > { %v1875_v9 = vunpack.c.l.b16 %v7994_v22 }
 0x1e1   : > { %v1216_v23 = vpop.f32.mrf.mxu2  ;;  %v1405_v24 = vpop.f32.mrf.mxu3 }
 0x1e2   : > { %v8026_v1 = vpack.c.bf16 %v1405_v24, %v1216_v23  ;;  %v7151_v23 = vld [vmem:[%s11942_s2 + $0x88] sm:$0xff] }
 0x1e4   : > { %v1877_v8 = vunpack.c.l.b16 %v8026_v1 }
 0x1e6   : > { %6537 = vmatmul.msk.bf16.gmra.mxu2 %vm1069_vm3, %v7147_v27  ;;  %6573 = vmatmul.msk.bf16.gmra.mxu3 %vm1069_vm3, %v7147_v27  ;;  %v1931_v19 = vpack.c.b16 %v1877_v8, %v1875_v9  ;;  %v7173_v8 = vld [vmem:[%s11943_s3 + $0x14] sm:$0xf0] }
 0x1e9   : > { %v1219_v28 = vpop.f32.mrf.mxu2  ;;  %v1408_v33 = vpop.f32.mrf.mxu3 }
 0x1ea   : > { %v8023_v62 = vpack.c.bf16 %v1408_v33, %v1219_v28 }
 0x1ec   : > { %v1879_v6 = vunpack.c.l.b16 %v8023_v62 }
 0x1f1   : > { %v1221_v34 = vpop.f32.mrf.mxu2  ;;  %v1410_v37 = vpop.f32.mrf.mxu3 }
 0x1f2   : > { %v8018_v26 = vpack.c.bf16 %v1410_v37, %v1221_v34 }
 0x1f4   : > { %v1881_v5 = vunpack.c.l.b16 %v8018_v26 }
 0x1f6   : > { %6538 = vmatmul.msk.bf16.gmra.mxu2 %vm1069_vm3, %v7148_v38  ;;  %6574 = vmatmul.msk.bf16.gmra.mxu3 %vm1069_vm3, %v7148_v38  ;;  %v1933_v7 = vpack.c.b16 %v1881_v5, %v1879_v6  ;;  %v1876_v6 = vunpack.c.h.b16 %v7994_v22 }
 0x1f9   : > { %v1224_v43 = vpop.f32.mrf.mxu2  ;;  %v1413_v44 = vpop.f32.mrf.mxu3 }
 0x1fa   : > { %v8016_v56 = vpack.c.bf16 %v1413_v44, %v1224_v43 }
 0x1fc   : > { %v1883_v20 = vunpack.c.l.b16 %v8016_v56 }
 0x201   : > { %v1226_v45 = vpop.f32.mrf.mxu2  ;;  %v1415_v48 = vpop.f32.mrf.mxu3 }
 0x202   : > { %v8011_v51 = vpack.c.bf16 %v1415_v48, %v1226_v45  ;;  %v6598_v48 = vld [vmem:[%s11943_s3] sm:$0xf] }
 0x204   : > { %v1885_v59 = vunpack.c.l.b16 %v8011_v51 }
 0x206   : > { %6539 = vmatmul.msk.bf16.gmra.mxu2 %vm1069_vm3, %v7149_v40  ;;  %6575 = vmatmul.msk.bf16.gmra.mxu3 %vm1069_vm3, %v7149_v40  ;;  %v1935_v4 = vpack.c.b16 %v1885_v59, %v1883_v20  ;;  %v7171_v40 = vld [vmem:[%s11943_s3 + $0x4] sm:$0xf0] }
 0x209   : > { %v1229_v41 = vpop.f32.mrf.mxu2  ;;  %v1418_v49 = vpop.f32.mrf.mxu3 }
 0x20a   : > { %v1577_v50 = vpack.c.bf16 %v1418_v49, %v1229_v41 }
 0x20c   : > { %v1887_v57 = vunpack.c.l.b16 %v1577_v50  ;;  %v1888_v41 = vunpack.c.h.b16 %v1577_v50  ;;  %v1884_v50 = vunpack.c.h.b16 %v8016_v56 }
 0x211   : > { %v1231_v35 = vpop.f32.mrf.mxu2  ;;  %v1420_v36 = vpop.f32.mrf.mxu3 }
 0x212   : > { %v1578_v30 = vpack.c.bf16 %v1420_v36, %v1231_v35  ;;  %v7152_v36 = vld [vmem:[%s11942_s2 + $0x90] sm:$0xff] }
 0x214   : > { %v1889_v25 = vunpack.c.l.b16 %v1578_v30  ;;  %v1890_v45 = vunpack.c.h.b16 %v1578_v30 }
 0x216   : > { %6540 = vmatmul.msk.bf16.gmra.mxu2 %vm1069_vm3, %v7150_v31  ;;  %6576 = vmatmul.msk.bf16.gmra.mxu3 %vm1069_vm3, %v7150_v31  ;;  %v1937_v58 = vpack.c.b16 %v1889_v25, %v1887_v57  ;;  %v1938_v30 = vpack.c.b16 %v1890_v45, %v1888_v41 }
 0x218   : > { %1987 = vmatpush.bf16.msrb.mxu0 %v1937_v58 }
 0x219   : > { %v1234_v21 = vpop.f32.mrf.mxu2  ;;  %v1423_v15 = vpop.f32.mrf.mxu3 }
 0x21a   : > { %v1579_v3 = vpack.c.bf16 %v1423_v15, %v1234_v21  ;;  %v1880_v15 = vunpack.c.h.b16 %v8023_v62 }
 0x21c   : > { %1988 = vmatpush.bf16.msrb.mxu0 %v1935_v4  ;;  %v1891_v24 = vunpack.c.l.b16 %v1579_v3  ;;  %v1892_v27 = vunpack.c.h.b16 %v1579_v3  ;;  %v1878_v4 = vunpack.c.h.b16 %v8026_v1  ;;  %v7153_v1 = vld [vmem:[%s11942_s2 + $0x98] sm:$0xff] }
 0x220   : > { %1989 = vmatpush.bf16.msrb.mxu0 %v1933_v7  ;;  %v1932_v7 = vpack.c.b16 %v1878_v4, %v1876_v6 }
 0x221   : > { %v1236_v12 = vpop.f32.mrf.mxu2  ;;  %v1425_v13 = vpop.f32.mrf.mxu3 }
 0x222   : > { %v1580_v18 = vpack.c.bf16 %v1425_v13, %v1236_v12 }
 0x224   : > { %v1894_v28 = vunpack.c.h.b16 %v1580_v18  ;;  %1990 = vmatpush.bf16.msrb.mxu0 %v1931_v19  ;;  %v1893_v33 = vunpack.c.l.b16 %v1580_v18 }
 0x226   : > { %6541 = vmatmul.msk.bf16.gmra.mxu2 %vm1069_vm3, %v7151_v23  ;;  %6577 = vmatmul.msk.bf16.gmra.mxu3 %vm1069_vm3, %v7151_v23  ;;  %v8037_v34 = vpack.c.b16 %v1893_v33, %v1891_v24  ;;  %v8039_v37 = vpack.c.b16 %v1894_v28, %v1892_v27 }
 0x228   : > { %1991 = vmatpush.bf16.msrb.mxu0 %v7990_v14 }
 0x229   : > { %v1239_v38 = vpop.f32.mrf.mxu2  ;;  %v1428_v43 = vpop.f32.mrf.mxu3 }
 0x22a   : > { %v1581_v44 = vpack.c.bf16 %v1428_v43, %v1239_v38  ;;  %v7175_v43 = vld [vmem:[%s11943_s3 + $0x24] sm:$0xf0] }
 0x22c   : > { %1992 = vmatpush.bf16.msrb.mxu0 %v7981_v63  ;;  %v1886_v63 = vunpack.c.h.b16 %v8011_v51  ;;  %v1895_v31 = vunpack.c.l.b16 %v1581_v44  ;;  %v1896_v57 = vunpack.c.h.b16 %v1581_v44  ;;  %v1882_v51 = vunpack.c.h.b16 %v8018_v26  ;;  %v6606_v26 = vld [vmem:[%s11943_s3 + $0x10] sm:$0xf] }
 0x22d   : > { %v8078_v13 = vor.u32 %v7173_v8, %v6606_v26  ;;  %v6638_v8 = vld [vmem:[%s11943_s3 + $0x50] sm:$0xf] }
 0x22e   : > { %v1936_v21 = vpack.c.b16 %v1886_v63, %v1884_v50  ;;  %v1934_v5 = vpack.c.b16 %v1882_v51, %v1880_v15  ;;  %v7155_v50 = vld [vmem:[%s11942_s2 + $0xa8] sm:$0xff] }
 0x230   : > { %1993 = vmatpush.bf16.msrb.mxu0 %v7972_v52  ;;  %v8054_v52 = vor.u32 %v7171_v40, %v6598_v48 }
 0x231   : > { %v1241_v49 = vpop.f32.mrf.mxu2  ;;  %v1430_v35 = vpop.f32.mrf.mxu3 }
 0x232   : > { %v1582_v14 = vpack.c.bf16 %v1430_v35, %v1241_v49 }
 0x234   : > { %v1898_v25 = vunpack.c.h.b16 %v1582_v14  ;;  %1994 = vmatpush.bf16.msrb.mxu0 %v7963_v39  ;;  %v1897_v58 = vunpack.c.l.b16 %v1582_v14 }
 0x236   : > { %6542 = vmatmul.msk.bf16.gmra.mxu2 %vm1069_vm3, %v7152_v36  ;;  %6578 = vmatmul.msk.bf16.gmra.mxu3 %vm1069_vm3, %v7152_v36  ;;  %v8060_v59 = vpack.c.b16 %v1897_v58, %v1895_v31  ;;  %v8062_v20 = vpack.c.b16 %v1898_v25, %v1896_v57  ;;  %v6622_v31 = vld [vmem:[%s11943_s3 + $0x30] sm:$0xf]  ;;  %v7177_v57 = vld [vmem:[%s11943_s3 + $0x34] sm:$0xf0] }
 0x237   : > { %1995 = vmatmul.bf16.vlgmr.msrb.gmra.mxu0 %v8054_v52  ;;  %v8120_v51 = vor.u32 %v7177_v57, %v6622_v31 }
 0x238   : > { %2165 = vmatpush.bf16.msra.mxu0 %v1938_v30 }
 0x239   : > { %v1244_v39 = vpop.f32.mrf.mxu2  ;;  %v1433_v3 = vpop.f32.mrf.mxu3 }
 0x23a   : > { %v1583_v56 = vpack.c.bf16 %v1433_v3, %v1244_v39  ;;  %v6630_v39 = vld [vmem:[%s11943_s3 + $0x40] sm:$0xf]  ;;  %v7179_v3 = vld [vmem:[%s11943_s3 + $0x44] sm:$0xf0] }
 0x23b   : > { %v8134_v6 = vor.u32 %v7179_v3, %v6630_v39 }
 0x23c   : > { %2166 = vmatpush.bf16.msra.mxu0 %v1936_v21  ;;  %v1899_v22 = vunpack.c.l.b16 %v1583_v56  ;;  %v1900_v18 = vunpack.c.h.b16 %v1583_v56 }
 0x240   : > { %2167 = vmatpush.bf16.msra.mxu0 %v1934_v5  ;;  %v7156_v5 = vld [vmem:[%s11942_s2 + $0xb0] sm:$0xff] }
 0x241   : > { %v1246_v62 = vpop.f32.mrf.mxu2  ;;  %v1435_v9 = vpop.f32.mrf.mxu3 }
 0x242   : > { %v1584_v12 = vpack.c.bf16 %v1435_v9, %v1246_v62  ;;  %v7181_v62 = vld [vmem:[%s11943_s3 + $0x54] sm:$0xf0] }
 0x244   : > { %2168 = vmatpush.bf16.msra.mxu0 %v1932_v7  ;;  %v1902_v19 = vunpack.c.h.b16 %v1584_v12  ;;  %v1901_v23 = vunpack.c.l.b16 %v1584_v12 }
 0x246   : > { %6543 = vmatmul.msk.bf16.gmra.mxu2 %vm1069_vm3, %v7153_v1  ;;  %6579 = vmatmul.msk.bf16.gmra.mxu3 %vm1069_vm3, %v7153_v1  ;;  %v8083_v24 = vpack.c.b16 %v1901_v23, %v1899_v22  ;;  %v8085_v27 = vpack.c.b16 %v1902_v19, %v1900_v18  ;;  %v7157_v1 = vld [vmem:[%s11942_s2 + $0xb8] sm:$0xff]  ;;  %v8148_v22 = vor.u32 %v7181_v62, %v6638_v8 }
 0x247   : > { %2000 = vmatmul.bf16.gmra.mxu0 %v8078_v13 }
 0x248   : > { %2169 = vmatpush.bf16.msra.mxu0 %v7992_v17  ;;  %v6614_v17 = vld [vmem:[%s11943_s3 + $0x20] sm:$0xf] }
 0x249   : > { %v1249_v28 = vpop.f32.mrf.mxu2  ;;  %v1438_v33 = vpop.f32.mrf.mxu3  ;;  %v8100_v40 = vor.u32 %v7175_v43, %v6614_v17 }
 0x24a   : > { %v1585_v38 = vpack.c.bf16 %v1438_v33, %v1249_v28  ;;  %v6646_v28 = vld [vmem:[%s11943_s3 + $0x60] sm:$0xf]  ;;  %v7183_v33 = vld [vmem:[%s11943_s3 + $0x64] sm:$0xf0] }
 0x24c   : > { %2170 = vmatpush.bf16.msra.mxu0 %v7983_v0  ;;  %v7154_v0 = vld [vmem:[%s11942_s2 + $0xa0] sm:$0xff]  ;;  %v1904_v41 = vunpack.c.h.b16 %v1585_v38 }
 0x250   : > { %2171 = vmatpush.bf16.msra.mxu0 %v7974_v55  ;;  %v1903_v55 = vunpack.c.l.b16 %v1585_v38 }
 0x251   : > { %v1251_v44 = vpop.f32.mrf.mxu2  ;;  %v1440_v45 = vpop.f32.mrf.mxu3 }
 0x252   : > { %v1586_v48 = vpack.c.bf16 %v1440_v45, %v1251_v44  ;;  %v7158_v45 = vld [vmem:[%s11942_s2 + $0xc0] sm:$0xff] }
 0x254   : > { %2172 = vmatpush.bf16.msra.mxu0 %v7965_v42  ;;  %v1906_v49 = vunpack.c.h.b16 %v1586_v48  ;;  %v1905_v35 = vunpack.c.l.b16 %v1586_v48  ;;  %v8166_v48 = vor.u32 %v7183_v33, %v6646_v28 }
 0x256   : > { %6544 = vmatmul.msk.bf16.gmra.mxu2 %vm1069_vm3, %v7154_v0  ;;  %6580 = vmatmul.msk.bf16.gmra.mxu3 %vm1069_vm3, %v7154_v0  ;;  %v8104_v14 = vpack.c.b16 %v1905_v35, %v1903_v55  ;;  %v8106_v36 = vpack.c.b16 %v1906_v49, %v1904_v41 }
 0x257   : > { %2005 = vmatmul.bf16.gmra.mxu0 %v8100_v40 }
 0x259   : > { %v1254_v42 = vpop.f32.mrf.mxu2  ;;  %v1443_v63 = vpop.f32.mrf.mxu3 }
 0x25a   : > { %v8109_v30 = vpack.c.bf16 %v1443_v63, %v1254_v42 }
 0x261   : > { %v1256_v25 = vpop.f32.mrf.mxu2  ;;  %v1445_v58 = vpop.f32.mrf.mxu3 }
 0x262   : > { %v8180_v39 = vpack.c.bf16 %v1445_v58, %v1256_v25  ;;  %v7185_v25 = vld [vmem:[%s11943_s3 + $0x74] sm:$0xf0] }
 0x266   : > { %6545 = vmatmul.msk.bf16.gmra.mxu2 %vm1069_vm3, %v7155_v50  ;;  %6581 = vmatmul.msk.bf16.gmra.mxu3 %vm1069_vm3, %v7155_v50 }
 0x267   : > { %2010 = vmatmul.bf16.gmra.mxu0 %v8120_v51 }
 0x269   : > { %v1259_v21 = vpop.f32.mrf.mxu2  ;;  %v1448_v15 = vpop.f32.mrf.mxu3 }
 0x26a   : > { %v8177_v63 = vpack.c.bf16 %v1448_v15, %v1259_v21  ;;  %v1907_v21 = vunpack.c.l.b16 %v8109_v30  ;;  %v6654_v15 = vld [vmem:[%s11943_s3 + $0x70] sm:$0xf] }
 0x271   : > { %v1261_v56 = vpop.f32.mrf.mxu2  ;;  %v1450_v4 = vpop.f32.mrf.mxu3 }
 0x272   : > { %v8171_v49 = vpack.c.bf16 %v1450_v4, %v1261_v56 }
 0x274   : > { %v1913_v4 = vunpack.c.l.b16 %v8171_v49 }
 0x276   : > { %6546 = vmatmul.msk.bf16.gmra.mxu2 %vm1069_vm3, %v7156_v5  ;;  %6582 = vmatmul.msk.bf16.gmra.mxu3 %vm1069_vm3, %v7156_v5  ;;  %v1911_v5 = vunpack.c.l.b16 %v8177_v63 }
 0x277   : > { %2015 = vmatmul.bf16.gmra.mxu0 %v8134_v6 }
 0x279   : > { %v1264_v7 = vpop.f32.mrf.mxu2  ;;  %v1453_v26 = vpop.f32.mrf.mxu3 }
 0x27a   : > { %v8168_v0 = vpack.c.bf16 %v1453_v26, %v1264_v7  ;;  %v1949_v7 = vpack.c.b16 %v1913_v4, %v1911_v5  ;;  %v1909_v26 = vunpack.c.l.b16 %v8180_v39  ;;  %v1912_v4 = vunpack.c.h.b16 %v8177_v63  ;;  %v7189_v63 = vld [vmem:[%s11943_s3 + $0x94] sm:$0xf0] }
 0x27c   : > { %v1915_v31 = vunpack.c.l.b16 %v8168_v0 }
 0x281   : > { %v1266_v9 = vpop.f32.mrf.mxu2  ;;  %v1455_v12 = vpop.f32.mrf.mxu3 }
 0x282   : > { %v8161_v43 = vpack.c.bf16 %v1455_v12, %v1266_v9  ;;  %v1947_v9 = vpack.c.b16 %v1909_v26, %v1907_v21  ;;  %v7159_v12 = vld [vmem:[%s11942_s2 + $0xc8] sm:$0xff] }
 0x284   : > { %v1917_v42 = vunpack.c.l.b16 %v8161_v43 }
 0x286   : > { %6547 = vmatmul.msk.bf16.gmra.mxu2 %vm1069_vm3, %v7157_v1  ;;  %6583 = vmatmul.msk.bf16.gmra.mxu3 %vm1069_vm3, %v7157_v1  ;;  %v1951_v56 = vpack.c.b16 %v1917_v42, %v1915_v31  ;;  %v8199_v1 = vor.u32 %v7185_v25, %v6654_v15  ;;  %v1908_v15 = vunpack.c.h.b16 %v8109_v30  ;;  %v6670_v25 = vld [vmem:[%s11943_s3 + $0x90] sm:$0xf] }
 0x287   : > { %2020 = vmatmul.bf16.gmra.mxu0 %v8148_v22 }
 0x289   : > { %v1269_v18 = vpop.f32.mrf.mxu2  ;;  %v1458_v19 = vpop.f32.mrf.mxu3 }
 0x28a   : > { %v8153_v23 = vpack.c.bf16 %v1458_v19, %v1269_v18 }
 0x28c   : > { %v1919_v55 = vunpack.c.l.b16 %v8153_v23 }
 0x291   : > { %v1271_v38 = vpop.f32.mrf.mxu2  ;;  %v1460_v17 = vpop.f32.mrf.mxu3 }
 0x292   : > { %v1594_v44 = vpack.c.bf16 %v1460_v17, %v1271_v38  ;;  %v6662_v38 = vld [vmem:[%s11943_s3 + $0x80] sm:$0xf]  ;;  %v7187_v17 = vld [vmem:[%s11943_s3 + $0x84] sm:$0xf0] }
 0x293   : > { %v8228_v31 = vor.u32 %v7187_v17, %v6662_v38 }
 0x294   : > { %v1921_v41 = vunpack.c.l.b16 %v1594_v44  ;;  %v1922_v33 = vunpack.c.h.b16 %v1594_v44 }
 0x296   : > { %6548 = vmatmul.msk.bf16.gmra.mxu2 %vm1069_vm3, %v7158_v45  ;;  %6584 = vmatmul.msk.bf16.gmra.mxu3 %vm1069_vm3, %v7158_v45  ;;  %v1953_v35 = vpack.c.b16 %v1921_v41, %v1919_v55  ;;  %v6600_v45 = vld [vmem:[%s11943_s3 + $0x8] sm:$0xf0] }
 0x297   : > { %2025 = vmatmul.bf16.gmra.mxu0 %v8166_v48 }
 0x298   : > { %2076 = vmatpush.bf16.msrb.mxu1 %v1953_v35  ;;  %v1918_v35 = vunpack.c.h.b16 %v8161_v43 }
 0x299   : > { %v1274_v57 = vpop.f32.mrf.mxu2  ;;  %v1463_v50 = vpop.f32.mrf.mxu3 }
 0x29a   : > { %v8182_v3 = vpack.c.bf16 %v1463_v50, %v1274_v57 }
 0x29c   : > { %2077 = vmatpush.bf16.msrb.mxu1 %v1951_v56  ;;  %v1914_v56 = vunpack.c.h.b16 %v8171_v49 }
 0x29e   : > { %v1950_v26 = vpack.c.b16 %v1914_v56, %v1912_v4 }
 0x2a0   : > { %2078 = vmatpush.bf16.msrb.mxu1 %v1949_v7 }
 0x2a1   : > { %v1276_v58 = vpop.f32.mrf.mxu2  ;;  %v1465_v8 = vpop.f32.mrf.mxu3 }
 0x2a2   : > { %v8194_v62 = vpack.c.bf16 %v1465_v8, %v1276_v58  ;;  %v7172_v58 = vld [vmem:[%s11943_s3 + $0x14] sm:$0xf] }
 0x2a4   : > { %2079 = vmatpush.bf16.msrb.mxu1 %v1947_v9 }
 0x2a6   : > { %6549 = vmatmul.msk.bf16.gmra.mxu2 %vm1069_vm3, %v7159_v12  ;;  %6585 = vmatmul.msk.bf16.gmra.mxu3 %vm1069_vm3, %v7159_v12  ;;  %v7161_v12 = vld [vmem:[%s11942_s2 + $0xd8] sm:$0xff] }
 0x2a7   : > { %2030 = vmatmul.bf16.gmra.mxu0 %v8199_v1 }
 0x2a8   : > { %2080 = vmatpush.bf16.msrb.mxu1 %v8104_v14  ;;  %v7170_v14 = vld [vmem:[%s11943_s3 + $0x4] sm:$0xf] }
 0x2a9   : > { %v1279_v18 = vpop.f32.mrf.mxu2  ;;  %v1468_v19 = vpop.f32.mrf.mxu3  ;;  %v8230_v57 = vor.u32 %v7170_v14, %v6600_v45 }
 0x2aa   : > { %v8205_v28 = vpack.c.bf16 %v1468_v19, %v1279_v18  ;;  %v8265_v18 = vor.u32 %v7189_v63, %v6670_v25  ;;  %v7163_v63 = vld [vmem:[%s11942_s2 + $0xe8] sm:$0xff] }
 0x2ac   : > { %2081 = vmatpush.bf16.msrb.mxu1 %v8083_v24  ;;  %v1920_v24 = vunpack.c.h.b16 %v8153_v23  ;;  %v1916_v23 = vunpack.c.h.b16 %v8168_v0  ;;  %v1910_v0 = vunpack.c.h.b16 %v8180_v39  ;;  %v6608_v39 = vld [vmem:[%s11943_s3 + $0x18] sm:$0xf0] }
 0x2ad   : > { %v8267_v19 = vor.u32 %v7172_v58, %v6608_v39 }
 0x2ae   : > { %v1954_v42 = vpack.c.b16 %v1922_v33, %v1920_v24  ;;  %v1952_v43 = vpack.c.b16 %v1918_v35, %v1916_v23  ;;  %v1948_v49 = vpack.c.b16 %v1910_v0, %v1908_v15  ;;  %v7191_v24 = vld [vmem:[%s11943_s3 + $0xa4] sm:$0xf0]  ;;  %v7162_v35 = vld [vmem:[%s11942_s2 + $0xe0] sm:$0xff]  ;;  %v7193_v0 = vld [vmem:[%s11943_s3 + $0xb4] sm:$0xf0] }
 0x2af   : > { %v6624_v15 = vld [vmem:[%s11943_s3 + $0x38] sm:$0xf0] }
 0x2b0   : > { %2082 = vmatpush.bf16.msrb.mxu1 %v8060_v59  ;;  %v7160_v59 = vld [vmem:[%s11942_s2 + $0xd0] sm:$0xff] }
 0x2b1   : > { %v1281_v44 = vpop.f32.mrf.mxu2  ;;  %v1470_v55 = vpop.f32.mrf.mxu3 }
 0x2b2   : > { %v8222_v41 = vpack.c.bf16 %v1470_v55, %v1281_v44  ;;  %v7174_v44 = vld [vmem:[%s11943_s3 + $0x24] sm:$0xf] }
 0x2b4   : > { %v8232_v50 = vpop.f32.mrf.mxu0  ;;  %2083 = vmatpush.bf16.msrb.mxu1 %v8037_v34 }
 0x2b6   : > { %6550 = vmatmul.msk.bf16.gmra.mxu2 %vm1069_vm3, %v7160_v59  ;;  %6586 = vmatmul.msk.bf16.gmra.mxu3 %vm1069_vm3, %v7160_v59 }
 0x2b7   : > { %2035 = vmatmul.bf16.gmra.mxu0 %v8228_v31  ;;  %2084 = vmatmul.bf16.vlgmr.msrb.gmra.mxu1 %v8230_v57 }
 0x2b8   : > { %2254 = vmatpush.bf16.msra.mxu1 %v1954_v42 }
 0x2b9   : > { %v1284_v5 = vpop.f32.mrf.mxu2  ;;  %v1473_v7 = vpop.f32.mrf.mxu3 }
 0x2ba   : > { %v8242_v34 = vpack.c.bf16 %v1473_v7, %v1284_v5  ;;  %v6686_v7 = vld [vmem:[%s11943_s3 + $0xb0] sm:$0xf] }
 0x2bb   : > { %v8333_v58 = vor.u32 %v7193_v0, %v6686_v7 }
 0x2bc   : > { %2255 = vmatpush.bf16.msra.mxu1 %v1952_v43  ;;  %v8245_v21 = vpop.f32.mrf.mxu0 }
 0x2bd   : > { %12071 = vst [vmem:[#allocation16_spill] sm:$0xff] %v8333_v58 }
 0x2c0   : > { %2256 = vmatpush.bf16.msra.mxu1 %v1950_v26  ;;  %v7176_v26 = vld [vmem:[%s11943_s3 + $0x34] sm:$0xf] }
 0x2c1   : > { %v1286_v8 = vpop.f32.mrf.mxu2  ;;  %v1475_v30 = vpop.f32.mrf.mxu3  ;;  %v8335_v39 = vor.u32 %v7176_v26, %v6624_v15  ;;  %v6702_v15 = vld [vmem:[%s11943_s3 + $0xd0] sm:$0xf] }
 0x2c2   : > { %v8260_v9 = vpack.c.bf16 %v1475_v30, %v1286_v8 }
 0x2c3   : > { %12072 = vst [vmem:[#allocation17_spill] sm:$0xff] %v8335_v39 }
 0x2c4   : > { %2257 = vmatpush.bf16.msra.mxu1 %v1948_v49  ;;  %v8269_v33 = vpop.f32.mrf.mxu0 }
 0x2c6   : > { %6551 = vmatmul.msk.bf16.gmra.mxu2 %vm1069_vm3, %v7161_v12  ;;  %6587 = vmatmul.msk.bf16.gmra.mxu3 %vm1069_vm3, %v7161_v12 }
 0x2c7   : > { %2040 = vmatmul.bf16.gmra.mxu0 %v8265_v18  ;;  %2089 = vmatmul.bf16.gmra.mxu1 %v8267_v19 }
 0x2c8   : > { %2258 = vmatpush.bf16.msra.mxu1 %v8106_v36  ;;  %v6678_v36 = vld [vmem:[%s11943_s3 + $0xa0] sm:$0xf] }
 0x2c9   : > { %v1289_v38 = vpop.f32.mrf.mxu2  ;;  %v1478_v17 = vpop.f32.mrf.mxu3  ;;  %v8300_v42 = vor.u32 %v7191_v24, %v6678_v36  ;;  %v7195_v36 = vld [vmem:[%s11943_s3 + $0xc4] sm:$0xf0]  ;;  %v7178_v24 = vld [vmem:[%s11943_s3 + $0x44] sm:$0xf] }
 0x2ca   : > { %v8277_v14 = vpack.c.bf16 %v1478_v17, %v1289_v38  ;;  %v6694_v17 = vld [vmem:[%s11943_s3 + $0xc0] sm:$0xf] }
 0x2cc   : > { %2259 = vmatpush.bf16.msra.mxu1 %v8085_v27  ;;  %v8279_v45 = vpop.f32.mrf.mxu0  ;;  %v6616_v27 = vld [vmem:[%s11943_s3 + $0x28] sm:$0xf0] }
 0x2cd   : > { %v8302_v23 = vor.u32 %v7174_v44, %v6616_v27  ;;  %v6632_v44 = vld [vmem:[%s11943_s3 + $0x48] sm:$0xf0] }
 0x2d0   : > { %2260 = vmatpush.bf16.msra.mxu1 %v8062_v20 }
 0x2d1   : > { %v1291_v55 = vpop.f32.mrf.mxu2  ;;  %v1480_v59 = vpop.f32.mrf.mxu3 }
 0x2d2   : > { %v8295_v20 = vpack.c.bf16 %v1480_v59, %v1291_v55  ;;  %v7164_v59 = vld [vmem:[%s11942_s2 + $0xf0] sm:$0xff] }
 0x2d4   : > { %2261 = vmatpush.bf16.msra.mxu1 %v8039_v37  ;;  %v8304_v56 = vpop.f32.mrf.mxu0  ;;  %v2582_v11 = vunpack.c.h.b16 %v8295_v20 }
 0x2d5   : > { %12069 = vst [vmem:[#allocation14_spill] sm:$0xff] %v8304_v56 }
 0x2d6   : > { %6552 = vmatmul.msk.bf16.gmra.mxu2 %vm1069_vm3, %v7162_v35  ;;  %6588 = vmatmul.msk.bf16.gmra.mxu3 %vm1069_vm3, %v7162_v35  ;;  %v8364_v35 = vor.u32 %v7195_v36, %v6694_v17  ;;  %v7180_v17 = vld [vmem:[%s11943_s3 + $0x54] sm:$0xf]  ;;  %v6640_v36 = vld [vmem:[%s11943_s3 + $0x58] sm:$0xf0] }
 0x2d7   : > { %2045 = vmatmul.bf16.gmra.mxu0 %v8300_v42  ;;  %2094 = vmatmul.bf16.gmra.mxu1 %v8302_v23 }
 0x2d8   : > { %12075 = vst [vmem:[#allocation20_spill] sm:$0xff] %v8364_v35 }
 0x2d9   : > { %v1294_v37 = vpop.f32.mrf.mxu2  ;;  %v1483_v43 = vpop.f32.mrf.mxu3 }
 0x2da   : > { %v8310_v4 = vpack.c.bf16 %v1483_v43, %v1294_v37  ;;  %v8366_v37 = vor.u32 %v7178_v24, %v6632_v44 }
 0x2dc   : > { %v8312_v5 = vpop.f32.mrf.mxu0  ;;  %12076 = vst [vmem:[#allocation21_spill] sm:$0xff] %v8366_v37 }
 0x2dd   : > { %12070 = vst [vmem:[#allocation15_spill] sm:$0xff] %v8312_v5 }
 0x2e1   : > { %v8326_v49 = vpop.f32.mrf.mxu2  ;;  %v8328_v25 = vpop.f32.mrf.mxu3 }
 0x2e4   : > { %v8337_v8 = vpop.f32.mrf.mxu0 }
 0x2e5   : > { %12073 = vst [vmem:[#allocation18_spill] sm:$0xff] %v8337_v8  ;;  %v2579_v8 = vunpack.c.l.b16 %v8277_v14 }
 0x2e6   : > { %6553 = vmatmul.msk.bf16.gmra.mxu2 %vm1069_vm3, %v7163_v63  ;;  %6589 = vmatmul.msk.bf16.gmra.mxu3 %vm1069_vm3, %v7163_v63  ;;  %v7197_v63 = vld [vmem:[%s11943_s3 + $0xd4] sm:$0xf0] }
 0x2e7   : > { %2050 = vmatmul.bf16.gmra.mxu0 %v8333_v58  ;;  %2099 = vmatmul.bf16.gmra.mxu1 %v8335_v39 }
 0x2e9   : > { %v8343_v30 = vpop.f32.mrf.mxu2  ;;  %v8345_v12 = vpop.f32.mrf.mxu3 }
 0x2ec   : > { %v8347_v38 = vpop.f32.mrf.mxu0 }
 0x2ed   : > { %12074 = vst [vmem:[#allocation19_spill] sm:$0xff] %v8347_v38  ;;  %v2580_v38 = vunpack.c.h.b16 %v8277_v14  ;;  %v2575_v14 = vunpack.c.l.b16 %v8242_v34 }
 0x2f1   : > { %v1301_v27 = vpop.f32.mrf.mxu2  ;;  %v1490_v55 = vpop.f32.mrf.mxu3 }
 0x2f4   : > { %v8368_v43 = vpop.f32.mrf.mxu0 }
 0x2f5   : > { %12077 = vst [vmem:[#allocation22_spill] sm:$0xff] %v8368_v43  ;;  %v8393_v43 = vor.u32 %v7180_v17, %v6640_v36  ;;  %v2578_v17 = vunpack.c.h.b16 %v8260_v9  ;;  %v8407_v36 = vpack.c.b16 %v2582_v11, %v2580_v38  ;;  %v2573_v11 = vunpack.c.l.b16 %v8222_v41 }
 0x2f6   : > { %6554 = vmatmul.msk.bf16.gmra.mxu2 %vm1069_vm3, %v7164_v59  ;;  %6590 = vmatmul.msk.bf16.gmra.mxu3 %vm1069_vm3, %v7164_v59  ;;  %v7165_v59 = vld [vmem:[%s11942_s2 + $0xf8] sm:$0xff] }
 0x2f7   : > { %2055 = vmatmul.bf16.gmra.mxu0 %v8364_v35  ;;  %2104 = vmatmul.bf16.gmra.mxu1 %v8366_v37  ;;  %12080 = vst [vmem:[#allocation25_spill] sm:$0xff] %v8393_v43 }
 0x2f9   : > { %v1304_v7 = vpop.f32.mrf.mxu2  ;;  %v1493_v0 = vpop.f32.mrf.mxu3 }
 0x2fc   : > { %v8374_v26 = vpop.f32.mrf.mxu0 }
 0x2fd   : > { %12078 = vst [vmem:[#allocation23_spill] sm:$0xff] %v8374_v26  ;;  %v8391_v26 = vor.u32 %v7197_v63, %v6702_v15  ;;  %v2581_v15 = vunpack.c.l.b16 %v8295_v20  ;;  %v2576_v63 = vunpack.c.h.b16 %v8242_v34  ;;  %v2577_v20 = vunpack.c.l.b16 %v8260_v9  ;;  %v6710_v34 = vld [vmem:[%s11943_s3 + $0xe0] sm:$0xf]  ;;  %v7182_v9 = vld [vmem:[%s11943_s3 + $0x64] sm:$0xf] }
 0x2ff   : > { %12079 = vst [vmem:[#allocation24_spill] sm:$0xff] %v8391_v26  ;;  %v8409_v35 = vpack.c.b16 %v2581_v15, %v2579_v8  ;;  %v8418_v16 = vpack.c.b16 %v2578_v17, %v2576_v63  ;;  %v8421_v61 = vpack.c.b16 %v2577_v20, %v2575_v14  ;;  %v1607_v8 = vpack.c.bf16 %v1493_v0, %v1304_v7 }
 0x300   : > { %v2568_v7 = vunpack.c.h.b16 %v8182_v3  ;;  %v2570_v0 = vunpack.c.h.b16 %v8194_v62  ;;  %v1606_v17 = vpack.c.bf16 %v1490_v55, %v1301_v27  ;;  %v2569_v27 = vunpack.c.l.b16 %v8194_v62 }
 0x301   : > { %v1306_v24 = vpop.f32.mrf.mxu2  ;;  %v1495_v44 = vpop.f32.mrf.mxu3 }
 0x302   : > { %v8454_v55 = vpack.c.b16 %v2570_v0, %v2568_v7  ;;  %v2589_v7 = vunpack.c.l.b16 %v1606_v17 }
 0x304   : > { %v8397_v10 = vpop.f32.mrf.mxu0 }
 0x305   : > { %12081 = vst [vmem:[#allocation26_spill] sm:$0xff] %v8397_v10 }
 0x306   : > { %6555 = vmatmul.msk.bf16.gmra.mxu2 %vm1069_vm3, %v7165_v59  ;;  %6591 = vmatmul.msk.bf16.gmra.mxu3 %vm1069_vm3, %v7165_v59  ;;  %v2571_v59 = vunpack.c.l.b16 %v8205_v28 }
 0x307   : > { %2060 = vmatmul.bf16.gmra.mxu0 %v8391_v26  ;;  %2109 = vmatmul.bf16.gmra.mxu1 %v8393_v43  ;;  %v2572_v26 = vunpack.c.h.b16 %v8205_v28  ;;  %v2574_v43 = vunpack.c.h.b16 %v8222_v41  ;;  %v1608_v28 = vpack.c.bf16 %v1495_v44, %v1306_v24  ;;  %v1605_v24 = vpack.c.bf16 %v8345_v12, %v8343_v30 }
 0x308   : > { %v8426_v15 = vpack.c.b16 %v2573_v11, %v2571_v59  ;;  %v2592_v11 = vunpack.c.h.b16 %v1607_v8 }
 0x309   : > { %v1309_v37 = vpop.f32.mrf.mxu2  ;;  %v1498_v10 = vpop.f32.mrf.mxu3  ;;  %v8437_v41 = vpack.c.b16 %v2574_v43, %v2572_v26  ;;  %v7166_v43 = vld [vmem:[%s11942_s2 + $0x100] sm:$0xff]  ;;  %v2591_v26 = vunpack.c.l.b16 %v1607_v8  ;;  %v2594_v5 = vunpack.c.h.b16 %v1608_v28  ;;  %v2593_v12 = vunpack.c.l.b16 %v1608_v28 }
 0x30a   : > { %v1609_v38 = vpack.c.bf16 %v1498_v10, %v1309_v37  ;;  %v6648_v10 = vld [vmem:[%s11943_s3 + $0x68] sm:$0xf0]  ;;  %v2567_v37 = vunpack.c.l.b16 %v8182_v3 }
 0x30b   : > { %v8449_v3 = vor.u32 %v7182_v9, %v6648_v10  ;;  %v2588_v9 = vunpack.c.h.b16 %v1605_v24  ;;  %v2590_v10 = vunpack.c.h.b16 %v1606_v17  ;;  %v2643_v62 = vpack.c.b16 %v2593_v12, %v2591_v26  ;;  %v7184_v26 = vld [vmem:[%s11943_s3 + $0x74] sm:$0xf] }
 0x30c   : > { %v8415_v2 = vpop.f32.mrf.mxu0  ;;  %v2595_v14 = vunpack.c.l.b16 %v1609_v38  ;;  %v2596_v59 = vunpack.c.h.b16 %v1609_v38  ;;  %v2631_v28 = vpack.c.b16 %v2569_v27, %v2567_v37  ;;  %v7167_v27 = vld [vmem:[%s11942_s2 + $0x108] sm:$0xff] }
 0x30d   : > { %12082 = vst [vmem:[#allocation27_spill] sm:$0xff] %v8415_v2  ;;  %v7199_v2 = vld [vmem:[%s11943_s3 + $0xe4] sm:$0xf0] }
 0x30e   : > { %v8447_v60 = vor.u32 %v7199_v2, %v6710_v34  ;;  %12084 = vst [vmem:[#allocation29_spill] sm:$0xff] %v8449_v3  ;;  %v1604_v2 = vpack.c.bf16 %v8328_v25, %v8326_v49  ;;  %v2587_v34 = vunpack.c.l.b16 %v1605_v24  ;;  %v2584_v49 = vunpack.c.h.b16 %v8310_v4 }
 0x310   : > { %12083 = vst [vmem:[#allocation28_spill] sm:$0xff] %v8447_v60  ;;  %v2586_v25 = vunpack.c.h.b16 %v1604_v2  ;;  %v2641_v37 = vpack.c.b16 %v2589_v7, %v2587_v34 }
 0x311   : > { %v1311_v44 = vpop.f32.mrf.mxu2  ;;  %v1500_v63 = vpop.f32.mrf.mxu3 }
 0x312   : > { %v1610_v20 = vpack.c.bf16 %v1500_v63, %v1311_v44 }
 0x314   : > { %v2598_v54 = vunpack.c.h.b16 %v1610_v20  ;;  %v8451_v53 = vpop.f32.mrf.mxu0  ;;  %v2597_v30 = vunpack.c.l.b16 %v1610_v20  ;;  %v2585_v20 = vunpack.c.l.b16 %v1604_v2 }
 0x315   : > { %12085 = vst [vmem:[#allocation30_spill] sm:$0xff] %v8451_v53 }
 0x316   : > { %v2646_v38 = vpack.c.b16 %v2598_v54, %v2596_v59  ;;  %6556 = vmatmul.msk.bf16.gmra.mxu2 %vm1069_vm3, %v7166_v43  ;;  %6592 = vmatmul.msk.bf16.gmra.mxu3 %vm1069_vm3, %v7166_v43  ;;  %v2645_v8 = vpack.c.b16 %v2597_v30, %v2595_v14  ;;  %v2644_v54 = vpack.c.b16 %v2594_v5, %v2592_v11  ;;  %v2583_v14 = vunpack.c.l.b16 %v8310_v4  ;;  %v6718_v5 = vld [vmem:[%s11943_s3 + $0xf0] sm:$0xf]  ;;  %v7201_v4 = vld [vmem:[%s11943_s3 + $0xf4] sm:$0xf0]  ;;  %v6656_v11 = vld [vmem:[%s11943_s3 + $0x78] sm:$0xf0] }
 0x317   : > { %2065 = vmatmul.bf16.gmra.mxu0 %v8447_v60  ;;  %2114 = vmatmul.bf16.gmra.mxu1 %v8449_v3  ;;  %v2642_v59 = vpack.c.b16 %v2590_v10, %v2588_v9  ;;  %v2640_v43 = vpack.c.b16 %v2586_v25, %v2584_v49 }
 0x318   : > { %2695 = vmatpush.bf16.msrb.mxu2 %v2645_v8  ;;  %2873 = vmatpush.bf16.msrb.mxu0 %v2646_v38  ;;  %v2639_v17 = vpack.c.b16 %v2585_v20, %v2583_v14  ;;  %v8487_v38 = vor.u32 %v7201_v4, %v6718_v5  ;;  %v8489_v8 = vor.u32 %v7184_v26, %v6656_v11 }
 0x319   : > { %v1314_v0 = vpop.f32.mrf.mxu2  ;;  %v1503_v44 = vpop.f32.mrf.mxu3 }
 0x31a   : > { %v8462_v63 = vpack.c.bf16 %v1503_v44, %v1314_v0  ;;  %12087 = vst [vmem:[#allocation32_spill] sm:$0xff] %v8487_v38 }
 0x31b   : > { %12088 = vst [vmem:[#allocation33_spill] sm:$0xff] %v8489_v8 }
 0x31c   : > { %v8466_v24 = vpop.f32.mrf.mxu0  ;;  %2696 = vmatpush.bf16.msrb.mxu2 %v2643_v62  ;;  %2874 = vmatpush.bf16.msrb.mxu0 %v2644_v54 }
 0x31d   : > { %12086 = vst [vmem:[#allocation31_spill] sm:$0xff] %v8466_v24 }
 0x320   : > { %2697 = vmatpush.bf16.msrb.mxu2 %v2641_v37  ;;  %2875 = vmatpush.bf16.msrb.mxu0 %v2642_v59 }
 0x321   : > { %v8480_v30 = vpop.f32.mrf.mxu2  ;;  %v8482_v12 = vpop.f32.mrf.mxu3 }
 0x324   : > { %v8491_v2 = vpop.f32.mrf.mxu0  ;;  %2698 = vmatpush.bf16.msrb.mxu2 %v2639_v17  ;;  %2876 = vmatpush.bf16.msrb.mxu0 %v2640_v43 }
 0x325   : > { %12089 = vst [vmem:[#allocation34_spill] sm:$0xff] %v8491_v2 }
 0x326   : > { %6557 = vmatmul.msk.bf16.gmra.mxu2 %vm1069_vm3, %v7167_v27  ;;  %6593 = vmatmul.msk.bf16.gmra.mxu3 %vm1069_vm3, %v7167_v27 }
 0x327   : > { %2070 = vmatmul.bf16.gmra.mxu0 %v8487_v38  ;;  %2119 = vmatmul.bf16.gmra.mxu1 %v8489_v8 }
 0x328   : > { %2699 = vmatpush.bf16.msrb.mxu2 %v8409_v35  ;;  %2877 = vmatpush.bf16.msrb.mxu0 %v8407_v36  ;;  %v7186_v35 = vld [vmem:[%s11943_s3 + $0x84] sm:$0xf]  ;;  %v6664_v36 = vld [vmem:[%s11943_s3 + $0x88] sm:$0xf0] }
 0x329   : > { %v1319_v34 = vpop.f32.mrf.mxu2  ;;  %v1508_v9 = vpop.f32.mrf.mxu3 }
 0x32a   : > { %v8499_v10 = vpack.c.bf16 %v1508_v9, %v1319_v34  ;;  %v7190_v34 = vld [vmem:[%s11943_s3 + $0xa4] sm:$0xf]  ;;  %v6680_v9 = vld [vmem:[%s11943_s3 + $0xa8] sm:$0xf0] }
 0x32c   : > { %v8501_v62 = vpop.f32.mrf.mxu0  ;;  %2700 = vmatpush.bf16.msrb.mxu2 %v8421_v61  ;;  %2878 = vmatpush.bf16.msrb.mxu0 %v8418_v16  ;;  %v7168_v61 = vld [vmem:[%s11942_s2 + $0x110] sm:$0xff]  ;;  %v8520_v16 = vor.u32 %v7186_v35, %v6664_v36 }
 0x32d   : > { %12090 = vst [vmem:[#allocation35_spill] sm:$0xff] %v8501_v62 }
 0x32e   : > { %12091 = vst [vmem:[#allocation36_spill] sm:$0xff] %v8520_v16 }
 0x330   : > { %2701 = vmatpush.bf16.msrb.mxu2 %v8426_v15  ;;  %2879 = vmatpush.bf16.msrb.mxu0 %v8437_v41 }
 0x331   : > { %v8513_v54 = vpop.f32.mrf.mxu2  ;;  %v8515_v7 = vpop.f32.mrf.mxu3 }
 0x334   : > { %v8522_v15 = vpop.f32.mrf.mxu0  ;;  %v8524_v41 = vpop.f32.mrf.mxu1  ;;  %2702 = vmatpush.bf16.msrb.mxu2 %v2631_v28  ;;  %2880 = vmatpush.bf16.msrb.mxu0 %v8454_v55  ;;  %v7188_v55 = vld [vmem:[%s11943_s3 + $0x94] sm:$0xf]  ;;  %v6672_v28 = vld [vmem:[%s11943_s3 + $0x98] sm:$0xf0] }
 0x335   : > { %v8550_v20 = vor.u32 %v7188_v55, %v6672_v28 }
 0x336   : > { %6558 = vmatmul.msk.bf16.gmra.mxu2 %vm1069_vm3, %v7168_v61  ;;  %6594 = vmatmul.msk.bf16.gmra.mxu3 %vm1069_vm3, %v7168_v61 }
 0x337   : > { %2124 = vmatmul.bf16.gmra.mxu1 %v8520_v16  ;;  %2173 = vmatmul.bf16.vlgmr.msra.gmra.mxu0 %v8054_v52  ;;  %v7169_v52 = vld [vmem:[%s11942_s2 + $0x118] sm:$0xff]  ;;  %12092 = vst [vmem:[#allocation37_spill] sm:$0xff] %v8550_v20 }
 0x339   : > { %v1324_v0 = vpop.f32.mrf.mxu2  ;;  %v1513_v44 = vpop.f32.mrf.mxu3 }
 0x33a   : > { %v8531_v14 = vpack.c.bf16 %v1513_v44, %v1324_v0  ;;  %v8582_v44 = vpop.permute.xlu1 %3305 }
 0x33b   : > { %12095 = vst [vmem:[#allocation40_spill] sm:$0xff] %v8582_v44 }
 0x33c   : > { %v8533_v49 = vpop.f32.mrf.mxu0  ;;  %v8535_v25 = vpop.f32.mrf.mxu1 }
 0x341   : > { %v8543_v37 = vpop.f32.mrf.mxu2  ;;  %v8545_v59 = vpop.f32.mrf.mxu3 }
 0x344   : > { %v8552_v5 = vpop.f32.mrf.mxu0  ;;  %v8554_v17 = vpop.f32.mrf.mxu1 }
 0x346   : > { %6559 = vmatmul.msk.bf16.gmra.mxu2 %vm1069_vm3, %v7169_v52  ;;  %6595 = vmatmul.msk.bf16.gmra.mxu3 %vm1069_vm3, %v7169_v52 }
 0x347   : > { %2129 = vmatmul.bf16.gmra.mxu1 %v8550_v20  ;;  %2178 = vmatmul.bf16.gmra.mxu0 %v8078_v13  ;;  %v8576_v13 = vor.u32 %v7190_v34, %v6680_v9  ;;  %v8592_v34 = vpop.permute.xlu2 %3908  ;;  %v8594_v9 = vpop.permute.xlu1 %3290  ;;  %v7192_v20 = vld [vmem:[%s11943_s3 + $0xb4] sm:$0xf] }
 0x348   : > { %12097 = vst [vmem:[#allocation42_spill] sm:$0xff] %v8592_v34 }
 0x349   : > { %v1329_v43 = vpop.f32.mrf.mxu2  ;;  %v1518_v4 = vpop.f32.mrf.mxu3  ;;  %12093 = vst [vmem:[#allocation38_spill] sm:$0xff] %v8576_v13 }
 0x34a   : > { %v8560_v26 = vpack.c.bf16 %v1518_v4, %v1329_v43  ;;  %12098 = vst [vmem:[#allocation43_spill] sm:$0xff] %v8594_v9 }
 0x34c   : > { %v8562_v11 = vpop.f32.mrf.mxu0  ;;  %v8564_v27 = vpop.f32.mrf.mxu1 }
 0x34f   : > { %v8614_v34 = vpop.permute.xlu2 %3295  ;;  %v8616_v44 = vpop.permute.xlu1 %3903 }
 0x350   : > { %12101 = vst [vmem:[#allocation46_spill] sm:$0xff] %v8614_v34 }
 0x351   : > { %v8572_v35 = vpop.f32.mrf.mxu2  ;;  %v8574_v36 = vpop.f32.mrf.mxu3  ;;  %12102 = vst [vmem:[#allocation47_spill] sm:$0xff] %v8616_v44 }
 0x354   : > { %v8578_v61 = vpop.f32.mrf.mxu0  ;;  %v8580_v0 = vpop.f32.mrf.mxu1 }
 0x355   : > { %12094 = vst [vmem:[#allocation39_spill] sm:$0xff] %v8580_v0 }
 0x357   : > { %2134 = vmatmul.bf16.gmra.mxu1 %v8576_v13  ;;  %2183 = vmatmul.bf16.gmra.mxu0 %v8100_v40  ;;  %v6688_v40 = vld [vmem:[%s11943_s3 + $0xb8] sm:$0xf0]  ;;  %v8630_v34 = vpop.permute.xlu2 %3280  ;;  %v8638_v9 = vpop.permute.xlu1 %3888 }
 0x358   : > { %12106 = vst [vmem:[#allocation51_spill] sm:$0xff] %v8630_v34 }
 0x359   : > { %v1334_v55 = vpop.f32.mrf.mxu2  ;;  %v1523_v28 = vpop.f32.mrf.mxu3  ;;  %12110 = vst [vmem:[#allocation55_spill] sm:$0xff] %v8638_v9  ;;  %v7196_v9 = vld [vmem:[%s11943_s3 + $0xd4] sm:$0xf] }
 0x35a   : > { %v8586_v52 = vpack.c.bf16 %v1523_v28, %v1334_v55  ;;  %v8606_v28 = vor.u32 %v7192_v20, %v6688_v40  ;;  %v8622_v20 = vpop.permute.xlu0 %3300  ;;  %v7194_v40 = vld [vmem:[%s11943_s3 + $0xc4] sm:$0xf] }
 0x35b   : > { %12105 = vst [vmem:[#allocation50_spill] sm:$0xff] %v8622_v20 }
 0x35c   : > { %v8588_v43 = vpop.f32.mrf.mxu0  ;;  %v8590_v4 = vpop.f32.mrf.mxu1  ;;  %12099 = vst [vmem:[#allocation44_spill] sm:$0xff] %v8606_v28 }
 0x35d   : > { %12096 = vst [vmem:[#allocation41_spill] sm:$0xff] %v8590_v4 }
 0x361   : > { %v8602_v13 = vpop.f32.mrf.mxu2  ;;  %v8604_v55 = vpop.f32.mrf.mxu3 }
 0x364   : > { %v8608_v62 = vpop.f32.mrf.mxu0  ;;  %v8610_v2 = vpop.f32.mrf.mxu1 }
 0x365   : > { %12100 = vst [vmem:[#allocation45_spill] sm:$0xff] %v8610_v2  ;;  %v8642_v2 = vpop.permute.xlu0 %3913 }
 0x366   : > { %12111 = vst [vmem:[#allocation56_spill] sm:$0xff] %v8642_v2 }
 0x367   : > { %2139 = vmatmul.bf16.gmra.mxu1 %v8606_v28  ;;  %2188 = vmatmul.bf16.gmra.mxu0 %v8120_v51  ;;  %v6696_v51 = vld [vmem:[%s11943_s3 + $0xc8] sm:$0xf0] }
 0x368   : > { %v8632_v3 = vor.u32 %v7194_v40, %v6696_v51  ;;  %v8648_v40 = vpop.permute.xlu2 %3893  ;;  %v8650_v51 = vpop.permute.xlu1 %3275 }
 0x369   : > { %v1339_v16 = vpop.f32.mrf.mxu2  ;;  %v1528_v24 = vpop.f32.mrf.mxu3  ;;  %12114 = vst [vmem:[#allocation59_spill] sm:$0xff] %v8648_v40 }
 0x36a   : > { %12107 = vst [vmem:[#allocation52_spill] sm:$0xff] %v8632_v3  ;;  %v1621_v56 = vpack.c.bf16 %v1528_v24, %v1339_v16  ;;  %v6726_v24 = vld [vmem:[%s11944_s4] sm:$0xf] }
 0x36b   : > { %12115 = vst [vmem:[#allocation60_spill] sm:$0xff] %v8650_v51 }
 0x36c   : > { %v8618_v53 = vpop.f32.mrf.mxu0  ;;  %v8620_v8 = vpop.f32.mrf.mxu1 }
 0x36d   : > { %12103 = vst [vmem:[#allocation48_spill] sm:$0xff] %v8618_v53 }
 0x36e   : > { %12104 = vst [vmem:[#allocation49_spill] sm:$0xff] %v8620_v8 }
 0x370   : > { %v8668_v40 = vpop.permute.xlu2 %3878  ;;  %v8670_v47 = vpop.permute.xlu1 %3260 }
 0x371   : > { %v1341_v28 = vpop.f32.mrf.mxu2  ;;  %v1530_v38 = vpop.f32.mrf.mxu3  ;;  %12120 = vst [vmem:[#allocation65_spill] sm:$0xff] %v8668_v40 }
 0x372   : > { %12121 = vst [vmem:[#allocation66_spill] sm:$0xff] %v8670_v47 }
 0x374   : > { %v8634_v44 = vpop.f32.mrf.mxu0  ;;  %v8636_v60 = vpop.f32.mrf.mxu1 }
 0x375   : > { %12108 = vst [vmem:[#allocation53_spill] sm:$0xff] %v8634_v44 }
 0x376   : > { %12109 = vst [vmem:[#allocation54_spill] sm:$0xff] %v8636_v60 }
 0x377   : > { %2144 = vmatmul.bf16.gmra.mxu1 %v8632_v3  ;;  %2193 = vmatmul.bf16.gmra.mxu0 %v8134_v6  ;;  %v6704_v6 = vld [vmem:[%s11943_s3 + $0xd8] sm:$0xf0] }
 0x378   : > { %v8658_v34 = vor.u32 %v7196_v9, %v6704_v6 }
 0x379   : > { %v1344_v20 = vpop.f32.mrf.mxu2  ;;  %v1533_v8 = vpop.f32.mrf.mxu3 }
 0x37a   : > { %12116 = vst [vmem:[#allocation61_spill] sm:$0xff] %v8658_v34 }
 0x37c   : > { %v8644_v4 = vpop.f32.mrf.mxu0  ;;  %v8646_v53 = vpop.f32.mrf.mxu1 }
 0x37d   : > { %12112 = vst [vmem:[#allocation57_spill] sm:$0xff] %v8644_v4 }
 0x37e   : > { %12113 = vst [vmem:[#allocation58_spill] sm:$0xff] %v8646_v53  ;;  %v8664_v53 = vpop.permute.xlu0 %3898 }
 0x37f   : > { %12119 = vst [vmem:[#allocation64_spill] sm:$0xff] %v8664_v53  ;;  %v7198_v53 = vld [vmem:[%s11943_s3 + $0xe4] sm:$0xf] }
 0x381   : > { %v1346_v3 = vpop.f32.mrf.mxu2  ;;  %v1535_v60 = vpop.f32.mrf.mxu3 }
 0x384   : > { %v8660_v2 = vpop.f32.mrf.mxu0  ;;  %v8662_v4 = vpop.f32.mrf.mxu1 }
 0x385   : > { %12117 = vst [vmem:[#allocation62_spill] sm:$0xff] %v8660_v2  ;;  %v1623_v2 = vpack.c.bf16 %v1533_v8, %v1344_v20  ;;  %v1622_v8 = vpack.c.bf16 %v1530_v38, %v1341_v28  ;;  %v7203_v38 = vld [vmem:[%s11944_s4 + $0x4] sm:$0xf0]  ;;  %v1620_v28 = vpack.c.bf16 %v8604_v55, %v8602_v13 }
 0x386   : > { %12118 = vst [vmem:[#allocation63_spill] sm:$0xff] %v8662_v4  ;;  %v8676_v0 = vpop.permute.xlu0 %3285  ;;  %v1624_v4 = vpack.c.bf16 %v1535_v60, %v1346_v3  ;;  %v8698_v16 = vor.u32 %v7203_v38, %v6726_v24 }
 0x387   : > { %2149 = vmatmul.bf16.gmra.mxu1 %v8658_v34  ;;  %2198 = vmatmul.bf16.gmra.mxu0 %v8148_v22  ;;  %12124 = vst [vmem:[#allocation69_spill] sm:$0xff] %v8676_v0  ;;  %v6712_v22 = vld [vmem:[%s11943_s3 + $0xe8] sm:$0xf0]  ;;  %v2624_v20 = vunpack.c.h.b16 %v1623_v2  ;;  %v2621_v24 = vunpack.c.l.b16 %v1622_v8  ;;  %v2618_v13 = vunpack.c.h.b16 %v1620_v28 }
 0x388   : > { %v8686_v60 = vor.u32 %v7198_v53, %v6712_v22  ;;  %v2626_v3 = vunpack.c.h.b16 %v1624_v4  ;;  %v2625_v29 = vunpack.c.l.b16 %v1624_v4  ;;  %v8700_v53 = vpop.permute.xlu1 %3873  ;;  %v2622_v4 = vunpack.c.h.b16 %v1622_v8  ;;  %2703 = vmatmul.bf16.vlgmr.msrb.gmra.mxu2 %v8698_v16 }
 0x389   : > { %v1349_v51 = vpop.f32.mrf.mxu2  ;;  %v1538_v44 = vpop.f32.mrf.mxu3  ;;  %12126 = vst [vmem:[#allocation71_spill] sm:$0xff] %v8700_v53 }
 0x38a   : > { %v1625_v6 = vpack.c.bf16 %v1538_v44, %v1349_v51  ;;  %v2623_v44 = vunpack.c.l.b16 %v1623_v2  ;;  %v2660_v22 = vpack.c.b16 %v2626_v3, %v2624_v20  ;;  %v1616_v3 = vpack.c.bf16 %v8545_v59, %v8543_v37 }
 0x38c   : > { %v8672_v46 = vpop.f32.mrf.mxu0  ;;  %v8674_v9 = vpop.f32.mrf.mxu1  ;;  %v2627_v39 = vunpack.c.l.b16 %v1625_v6 }
 0x38d   : > { %12122 = vst [vmem:[#allocation67_spill] sm:$0xff] %v8672_v46  ;;  %v2628_v46 = vunpack.c.h.b16 %v1625_v6  ;;  %v2659_v6 = vpack.c.b16 %v2625_v29, %v2623_v44 }
 0x38e   : > { %12123 = vst [vmem:[#allocation68_spill] sm:$0xff] %v8674_v9  ;;  %v8684_v9 = vpop.permute.xlu2 %3265 }
 0x391   : > { %v1351_v40 = vpop.f32.mrf.mxu2  ;;  %v1540_v34 = vpop.f32.mrf.mxu3 }
 0x392   : > { %v1626_v58 = vpack.c.bf16 %v1540_v34, %v1351_v40  ;;  %v2619_v40 = vunpack.c.l.b16 %v1621_v56 }
 0x394   : > { %v2630_v51 = vunpack.c.h.b16 %v1626_v58  ;;  %v8688_v0 = vpop.f32.mrf.mxu0  ;;  %v8690_v47 = vpop.f32.mrf.mxu1  ;;  %v2629_v32 = vunpack.c.l.b16 %v1626_v58  ;;  %v2620_v58 = vunpack.c.h.b16 %v1621_v56  ;;  %v1618_v56 = vpack.c.bf16 %v8574_v36, %v8572_v35 }
 0x395   : > { %12125 = vst [vmem:[#allocation70_spill] sm:$0xff] %v8690_v47  ;;  %v2657_v8 = vpack.c.b16 %v2621_v24, %v2619_v40  ;;  %v2611_v35 = vunpack.c.l.b16 %v8560_v26  ;;  %v2612_v36 = vunpack.c.h.b16 %v8560_v26  ;;  %v6720_v40 = vld [vmem:[%s11943_s3 + $0xf8] sm:$0xf0]  ;;  %v1614_v26 = vpack.c.bf16 %v8515_v7, %v8513_v54  ;;  %v6734_v54 = vld [vmem:[%s11944_s4 + $0x10] sm:$0xf] }
 0x396   : > { %v2662_v2 = vpack.c.b16 %v2630_v51, %v2628_v46  ;;  %v2661_v34 = vpack.c.b16 %v2629_v32, %v2627_v39  ;;  %v8709_v46 = vpop.permute.xlu0 %3270  ;;  %v2615_v39 = vunpack.c.l.b16 %v8586_v52  ;;  %v2658_v44 = vpack.c.b16 %v2622_v4, %v2620_v58  ;;  %v8719_v20 = vpop.permute.xlu2 %3250  ;;  %v7205_v7 = vld [vmem:[%s11944_s4 + $0x14] sm:$0xf0] }
 0x397   : > { %2154 = vmatmul.bf16.gmra.mxu1 %v8686_v60  ;;  %2203 = vmatmul.bf16.gmra.mxu0 %v8166_v48  ;;  %v2616_v48 = vunpack.c.h.b16 %v8586_v52  ;;  %v8725_v52 = vpop.permute.xlu1 %3858  ;;  %v2614_v51 = vunpack.c.h.b16 %v1618_v56  ;;  %v2613_v37 = vunpack.c.l.b16 %v1618_v56  ;;  %v2607_v4 = vunpack.c.l.b16 %v8531_v14 }
 0x398   : > { %2784 = vmatpush.bf16.msrb.mxu3 %v2661_v34  ;;  %2962 = vmatpush.bf16.msrb.mxu1 %v2662_v2  ;;  %12127 = vst [vmem:[#allocation72_spill] sm:$0xff] %v8725_v52  ;;  %v2610_v24 = vunpack.c.h.b16 %v1616_v3 }
 0x399   : > { %v1354_v38 = vpop.f32.mrf.mxu2  ;;  %v1543_v47 = vpop.f32.mrf.mxu3  ;;  %v2656_v34 = vpack.c.b16 %v2618_v13, %v2616_v48  ;;  %v2653_v56 = vpack.c.b16 %v2613_v37, %v2611_v35  ;;  %v2654_v48 = vpack.c.b16 %v2614_v51, %v2612_v36  ;;  %v2609_v13 = vunpack.c.l.b16 %v1616_v3 }
 0x39a   : > { %v8707_v32 = vpack.c.bf16 %v1543_v47, %v1354_v38  ;;  %v2617_v47 = vunpack.c.l.b16 %v1620_v28  ;;  %v7200_v28 = vld [vmem:[%s11943_s3 + $0xf4] sm:$0xf]  ;;  %v2604_v35 = vunpack.c.h.b16 %v8499_v10  ;;  %v2606_v36 = vunpack.c.h.b16 %v1614_v26 }
 0x39b   : > { %v2651_v51 = vpack.c.b16 %v2609_v13, %v2607_v4 }
 0x39c   : > { %v8715_v55 = vpop.f32.mrf.mxu0  ;;  %v8717_v29 = vpop.f32.mrf.mxu1  ;;  %2785 = vmatpush.bf16.msrb.mxu3 %v2659_v6  ;;  %2963 = vmatpush.bf16.msrb.mxu1 %v2660_v22  ;;  %v2655_v2 = vpack.c.b16 %v2617_v47, %v2615_v39  ;;  %v2608_v6 = vunpack.c.h.b16 %v8531_v14  ;;  %v8741_v22 = vor.u32 %v7200_v28, %v6720_v40  ;;  %v2603_v47 = vunpack.c.l.b16 %v8499_v10 }
 0x39d   : > { %v2650_v4 = vpack.c.b16 %v2606_v36, %v2604_v35 }
 0x39e   : > { %v8753_v14 = vpop.permute.xlu0 %3883  ;;  %v8763_v3 = vpop.permute.xlu2 %3863 }
 0x39f   : > { %12128 = vst [vmem:[#allocation73_spill] sm:$0xff] %v8753_v14  ;;  %v6736_v14 = vld [vmem:[%s11944_s4 + $0x18] sm:$0xf0] }
 0x3a0   : > { %2786 = vmatpush.bf16.msrb.mxu3 %v2657_v8  ;;  %2964 = vmatpush.bf16.msrb.mxu1 %v2658_v44  ;;  %v8755_v8 = vor.u32 %v7205_v7, %v6734_v54  ;;  %v1612_v44 = vpack.c.bf16 %v8482_v12, %v8480_v30  ;;  %12129 = vst [vmem:[#allocation74_spill] sm:$0xff] %v8763_v3  ;;  %v8770_v30 = vpop.permute.xlu1 %3245  ;;  %v2599_v12 = vunpack.c.l.b16 %v8462_v63 }
 0x3a1   : > { %v8733_v59 = vpop.f32.mrf.mxu2  ;;  %v8735_v58 = vpop.f32.mrf.mxu3 }
 0x3a2   : > { %2708 = vmatmul.bf16.gmra.mxu2 %v8755_v8  ;;  %v2602_v10 = vunpack.c.h.b16 %v1612_v44 }
 0x3a4   : > { %v8743_v38 = vpop.f32.mrf.mxu0  ;;  %v8745_v39 = vpop.f32.mrf.mxu1  ;;  %2787 = vmatpush.bf16.msrb.mxu3 %v2655_v2  ;;  %2965 = vmatpush.bf16.msrb.mxu1 %v2656_v34  ;;  %v2652_v2 = vpack.c.b16 %v2610_v24, %v2608_v6  ;;  %v2605_v34 = vunpack.c.l.b16 %v1614_v26  ;;  %v2601_v6 = vunpack.c.l.b16 %v1612_v44 }
 0x3a6   : > { %v2649_v26 = vpack.c.b16 %v2605_v34, %v2603_v47  ;;  %v8778_v24 = vpop.permute.xlu0 %3868  ;;  %v6728_v47 = vld [vmem:[%s11944_s4 + $0x8] sm:$0xf0]  ;;  %v8790_v35 = vpop.permute.xlu2 %3848  ;;  %v6742_v34 = vld [vmem:[%s11944_s4 + $0x20] sm:$0xf] }
 0x3a7   : > { %2159 = vmatmul.bf16.gmra.mxu1 %v8741_v22  ;;  %2208 = vmatmul.bf16.gmra.mxu0 %v8199_v1  ;;  %v2600_v1 = vunpack.c.h.b16 %v8462_v63  ;;  %12130 = vst [vmem:[#allocation75_spill] sm:$0xff] %v8778_v24  ;;  %v7202_v63 = vld [vmem:[%s11944_s4 + $0x4] sm:$0xf]  ;;  %v6750_v24 = vld [vmem:[%s11944_s4 + $0x30] sm:$0xf] }
 0x3a8   : > { %2788 = vmatpush.bf16.msrb.mxu3 %v2653_v56  ;;  %2966 = vmatpush.bf16.msrb.mxu1 %v2654_v48  ;;  %v2647_v48 = vpack.c.b16 %v2601_v6, %v2599_v12  ;;  %12131 = vst [vmem:[#allocation76_spill] sm:$0xff] %v8790_v35  ;;  %v7207_v12 = vld [vmem:[%s11944_s4 + $0x24] sm:$0xf0] }
 0x3a9   : > { %v8765_v28 = vpop.f32.mrf.mxu2  ;;  %v8767_v40 = vpop.f32.mrf.mxu3  ;;  %v2648_v13 = vpack.c.b16 %v2602_v10, %v2600_v1  ;;  %v8805_v10 = vor.u32 %v7207_v12, %v6742_v34  ;;  %v7204_v12 = vld [vmem:[%s11944_s4 + $0x14] sm:$0xf] }
 0x3aa   : > { %v8803_v1 = vpop.permute.xlu1 %3230 }
 0x3ac   : > { %v8774_v37 = vpop.f32.mrf.mxu0  ;;  %v8776_v56 = vpop.f32.mrf.mxu1  ;;  %2789 = vmatpush.bf16.msrb.mxu3 %v2651_v51  ;;  %2967 = vmatpush.bf16.msrb.mxu1 %v2652_v2  ;;  %v8794_v51 = vor.u32 %v7202_v63, %v6728_v47 }
 0x3ae   : > { %v8812_v6 = vpop.permute.xlu0 %3255  ;;  %v8817_v47 = vpop.permute.xlu2 %3235 }
 0x3af   : > { %12134 = vst [vmem:[#allocation79_spill] sm:$0xff] %v8817_v47 }
 0x3b0   : > { %2790 = vmatpush.bf16.msrb.mxu3 %v2649_v26  ;;  %2968 = vmatpush.bf16.msrb.mxu1 %v2650_v4 }
 0x3b1   : > { %v8780_v54 = vpop.f32.mrf.mxu2  ;;  %v8782_v7 = vpop.f32.mrf.mxu3 }
 0x3b2   : > { %2713 = vmatmul.bf16.gmra.mxu2 %v8805_v10 }
 0x3b4   : > { %v2125_v44 = vpop.f32.mrf.mxu1  ;;  %v8792_v36 = vpop.f32.mrf.mxu0  ;;  %2791 = vmatpush.bf16.msrb.mxu3 %v2647_v48  ;;  %2969 = vmatpush.bf16.msrb.mxu1 %v2648_v13 }
 0x3b5   : > { %12132 = vst [vmem:[#allocation77_spill] sm:$0xff] %v8792_v36  ;;  %v2126_v2 = vadd.f32 %v2125_v44, %v8522_v15 }
 0x3b7   : > { %v3308_v26 = vadd.f32 %v8803_v1, %v2126_v2  ;;  %2213 = vmatmul.bf16.gmra.mxu0 %v8228_v31  ;;  %2262 = vmatmul.bf16.vlgmr.msra.gmra.mxu1 %v8230_v57 }
 0x3b8   : > { %2792 = vmatmul.bf16.vlgmr.msrb.gmra.mxu3 %v8794_v51 }
 0x3b9   : > { %7297 = vrcp.f32 %v3308_v26  ;;  %v1364_v15 = vpop.f32.mrf.mxu2  ;;  %v1553_v4 = vpop.f32.mrf.mxu3  ;;  %v3351_v53 = vand.u32 2147483648, %v3308_v26  ;;  %v3349_v36 = vand.u32 2147483647, %v3308_v26  ;;  %vm3345_vm5 = vweird.f32 %v3308_v26 }
 0x3bb   : > { %vm3350_vm7 = vcmp.eq.f32.partialorder %v3349_v36, 8.507059e+37  ;;  %v7206_v36 = vld [vmem:[%s11944_s4 + $0x24] sm:$0xf] }
 0x3bc   : > { %v2127_v48 = vpop.f32.mrf.mxu1  ;;  %v8814_v13 = vpop.f32.mrf.mxu0 }
 0x3bd   : > { %12133 = vst [vmem:[#allocation78_spill] sm:$0xff] %v8814_v13  ;;  %v2128_v63 = vadd.f32 %v2127_v48, %v8533_v49  ;;  %v7209_v13 = vld [vmem:[%s11944_s4 + $0x34] sm:$0xf0] }
 0x3bf   : > { %v7298_v44 = vpop.eup %7297  ;;  %v8820_v31 = vadd.f32 %v8817_v47, %v2128_v63  ;;  %v8831_v63 = vor.u32 %v7204_v12, %v6736_v14  ;;  %v3352_v47 = vor.u32 1.1754944e-38, %v3351_v53 }
 0x3c0   : > { %v3341_v57 = vmul.f32 %v7298_v44, %v3308_v26  ;;  %vm3346_vm4 = vweird.f32 %v7298_v44 }
 0x3c1   : > { %7299 = vrcp.f32 %v8820_v31  ;;  %v1366_v2 = vpop.f32.mrf.mxu2  ;;  %v1555_v34 = vpop.f32.mrf.mxu3  ;;  %12136 = vst [vmem:[#allocation81_spill] sm:$0xff] %v8831_v63  ;;  %vm3347_vm6 = vmor %vm3345_vm5, %vm3346_vm4  ;;  %vm3375_vm9 = vweird.f32 %v8820_v31 }
 0x3c2   : > { %v3342_v49 = vsub.f32 1.0, %v3341_v57  ;;  %v8840_v57 = vpop.permute.xlu0 %3240 }
 0x3c3   : > { %12137 = vst [vmem:[#allocation82_spill] sm:$0xff] %v8840_v57 }
 0x3c4   : > { %v3343_v48 = vmul.f32 %v7298_v44, %v3342_v49  ;;  %v2130_v3 = vpop.f32.mrf.mxu1  ;;  %v8829_v52 = vpop.f32.mrf.mxu0  ;;  %v8842_v49 = vor.u32 %v7209_v13, %v6750_v24  ;;  %v2086_v24 = vadd.f32 %v8524_v41, %v8232_v50  ;;  %v3381_v50 = vand.u32 2147483648, %v8820_v31 }
 0x3c5   : > { %12135 = vst [vmem:[#allocation80_spill] sm:$0xff] %v8829_v52  ;;  %v2131_v35 = vadd.f32 %v2130_v3, %v8552_v5  ;;  %v8862_v41 = vpack.c.bf16 %v1553_v4, %v1364_v15  ;;  %v8878_v15 = vpack.c.bf16 %v8735_v58, %v8733_v59 }
 0x3c6   : > { %v3344_v52 = vadd.f32 %v7298_v44, %v3343_v48  ;;  %2718 = vmatmul.bf16.gmra.mxu2 %v8842_v49  ;;  %v2088_v48 = vadd.f32 %v8535_v25, %v8245_v21  ;;  %v6744_v21 = vld [vmem:[%s11944_s4 + $0x28] sm:$0xf0]  ;;  %v3379_v25 = vand.u32 2147483647, %v8820_v31 }
 0x3c7   : > { %v7300_v14 = vpop.eup %7299  ;;  %v8845_v12 = vadd.f32 %v8840_v57, %v2131_v35  ;;  %2218 = vmatmul.bf16.gmra.mxu0 %v8265_v18  ;;  %2267 = vmatmul.bf16.gmra.mxu1 %v8267_v19  ;;  %v8897_v59 = vor.u32 %v7206_v36, %v6744_v21 }
 0x3c8   : > { %v3371_v5 = vmul.f32 %v7300_v14, %v8820_v31  ;;  %2797 = vmatmul.bf16.gmra.mxu3 %v8831_v63  ;;  %v3348_v3 = vsel %vm3347_vm6, %v7298_v44, %v3344_v52  ;;  %vm3376_vm8 = vweird.f32 %v7300_v14  ;;  %v3382_v31 = vor.u32 1.1754944e-38, %v3381_v50 }
 0x3c9   : > { %7301 = vrcp.f32 %v8845_v12  ;;  %v1369_v26 = vpop.f32.mrf.mxu2  ;;  %v1558_v13 = vpop.f32.mrf.mxu3  ;;  %v3353_v35 = vsel %vm3350_vm7, %v3352_v47, %v3348_v3  ;;  %v8874_v47 = vadd.f32 %v8554_v17, %v8269_v33  ;;  %v8889_v3 = vpack.c.bf16 %v8782_v7, %v8780_v54  ;;  %vm3377_vm10 = vmor %vm3375_vm9, %vm3376_vm8 }
 0x3ca   : > { %v3372_v18 = vsub.f32 1.0, %v3371_v5  ;;  %v8855_v19 = vmul.f32 %v3353_v35, %v2086_v24  ;;  %v1633_v44 = vpack.c.bf16 %v1558_v13, %v1369_v26  ;;  %v8885_v5 = vpack.c.bf16 %v8767_v40, %v8765_v28 }
 0x3cb   : > { %v1632_v24 = vpack.c.bf16 %v1555_v34, %v1366_v2  ;;  %v3081_v28 = vunpack.c.l.b16 %v8862_v41  ;;  %vm3380_vm11 = vcmp.eq.f32.partialorder %v3379_v25, 8.507059e+37  ;;  %v3082_v26 = vunpack.c.h.b16 %v8862_v41  ;;  %v6758_v41 = vld [vmem:[%s11944_s4 + $0x40] sm:$0xf] }
 0x3cc   : > { %v3373_v63 = vmul.f32 %v7300_v14, %v3372_v18  ;;  %v2132_v52 = vpop.f32.mrf.mxu1  ;;  %v8859_v53 = vpop.f32.mrf.mxu0  ;;  %v3085_v40 = vunpack.c.l.b16 %v1633_v44  ;;  %v3086_v34 = vunpack.c.h.b16 %v1633_v44  ;;  %v3411_v18 = vand.u32 2147483648, %v8845_v12 }
 0x3cd   : > { %v2133_v57 = vadd.f32 %v2132_v52, %v8562_v11  ;;  %v3083_v13 = vunpack.c.l.b16 %v1632_v24  ;;  %v3084_v25 = vunpack.c.h.b16 %v1632_v24  ;;  %vm3405_vm13 = vweird.f32 %v8845_v12 }
 0x3ce   : > { %v3374_v11 = vadd.f32 %v7300_v14, %v3373_v63 }
 0x3cf   : > { %v8881_v4 = vpop.eup %7301  ;;  %v8892_v33 = vadd.f32 %v8770_v30, %v2133_v57 }
 0x3d0   : > { %v3401_v17 = vmul.f32 %v8881_v4, %v8845_v12  ;;  %v3378_v58 = vsel %vm3377_vm10, %v7300_v14, %v3374_v11  ;;  %vm3406_vm12 = vweird.f32 %v8881_v4  ;;  %v3409_v11 = vand.u32 2147483647, %v8845_v12 }
 0x3d1   : > { %7303 = vrcp.f32 %v8892_v33  ;;  %v1371_v54 = vpop.f32.mrf.mxu2  ;;  %v1560_v7 = vpop.f32.mrf.mxu3  ;;  %v3383_v57 = vsel %vm3380_vm11, %v3382_v31, %v3378_v58  ;;  %vm8935_vm14 = vmor %vm3405_vm13, %vm3406_vm12  ;;  %v3094_v12 = vpack.c.b16 %v3084_v25, %v3082_v26  ;;  %v3441_v25 = vand.u32 2147483648, %v8892_v33 }
 0x3d2   : > { %v3402_v2 = vsub.f32 1.0, %v3401_v17  ;;  %v1634_v63 = vpack.c.bf16 %v1560_v7, %v1371_v54  ;;  %v8903_v35 = vmul.f32 %v3383_v57, %v2088_v48  ;;  %v7211_v48 = vld [vmem:[%s11944_s4 + $0x44] sm:$0xf0]  ;;  %v3078_v7 = vunpack.c.h.b16 %v8885_v5 }
 0x3d3   : > { %v8918_v31 = vor.u32 %v7211_v48, %v6758_v41  ;;  %v3080_v57 = vunpack.c.h.b16 %v8889_v3  ;;  %vm3410_vm15 = vcmp.eq.f32.partialorder %v3409_v11, 8.507059e+37  ;;  %vm3435_vm4 = vweird.f32 %v8892_v33 }
 0x3d4   : > { %v3403_v14 = vmul.f32 %v8881_v4, %v3402_v2  ;;  %v3087_v52 = vunpack.c.l.b16 %v1634_v63  ;;  %v3088_v50 = vunpack.c.h.b16 %v1634_v63  ;;  %v2135_v36 = vpop.f32.mrf.mxu1  ;;  %v8906_v21 = vpop.f32.mrf.mxu0  ;;  %v3079_v2 = vunpack.c.l.b16 %v8889_v3 }
 0x3d5   : > { %v2136_v44 = vadd.f32 %v2135_v36, %v8578_v61  ;;  %v3077_v61 = vunpack.c.l.b16 %v8885_v5  ;;  %v3092_v41 = vpack.c.b16 %v3080_v57, %v3078_v7 }
 0x3d6   : > { %v3095_v17 = vpack.c.b16 %v3087_v52, %v3085_v40  ;;  %v3096_v58 = vpack.c.b16 %v3088_v50, %v3086_v34  ;;  %v3404_v24 = vadd.f32 %v8881_v4, %v3403_v14  ;;  %v3093_v34 = vpack.c.b16 %v3083_v13, %v3081_v28  ;;  %2723 = vmatmul.bf16.gmra.mxu2 %v8918_v31  ;;  %v6752_v40 = vld [vmem:[%s11944_s4 + $0x38] sm:$0xf0] }
 0x3d7   : > { %v8921_v54 = vpop.eup %7303  ;;  %v8927_v63 = vadd.f32 %v8719_v20, %v2136_v44  ;;  %2223 = vmatmul.bf16.gmra.mxu0 %v8300_v42  ;;  %2272 = vmatmul.bf16.gmra.mxu1 %v8302_v23  ;;  %v3412_v23 = vor.u32 1.1754944e-38, %v3411_v18  ;;  %v3073_v28 = vunpack.c.l.b16 %v8707_v32  ;;  %v3074_v13 = vunpack.c.h.b16 %v8707_v32 }
 0x3d8   : > { %v3431_v5 = vmul.f32 %v8921_v54, %v8892_v33  ;;  %2802 = vmatmul.bf16.gmra.mxu3 %v8897_v59  ;;  %3116 = vmatpush.bf16.msra.mxu2 %v3095_v17  ;;  %v3408_v42 = vsel %vm8935_vm14, %v8881_v4, %v3404_v24  ;;  %v3075_v4 = vunpack.c.l.b16 %v8878_v15  ;;  %v3091_v36 = vpack.c.b16 %v3079_v2, %v3077_v61  ;;  %v7208_v2 = vld [vmem:[%s11944_s4 + $0x34] sm:$0xf] }
 0x3d9   : > { %7305 = vrcp.f32 %v8927_v63  ;;  %3135 = vmatpush.bf16.msra.mxu3 %v3096_v58  ;;  %3194 = vmatpush.bf16.msra.mxu0 %v3095_v17  ;;  %v3413_v52 = vsel %vm3410_vm15, %v3412_v23, %v3408_v42  ;;  %vm3436_vm2 = vweird.f32 %v8921_v54  ;;  %v3076_v44 = vunpack.c.h.b16 %v8878_v15 }
 0x3da   : > { %v3432_v14 = vsub.f32 1.0, %v3431_v5  ;;  %3213 = vmatpush.bf16.msra.mxu1 %v3096_v58  ;;  %v8952_v18 = vmul.f32 %v3413_v52, %v8874_v47  ;;  %v3439_v47 = vand.u32 2147483647, %v8892_v33  ;;  %vm8967_vm5 = vmor %vm3435_vm4, %vm3436_vm2  ;;  %v3089_v15 = vpack.c.b16 %v3075_v4, %v3073_v28  ;;  %v6766_v52 = vld [vmem:[%s11944_s4 + $0x50] sm:$0xf] }
 0x3db   : > { %v3442_v24 = vor.u32 1.1754944e-38, %v3441_v25  ;;  %v2093_v61 = vadd.f32 %v8564_v27, %v8279_v45  ;;  %v3090_v7 = vpack.c.b16 %v3076_v44, %v3074_v13  ;;  %v3471_v27 = vand.u32 2147483648, %v8927_v63  ;;  %v7213_v28 = vld [vmem:[%s11944_s4 + $0x54] sm:$0xf0]  ;;  %v12143_v4 = vld [vmem:[#allocation3_spill] sm:$0xff] }
 0x3dc   : > { %v3433_v3 = vmul.f32 %v8921_v54, %v3432_v14  ;;  %v2137_v50 = vpop.f32.mrf.mxu1  ;;  %v8955_v26 = vpop.f32.mrf.mxu0  ;;  %3117 = vmatpush.bf16.msra.mxu2 %v3093_v34  ;;  %vm3440_vm6 = vcmp.eq.f32.partialorder %v3439_v47, 8.507059e+37  ;;  %v8989_v57 = vor.u32 %v7208_v2, %v6752_v40  ;;  %v12142_v14 = vld [vmem:[#allocation2_spill] sm:$0xff]  ;;  %v3469_v13 = vand.u32 2147483647, %v8927_v63  ;;  %v12145_v44 = vld [vmem:[#allocation16_spill] sm:$0xff]  ;;  %v12148_v58 = vld [vmem:[#allocation39_spill] sm:$0xff] }
 0x3dd   : > { %v2138_v32 = vadd.f32 %v2137_v50, %v8588_v43  ;;  %3136 = vmatpush.bf16.msra.mxu3 %v3094_v12  ;;  %3195 = vmatpush.bf16.msra.mxu0 %v3093_v34  ;;  %vm3465_vm8 = vweird.f32 %v8927_v63  ;;  %v3472_v47 = vor.u32 1.1754944e-38, %v3471_v27  ;;  %v12152_v27 = vld [vmem:[#allocation6_spill] sm:$0xff] }
 0x3de   : > { %v3434_v48 = vadd.f32 %v8921_v54, %v3433_v3  ;;  %3214 = vmatpush.bf16.msra.mxu1 %v3094_v12  ;;  %v9002_v3 = vor.u32 %v7213_v28, %v6766_v52  ;;  %vm3470_vm10 = vcmp.eq.f32.partialorder %v3469_v13, 8.507059e+37 }
 0x3df   : > { %v7306_v11 = vpop.eup %7305  ;;  %v8965_v17 = vadd.f32 %v8812_v6, %v2138_v32  ;;  %v12146_v32 = vld [vmem:[#allocation17_spill] sm:$0xff] }
 0x3e0   : > { %v3461_v43 = vmul.f32 %v7306_v11, %v8927_v63  ;;  %3118 = vmatpush.bf16.msra.mxu2 %v3091_v36  ;;  %v3438_v33 = vsel %vm8967_vm5, %v8921_v54, %v3434_v48  ;;  %vm3466_vm7 = vweird.f32 %v7306_v11  ;;  %v12147_v48 = vld [vmem:[#allocation14_spill] sm:$0xff] }
 0x3e1   : > { %7307 = vrcp.f32 %v8965_v17  ;;  %3137 = vmatpush.bf16.msra.mxu3 %v3092_v41  ;;  %3196 = vmatpush.bf16.msra.mxu0 %v3091_v36  ;;  %v3443_v54 = vsel %vm3440_vm6, %v3442_v24, %v3438_v33  ;;  %v12144_v36 = vld [vmem:[#allocation66_spill] sm:$0xff]  ;;  %vm3467_vm9 = vmor %vm3465_vm8, %vm3466_vm7  ;;  %v12150_v24 = vld [vmem:[#allocation5_spill] sm:$0xff]  ;;  %vm3495_vm12 = vweird.f32 %v8965_v17 }
 0x3e2   : > { %v3462_v5 = vsub.f32 1.0, %v3461_v43  ;;  %3215 = vmatpush.bf16.msra.mxu1 %v3092_v41  ;;  %v8984_v34 = vmul.f32 %v3443_v54, %v2093_v61  ;;  %v2096_v43 = vadd.f32 %v12148_v58, %v12147_v48  ;;  %v12151_v54 = vld [vmem:[#allocation48_spill] sm:$0xff]  ;;  %v12157_v58 = vld [vmem:[#allocation9_spill] sm:$0xff] }
 0x3e4   : > { %v3463_v45 = vmul.f32 %v7306_v11, %v3462_v5  ;;  %v2140_v42 = vpop.f32.mrf.mxu1  ;;  %v8987_v23 = vpop.f32.mrf.mxu0  ;;  %3119 = vmatpush.bf16.msra.mxu2 %v3089_v15 }
 0x3e5   : > { %v2141_v12 = vadd.f32 %v2140_v42, %v8608_v62  ;;  %3138 = vmatpush.bf16.msra.mxu3 %v3090_v7  ;;  %3197 = vmatpush.bf16.msra.mxu0 %v3089_v15  ;;  %v12149_v15 = vld [vmem:[#allocation4_spill] sm:$0xff]  ;;  %v3499_v42 = vand.u32 2147483647, %v8965_v17 }
 0x3e6   : > { %v3464_v62 = vadd.f32 %v7306_v11, %v3463_v45  ;;  %3216 = vmatpush.bf16.msra.mxu1 %v3090_v7  ;;  %2728 = vmatmul.bf16.gmra.mxu2 %v9002_v3  ;;  %v3501_v7 = vand.u32 2147483648, %v8965_v17 }
 0x3e7   : > { %v7308_v50 = vpop.eup %7307  ;;  %v9005_v25 = vadd.f32 %v12144_v36, %v2141_v12  ;;  %2228 = vmatmul.bf16.gmra.mxu0 %v12145_v44  ;;  %2277 = vmatmul.bf16.gmra.mxu1 %v12146_v32  ;;  %v12153_v12 = vld [vmem:[#allocation7_spill] sm:$0xff]  ;;  %v12155_v32 = vld [vmem:[#allocation41_spill] sm:$0xff]  ;;  %vm3500_vm14 = vcmp.eq.f32.partialorder %v3499_v42, 8.507059e+37 }
 0x3e8   : > { %4876 = vmatpush.bf16.msrb.mxu2 %v12142_v14  ;;  %v3491_v41 = vmul.f32 %v7308_v50, %v8965_v17  ;;  %2807 = vmatmul.bf16.gmra.mxu3 %v8989_v57  ;;  %v3468_v63 = vsel %vm3467_vm9, %v7306_v11, %v3464_v62  ;;  %vm3496_vm11 = vweird.f32 %v7308_v50  ;;  %v3502_v62 = vor.u32 1.1754944e-38, %v3501_v7  ;;  %v12154_v44 = vld [vmem:[#allocation15_spill] sm:$0xff]  ;;  %v7210_v17 = vld [vmem:[%s11944_s4 + $0x44] sm:$0xf] }
 0x3e9   : > { %4930 = vmatpush.bf16.msrb.mxu3 %v12143_v4  ;;  %7309 = vrcp.f32 %v9005_v25  ;;  %v3473_v61 = vsel %vm3470_vm10, %v3472_v47, %v3468_v63  ;;  %vm3497_vm13 = vmor %vm3495_vm12, %vm3496_vm11  ;;  %v12156_v63 = vld [vmem:[#allocation8_spill] sm:$0xff]  ;;  %v6760_v47 = vld [vmem:[%s11944_s4 + $0x48] sm:$0xf0]  ;;  %v3529_v42 = vand.u32 2147483647, %v9005_v25  ;;  %vm3525_vm2 = vweird.f32 %v9005_v25 }
 0x3ea   : > { %v3492_v33 = vsub.f32 1.0, %v3491_v41  ;;  %v9018_v2 = vmul.f32 %v3473_v61, %v2096_v43  ;;  %v2098_v41 = vadd.f32 %v12155_v32, %v12154_v44  ;;  %v12162_v44 = vld [vmem:[#allocation20_spill] sm:$0xff]  ;;  %v12163_v32 = vld [vmem:[#allocation21_spill] sm:$0xff] }
 0x3eb   : > { %vm3530_vm5 = vcmp.eq.f32.partialorder %v3529_v42, 8.507059e+37 }
 0x3ec   : > { %4877 = vmatpush.bf16.msrb.mxu2 %v12149_v15  ;;  %v3493_v40 = vmul.f32 %v7308_v50, %v3492_v33  ;;  %v2142_v11 = vpop.f32.mrf.mxu1  ;;  %v9020_v5 = vpop.f32.mrf.mxu0  ;;  %v3531_v33 = vand.u32 2147483648, %v9005_v25 }
 0x3ed   : > { %4931 = vmatpush.bf16.msrb.mxu3 %v12150_v24  ;;  %v2143_v45 = vadd.f32 %v2142_v11, %v12151_v54  ;;  %v12159_v11 = vld [vmem:[#allocation53_spill] sm:$0xff]  ;;  %v12160_v54 = vld [vmem:[#allocation10_spill] sm:$0xff] }
 0x3ee   : > { %v3494_v14 = vadd.f32 %v7308_v50, %v3493_v40  ;;  %v9048_v40 = vor.u32 %v7210_v17, %v6760_v47  ;;  %v12164_v17 = vld [vmem:[#allocation18_spill] sm:$0xff]  ;;  %v12165_v47 = vld [vmem:[#allocation45_spill] sm:$0xff] }
 0x3ef   : > { %v7310_v52 = vpop.eup %7309  ;;  %v9029_v28 = vadd.f32 %v8684_v9, %v2143_v45  ;;  %v6774_v45 = vld [vmem:[%s11944_s4 + $0x60] sm:$0xf] }
 0x3f0   : > { %4878 = vmatpush.bf16.msrb.mxu2 %v12152_v27  ;;  %v3521_v13 = vmul.f32 %v7310_v52, %v9005_v25  ;;  %v3498_v4 = vsel %vm3497_vm13, %v7308_v50, %v3494_v14  ;;  %vm3526_vm15 = vweird.f32 %v7310_v52  ;;  %v7215_v27 = vld [vmem:[%s11944_s4 + $0x64] sm:$0xf0]  ;;  %v3532_v25 = vor.u32 1.1754944e-38, %v3531_v33 }
 0x3f1   : > { %4932 = vmatpush.bf16.msrb.mxu3 %v12153_v12  ;;  %7311 = vrcp.f32 %v9029_v28  ;;  %v3503_v50 = vsel %vm3500_vm14, %v3502_v62, %v3498_v4  ;;  %v12161_v12 = vld [vmem:[#allocation11_spill] sm:$0xff]  ;;  %v9061_v14 = vor.u32 %v7215_v27, %v6774_v45  ;;  %vm3527_vm4 = vmor %vm3525_vm2, %vm3526_vm15  ;;  %v3561_v33 = vand.u32 2147483648, %v9029_v28  ;;  %v12169_v45 = vld [vmem:[#allocation57_spill] sm:$0xff] }
 0x3f2   : > { %v3522_v48 = vsub.f32 1.0, %v3521_v13  ;;  %v9043_v43 = vmul.f32 %v3503_v50, %v2098_v41  ;;  %vm3555_vm7 = vweird.f32 %v9029_v28 }
 0x3f4   : > { %4879 = vmatpush.bf16.msrb.mxu2 %v12156_v63  ;;  %v3523_v15 = vmul.f32 %v7310_v52, %v3522_v48  ;;  %v2145_v24 = vpop.f32.mrf.mxu1  ;;  %v9046_v61 = vpop.f32.mrf.mxu0  ;;  %v2101_v48 = vadd.f32 %v12165_v47, %v12164_v17  ;;  %v12171_v17 = vld [vmem:[#allocation19_spill] sm:$0xff]  ;;  %v12172_v47 = vld [vmem:[#allocation49_spill] sm:$0xff] }
 0x3f5   : > { %4933 = vmatpush.bf16.msrb.mxu3 %v12157_v58  ;;  %12158 = vst [vmem:[#allocation2_spill] sm:$0xff] %v9046_v61  ;;  %v2146_v7 = vadd.f32 %v2145_v24, %v12159_v11  ;;  %v12166_v58 = vld [vmem:[#allocation12_spill] sm:$0xff] }
 0x3f6   : > { %v3524_v13 = vadd.f32 %v7310_v52, %v3523_v15  ;;  %v12167_v15 = vld [vmem:[#allocation13_spill] sm:$0xff]  ;;  %2733 = vmatmul.bf16.gmra.mxu2 %v9061_v14 }
 0x3f7   : > { %v7312_v4 = vpop.eup %7311  ;;  %v9064_v62 = vadd.f32 %v8709_v46, %v2146_v7  ;;  %2233 = vmatmul.bf16.gmra.mxu0 %v12162_v44  ;;  %2282 = vmatmul.bf16.gmra.mxu1 %v12163_v32  ;;  %v12170_v44 = vld [vmem:[#allocation60_spill] sm:$0xff] }
 0x3f8   : > { %4880 = vmatpush.bf16.msrb.mxu2 %v12160_v54  ;;  %v3551_v41 = vmul.f32 %v7312_v4, %v9029_v28  ;;  %2812 = vmatmul.bf16.gmra.mxu3 %v9048_v40  ;;  %v3528_v63 = vsel %vm3527_vm4, %v7310_v52, %v3524_v13  ;;  %vm3556_vm6 = vweird.f32 %v7312_v4 }
 0x3f9   : > { %4934 = vmatpush.bf16.msrb.mxu3 %v12161_v12  ;;  %7313 = vrcp.f32 %v9064_v62  ;;  %v3533_v24 = vsel %vm3530_vm5, %v3532_v25, %v3528_v63  ;;  %v3559_v12 = vand.u32 2147483647, %v9029_v28  ;;  %vm3557_vm8 = vmor %vm3555_vm7, %vm3556_vm6  ;;  %v3562_v25 = vor.u32 1.1754944e-38, %v3561_v33  ;;  %v6768_v28 = vld [vmem:[%s11944_s4 + $0x58] sm:$0xf0] }
 0x3fa   : > { %v3552_v50 = vsub.f32 1.0, %v3551_v41  ;;  %v9076_v11 = vmul.f32 %v3533_v24, %v2101_v48  ;;  %v2103_v48 = vadd.f32 %v12172_v47, %v12171_v17  ;;  %v6782_v17 = vld [vmem:[%s11944_s4 + $0x70] sm:$0xf]  ;;  %vm3585_vm11 = vweird.f32 %v9064_v62 }
 0x3fb   : > { %vm3560_vm9 = vcmp.eq.f32.partialorder %v3559_v12, 8.507059e+37  ;;  %v7217_v12 = vld [vmem:[%s11944_s4 + $0x74] sm:$0xf0] }
 0x3fc   : > { %4881 = vmatpush.bf16.msrb.mxu2 %v12166_v58  ;;  %v3553_v7 = vmul.f32 %v7312_v4, %v3552_v50  ;;  %v2147_v54 = vpop.f32.mrf.mxu1  ;;  %v9078_v52 = vpop.f32.mrf.mxu0  ;;  %v7212_v58 = vld [vmem:[%s11944_s4 + $0x54] sm:$0xf] }
 0x3fd   : > { %4935 = vmatpush.bf16.msrb.mxu3 %v12167_v15  ;;  %12168 = vst [vmem:[#allocation3_spill] sm:$0xff] %v9078_v52  ;;  %v2148_v27 = vadd.f32 %v2147_v54, %v12169_v45  ;;  %v9099_v45 = vor.u32 %v7212_v58, %v6768_v28  ;;  %v12178_v28 = vld [vmem:[#allocation24_spill] sm:$0xff]  ;;  %v12181_v52 = vld [vmem:[#allocation54_spill] sm:$0xff] }
 0x3fe   : > { %v3554_v42 = vadd.f32 %v7312_v4, %v3553_v7 }
 0x3ff   : > { %v7314_v13 = vpop.eup %7313  ;;  %v3326_v32 = vadd.f32 %v12170_v44, %v2148_v27  ;;  %12175 = vst [vmem:[#allocation17_spill] sm:$0xff] %v9099_v45  ;;  %v12176_v27 = vld [vmem:[#allocation62_spill] sm:$0xff] }
 0x400   : > { %v3581_v41 = vmul.f32 %v7314_v13, %v9064_v62  ;;  %v3558_v63 = vsel %vm3557_vm8, %v7312_v4, %v3554_v42  ;;  %v3591_v4 = vand.u32 2147483648, %v9064_v62  ;;  %vm3586_vm10 = vweird.f32 %v7314_v13 }
 0x401   : > { %7315 = vrcp.f32 %v3326_v32  ;;  %v3563_v15 = vsel %vm3560_vm9, %v3562_v25, %v3558_v63  ;;  %v9110_v63 = vor.u32 %v7217_v12, %v6782_v17  ;;  %vm3587_vm12 = vmor %vm3585_vm11, %vm3586_vm10  ;;  %vm3615_vm15 = vweird.f32 %v3326_v32 }
 0x402   : > { %v3582_v50 = vsub.f32 1.0, %v3581_v41  ;;  %v9094_v24 = vmul.f32 %v3563_v15, %v2103_v48  ;;  %v3589_v41 = vand.u32 2147483647, %v9064_v62  ;;  %v12177_v48 = vld [vmem:[#allocation51_spill] sm:$0xff] }
 0x404   : > { %12173 = vst [vmem:[#allocation66_spill] sm:$0xff] %v9094_v24  ;;  %v3583_v7 = vmul.f32 %v7314_v13, %v3582_v50  ;;  %v2150_v54 = vpop.f32.mrf.mxu1  ;;  %v9097_v33 = vpop.f32.mrf.mxu0  ;;  %v12179_v50 = vld [vmem:[#allocation25_spill] sm:$0xff]  ;;  %vm3590_vm13 = vcmp.eq.f32.partialorder %v3589_v41, 8.507059e+37  ;;  %v12184_v24 = vld [vmem:[#allocation67_spill] sm:$0xff] }
 0x405   : > { %12174 = vst [vmem:[#allocation16_spill] sm:$0xff] %v9097_v33  ;;  %v2151_v42 = vadd.f32 %v2150_v54, %v12176_v27  ;;  %v3592_v27 = vor.u32 1.1754944e-38, %v3591_v4  ;;  %v12180_v33 = vld [vmem:[#allocation22_spill] sm:$0xff]  ;;  %v3619_v4 = vand.u32 2147483647, %v3326_v32 }
 0x406   : > { %v3584_v25 = vadd.f32 %v7314_v13, %v3583_v7  ;;  %v2106_v61 = vadd.f32 %v12181_v52, %v12180_v33  ;;  %2738 = vmatmul.bf16.gmra.mxu2 %v9110_v63  ;;  %v12185_v33 = vld [vmem:[#allocation69_spill] sm:$0xff] }
 0x407   : > { %v7316_v47 = vpop.eup %7315  ;;  %v3328_v58 = vadd.f32 %v12177_v48, %v2151_v42  ;;  %2238 = vmatmul.bf16.gmra.mxu0 %v12178_v28  ;;  %2287 = vmatmul.bf16.gmra.mxu1 %v12179_v50  ;;  %v3621_v50 = vand.u32 2147483648, %v3326_v32  ;;  %vm3620_vm4 = vcmp.eq.f32.partialorder %v3619_v4, 8.507059e+37 }
 0x408   : > { %v3611_v15 = vmul.f32 %v7316_v47, %v3326_v32  ;;  %2817 = vmatmul.bf16.gmra.mxu3 %v9099_v45  ;;  %v3588_v54 = vsel %vm3587_vm12, %v7314_v13, %v3584_v25  ;;  %vm3616_vm14 = vweird.f32 %v7316_v47  ;;  %v6776_v32 = vld [vmem:[%s11944_s4 + $0x68] sm:$0xf0] }
 0x409   : > { %7317 = vrcp.f32 %v3328_v58  ;;  %v3593_v7 = vsel %vm3590_vm13, %v3592_v27, %v3588_v54  ;;  %vm3617_vm2 = vmor %vm3615_vm15, %vm3616_vm14  ;;  %v3622_v54 = vor.u32 1.1754944e-38, %v3621_v50  ;;  %v12187_v27 = vld [vmem:[#allocation58_spill] sm:$0xff]  ;;  %v3649_v4 = vand.u32 2147483647, %v3328_v58 }
 0x40a   : > { %v3612_v62 = vsub.f32 1.0, %v3611_v15  ;;  %v9119_v42 = vmul.f32 %v3593_v7, %v2106_v61  ;;  %v12186_v61 = vld [vmem:[#allocation23_spill] sm:$0xff]  ;;  %v7214_v7 = vld [vmem:[%s11944_s4 + $0x64] sm:$0xf]  ;;  %vm3645_vm6 = vweird.f32 %v3328_v58 }
 0x40b   : > { %vm3650_vm8 = vcmp.eq.f32.partialorder %v3649_v4, 8.507059e+37 }
 0x40c   : > { %12182 = vst [vmem:[#allocation14_spill] sm:$0xff] %v9119_v42  ;;  %v3613_v17 = vmul.f32 %v7316_v47, %v3612_v62  ;;  %v2152_v12 = vpop.f32.mrf.mxu1  ;;  %v9121_v28 = vpop.f32.mrf.mxu0  ;;  %v2108_v62 = vadd.f32 %v12187_v27, %v12186_v61  ;;  %v9137_v61 = vor.u32 %v7214_v7, %v6776_v32  ;;  %v12192_v32 = vld [vmem:[#allocation28_spill] sm:$0xff]  ;;  %v12208_v42 = vld [vmem:[#allocation70_spill] sm:$0xff] }
 0x40d   : > { %12183 = vst [vmem:[#allocation39_spill] sm:$0xff] %v9121_v28  ;;  %v2153_v13 = vadd.f32 %v2152_v12, %v12184_v24  ;;  %v6790_v28 = vld [vmem:[%s11944_s4 + $0x80] sm:$0xf] }
 0x40e   : > { %v3614_v25 = vadd.f32 %v7316_v47, %v3613_v17  ;;  %12190 = vst [vmem:[#allocation48_spill] sm:$0xff] %v9137_v61 }
 0x40f   : > { %v7318_v52 = vpop.eup %7317  ;;  %v3330_v41 = vadd.f32 %v12185_v33, %v2153_v13  ;;  %v12195_v33 = vld [vmem:[#allocation63_spill] sm:$0xff] }
 0x410   : > { %v3641_v15 = vmul.f32 %v7318_v52, %v3328_v58  ;;  %v3618_v45 = vsel %vm3617_vm2, %v7316_v47, %v3614_v25  ;;  %v3651_v47 = vand.u32 2147483648, %v3328_v58  ;;  %vm3646_vm5 = vweird.f32 %v7318_v52 }
 0x411   : > { %7319 = vrcp.f32 %v3330_v41  ;;  %v3623_v17 = vsel %vm3620_vm4, %v3622_v54, %v3618_v45  ;;  %v7219_v45 = vld [vmem:[%s11944_s4 + $0x84] sm:$0xf0]  ;;  %vm3647_vm7 = vmor %vm3645_vm6, %vm3646_vm5  ;;  %vm3675_vm10 = vweird.f32 %v3330_v41 }
 0x412   : > { %v3642_v24 = vsub.f32 1.0, %v3641_v15  ;;  %v9133_v12 = vmul.f32 %v3623_v17, %v2108_v62  ;;  %v9146_v15 = vor.u32 %v7219_v45, %v6790_v28 }
 0x414   : > { %12188 = vst [vmem:[#allocation4_spill] sm:$0xff] %v9133_v12  ;;  %v3643_v13 = vmul.f32 %v7318_v52, %v3642_v24  ;;  %v2155_v50 = vpop.f32.mrf.mxu1  ;;  %v9135_v25 = vpop.f32.mrf.mxu0  ;;  %v12191_v24 = vld [vmem:[#allocation43_spill] sm:$0xff]  ;;  %v12194_v12 = vld [vmem:[#allocation26_spill] sm:$0xff] }
 0x415   : > { %12189 = vst [vmem:[#allocation5_spill] sm:$0xff] %v9135_v25  ;;  %v2156_v27 = vadd.f32 %v2155_v50, %v8688_v0  ;;  %v12193_v0 = vld [vmem:[#allocation29_spill] sm:$0xff]  ;;  %v3652_v25 = vor.u32 1.1754944e-38, %v3651_v47  ;;  %v2111_v58 = vadd.f32 %v12195_v33, %v12194_v12  ;;  %v9163_v47 = vpop.f32.mrf.mxu2  ;;  %v3679_v33 = vand.u32 2147483647, %v3330_v41 }
 0x416   : > { %v3644_v54 = vadd.f32 %v7318_v52, %v3643_v13  ;;  %2743 = vmatmul.bf16.gmra.mxu2 %v9146_v15 }
 0x417   : > { %v7320_v62 = vpop.eup %7319  ;;  %v9149_v7 = vadd.f32 %v12191_v24, %v2156_v27  ;;  %2243 = vmatmul.bf16.gmra.mxu0 %v12192_v32  ;;  %2292 = vmatmul.bf16.gmra.mxu1 %v12193_v0  ;;  %vm3680_vm12 = vcmp.eq.f32.partialorder %v3679_v33, 8.507059e+37  ;;  %v6798_v33 = vld [vmem:[%s11944_s4 + $0x90] sm:$0xf]  ;;  %v12207_v24 = vld [vmem:[#allocation30_spill] sm:$0xff] }
 0x418   : > { %v3671_v17 = vmul.f32 %v7320_v62, %v3330_v41  ;;  %2822 = vmatmul.bf16.gmra.mxu3 %v9137_v61  ;;  %v3648_v50 = vsel %vm3647_vm7, %v7318_v52, %v3644_v54  ;;  %vm3676_vm9 = vweird.f32 %v7320_v62  ;;  %v3681_v61 = vand.u32 2147483648, %v3330_v41  ;;  %v12198_v54 = vld [vmem:[#allocation46_spill] sm:$0xff]  ;;  %v6784_v41 = vld [vmem:[%s11944_s4 + $0x78] sm:$0xf0] }
 0x419   : > { %7321 = vrcp.f32 %v9149_v7  ;;  %v3653_v13 = vsel %vm3650_vm8, %v3652_v25, %v3648_v50  ;;  %vm3677_vm11 = vmor %vm3675_vm10, %vm3676_vm9  ;;  %vm3705_vm14 = vweird.f32 %v9149_v7 }
 0x41a   : > { %v3672_v28 = vsub.f32 1.0, %v3671_v17  ;;  %v9158_v27 = vmul.f32 %v3653_v13, %v2111_v58  ;;  %v3682_v58 = vor.u32 1.1754944e-38, %v3681_v61  ;;  %v12200_v13 = vld [vmem:[#allocation68_spill] sm:$0xff]  ;;  %v3711_v61 = vand.u32 2147483648, %v9149_v7 }
 0x41c   : > { %12196 = vst [vmem:[#allocation6_spill] sm:$0xff] %v9158_v27  ;;  %v3673_v45 = vmul.f32 %v7320_v62, %v3672_v28  ;;  %v2157_v32 = vpop.f32.mrf.mxu1  ;;  %v9160_v0 = vpop.f32.mrf.mxu0  ;;  %v12199_v28 = vld [vmem:[#allocation27_spill] sm:$0xff] }
 0x41d   : > { %12197 = vst [vmem:[#allocation7_spill] sm:$0xff] %v9160_v0  ;;  %v2158_v52 = vadd.f32 %v2157_v32, %v8715_v55  ;;  %v2113_v0 = vadd.f32 %v12200_v13, %v12199_v28  ;;  %v7216_v55 = vld [vmem:[%s11944_s4 + $0x74] sm:$0xf]  ;;  %v9186_v27 = vpop.f32.mrf.mxu2 }
 0x41e   : > { %v3674_v12 = vadd.f32 %v7320_v62, %v3673_v45  ;;  %v9183_v13 = vor.u32 %v7216_v55, %v6784_v41  ;;  %v12204_v41 = vld [vmem:[#allocation50_spill] sm:$0xff] }
 0x41f   : > { %v7322_v4 = vpop.eup %7321  ;;  %v9166_v17 = vadd.f32 %v12198_v54, %v2158_v52 }
 0x420   : > { %v3701_v25 = vmul.f32 %v7322_v4, %v9149_v7  ;;  %v3678_v50 = vsel %vm3677_vm11, %v7320_v62, %v3674_v12  ;;  %12203 = vst [vmem:[#allocation8_spill] sm:$0xff] %v9183_v13  ;;  %vm3706_vm13 = vweird.f32 %v7322_v4 }
 0x421   : > { %7323 = vrcp.f32 %v9166_v17  ;;  %v3683_v32 = vsel %vm3680_vm12, %v3682_v58, %v3678_v50  ;;  %vm3707_vm15 = vmor %vm3705_vm14, %vm3706_vm13  ;;  %vm3735_vm5 = vweird.f32 %v9166_v17 }
 0x422   : > { %v3702_v45 = vsub.f32 1.0, %v3701_v25  ;;  %v9178_v52 = vmul.f32 %v3683_v32, %v2113_v0  ;;  %v7221_v0 = vld [vmem:[%s11944_s4 + $0x94] sm:$0xf0]  ;;  %v3709_v25 = vand.u32 2147483647, %v9149_v7  ;;  %v12206_v32 = vld [vmem:[#allocation33_spill] sm:$0xff]  ;;  %v2116_v7 = vadd.f32 %v12208_v42, %v12207_v24 }
 0x423   : > { %v9196_v50 = vor.u32 %v7221_v0, %v6798_v33  ;;  %v3739_v42 = vand.u32 2147483647, %v9166_v17 }
 0x424   : > { %12201 = vst [vmem:[#allocation15_spill] sm:$0xff] %v9178_v52  ;;  %v3703_v62 = vmul.f32 %v7322_v4, %v3702_v45  ;;  %v2160_v12 = vpop.f32.mrf.mxu1  ;;  %v9181_v28 = vpop.f32.mrf.mxu0  ;;  %v12205_v45 = vld [vmem:[#allocation32_spill] sm:$0xff]  ;;  %v3712_v52 = vor.u32 1.1754944e-38, %v3711_v61  ;;  %vm3710_vm2 = vcmp.eq.f32.partialorder %v3709_v25, 8.507059e+37 }
 0x425   : > { %12202 = vst [vmem:[#allocation41_spill] sm:$0xff] %v9181_v28  ;;  %v2161_v54 = vadd.f32 %v2160_v12, %v8743_v38  ;;  %v9212_v61 = vpop.f32.mrf.mxu2  ;;  %vm3740_vm7 = vcmp.eq.f32.partialorder %v3739_v42, 8.507059e+37  ;;  %v7223_v42 = vld [vmem:[%s11944_s4 + $0xa4] sm:$0xf0] }
 0x426   : > { %v3704_v58 = vadd.f32 %v7322_v4, %v3703_v62  ;;  %2748 = vmatmul.bf16.gmra.mxu2 %v9196_v50 }
 0x427   : > { %v7324_v55 = vpop.eup %7323  ;;  %v3336_v38 = vadd.f32 %v12204_v41, %v2161_v54  ;;  %2248 = vmatmul.bf16.gmra.mxu0 %v12205_v45  ;;  %2297 = vmatmul.bf16.gmra.mxu1 %v12206_v32 }
 0x428   : > { %v3731_v12 = vmul.f32 %v7324_v55, %v9166_v17  ;;  %2827 = vmatmul.bf16.gmra.mxu3 %v9183_v13  ;;  %v3708_v28 = vsel %vm3707_vm15, %v7322_v4, %v3704_v58  ;;  %vm3736_vm4 = vweird.f32 %v7324_v55  ;;  %v3741_v13 = vand.u32 2147483648, %v9166_v17  ;;  %v6792_v17 = vld [vmem:[%s11944_s4 + $0x88] sm:$0xf0] }
 0x429   : > { %7325 = vrcp.f32 %v3336_v38  ;;  %v3713_v54 = vsel %vm3710_vm2, %v3712_v52, %v3708_v28  ;;  %v12211_v52 = vld [vmem:[#allocation40_spill] sm:$0xff]  ;;  %vm3737_vm6 = vmor %vm3735_vm5, %vm3736_vm4  ;;  %vm3765_vm9 = vweird.f32 %v3336_v38 }
 0x42a   : > { %v3732_v62 = vsub.f32 1.0, %v3731_v12  ;;  %v9206_v33 = vmul.f32 %v3713_v54, %v2116_v7  ;;  %v3742_v7 = vor.u32 1.1754944e-38, %v3741_v13  ;;  %v3769_v13 = vand.u32 2147483647, %v3336_v38 }
 0x42c   : > { %12209 = vst [vmem:[#allocation9_spill] sm:$0xff] %v9206_v33  ;;  %v3733_v0 = vmul.f32 %v7324_v55, %v3732_v62  ;;  %v2162_v45 = vpop.f32.mrf.mxu1  ;;  %v9208_v32 = vpop.f32.mrf.mxu0  ;;  %v12212_v62 = vld [vmem:[#allocation31_spill] sm:$0xff]  ;;  %v6806_v33 = vld [vmem:[%s11944_s4 + $0xa0] sm:$0xf]  ;;  %vm3770_vm11 = vcmp.eq.f32.partialorder %v3769_v13, 8.507059e+37 }
 0x42d   : > { %12210 = vst [vmem:[#allocation53_spill] sm:$0xff] %v9208_v32  ;;  %v2163_v4 = vadd.f32 %v2162_v45, %v8774_v37  ;;  %v2118_v54 = vadd.f32 %v8717_v29, %v12212_v62  ;;  %v7218_v37 = vld [vmem:[%s11944_s4 + $0x84] sm:$0xf] }
 0x42e   : > { %v3734_v24 = vadd.f32 %v7324_v55, %v3733_v0  ;;  %v9231_v62 = vor.u32 %v7218_v37, %v6792_v17  ;;  %v12216_v37 = vld [vmem:[#allocation34_spill] sm:$0xff] }
 0x42f   : > { %v7326_v25 = vpop.eup %7325  ;;  %v3338_v28 = vadd.f32 %v12211_v52, %v2163_v4  ;;  %v3771_v4 = vand.u32 2147483648, %v3336_v38  ;;  %v2711_v52 = vpop.f32.mrf.mxu2  ;;  %v2121_v17 = vadd.f32 %v8745_v39, %v12216_v37 }
 0x430   : > { %v3761_v58 = vmul.f32 %v7326_v25, %v3336_v38  ;;  %v3738_v12 = vsel %vm3737_vm6, %v7324_v55, %v3734_v24  ;;  %vm3766_vm8 = vweird.f32 %v7326_v25  ;;  %12214 = vst [vmem:[#allocation11_spill] sm:$0xff] %v9231_v62 }
 0x431   : > { %7327 = vrcp.f32 %v3338_v28  ;;  %v3743_v45 = vsel %vm3740_vm7, %v3742_v7, %v3738_v12  ;;  %v9239_v12 = vor.u32 %v7223_v42, %v6806_v33  ;;  %vm3767_vm10 = vmor %vm3765_vm9, %vm3766_vm8  ;;  %v3801_v33 = vand.u32 2147483648, %v3338_v28 }
 0x432   : > { %v3762_v0 = vsub.f32 1.0, %v3761_v58  ;;  %v9225_v32 = vmul.f32 %v3743_v45, %v2118_v54  ;;  %v3772_v54 = vor.u32 1.1754944e-38, %v3771_v4  ;;  %vm3795_vm13 = vweird.f32 %v3338_v28 }
 0x434   : > { %12213 = vst [vmem:[#allocation10_spill] sm:$0xff] %v9225_v32  ;;  %v3763_v55 = vmul.f32 %v7326_v25, %v3762_v0  ;;  %v9227_v24 = vpop.f32.mrf.mxu0  ;;  %v9229_v29 = vpop.f32.mrf.mxu1  ;;  %v12215_v0 = vld [vmem:[#allocation36_spill] sm:$0xff] }
 0x436   : > { %v3764_v58 = vadd.f32 %v7326_v25, %v3763_v55  ;;  %2753 = vmatmul.bf16.gmra.mxu2 %v9239_v12 }
 0x437   : > { %v7328_v7 = vpop.eup %7327  ;;  %2302 = vmatmul.bf16.gmra.mxu1 %v12215_v0  ;;  %2881 = vmatmul.bf16.vlgmr.msrb.gmra.mxu0 %v8698_v16  ;;  %v3799_v0 = vand.u32 2147483647, %v3338_v28  ;;  %v2714_v37 = vpop.f32.mrf.mxu2 }
 0x438   : > { %v3791_v45 = vmul.f32 %v7328_v7, %v3338_v28  ;;  %2832 = vmatmul.bf16.gmra.mxu3 %v9231_v62  ;;  %v3768_v32 = vsel %vm3767_vm10, %v7326_v25, %v3764_v58  ;;  %vm3796_vm12 = vweird.f32 %v7328_v7  ;;  %v12219_v58 = vld [vmem:[#allocation35_spill] sm:$0xff] }
 0x439   : > { %v3773_v41 = vsel %vm3770_vm11, %v3772_v54, %v3768_v32  ;;  %vm3797_vm14 = vmor %vm3795_vm13, %vm3796_vm12  ;;  %v3802_v32 = vor.u32 1.1754944e-38, %v3801_v33  ;;  %vm3800_vm15 = vcmp.eq.f32.partialorder %v3799_v0, 8.507059e+37  ;;  %v6814_v0 = vld [vmem:[%s11944_s4 + $0xb0] sm:$0xf] }
 0x43a   : > { %v3792_v55 = vsub.f32 1.0, %v3791_v45  ;;  %v9247_v38 = vmul.f32 %v3773_v41, %v2121_v17  ;;  %v2123_v41 = vadd.f32 %v8776_v56, %v12219_v58  ;;  %v7220_v17 = vld [vmem:[%s11944_s4 + $0x94] sm:$0xf]  ;;  %v12223_v58 = vld [vmem:[#allocation37_spill] sm:$0xff] }
 0x43b   : > { %v2793_v4 = vpop.f32.mrf.mxu3 }
 0x43c   : > { %12217 = vst [vmem:[#allocation20_spill] sm:$0xff] %v9247_v38  ;;  %v3793_v42 = vmul.f32 %v7328_v7, %v3792_v55  ;;  %v9250_v16 = vadd.f32 %v2793_v4, %v9163_v47  ;;  %v9252_v39 = vpop.f32.mrf.mxu0  ;;  %v9254_v13 = vpop.f32.mrf.mxu1  ;;  %v6800_v47 = vld [vmem:[%s11944_s4 + $0x98] sm:$0xf0]  ;;  %v7229_v38 = vld [vmem:[%s11944_s4 + $0xd4] sm:$0xf0] }
 0x43e   : > { %12218 = vst [vmem:[#allocation21_spill] sm:$0xff] %v9250_v16  ;;  %v3794_v25 = vadd.f32 %v7328_v7, %v3793_v42  ;;  %v7227_v16 = vld [vmem:[%s11944_s4 + $0xc4] sm:$0xf0] }
 0x43f   : > { %v2716_v42 = vpop.f32.mrf.mxu2 }
 0x440   : > { %v3798_v54 = vsel %vm3797_vm14, %v7328_v7, %v3794_v25  ;;  %v9273_v7 = vor.u32 %v7220_v17, %v6800_v47  ;;  %v7225_v25 = vld [vmem:[%s11944_s4 + $0xb4] sm:$0xf0] }
 0x441   : > { %v3803_v45 = vsel %vm3800_vm15, %v3802_v32, %v3798_v54  ;;  %v9281_v32 = vor.u32 %v7225_v25, %v6814_v0 }
 0x442   : > { %v9264_v55 = vmul.f32 %v3803_v45, %v2123_v41  ;;  %12222 = vst [vmem:[#allocation12_spill] sm:$0xff] %v9273_v7  ;;  %v7222_v45 = vld [vmem:[%s11944_s4 + $0xa4] sm:$0xf] }
 0x443   : > { %v2795_v4 = vpop.f32.mrf.mxu3 }
 0x444   : > { %12220 = vst [vmem:[#allocation18_spill] sm:$0xff] %v9264_v55  ;;  %v9267_v28 = vadd.f32 %v2795_v4, %v9186_v27  ;;  %v9269_v33 = vpop.f32.mrf.mxu0  ;;  %v9271_v56 = vpop.f32.mrf.mxu1  ;;  %v6830_v55 = vld [vmem:[%s11944_s4 + $0xd0] sm:$0xf] }
 0x445   : > { %v9348_v62 = vor.u32 %v7229_v38, %v6830_v55  ;;  %v7226_v38 = vld [vmem:[%s11944_s4 + $0xc4] sm:$0xf] }
 0x446   : > { %12221 = vst [vmem:[#allocation45_spill] sm:$0xff] %v9267_v28  ;;  %2758 = vmatmul.bf16.gmra.mxu2 %v9281_v32  ;;  %v6822_v28 = vld [vmem:[%s11944_s4 + $0xc0] sm:$0xf] }
 0x447   : > { %2307 = vmatmul.bf16.gmra.mxu1 %v12223_v58  ;;  %2886 = vmatmul.bf16.gmra.mxu0 %v8755_v8  ;;  %v6808_v8 = vld [vmem:[%s11944_s4 + $0xa8] sm:$0xf0]  ;;  %12232 = vst [vmem:[#allocation25_spill] sm:$0xff] %v9348_v62 }
 0x448   : > { %2837 = vmatmul.bf16.gmra.mxu3 %v9273_v7  ;;  %v9306_v58 = vor.u32 %v7222_v45, %v6808_v8  ;;  %v12227_v7 = vld [vmem:[#allocation38_spill] sm:$0xff] }
 0x449   : > { %v2719_v47 = vpop.f32.mrf.mxu2 }
 0x44a   : > { %12226 = vst [vmem:[#allocation60_spill] sm:$0xff] %v9306_v58 }
 0x44b   : > { %v2798_v27 = vpop.f32.mrf.mxu3 }
 0x44c   : > { %v9288_v41 = vadd.f32 %v2798_v27, %v9212_v61  ;;  %v9290_v54 = vpop.f32.mrf.mxu0  ;;  %v9292_v17 = vpop.f32.mrf.mxu1 }
 0x44e   : > { %12224 = vst [vmem:[#allocation13_spill] sm:$0xff] %v9288_v41  ;;  %v9314_v41 = vor.u32 %v7227_v16, %v6822_v28  ;;  %v7224_v16 = vld [vmem:[%s11944_s4 + $0xb4] sm:$0xf] }
 0x451   : > { %v2721_v27 = vpop.f32.mrf.mxu2 }
 0x453   : > { %v2800_v4 = vpop.f32.mrf.mxu3 }
 0x454   : > { %v9300_v0 = vadd.f32 %v2800_v4, %v2711_v52  ;;  %v9302_v25 = vpop.f32.mrf.mxu0  ;;  %v9304_v61 = vpop.f32.mrf.mxu1 }
 0x456   : > { %12225 = vst [vmem:[#allocation57_spill] sm:$0xff] %v9300_v0  ;;  %2763 = vmatmul.bf16.gmra.mxu2 %v9314_v41 }
 0x457   : > { %2312 = vmatmul.bf16.gmra.mxu1 %v12227_v7  ;;  %2891 = vmatmul.bf16.gmra.mxu0 %v8805_v10  ;;  %v6816_v10 = vld [vmem:[%s11944_s4 + $0xb8] sm:$0xf0] }
 0x458   : > { %2842 = vmatmul.bf16.gmra.mxu3 %v9306_v58 }
 0x459   : > { %v2724_v0 = vpop.f32.mrf.mxu2 }
 0x45b   : > { %v2803_v52 = vpop.f32.mrf.mxu3 }
 0x45c   : > { %v9320_v45 = vadd.f32 %v2803_v52, %v2714_v37  ;;  %v9322_v8 = vpop.f32.mrf.mxu0  ;;  %v9324_v4 = vpop.f32.mrf.mxu1  ;;  %v9338_v52 = vor.u32 %v7224_v16, %v6816_v10 }
 0x45e   : > { %12228 = vst [vmem:[#allocation19_spill] sm:$0xff] %v9320_v45 }
 0x45f   : > { %12230 = vst [vmem:[#allocation62_spill] sm:$0xff] %v9338_v52 }
 0x461   : > { %v9340_v45 = vpop.f32.mrf.mxu2 }
 0x462   : > { %12231 = vst [vmem:[#allocation24_spill] sm:$0xff] %v9340_v45 }
 0x463   : > { %v2805_v28 = vpop.f32.mrf.mxu3 }
 0x464   : > { %v9332_v7 = vadd.f32 %v2805_v28, %v2716_v42  ;;  %v9334_v58 = vpop.f32.mrf.mxu0  ;;  %v9336_v37 = vpop.f32.mrf.mxu1  ;;  %v12233_v42 = vld [vmem:[#allocation44_spill] sm:$0xff] }
 0x466   : > { %12229 = vst [vmem:[#allocation49_spill] sm:$0xff] %v9332_v7  ;;  %2768 = vmatmul.bf16.gmra.mxu2 %v9348_v62  ;;  %v7231_v62 = vld [vmem:[%s11944_s4 + $0xe4] sm:$0xf0] }
 0x467   : > { %2317 = vmatmul.bf16.gmra.mxu1 %v12233_v42  ;;  %2896 = vmatmul.bf16.gmra.mxu0 %v8842_v49  ;;  %v6824_v49 = vld [vmem:[%s11944_s4 + $0xc8] sm:$0xf0] }
 0x468   : > { %2847 = vmatmul.bf16.gmra.mxu3 %v9338_v52 }
 0x469   : > { %v2729_v45 = vpop.f32.mrf.mxu2 }
 0x46b   : > { %v2808_v16 = vpop.f32.mrf.mxu3 }
 0x46c   : > { %v9354_v10 = vadd.f32 %v2808_v16, %v2719_v47  ;;  %v9356_v28 = vpop.f32.mrf.mxu0  ;;  %v9358_v7 = vpop.f32.mrf.mxu1  ;;  %v9372_v16 = vor.u32 %v7226_v38, %v6824_v49 }
 0x46d   : > { %12235 = vst [vmem:[#allocation54_spill] sm:$0xff] %v9358_v7  ;;  %v12240_v7 = vld [vmem:[#allocation52_spill] sm:$0xff] }
 0x46e   : > { %12234 = vst [vmem:[#allocation22_spill] sm:$0xff] %v9354_v10  ;;  %v6838_v10 = vld [vmem:[%s11944_s4 + $0xe0] sm:$0xf] }
 0x46f   : > { %12238 = vst [vmem:[#allocation58_spill] sm:$0xff] %v9372_v16  ;;  %v9380_v48 = vor.u32 %v7231_v62, %v6838_v10  ;;  %v7228_v62 = vld [vmem:[%s11944_s4 + $0xd4] sm:$0xf] }
 0x471   : > { %12239 = vst [vmem:[#allocation28_spill] sm:$0xff] %v9380_v48 }
 0x473   : > { %v2810_v55 = vpop.f32.mrf.mxu3 }
 0x474   : > { %v9366_v42 = vadd.f32 %v2810_v55, %v2721_v27  ;;  %v9368_v52 = vpop.f32.mrf.mxu0  ;;  %v9370_v47 = vpop.f32.mrf.mxu1 }
 0x475   : > { %12237 = vst [vmem:[#allocation23_spill] sm:$0xff] %v9370_v47  ;;  %v9384_v27 = vpop.f32.mrf.mxu2 }
 0x476   : > { %12236 = vst [vmem:[#allocation67_spill] sm:$0xff] %v9366_v42  ;;  %2773 = vmatmul.bf16.gmra.mxu2 %v9380_v48 }
 0x477   : > { %2322 = vmatmul.bf16.gmra.mxu1 %v12240_v7  ;;  %2901 = vmatmul.bf16.gmra.mxu0 %v8918_v31  ;;  %12241 = vst [vmem:[#allocation29_spill] sm:$0xff] %v9384_v27  ;;  %v6832_v31 = vld [vmem:[%s11944_s4 + $0xd8] sm:$0xf0] }
 0x478   : > { %2852 = vmatmul.bf16.gmra.mxu3 %v9372_v16 }
 0x47b   : > { %v2813_v38 = vpop.f32.mrf.mxu3 }
 0x47c   : > { %v9388_v49 = vadd.f32 %v2813_v38, %v2724_v0  ;;  %v9390_v55 = vpop.f32.mrf.mxu0  ;;  %v9392_v42 = vpop.f32.mrf.mxu1  ;;  %v9406_v0 = vor.u32 %v7228_v62, %v6832_v31  ;;  %v6846_v38 = vld [vmem:[%s11944_s4 + $0xf0] sm:$0xf] }
 0x47d   : > { %12243 = vst [vmem:[#allocation63_spill] sm:$0xff] %v9392_v42  ;;  %v2734_v7 = vpop.f32.mrf.mxu2  ;;  %v12248_v42 = vld [vmem:[#allocation61_spill] sm:$0xff] }
 0x47e   : > { %12242 = vst [vmem:[#allocation26_spill] sm:$0xff] %v9388_v49  ;;  %v7233_v49 = vld [vmem:[%s11944_s4 + $0xf4] sm:$0xf0] }
 0x47f   : > { %12246 = vst [vmem:[#allocation32_spill] sm:$0xff] %v9406_v0  ;;  %v9414_v48 = vor.u32 %v7233_v49, %v6846_v38  ;;  %v7230_v49 = vld [vmem:[%s11944_s4 + $0xe4] sm:$0xf] }
 0x481   : > { %12247 = vst [vmem:[#allocation33_spill] sm:$0xff] %v9414_v48 }
 0x483   : > { %v9400_v10 = vpop.f32.mrf.mxu3 }
 0x484   : > { %12244 = vst [vmem:[#allocation27_spill] sm:$0xff] %v9400_v10  ;;  %v9402_v27 = vpop.f32.mrf.mxu0  ;;  %v9404_v16 = vpop.f32.mrf.mxu1 }
 0x485   : > { %12245 = vst [vmem:[#allocation68_spill] sm:$0xff] %v9404_v16  ;;  %v9420_v31 = vpop.f32.mrf.mxu2 }
 0x486   : > { %2778 = vmatmul.bf16.gmra.mxu2 %v9414_v48  ;;  %12249 = vst [vmem:[#allocation30_spill] sm:$0xff] %v9420_v31 }
 0x487   : > { %2327 = vmatmul.bf16.gmra.mxu1 %v12248_v42  ;;  %2906 = vmatmul.bf16.gmra.mxu0 %v9002_v3  ;;  %v6840_v3 = vld [vmem:[%s11944_s4 + $0xe8] sm:$0xf0] }
 0x488   : > { %2857 = vmatmul.bf16.gmra.mxu3 %v9406_v0 }
 0x48b   : > { %v2818_v62 = vpop.f32.mrf.mxu3 }
 0x48c   : > { %v9422_v10 = vadd.f32 %v2818_v62, %v2729_v45  ;;  %v9424_v16 = vpop.f32.mrf.mxu0  ;;  %v9426_v47 = vpop.f32.mrf.mxu1  ;;  %v9440_v45 = vor.u32 %v7230_v49, %v6840_v3  ;;  %v7232_v49 = vld [vmem:[%s11944_s4 + $0xf4] sm:$0xf] }
 0x48d   : > { %12251 = vst [vmem:[#allocation31_spill] sm:$0xff] %v9426_v47  ;;  %v2739_v62 = vpop.f32.mrf.mxu2 }
 0x48e   : > { %12250 = vst [vmem:[#allocation70_spill] sm:$0xff] %v9422_v10 }
 0x48f   : > { %12255 = vst [vmem:[#allocation37_spill] sm:$0xff] %v9440_v45 }
 0x493   : > { %v9434_v42 = vpop.f32.mrf.mxu3 }
 0x494   : > { %12252 = vst [vmem:[#allocation36_spill] sm:$0xff] %v9434_v42  ;;  %v9436_v38 = vpop.f32.mrf.mxu0  ;;  %v9438_v0 = vpop.f32.mrf.mxu1 }
 0x495   : > { %12253 = vst [vmem:[#allocation34_spill] sm:$0xff] %v9436_v38  ;;  %v9451_v42 = vpop.f32.mrf.mxu2 }
 0x496   : > { %12254 = vst [vmem:[#allocation35_spill] sm:$0xff] %v9438_v0 }
 0x497   : > { %2332 = vmatmul.bf16.gmra.mxu1 %v8686_v60  ;;  %2911 = vmatmul.bf16.gmra.mxu0 %v9061_v14  ;;  %12259 = vst [vmem:[#allocation61_spill] sm:$0xff] %v9451_v42  ;;  %v6848_v60 = vld [vmem:[%s11944_s4 + $0xf8] sm:$0xf0] }
 0x498   : > { %2862 = vmatmul.bf16.gmra.mxu3 %v9440_v45 }
 0x49b   : > { %v2823_v10 = vpop.f32.mrf.mxu3 }
 0x49c   : > { %v9445_v31 = vadd.f32 %v2823_v10, %v2734_v7  ;;  %v9447_v48 = vpop.f32.mrf.mxu0  ;;  %v9449_v47 = vpop.f32.mrf.mxu1  ;;  %v9465_v10 = vor.u32 %v7232_v49, %v6848_v60 }
 0x49d   : > { %12257 = vst [vmem:[#allocation44_spill] sm:$0xff] %v9447_v48 }
 0x49e   : > { %12256 = vst [vmem:[#allocation38_spill] sm:$0xff] %v9445_v31  ;;  %v2744_v31 = vpop.f32.mrf.mxu2 }
 0x49f   : > { %12258 = vst [vmem:[#allocation52_spill] sm:$0xff] %v9449_v47 }
 0x4a0   : > { %12263 = vst [vmem:[#allocation86_spill] sm:$0xff] %v9465_v10 }
 0x4a3   : > { %v9459_v14 = vpop.f32.mrf.mxu3 }
 0x4a4   : > { %12260 = vst [vmem:[#allocation83_spill] sm:$0xff] %v9459_v14  ;;  %v9461_v3 = vpop.f32.mrf.mxu0  ;;  %v9463_v7 = vpop.f32.mrf.mxu1 }
 0x4a5   : > { %12261 = vst [vmem:[#allocation84_spill] sm:$0xff] %v9461_v3 }
 0x4a6   : > { %12262 = vst [vmem:[#allocation85_spill] sm:$0xff] %v9463_v7  ;;  %v9478_v3 = vpop.f32.mrf.mxu2 }
 0x4a7   : > { %2337 = vmatmul.bf16.gmra.mxu1 %v8741_v22  ;;  %2916 = vmatmul.bf16.gmra.mxu0 %v9110_v63  ;;  %12268 = vst [vmem:[#allocation91_spill] sm:$0xff] %v9478_v3 }
 0x4a8   : > { %2867 = vmatmul.bf16.gmra.mxu3 %v9465_v10 }
 0x4ab   : > { %v2828_v42 = vpop.f32.mrf.mxu3 }
 0x4ac   : > { %v9470_v45 = vadd.f32 %v2828_v42, %v2739_v62  ;;  %v9472_v47 = vpop.f32.mrf.mxu0  ;;  %v9474_v0 = vpop.f32.mrf.mxu1 }
 0x4ad   : > { %12265 = vst [vmem:[#allocation88_spill] sm:$0xff] %v9472_v47 }
 0x4ae   : > { %12264 = vst [vmem:[#allocation87_spill] sm:$0xff] %v9470_v45  ;;  %v2749_v3 = vpop.f32.mrf.mxu2 }
 0x4af   : > { %12266 = vst [vmem:[#allocation89_spill] sm:$0xff] %v9474_v0 }
 0x4b3   : > { %v9476_v14 = vpop.f32.mrf.mxu3 }
 0x4b4   : > { %12267 = vst [vmem:[#allocation90_spill] sm:$0xff] %v9476_v14  ;;  %v2303_v49 = vpop.f32.mrf.mxu1  ;;  %v9480_v60 = vpop.f32.mrf.mxu0 }
 0x4b5   : > { %12269 = vst [vmem:[#allocation92_spill] sm:$0xff] %v9480_v60  ;;  %v2304_v22 = vadd.f32 %v2303_v49, %v9227_v24  ;;  %v12272_v60 = vld [vmem:[#allocation79_spill] sm:$0xff] }
 0x4b7   : > { %v3309_v63 = vadd.f32 %v8803_v1, %v2304_v22  ;;  %2921 = vmatmul.bf16.gmra.mxu0 %v9146_v15  ;;  %2970 = vmatmul.bf16.vlgmr.msrb.gmra.mxu1 %v8794_v51 }
 0x4b9   : > { %7329 = vrcp.f32 %v3309_v63  ;;  %v3366_v51 = vand.u32 2147483648, %v3309_v63  ;;  %vm3360_vm4 = vweird.f32 %v3309_v63 }
 0x4bb   : > { %v2833_v42 = vpop.f32.mrf.mxu3 }
 0x4bc   : > { %v9486_v62 = vadd.f32 %v2833_v42, %v2744_v31  ;;  %v2305_v45 = vpop.f32.mrf.mxu1  ;;  %v9488_v10 = vpop.f32.mrf.mxu0  ;;  %v3364_v42 = vand.u32 2147483647, %v3309_v63 }
 0x4bd   : > { %12271 = vst [vmem:[#allocation94_spill] sm:$0xff] %v9488_v10  ;;  %v2306_v14 = vadd.f32 %v2305_v45, %v9252_v39  ;;  %v12275_v10 = vld [vmem:[#allocation82_spill] sm:$0xff] }
 0x4be   : > { %12270 = vst [vmem:[#allocation93_spill] sm:$0xff] %v9486_v62  ;;  %vm3365_vm6 = vcmp.eq.f32.partialorder %v3364_v42, 8.507059e+37 }
 0x4bf   : > { %v7330_v0 = vpop.eup %7329  ;;  %v3311_v7 = vadd.f32 %v12272_v60, %v2306_v14  ;;  %v12276_v14 = vld [vmem:[#allocation81_spill] sm:$0xff]  ;;  %v9500_v60 = vpop.f32.mrf.mxu2 }
 0x4c0   : > { %v3356_v24 = vmul.f32 %v7330_v0, %v3309_v63  ;;  %vm3361_vm2 = vweird.f32 %v7330_v0  ;;  %12277 = vst [vmem:[#allocation82_spill] sm:$0xff] %v9500_v60 }
 0x4c1   : > { %7331 = vrcp.f32 %v3311_v7  ;;  %vm3362_vm5 = vmor %vm3360_vm4, %vm3361_vm2  ;;  %v3396_v38 = vand.u32 2147483648, %v3311_v7  ;;  %vm3390_vm8 = vweird.f32 %v3311_v7 }
 0x4c2   : > { %v3357_v1 = vsub.f32 1.0, %v3356_v24 }
 0x4c3   : > { %v9492_v49 = vpop.f32.mrf.mxu3 }
 0x4c4   : > { %12273 = vst [vmem:[#allocation79_spill] sm:$0xff] %v9492_v49  ;;  %v3358_v15 = vmul.f32 %v7330_v0, %v3357_v1  ;;  %v2308_v22 = vpop.f32.mrf.mxu1  ;;  %v9494_v47 = vpop.f32.mrf.mxu0  ;;  %v3367_v49 = vor.u32 1.1754944e-38, %v3366_v51 }
 0x4c5   : > { %12274 = vst [vmem:[#allocation95_spill] sm:$0xff] %v9494_v47  ;;  %v2309_v31 = vadd.f32 %v2308_v22, %v9269_v33  ;;  %v12278_v47 = vld [vmem:[#allocation77_spill] sm:$0xff] }
 0x4c6   : > { %v3359_v39 = vadd.f32 %v7330_v0, %v3358_v15  ;;  %v2264_v48 = vadd.f32 %v9229_v29, %v12278_v47  ;;  %v3394_v29 = vand.u32 2147483647, %v3311_v7 }
 0x4c7   : > { %v7332_v45 = vpop.eup %7331  ;;  %v3313_v62 = vadd.f32 %v12275_v10, %v2309_v31  ;;  %2926 = vmatmul.bf16.gmra.mxu0 %v9196_v50  ;;  %2975 = vmatmul.bf16.gmra.mxu1 %v12276_v14 }
 0x4c8   : > { %v3386_v24 = vmul.f32 %v7332_v45, %v3311_v7  ;;  %v3363_v1 = vsel %vm3362_vm5, %v7330_v0, %v3359_v39  ;;  %vm3391_vm7 = vweird.f32 %v7332_v45  ;;  %vm3395_vm10 = vcmp.eq.f32.partialorder %v3394_v29, 8.507059e+37 }
 0x4c9   : > { %7333 = vrcp.f32 %v3313_v62  ;;  %v3368_v63 = vsel %vm3365_vm6, %v3367_v49, %v3363_v1  ;;  %vm3392_vm9 = vmor %vm3390_vm8, %vm3391_vm7  ;;  %v3397_v49 = vor.u32 1.1754944e-38, %v3396_v38  ;;  %vm3420_vm12 = vweird.f32 %v3313_v62 }
 0x4ca   : > { %v3387_v33 = vsub.f32 1.0, %v3386_v24  ;;  %v3369_v22 = vmul.f32 %v3368_v63, %v2264_v48 }
 0x4cb   : > { %v2838_v15 = vpop.f32.mrf.mxu3 }
 0x4cc   : > { %v3388_v10 = vmul.f32 %v7332_v45, %v3387_v33  ;;  %v9504_v31 = vadd.f32 %v2838_v15, %v2749_v3  ;;  %v2310_v50 = vpop.f32.mrf.mxu1  ;;  %v9506_v14 = vpop.f32.mrf.mxu0  ;;  %v3820_v0 = vpack.c.bf16 %v3369_v22, %v8855_v19  ;;  %v3426_v15 = vand.u32 2147483648, %v3313_v62 }
 0x4cd   : > { %v2311_v60 = vadd.f32 %v2310_v50, %v9290_v54  ;;  %v2754_v3 = vpop.f32.mrf.mxu2  ;;  %v12279_v54 = vld [vmem:[#allocation78_spill] sm:$0xff]  ;;  %v3424_v22 = vand.u32 2147483647, %v3313_v62 }
 0x4ce   : > { %v3389_v51 = vadd.f32 %v7332_v45, %v3388_v10  ;;  %v2266_v19 = vadd.f32 %v9254_v13, %v12279_v54 }
 0x4cf   : > { %v7334_v47 = vpop.eup %7333  ;;  %v9511_v42 = vadd.f32 %v8770_v30, %v2311_v60  ;;  %vm3425_vm14 = vcmp.eq.f32.partialorder %v3424_v22, 8.507059e+37 }
 0x4d0   : > { %v3416_v48 = vmul.f32 %v7334_v47, %v3313_v62  ;;  %v3393_v24 = vsel %vm3392_vm9, %v7332_v45, %v3389_v51  ;;  %vm3421_vm11 = vweird.f32 %v7334_v47 }
 0x4d1   : > { %7335 = vrcp.f32 %v9511_v42  ;;  %v3398_v33 = vsel %vm3395_vm10, %v3397_v49, %v3393_v24  ;;  %vm3422_vm13 = vmor %vm3420_vm12, %vm3421_vm11  ;;  %vm3450_vm2 = vweird.f32 %v9511_v42 }
 0x4d2   : > { %v3417_v39 = vsub.f32 1.0, %v3416_v48  ;;  %v3399_v10 = vmul.f32 %v3398_v33, %v2266_v19  ;;  %v3427_v48 = vor.u32 1.1754944e-38, %v3426_v15 }
 0x4d3   : > { %v9516_v1 = vpop.f32.mrf.mxu3 }
 0x4d4   : > { %v3418_v63 = vmul.f32 %v7334_v47, %v3417_v39  ;;  %v2313_v30 = vpop.f32.mrf.mxu1  ;;  %v9518_v60 = vpop.f32.mrf.mxu0  ;;  %v3821_v13 = vpack.c.bf16 %v3399_v10, %v8903_v35 }
 0x4d5   : > { %v2314_v7 = vadd.f32 %v2313_v30, %v9302_v25  ;;  %v12280_v25 = vld [vmem:[#allocation80_spill] sm:$0xff]  ;;  %v9531_v24 = vpop.f32.mrf.mxu2  ;;  %v3456_v30 = vand.u32 2147483648, %v9511_v42 }
 0x4d6   : > { %v3419_v38 = vadd.f32 %v7334_v47, %v3418_v63  ;;  %v2269_v49 = vadd.f32 %v9271_v56, %v12280_v25  ;;  %v4586_v54 = vunpack.c.l.b16 %v3821_v13  ;;  %v4585_v63 = vunpack.c.h.b16 %v3820_v0 }
 0x4d7   : > { %v7336_v45 = vpop.eup %7335  ;;  %v9522_v50 = vadd.f32 %v8719_v20, %v2314_v7  ;;  %2931 = vmatmul.bf16.gmra.mxu0 %v9239_v12  ;;  %2980 = vmatmul.bf16.gmra.mxu1 %v8897_v59  ;;  %v4584_v59 = vunpack.c.l.b16 %v3820_v0  ;;  %v4587_v15 = vunpack.c.h.b16 %v3821_v13 }
 0x4d8   : > { %v3446_v51 = vmul.f32 %v7336_v45, %v9511_v42  ;;  %v3423_v29 = vsel %vm3422_vm13, %v7334_v47, %v3419_v38  ;;  %vm3451_vm15 = vweird.f32 %v7336_v45  ;;  %v3454_v38 = vand.u32 2147483647, %v9511_v42 }
 0x4d9   : > { %7337 = vrcp.f32 %v9522_v50  ;;  %v3428_v20 = vsel %vm3425_vm14, %v3427_v48, %v3423_v29  ;;  %v9540_v22 = vpack.c.b16 %v4586_v54, %v4584_v59  ;;  %vm3452_vm4 = vmor %vm3450_vm2, %vm3451_vm15  ;;  %v2271_v48 = vadd.f32 %v9292_v17, %v8859_v53 }
 0x4da   : > { %v3447_v62 = vsub.f32 1.0, %v3446_v51  ;;  %v3429_v12 = vmul.f32 %v3428_v20, %v2269_v49  ;;  %v9543_v51 = vpack.c.b16 %v4587_v15, %v4585_v63  ;;  %vm3455_vm5 = vcmp.eq.f32.partialorder %v3454_v38, 8.507059e+37 }
 0x4db   : > { %v2843_v39 = vpop.f32.mrf.mxu3  ;;  %v3484_v59 = vand.u32 2147483647, %v9522_v50  ;;  %vm3480_vm7 = vweird.f32 %v9522_v50  ;;  %v2274_v15 = vadd.f32 %v9304_v61, %v8906_v21 }
 0x4dc   : > { %v3448_v19 = vmul.f32 %v7336_v45, %v3447_v62  ;;  %v9533_v35 = vadd.f32 %v2843_v39, %v2754_v3  ;;  %v2315_v33 = vpop.f32.mrf.mxu1  ;;  %v9535_v47 = vpop.f32.mrf.mxu0  ;;  %v3822_v7 = vpack.c.bf16 %v3429_v12, %v8952_v18  ;;  %v3457_v18 = vor.u32 1.1754944e-38, %v3456_v30 }
 0x4dd   : > { %v2316_v56 = vadd.f32 %v2315_v33, %v9322_v8  ;;  %v2759_v12 = vpop.f32.mrf.mxu2  ;;  %vm3485_vm9 = vcmp.eq.f32.partialorder %v3484_v59, 8.507059e+37  ;;  %v2276_v59 = vadd.f32 %v9324_v4, %v8955_v26 }
 0x4de   : > { %v3449_v10 = vadd.f32 %v7336_v45, %v3448_v19 }
 0x4df   : > { %v7338_v3 = vpop.eup %7337  ;;  %v9546_v29 = vadd.f32 %v8812_v6, %v2316_v56  ;;  %v3486_v6 = vand.u32 2147483648, %v9522_v50 }
 0x4e0   : > { %v3476_v8 = vmul.f32 %v7338_v3, %v9522_v50  ;;  %v3453_v13 = vsel %vm3452_vm4, %v7336_v45, %v3449_v10  ;;  %vm3481_vm6 = vweird.f32 %v7338_v3 }
 0x4e1   : > { %7339 = vrcp.f32 %v9546_v29  ;;  %v3458_v49 = vsel %vm3455_vm5, %v3457_v18, %v3453_v13  ;;  %vm3482_vm8 = vmor %vm3480_vm7, %vm3481_vm6  ;;  %v3487_v63 = vor.u32 1.1754944e-38, %v3486_v6  ;;  %v3516_v21 = vand.u32 2147483648, %v9546_v29 }
 0x4e2   : > { %v3477_v0 = vsub.f32 1.0, %v3476_v8  ;;  %v3459_v45 = vmul.f32 %v3458_v49, %v2271_v48  ;;  %v3514_v49 = vand.u32 2147483647, %v9546_v29  ;;  %vm3510_vm11 = vweird.f32 %v9546_v29 }
 0x4e3   : > { %v9553_v25 = vpop.f32.mrf.mxu3 }
 0x4e4   : > { %v3478_v62 = vmul.f32 %v7338_v3, %v3477_v0  ;;  %v2318_v20 = vpop.f32.mrf.mxu1  ;;  %v9556_v42 = vpop.f32.mrf.mxu0  ;;  %v3823_v19 = vpack.c.bf16 %v3459_v45, %v8984_v34  ;;  %vm3515_vm13 = vcmp.eq.f32.partialorder %v3514_v49, 8.507059e+37 }
 0x4e5   : > { %v2319_v39 = vadd.f32 %v2318_v20, %v9334_v58 }
 0x4e6   : > { %v3479_v54 = vadd.f32 %v7338_v3, %v3478_v62  ;;  %v4590_v10 = vunpack.c.l.b16 %v3823_v19  ;;  %v4591_v18 = vunpack.c.h.b16 %v3823_v19 }
 0x4e7   : > { %v7340_v53 = vpop.eup %7339  ;;  %v9562_v17 = vadd.f32 %v12144_v36, %v2319_v39  ;;  %2936 = vmatmul.bf16.gmra.mxu0 %v9281_v32  ;;  %2985 = vmatmul.bf16.gmra.mxu1 %v8989_v57  ;;  %v4588_v32 = vunpack.c.l.b16 %v3822_v7 }
 0x4e8   : > { %v3506_v58 = vmul.f32 %v7340_v53, %v9546_v29  ;;  %v3483_v33 = vsel %vm3482_vm8, %v7338_v3, %v3479_v54  ;;  %v4589_v3 = vunpack.c.h.b16 %v3822_v7  ;;  %vm3511_vm10 = vweird.f32 %v7340_v53  ;;  %v9588_v7 = vpop.f32.mrf.mxu2 }
 0x4e9   : > { %7341 = vrcp.f32 %v9562_v17  ;;  %v3488_v36 = vsel %vm3485_vm9, %v3487_v63, %v3483_v33  ;;  %v9580_v13 = vpack.c.b16 %v4590_v10, %v4588_v32  ;;  %vm3512_vm12 = vmor %vm3510_vm11, %vm3511_vm10  ;;  %v3546_v19 = vand.u32 2147483648, %v9562_v17 }
 0x4ea   : > { %v3507_v50 = vsub.f32 1.0, %v3506_v58  ;;  %v3489_v30 = vmul.f32 %v3488_v36, %v2274_v15  ;;  %v9583_v62 = vpack.c.b16 %v4591_v18, %v4589_v3  ;;  %v3544_v63 = vand.u32 2147483647, %v9562_v17 }
 0x4eb   : > { %v2848_v56 = vpop.f32.mrf.mxu3  ;;  %vm3540_vm15 = vweird.f32 %v9562_v17 }
 0x4ec   : > { %v3508_v57 = vmul.f32 %v7340_v53, %v3507_v50  ;;  %v9571_v38 = vadd.f32 %v2848_v56, %v2759_v12  ;;  %v2320_v34 = vpop.f32.mrf.mxu1  ;;  %v9573_v8 = vpop.f32.mrf.mxu0  ;;  %v9578_v61 = vpack.c.bf16 %v3489_v30, %v9018_v2  ;;  %v3517_v2 = vor.u32 1.1754944e-38, %v3516_v21 }
 0x4ed   : > { %12281 = vst [vmem:[#allocation81_spill] sm:$0xff] %v9573_v8  ;;  %v2321_v0 = vadd.f32 %v2320_v34, %v9356_v28  ;;  %v3547_v56 = vor.u32 1.1754944e-38, %v3546_v19  ;;  %v2279_v30 = vadd.f32 %v9336_v37, %v8987_v23  ;;  %vm3545_vm4 = vcmp.eq.f32.partialorder %v3544_v63, 8.507059e+37 }
 0x4ee   : > { %v3509_v48 = vadd.f32 %v7340_v53, %v3508_v57 }
 0x4ef   : > { %v7342_v6 = vpop.eup %7341  ;;  %v9586_v20 = vadd.f32 %v8684_v9, %v2321_v0  ;;  %v4593_v0 = vunpack.c.h.b16 %v9578_v61 }
 0x4f0   : > { %v3536_v28 = vmul.f32 %v7342_v6, %v9562_v17  ;;  %v3513_v12 = vsel %vm3512_vm12, %v7340_v53, %v3509_v48  ;;  %vm3541_vm14 = vweird.f32 %v7342_v6  ;;  %v2764_v17 = vpop.f32.mrf.mxu2 }
 0x4f1   : > { %7343 = vrcp.f32 %v9586_v20  ;;  %v3518_v9 = vsel %vm3515_vm13, %v3517_v2, %v3513_v12  ;;  %vm3542_vm2 = vmor %vm3540_vm15, %vm3541_vm14  ;;  %v3576_v21 = vand.u32 2147483648, %v9586_v20  ;;  %vm3570_vm6 = vweird.f32 %v9586_v20 }
 0x4f2   : > { %v3537_v39 = vsub.f32 1.0, %v3536_v28  ;;  %v3519_v15 = vmul.f32 %v3518_v9, %v2276_v59  ;;  %v3574_v28 = vand.u32 2147483647, %v9586_v20  ;;  %v12284_v9 = vld [vmem:[#allocation54_spill] sm:$0xff] }
 0x4f3   : > { %v9595_v45 = vpop.f32.mrf.mxu3 }
 0x4f4   : > { %v3538_v54 = vmul.f32 %v7342_v6, %v3537_v39  ;;  %v2323_v58 = vpop.f32.mrf.mxu1  ;;  %v9598_v29 = vpop.f32.mrf.mxu0  ;;  %v3825_v4 = vpack.c.bf16 %v3519_v15, %v9043_v43  ;;  %vm3575_vm8 = vcmp.eq.f32.partialorder %v3574_v28, 8.507059e+37 }
 0x4f5   : > { %12282 = vst [vmem:[#allocation77_spill] sm:$0xff] %v9598_v29  ;;  %v2324_v33 = vadd.f32 %v2323_v58, %v9368_v52  ;;  %v12401_v29 = vld [vmem:[#allocation83_spill] sm:$0xff] }
 0x4f6   : > { %v3539_v53 = vadd.f32 %v7342_v6, %v3538_v54  ;;  %v4594_v57 = vunpack.c.l.b16 %v3825_v4  ;;  %v4595_v23 = vunpack.c.h.b16 %v3825_v4  ;;  %v2281_v54 = vadd.f32 %v12284_v9, %v9020_v5  ;;  %v12287_v5 = vld [vmem:[#allocation25_spill] sm:$0xff] }
 0x4f7   : > { %v7344_v50 = vpop.eup %7343  ;;  %v9604_v26 = vadd.f32 %v8709_v46, %v2324_v33  ;;  %2941 = vmatmul.bf16.gmra.mxu0 %v9314_v41  ;;  %2990 = vmatmul.bf16.gmra.mxu1 %v9048_v40  ;;  %v4592_v40 = vunpack.c.l.b16 %v9578_v61 }
 0x4f8   : > { %v3566_v36 = vmul.f32 %v7344_v50, %v9586_v20  ;;  %v3543_v52 = vsel %vm3542_vm2, %v7342_v6, %v3539_v53  ;;  %vm3571_vm5 = vweird.f32 %v7344_v50  ;;  %v9625_v2 = vpack.c.b16 %v4595_v23, %v4593_v0 }
 0x4f9   : > { %7345 = vrcp.f32 %v9604_v26  ;;  %v3548_v32 = vsel %vm3545_vm4, %v3547_v56, %v3543_v52  ;;  %v9622_v49 = vpack.c.b16 %v4594_v57, %v4592_v40  ;;  %vm3572_vm7 = vmor %vm3570_vm6, %vm3571_vm5  ;;  %v3606_v33 = vand.u32 2147483648, %v9604_v26  ;;  %v12288_v56 = vld [vmem:[#allocation17_spill] sm:$0xff] }
 0x4fa   : > { %v3567_v46 = vsub.f32 1.0, %v3566_v36  ;;  %v3549_v41 = vmul.f32 %v3548_v32, %v2279_v30  ;;  %v3604_v20 = vand.u32 2147483647, %v9604_v26  ;;  %vm3600_vm10 = vweird.f32 %v9604_v26  ;;  %v12286_v36 = vld [vmem:[#allocation51_spill] sm:$0xff]  ;;  %v12289_v30 = vld [vmem:[#allocation66_spill] sm:$0xff] }
 0x4fb   : > { %v2853_v10 = vpop.f32.mrf.mxu3 }
 0x4fc   : > { %v3568_v34 = vmul.f32 %v7344_v50, %v3567_v46  ;;  %v9614_v43 = vadd.f32 %v2853_v10, %v2764_v17  ;;  %v2325_v3 = vpop.f32.mrf.mxu1  ;;  %v9616_v18 = vpop.f32.mrf.mxu0  ;;  %v3826_v48 = vpack.c.bf16 %v3549_v41, %v9076_v11  ;;  %v12290_v10 = vld [vmem:[#allocation2_spill] sm:$0xff]  ;;  %v12291_v41 = vld [vmem:[#allocation23_spill] sm:$0xff]  ;;  %vm3605_vm12 = vcmp.eq.f32.partialorder %v3604_v20, 8.507059e+37 }
 0x4fd   : > { %12283 = vst [vmem:[#allocation78_spill] sm:$0xff] %v9616_v18  ;;  %v2326_v37 = vadd.f32 %v2325_v3, %v9390_v55  ;;  %v3577_v55 = vor.u32 1.1754944e-38, %v3576_v21  ;;  %v2284_v40 = vadd.f32 %v12291_v41, %v12290_v10 }
 0x4fe   : > { %v3569_v6 = vadd.f32 %v7344_v50, %v3568_v34  ;;  %v4596_v3 = vunpack.c.l.b16 %v3826_v48 }
 0x4ff   : > { %v7346_v39 = vpop.eup %7345  ;;  %v3327_v12 = vadd.f32 %v12170_v44, %v2326_v37 }
 0x500   : > { %v3596_v61 = vmul.f32 %v7346_v39, %v9604_v26  ;;  %v3573_v11 = vsel %vm3572_vm7, %v7344_v50, %v3569_v6  ;;  %vm3601_vm9 = vweird.f32 %v7346_v39  ;;  %v4597_v6 = vunpack.c.h.b16 %v3826_v48 }
 0x501   : > { %7347 = vrcp.f32 %v3327_v12  ;;  %v3578_v19 = vsel %vm3575_vm8, %v3577_v55, %v3573_v11  ;;  %vm3602_vm11 = vmor %vm3600_vm10, %vm3601_vm9  ;;  %v12293_v55 = vld [vmem:[#allocation14_spill] sm:$0xff]  ;;  %vm3630_vm14 = vweird.f32 %v3327_v12 }
 0x502   : > { %v3597_v59 = vsub.f32 1.0, %v3596_v61  ;;  %v3579_v53 = vmul.f32 %v3578_v19, %v2281_v54  ;;  %v3636_v61 = vand.u32 2147483648, %v3327_v12  ;;  %v3634_v54 = vand.u32 2147483647, %v3327_v12 }
 0x504   : > { %v3598_v58 = vmul.f32 %v7346_v39, %v3597_v59  ;;  %v2328_v63 = vpop.f32.mrf.mxu1  ;;  %v9633_v15 = vpop.f32.mrf.mxu0  ;;  %v3827_v17 = vpack.c.bf16 %v3579_v53, %v12289_v30  ;;  %v3637_v48 = vor.u32 1.1754944e-38, %v3636_v61  ;;  %vm3635_vm2 = vcmp.eq.f32.partialorder %v3634_v54, 8.507059e+37  ;;  %v12295_v53 = vld [vmem:[#allocation3_spill] sm:$0xff] }
 0x505   : > { %12285 = vst [vmem:[#allocation80_spill] sm:$0xff] %v9633_v15  ;;  %v2329_v44 = vadd.f32 %v2328_v63, %v9402_v27  ;;  %v3607_v27 = vor.u32 1.1754944e-38, %v3606_v33  ;;  %v12294_v33 = vld [vmem:[#allocation69_spill] sm:$0xff] }
 0x506   : > { %v3599_v50 = vadd.f32 %v7346_v39, %v3598_v58  ;;  %v4598_v0 = vunpack.c.l.b16 %v3827_v17  ;;  %v4599_v28 = vunpack.c.h.b16 %v3827_v17 }
 0x507   : > { %v7348_v4 = vpop.eup %7347  ;;  %v9639_v52 = vadd.f32 %v12286_v36, %v2329_v44  ;;  %2946 = vmatmul.bf16.gmra.mxu0 %v12287_v5  ;;  %2995 = vmatmul.bf16.gmra.mxu1 %v12288_v56 }
 0x508   : > { %v3626_v46 = vmul.f32 %v7348_v4, %v3327_v12  ;;  %v3603_v32 = vsel %vm3602_vm11, %v7346_v39, %v3599_v50  ;;  %v9651_v11 = vpack.c.b16 %v4598_v0, %v4596_v3  ;;  %vm3631_vm13 = vweird.f32 %v7348_v4  ;;  %v12296_v50 = vld [vmem:[#allocation63_spill] sm:$0xff]  ;;  %v12302_v3 = vld [vmem:[#allocation4_spill] sm:$0xff] }
 0x509   : > { %7349 = vrcp.f32 %v9639_v52  ;;  %v3608_v57 = vsel %vm3605_vm12, %v3607_v27, %v3603_v32  ;;  %v9653_v19 = vpack.c.b16 %v4599_v28, %v4597_v6  ;;  %vm3632_vm15 = vmor %vm3630_vm14, %vm3631_vm13  ;;  %v2286_v36 = vadd.f32 %v12296_v50, %v12295_v53  ;;  %v12298_v32 = vld [vmem:[#allocation34_spill] sm:$0xff]  ;;  %v12303_v6 = vld [vmem:[#allocation16_spill] sm:$0xff] }
 0x50a   : > { %v3627_v26 = vsub.f32 1.0, %v3626_v46  ;;  %v3609_v34 = vmul.f32 %v3608_v57, %v2284_v40  ;;  %v3666_v46 = vand.u32 2147483648, %v9639_v52  ;;  %v3664_v41 = vand.u32 2147483647, %v9639_v52  ;;  %v12300_v57 = vld [vmem:[#allocation28_spill] sm:$0xff] }
 0x50b   : > { %vm3660_vm5 = vweird.f32 %v9639_v52  ;;  %v12304_v28 = vld [vmem:[#allocation68_spill] sm:$0xff]  ;;  %vm3105_vm13 = vcmask 523264  }
 0x50c   : > { %v3628_v23 = vmul.f32 %v7348_v4, %v3627_v26  ;;  %v2330_v37 = vpop.f32.mrf.mxu1  ;;  %v9647_v21 = vpop.f32.mrf.mxu0  ;;  %v3828_v59 = vpack.c.bf16 %v3609_v34, %v12293_v55  ;;  %v12301_v34 = vld [vmem:[#allocation48_spill] sm:$0xff]  ;;  %vm3665_vm7 = vcmp.eq.f32.partialorder %v3664_v41, 8.507059e+37 }
 0x50d   : > { %12292 = vst [vmem:[#allocation54_spill] sm:$0xff] %v9647_v21  ;;  %v2331_v39 = vadd.f32 %v2330_v37, %v9424_v16  ;;  %v3667_v37 = vor.u32 1.1754944e-38, %v3666_v46  ;;  %v12306_v53 = vld [vmem:[#allocation44_spill] sm:$0xff] }
 0x50e   : > { %v3629_v9 = vadd.f32 %v7348_v4, %v3628_v23  ;;  %v4600_v54 = vunpack.c.l.b16 %v3828_v59 }
 0x50f   : > { %v7350_v58 = vpop.eup %7349  ;;  %v3331_v63 = vadd.f32 %v12294_v33, %v2331_v39  ;;  %v2289_v39 = vadd.f32 %v12304_v28, %v12303_v6 }
 0x510   : > { %v3656_v44 = vmul.f32 %v7350_v58, %v9639_v52  ;;  %v3633_v20 = vsel %vm3632_vm15, %v7348_v4, %v3629_v9  ;;  %vm3661_vm4 = vweird.f32 %v7350_v58  ;;  %v12299_v4 = vld [vmem:[#allocation43_spill] sm:$0xff]  ;;  %v4601_v52 = vunpack.c.h.b16 %v3828_v59 }
 0x511   : > { %7351 = vrcp.f32 %v3331_v63  ;;  %v3638_v5 = vsel %vm3635_vm2, %v3637_v48, %v3633_v20  ;;  %vm3662_vm6 = vmor %vm3660_vm5, %vm3661_vm4  ;;  %v3694_v46 = vand.u32 2147483647, %v3331_v63  ;;  %vm3690_vm9 = vweird.f32 %v3331_v63 }
 0x512   : > { %v3657_v16 = vsub.f32 1.0, %v3656_v44  ;;  %v3639_v27 = vmul.f32 %v3638_v5, %v2286_v36  ;;  %v3696_v36 = vand.u32 2147483648, %v3331_v63 }
 0x513   : > { %vm3695_vm11 = vcmp.eq.f32.partialorder %v3694_v46, 8.507059e+37 }
 0x514   : > { %v3658_v56 = vmul.f32 %v7350_v58, %v3657_v16  ;;  %v2333_v30 = vpop.f32.mrf.mxu1  ;;  %v9659_v17 = vpop.f32.mrf.mxu0  ;;  %v3829_v0 = vpack.c.bf16 %v3639_v27, %v12302_v3  ;;  %v12308_v27 = vld [vmem:[#allocation46_spill] sm:$0xff]  ;;  %v12309_v3 = vld [vmem:[#allocation39_spill] sm:$0xff] }
 0x515   : > { %12297 = vst [vmem:[#allocation51_spill] sm:$0xff] %v9659_v17  ;;  %v2334_v12 = vadd.f32 %v2333_v30, %v12298_v32 }
 0x516   : > { %v3659_v10 = vadd.f32 %v7350_v58, %v3658_v56  ;;  %v4602_v33 = vunpack.c.l.b16 %v3829_v0  ;;  %v4603_v56 = vunpack.c.h.b16 %v3829_v0  ;;  %v12310_v0 = vld [vmem:[#allocation31_spill] sm:$0xff] }
 0x517   : > { %v7352_v40 = vpop.eup %7351  ;;  %v9665_v26 = vadd.f32 %v12299_v4, %v2334_v12  ;;  %2951 = vmatmul.bf16.gmra.mxu0 %v12300_v57  ;;  %3000 = vmatmul.bf16.gmra.mxu1 %v12301_v34  ;;  %v3697_v4 = vor.u32 1.1754944e-38, %v3696_v36 }
 0x518   : > { %v3686_v23 = vmul.f32 %v7352_v40, %v3331_v63  ;;  %v3663_v55 = vsel %vm3662_vm6, %v7350_v58, %v3659_v10  ;;  %v9677_v5 = vpack.c.b16 %v4602_v33, %v4600_v54  ;;  %vm3691_vm8 = vweird.f32 %v7352_v40  ;;  %v12307_v58 = vld [vmem:[#allocation6_spill] sm:$0xff]  ;;  %v7234_v63 = vld [vmem:[%s11945_s5] sm:$0xff] }
 0x519   : > { %7353 = vrcp.f32 %v9665_v26  ;;  %v3668_v9 = vsel %vm3665_vm7, %v3667_v37, %v3663_v55  ;;  %v9683_v41 = vpack.c.b16 %v4603_v56, %v4601_v52  ;;  %vm3692_vm10 = vmor %vm3690_vm9, %vm3691_vm8  ;;  %v3726_v28 = vand.u32 2147483648, %v9665_v26  ;;  %6860 = vmatmul.msk.bf16.vlgmr.msra.gmra.mxu2 %vm3105_vm13, %v7234_v63  ;;  %6862 = vmatmul.msk.bf16.vlgmr.msra.gmra.mxu3 %vm3105_vm13, %v7234_v63  ;;  %v12314_v52 = vld [vmem:[#allocation33_spill] sm:$0xff]  ;;  %v12320_v63 = vld [vmem:[#allocation88_spill] sm:$0xff] }
 0x51a   : > { %v3687_v61 = vsub.f32 1.0, %v3686_v23  ;;  %v3669_v20 = vmul.f32 %v3668_v9, %v2289_v39  ;;  %v2291_v23 = vadd.f32 %v12310_v0, %v12309_v3  ;;  %vm3720_vm14 = vweird.f32 %v9665_v26  ;;  %v12317_v56 = vld [vmem:[#allocation65_spill] sm:$0xff] }
 0x51c   : > { %v3688_v44 = vmul.f32 %v7352_v40, %v3687_v61  ;;  %v2335_v48 = vpop.f32.mrf.mxu1  ;;  %v9674_v16 = vpop.f32.mrf.mxu0  ;;  %v3830_v32 = vpack.c.bf16 %v3669_v20, %v12307_v58  ;;  %v12311_v61 = vld [vmem:[#allocation84_spill] sm:$0xff]  ;;  %v3727_v58 = vor.u32 1.1754944e-38, %v3726_v28  ;;  %v12321_v28 = vld [vmem:[#allocation9_spill] sm:$0xff] }
 0x51d   : > { %12305 = vst [vmem:[#allocation25_spill] sm:$0xff] %v9674_v16  ;;  %v2336_v50 = vadd.f32 %v2335_v48, %v12306_v53  ;;  %v12313_v48 = vld [vmem:[#allocation50_spill] sm:$0xff]  ;;  %v12315_v53 = vld [vmem:[#allocation8_spill] sm:$0xff] }
 0x51e   : > { %v3689_v30 = vadd.f32 %v7352_v40, %v3688_v44  ;;  %v4604_v0 = vunpack.c.l.b16 %v3830_v32 }
 0x51f   : > { %v7354_v12 = vpop.eup %7353  ;;  %v9681_v10 = vadd.f32 %v12308_v27, %v2336_v50  ;;  %v12316_v50 = vld [vmem:[#allocation15_spill] sm:$0xff]  ;;  %v12318_v27 = vld [vmem:[#allocation5_spill] sm:$0xff] }
 0x520   : > { %v3716_v59 = vmul.f32 %v7354_v12, %v9665_v26  ;;  %v3693_v34 = vsel %vm3692_vm10, %v7352_v40, %v3689_v30  ;;  %vm3721_vm12 = vweird.f32 %v7354_v12  ;;  %v3724_v40 = vand.u32 2147483647, %v9665_v26 }
 0x521   : > { %7355 = vrcp.f32 %v9681_v10  ;;  %v3698_v37 = vsel %vm3695_vm11, %v3697_v4, %v3693_v34  ;;  %vm3722_vm15 = vmor %vm3720_vm14, %vm3721_vm12  ;;  %v9708_v30 = vadd.f32 %v12317_v56, %v9614_v43  ;;  %vm3750_vm5 = vweird.f32 %v9681_v10 }
 0x522   : > { %v3717_v57 = vsub.f32 1.0, %v3716_v59  ;;  %v3699_v54 = vmul.f32 %v3698_v37, %v2291_v23  ;;  %v12319_v59 = vld [vmem:[#allocation35_spill] sm:$0xff]  ;;  %vm3725_vm2 = vcmp.eq.f32.partialorder %v3724_v40, 8.507059e+37 }
 0x523   : > { %v2294_v4 = vadd.f32 %v12319_v59, %v12318_v27  ;;  %v9739_v27 = vpop.permute.xlu0 %3853  ;;  %v12326_v59 = vld [vmem:[#allocation7_spill] sm:$0xff] }
 0x524   : > { %v3718_v6 = vmul.f32 %v7354_v12, %v3717_v57  ;;  %v2338_v39 = vpop.f32.mrf.mxu1  ;;  %v9694_v9 = vpop.f32.mrf.mxu0  ;;  %v3831_v36 = vpack.c.bf16 %v3699_v54, %v12316_v50  ;;  %v12324_v50 = vld [vmem:[#allocation75_spill] sm:$0xff]  ;;  %12325 = vst [vmem:[#allocation2_spill] sm:$0xff] %v9739_v27 }
 0x525   : > { %v2339_v55 = vadd.f32 %v2338_v39, %v12311_v61  ;;  %12312 = vst [vmem:[#allocation17_spill] sm:$0xff] %v9694_v9 }
 0x526   : > { %v3719_v33 = vadd.f32 %v7354_v12, %v3718_v6  ;;  %v4606_v23 = vunpack.c.l.b16 %v3831_v36  ;;  %v4605_v6 = vunpack.c.h.b16 %v3830_v32  ;;  %v4607_v39 = vunpack.c.h.b16 %v3831_v36 }
 0x527   : > { %v7356_v44 = vpop.eup %7355  ;;  %v9701_v20 = vadd.f32 %v12313_v48, %v2339_v55  ;;  %2956 = vmatmul.bf16.gmra.mxu0 %v12314_v52  ;;  %3005 = vmatmul.bf16.gmra.mxu1 %v12315_v53  ;;  %v3756_v32 = vand.u32 2147483648, %v9681_v10  ;;  %v9731_v36 = vadd.f32 %v12324_v50, %v9571_v38  ;;  %v12328_v38 = vld [vmem:[#allocation76_spill] sm:$0xff] }
 0x528   : > { %v3746_v26 = vmul.f32 %v7356_v44, %v9681_v10  ;;  %v3723_v46 = vsel %vm3722_vm15, %v7354_v12, %v3719_v33  ;;  %v9719_v55 = vpack.c.b16 %v4606_v23, %v4604_v0  ;;  %v9721_v54 = vpack.c.b16 %v4607_v39, %v4605_v6  ;;  %v12322_v33 = vld [vmem:[#allocation40_spill] sm:$0xff] }
 0x529   : > { %7357 = vrcp.f32 %v9701_v20  ;;  %v3728_v34 = vsel %vm3725_vm2, %v3727_v58, %v3723_v46  ;;  %vm3751_vm4 = vweird.f32 %v7356_v44  ;;  %v3754_v46 = vand.u32 2147483647, %v9681_v10  ;;  %v12329_v0 = vld [vmem:[#allocation72_spill] sm:$0xff]  ;;  %v9754_v10 = vld [vmem:[%s11946_s6] sm:$0xff] }
 0x52a   : > { %v3747_v57 = vsub.f32 1.0, %v3746_v26  ;;  %v3729_v3 = vmul.f32 %v3728_v34, %v2294_v4  ;;  %7359 = vrcp.f32 %v9708_v30  ;;  %v12327_v4 = vld [vmem:[#allocation52_spill] sm:$0xff]  ;;  %vm3752_vm6 = vmor %vm3750_vm5, %vm3751_vm4  ;;  %v9749_v23 = vadd.f32 %v12329_v0, %v9533_v35 }
 0x52b   : > { %v3786_v39 = vand.u32 2147483648, %v9701_v20  ;;  %vm3755_vm7 = vcmp.eq.f32.partialorder %v3754_v46, 8.507059e+37  ;;  %v3784_v35 = vand.u32 2147483647, %v9701_v20  ;;  %vm3780_vm9 = vweird.f32 %v9701_v20  ;;  %v12332_v46 = vld [vmem:[#allocation85_spill] sm:$0xff] }
 0x52c   : > { %v3748_v37 = vmul.f32 %v7356_v44, %v3747_v57  ;;  %v2340_v43 = vpop.f32.mrf.mxu1  ;;  %v9717_v61 = vpack.c.bf16 %v3729_v3, %v12321_v28  ;;  %v9726_v52 = vpop.f32.mrf.mxu0  ;;  %v2296_v57 = vadd.f32 %v12327_v4, %v12326_v59  ;;  %v9745_v3 = vadd.f32 %v12328_v38, %v9504_v31 }
 0x52d   : > { %v2341_v12 = vadd.f32 %v2340_v43, %v12320_v63  ;;  %12323 = vst [vmem:[#allocation66_spill] sm:$0xff] %v9726_v52  ;;  %v3757_v43 = vor.u32 1.1754944e-38, %v3756_v32  ;;  %v12330_v32 = vld [vmem:[#allocation11_spill] sm:$0xff]  ;;  %v3787_v4 = vor.u32 1.1754944e-38, %v3786_v39  ;;  %vm3785_vm11 = vcmp.eq.f32.partialorder %v3784_v35, 8.507059e+37  ;;  %v12338_v52 = vld [vmem:[#allocation89_spill] sm:$0xff] }
 0x52e   : > { %v3749_v53 = vadd.f32 %v7356_v44, %v3748_v37  ;;  %v4608_v39 = vunpack.c.l.b16 %v9717_v61  ;;  %v4609_v50 = vunpack.c.h.b16 %v9717_v61  ;;  %vm4193_vm4 = vweird.f32 %v9708_v30 }
 0x52f   : > { %v7358_v40 = vpop.eup %7357  ;;  %v9724_v48 = vadd.f32 %v12322_v33, %v2341_v12 }
 0x530   : > { %v3776_v26 = vmul.f32 %v7358_v40, %v9701_v20  ;;  %v9737_v58 = vpop.eup %7359  ;;  %v3753_v37 = vsel %vm3752_vm6, %v7356_v44, %v3749_v53  ;;  %vm3781_vm8 = vweird.f32 %v7358_v40  ;;  %v7235_v44 = vld [vmem:[%s11945_s5 + $0x8] sm:$0xff] }
 0x531   : > { %7361 = vrcp.f32 %v9724_v48  ;;  %v4189_v31 = vmul.f32 %v9737_v58, %v9708_v30  ;;  %v3758_v12 = vsel %vm3755_vm7, %v3757_v43, %v3753_v37  ;;  %vm3782_vm10 = vmor %vm3780_vm9, %vm3781_vm8  ;;  %6861 = vmatmul.msk.bf16.gmra.mxu2 %vm3105_vm13, %v7235_v44  ;;  %6863 = vmatmul.msk.bf16.gmra.mxu3 %vm3105_vm13, %v7235_v44  ;;  %v3816_v56 = vand.u32 2147483648, %v9724_v48 }
 0x532   : > { %v3777_v34 = vsub.f32 1.0, %v3776_v26  ;;  %7363 = vrcp.f32 %v9731_v36  ;;  %v3759_v33 = vmul.f32 %v3758_v12, %v2296_v57  ;;  %v12331_v26 = vld [vmem:[#allocation41_spill] sm:$0xff]  ;;  %vm3810_vm14 = vweird.f32 %v9724_v48 }
 0x533   : > { %v2299_v59 = vadd.f32 %v12332_v46, %v12331_v26  ;;  %7365 = vrcp.f32 %v9745_v3  ;;  %v4190_v20 = vsub.f32 1.0, %v4189_v31  ;;  %v3814_v46 = vand.u32 2147483647, %v9724_v48  ;;  %v9786_v31 = vpop.permute.xlu0 %3838 }
 0x534   : > { %v3778_v6 = vmul.f32 %v7358_v40, %v3777_v34  ;;  %v9758_v63 = vpop.f32.mrf.mxu1  ;;  %7367 = vrcp.f32 %v9749_v23  ;;  %v9777_v57 = vpop.f32.mrf.mxu0  ;;  %vm4194_vm5 = vweird.f32 %v9737_v58  ;;  %vm4133_vm8 = vweird.f32 %v9731_v36 }
 0x535   : > { %v4191_v9 = vmul.f32 %v9737_v58, %v4190_v20  ;;  %vm3815_vm2 = vcmp.eq.f32.partialorder %v3814_v46, 8.507059e+37  ;;  %vm4195_vm6 = vmor %vm4193_vm4, %vm4194_vm5  ;;  %vm4013_vm4 = vweird.f32 %v9745_v3 }
 0x536   : > { %v3779_v28 = vadd.f32 %v7358_v40, %v3778_v6 }
 0x537   : > { %v7362_v53 = vpop.eup %7361  ;;  %3010 = vmatmul.bf16.gmra.mxu1 %v12330_v32  ;;  %6872 = vmatmul.msk.bf16.vlgmr.msra.gmra.mxu0 %vm3105_vm13, %v9754_v10  ;;  %v12333_v32 = vld [vmem:[#allocation10_spill] sm:$0xff]  ;;  %v4192_v46 = vadd.f32 %v9737_v58, %v4191_v9 }
 0x538   : > { %v3806_v34 = vmul.f32 %v7362_v53, %v9724_v48  ;;  %v3783_v37 = vsel %vm3782_vm10, %v7358_v40, %v3779_v28  ;;  %v9779_v43 = vpop.eup %7363  ;;  %v3833_v26 = vpack.c.bf16 %v3759_v33, %v12333_v32  ;;  %vm3811_vm12 = vweird.f32 %v7362_v53  ;;  %v12336_v32 = vld [vmem:[#allocation20_spill] sm:$0xff] }
 0x539   : > { %v3788_v12 = vsel %vm3785_vm11, %v3787_v4, %v3783_v37  ;;  %v12335_v4 = vld [vmem:[#allocation93_spill] sm:$0xff]  ;;  %v4129_v37 = vmul.f32 %v9779_v43, %v9731_v36  ;;  %vm3812_vm15 = vmor %vm3810_vm14, %vm3811_vm12  ;;  %vm4134_vm9 = vweird.f32 %v9779_v43  ;;  %vm4073_vm14 = vweird.f32 %v9749_v23 }
 0x53a   : > { %v3807_v6 = vsub.f32 1.0, %v3806_v34  ;;  %v3789_v44 = vmul.f32 %v3788_v12, %v2299_v59  ;;  %v4610_v28 = vunpack.c.l.b16 %v3833_v26  ;;  %v4611_v34 = vunpack.c.h.b16 %v3833_v26  ;;  %v9797_v59 = vpop.eup %7365  ;;  %vm4135_vm10 = vmor %vm4133_vm8, %vm4134_vm9 }
 0x53b   : > { %v9792_v33 = vadd.f32 %v9786_v31, %v12335_v4  ;;  %v9800_v38 = vpop.eup %7367  ;;  %v3817_v26 = vor.u32 1.1754944e-38, %v3816_v56  ;;  %v4130_v17 = vsub.f32 1.0, %v4129_v37  ;;  %vm4014_vm5 = vweird.f32 %v9797_v59 }
 0x53c   : > { %v3808_v35 = vmul.f32 %v7362_v53, %v3807_v6  ;;  %v9788_v40 = vpop.f32.mrf.mxu1  ;;  %v3834_v0 = vpack.c.bf16 %v3789_v44, %v12336_v32  ;;  %v4628_v6 = vpack.c.b16 %v4610_v28, %v4608_v39  ;;  %v4629_v12 = vpack.c.b16 %v4611_v34, %v4609_v50 }
 0x53d   : > { %12334 = vst [vmem:[#allocation23_spill] sm:$0xff] %v9788_v40  ;;  %v12337_v40 = vld [vmem:[#allocation53_spill] sm:$0xff]  ;;  %v4199_v44 = vand.u32 2147483648, %v9708_v30  ;;  %7369 = vrcp.f32 %v9792_v33  ;;  %v4009_v50 = vmul.f32 %v9797_v59, %v9745_v3  ;;  %v4069_v56 = vmul.f32 %v9800_v38, %v9749_v23 }
 0x53e   : > { %v3809_v61 = vadd.f32 %v7362_v53, %v3808_v35  ;;  %v2301_v4 = vadd.f32 %v12338_v52, %v12337_v40  ;;  %v9812_v52 = vpop.f32.mrf.mxu0  ;;  %v4197_v35 = vand.u32 2147483647, %v9708_v30  ;;  %v4131_v40 = vmul.f32 %v9779_v43, %v4130_v17 }
 0x53f   : > { %v4612_v28 = vunpack.c.l.b16 %v3834_v0  ;;  %v4613_v34 = vunpack.c.h.b16 %v3834_v0  ;;  %v4200_v37 = vor.u32 1.1754944e-38, %v4199_v44  ;;  %v4010_v21 = vsub.f32 1.0, %v4009_v50  ;;  %v12341_v44 = vld [vmem:[#allocation26_spill] sm:$0xff] }
 0x540   : > { %v3813_v16 = vsel %vm3812_vm15, %v7362_v53, %v3809_v61  ;;  %v9817_v53 = vld [vmem:[%s11946_s6 + $0x8] sm:$0xff]  ;;  %vm4198_vm7 = vcmp.eq.f32.partialorder %v4197_v35, 8.507059e+37  ;;  %vm4074_vm12 = vweird.f32 %v9800_v38  ;;  %vm3953_vm8 = vweird.f32 %v9792_v33 }
 0x541   : > { %v3818_v32 = vsel %vm3815_vm2, %v3817_v26, %v3813_v16  ;;  %v12339_v16 = vld [vmem:[#allocation18_spill] sm:$0xff]  ;;  %vm4075_vm15 = vmor %vm4073_vm14, %vm4074_vm12 }
 0x542   : > { %v3819_v48 = vmul.f32 %v3818_v32, %v2301_v4  ;;  %v4196_v4 = vsel %vm4195_vm6, %v9737_v58, %v4192_v46  ;;  %v4070_v32 = vsub.f32 1.0, %v4069_v56  ;;  %v4132_v58 = vadd.f32 %v9779_v43, %v4131_v40  ;;  %vm4015_vm6 = vmor %vm4013_vm4, %vm4014_vm5 }
 0x543   : > { %v4201_v9 = vsel %vm4198_vm7, %v4200_v37, %v4196_v4  ;;  %v9831_v30 = vpop.eup %7369  ;;  %v4137_v56 = vand.u32 2147483647, %v9731_v36 }
 0x544   : > { %v9819_v20 = vpop.f32.mrf.mxu1  ;;  %v3835_v39 = vpack.c.bf16 %v3819_v48, %v12339_v16  ;;  %v4139_v48 = vand.u32 2147483648, %v9731_v36  ;;  %v12340_v16 = vld [vmem:[#allocation12_spill] sm:$0xff]  ;;  %v9834_v15 = vmul.f32 %v4201_v9, %v12341_v44  ;;  %v4071_v46 = vmul.f32 %v9800_v38, %v4070_v32  ;;  %v12344_v36 = vld [vmem:[#allocation22_spill] sm:$0xff] }
 0x545   : > { %vm4138_vm11 = vcmp.eq.f32.partialorder %v4137_v56, 8.507059e+37  ;;  %v4077_v32 = vand.u32 2147483647, %v9749_v23  ;;  %v12349_v56 = vld [vmem:[#allocation60_spill] sm:$0xff]  ;;  %vm3954_vm9 = vweird.f32 %v9831_v30 }
 0x546   : > { %v4614_v61 = vunpack.c.l.b16 %v3835_v39  ;;  %v4615_v26 = vunpack.c.h.b16 %v3835_v39  ;;  %12342 = vst [vmem:[#allocation14_spill] sm:$0xff] %v9834_v15  ;;  %v3949_v39 = vmul.f32 %v9831_v30, %v9792_v33  ;;  %v4140_v50 = vor.u32 1.1754944e-38, %v4139_v48  ;;  %v9847_v37 = vpop.f32.mrf.mxu0 }
 0x547   : > { %3015 = vmatmul.bf16.gmra.mxu1 %v12340_v16  ;;  %6873 = vmatmul.msk.bf16.gmra.mxu0 %vm3105_vm13, %v9817_v53  ;;  %12343 = vst [vmem:[#allocation69_spill] sm:$0xff] %v9847_v37  ;;  %v4019_v48 = vand.u32 2147483648, %v9745_v3  ;;  %vm4078_vm2 = vcmp.eq.f32.partialorder %v4077_v32, 8.507059e+37  ;;  %v2766_v32 = vpop.f32.mrf.mxu2 }
 0x548   : > { %v4630_v17 = vpack.c.b16 %v4614_v61, %v4612_v28  ;;  %v4631_v0 = vpack.c.b16 %v4615_v26, %v4613_v34  ;;  %v4136_v28 = vsel %vm4135_vm10, %v9779_v43, %v4132_v58  ;;  %v4079_v34 = vand.u32 2147483648, %v9749_v23  ;;  %vm3955_vm10 = vmor %vm3953_vm8, %vm3954_vm9 }
 0x549   : > { %v4141_v40 = vsel %vm4138_vm11, %v4140_v50, %v4136_v28  ;;  %v4011_v61 = vmul.f32 %v9797_v59, %v4010_v21  ;;  %v3950_v4 = vsub.f32 1.0, %v3949_v39  ;;  %v4072_v43 = vadd.f32 %v9800_v38, %v4071_v46 }
 0x54a   : > { %5145 = vmatpush.bf16.msrb.mxu0 %v4630_v17  ;;  %5307 = vmatpush.bf16.msra.mxu3 %v4631_v0  ;;  %v9851_v26 = vmul.f32 %v4141_v40, %v12344_v36  ;;  %v4080_v21 = vor.u32 1.1754944e-38, %v4079_v34  ;;  %v12346_v17 = vld [vmem:[#allocation19_spill] sm:$0xff]  ;;  %v4020_v44 = vor.u32 1.1754944e-38, %v4019_v48  ;;  %v12352_v40 = vld [vmem:[#allocation21_spill] sm:$0xff]  ;;  %v2855_v48 = vpop.f32.mrf.mxu3 }
 0x54b   : > { %v4076_v16 = vsel %vm4075_vm15, %v9800_v38, %v4072_v43 }
 0x54c   : > { %v9843_v35 = vpop.f32.mrf.mxu1  ;;  %12345 = vst [vmem:[#allocation3_spill] sm:$0xff] %v9851_v26  ;;  %v4081_v9 = vsel %vm4078_vm2, %v4080_v21, %v4076_v16  ;;  %v12379_v26 = vld [vmem:[#allocation79_spill] sm:$0xff] }
 0x54d   : > { %v9868_v0 = vmul.f32 %v4081_v9, %v12346_v17  ;;  %v12369_v17 = vld [vmem:[#allocation37_spill] sm:$0xff] }
 0x54e   : > { %5146 = vmatpush.bf16.msrb.mxu0 %v4628_v6  ;;  %5308 = vmatpush.bf16.msra.mxu3 %v4629_v12  ;;  %v4012_v6 = vadd.f32 %v9797_v59, %v4011_v61  ;;  %v3951_v12 = vmul.f32 %v9831_v30, %v3950_v4  ;;  %v9876_v58 = vpop.f32.mrf.mxu0  ;;  %v12361_v4 = vld [vmem:[#allocation58_spill] sm:$0xff] }
 0x54f   : > { %12347 = vst [vmem:[#allocation63_spill] sm:$0xff] %v9868_v0  ;;  %v12378_v0 = vld [vmem:[#allocation91_spill] sm:$0xff] }
 0x550   : > { %v4016_v38 = vsel %vm4015_vm6, %v9797_v59, %v4012_v6  ;;  %12348 = vst [vmem:[#allocation34_spill] sm:$0xff] %v9876_v58  ;;  %v3952_v46 = vadd.f32 %v9831_v30, %v3951_v12  ;;  %v2769_v12 = vpop.f32.mrf.mxu2  ;;  %v2836_v15 = vadd.f32 %v12379_v26, %v12378_v0 }
 0x552   : > { %5147 = vmatpush.bf16.msrb.mxu0 %v9719_v55  ;;  %5309 = vmatpush.bf16.msra.mxu3 %v9721_v54  ;;  %v4017_v55 = vand.u32 2147483647, %v9745_v3  ;;  %v3959_v54 = vand.u32 2147483648, %v9792_v33  ;;  %v12350_v3 = vld [vmem:[#allocation13_spill] sm:$0xff]  ;;  %v2858_v9 = vpop.f32.mrf.mxu3 }
 0x554   : > { %v9865_v23 = vpop.f32.mrf.mxu1  ;;  %vm4018_vm7 = vcmp.eq.f32.partialorder %v4017_v55, 8.507059e+37  ;;  %v3960_v59 = vor.u32 1.1754944e-38, %v3959_v54 }
 0x555   : > { %v4021_v39 = vsel %vm4018_vm7, %v4020_v44, %v4016_v38 }
 0x556   : > { %5148 = vmatpush.bf16.msrb.mxu0 %v9677_v5  ;;  %5310 = vmatpush.bf16.msra.mxu3 %v9683_v41  ;;  %v9882_v50 = vmul.f32 %v4021_v39, %v12350_v3  ;;  %v3957_v5 = vand.u32 2147483647, %v9792_v33  ;;  %v3956_v41 = vsel %vm3955_vm10, %v9831_v30, %v3952_v46  ;;  %v9895_v36 = vpop.f32.mrf.mxu0  ;;  %v12374_v46 = vld [vmem:[#allocation86_spill] sm:$0xff] }
 0x557   : > { %3020 = vmatmul.bf16.gmra.mxu1 %v12349_v56  ;;  %12354 = vst [vmem:[#allocation48_spill] sm:$0xff] %v9895_v36  ;;  %v12396_v36 = vld [vmem:[#allocation24_spill] sm:$0xff] }
 0x558   : > { %12351 = vst [vmem:[#allocation43_spill] sm:$0xff] %v9882_v50  ;;  %vm3958_vm11 = vcmp.eq.f32.partialorder %v3957_v5, 8.507059e+37  ;;  %v2771_v38 = vpop.f32.mrf.mxu2 }
 0x559   : > { %v3961_v28 = vsel %vm3958_vm11, %v3960_v59, %v3956_v41  ;;  %v7265_v59 = vld [vmem:[%s11948_s8] sm:$0xff] }
 0x55a   : > { %5149 = vmatpush.bf16.msrb.mxu0 %v9651_v11  ;;  %5311 = vmatpush.bf16.msra.mxu3 %v9653_v19  ;;  %v9891_v61 = vmul.f32 %v3961_v28, %v12352_v40  ;;  %v12356_v19 = vld [vmem:[#allocation62_spill] sm:$0xff]  ;;  %v2860_v44 = vpop.f32.mrf.mxu3 }
 0x55b   : > { %6912 = vmatmul.msk.bf16.vlgmr.msrb.gmra.mxu2 %vm1069_vm3, %v7265_v59  ;;  %6921 = vmatmul.msk.bf16.vlgmr.msrb.gmra.mxu3 %vm1069_vm3, %v7265_v59  ;;  %v2859_v59 = vadd.f32 %v2858_v9, %v2769_v12  ;;  %v2851_v12 = vadd.f32 %v9595_v45, %v9588_v7  ;;  %v12387_v7 = vld [vmem:[#allocation71_spill] sm:$0xff] }
 0x55c   : > { %v9888_v34 = vpop.f32.mrf.mxu1  ;;  %12353 = vst [vmem:[#allocation28_spill] sm:$0xff] %v9891_v61 }
 0x55d   : > { %v9994_v45 = vadd.f32 %v12387_v7, %v2851_v12 }
 0x55e   : > { %5150 = vmatpush.bf16.msrb.mxu0 %v9622_v49  ;;  %5312 = vmatpush.bf16.msra.mxu3 %v9625_v2  ;;  %v9904_v33 = vpop.f32.mrf.mxu0 }
 0x55f   : > { %12357 = vst [vmem:[#allocation16_spill] sm:$0xff] %v9904_v33 }
 0x560   : > { %v2774_v3 = vpop.f32.mrf.mxu2 }
 0x562   : > { %5151 = vmatpush.bf16.msrb.mxu0 %v9580_v13  ;;  %5313 = vmatpush.bf16.msra.mxu3 %v9583_v62  ;;  %v2863_v5 = vpop.f32.mrf.mxu3 }
 0x564   : > { %v9899_v11 = vpop.f32.mrf.mxu1 }
 0x565   : > { %12355 = vst [vmem:[#allocation4_spill] sm:$0xff] %v9899_v11 }
 0x566   : > { %5152 = vmatpush.bf16.msrb.mxu0 %v9540_v22  ;;  %5314 = vmatpush.bf16.msra.mxu3 %v9543_v51  ;;  %v9910_v2 = vpop.f32.mrf.mxu0  ;;  %v12365_v22 = vld [vmem:[#allocation32_spill] sm:$0xff] }
 0x567   : > { %3025 = vmatmul.bf16.gmra.mxu1 %v12356_v19  ;;  %12360 = vst [vmem:[#allocation6_spill] sm:$0xff] %v9910_v2 }
 0x568   : > { %v2776_v40 = vpop.f32.mrf.mxu2 }
 0x56a   : > { %v2865_v19 = vpop.f32.mrf.mxu3 }
 0x56c   : > { %v9906_v30 = vpop.f32.mrf.mxu1 }
 0x56d   : > { %12358 = vst [vmem:[#allocation68_spill] sm:$0xff] %v9906_v30 }
 0x56e   : > { %v9915_v62 = vpop.f32.mrf.mxu0 }
 0x56f   : > { %12363 = vst [vmem:[#allocation39_spill] sm:$0xff] %v9915_v62  ;;  %v12382_v62 = vld [vmem:[#allocation55_spill] sm:$0xff] }
 0x570   : > { %v2779_v61 = vpop.f32.mrf.mxu2  ;;  %v9969_v2 = vadd.f32 %v12382_v62, %v2859_v59 }
 0x572   : > { %v2868_v50 = vpop.f32.mrf.mxu3  ;;  %7371 = vrcp.f32 %v9969_v2  ;;  %vm4253_vm12 = vweird.f32 %v9969_v2 }
 0x574   : > { %v9908_v49 = vpop.f32.mrf.mxu1 }
 0x575   : > { %12359 = vst [vmem:[#allocation44_spill] sm:$0xff] %v9908_v49  ;;  %v12400_v49 = vld [vmem:[#allocation30_spill] sm:$0xff] }
 0x576   : > { %v9920_v51 = vpop.f32.mrf.mxu0 }
 0x577   : > { %3030 = vmatmul.bf16.gmra.mxu1 %v12361_v4 }
 0x57c   : > { %v9913_v13 = vpop.f32.mrf.mxu1 }
 0x57d   : > { %12362 = vst [vmem:[#allocation46_spill] sm:$0xff] %v9913_v13 }
 0x57e   : > { %v9924_v21 = vpop.f32.mrf.mxu0 }
 0x57f   : > { %12367 = vst [vmem:[#allocation50_spill] sm:$0xff] %v9924_v21  ;;  %v2846_v21 = vadd.f32 %v9553_v25, %v9531_v24  ;;  %v2869_v24 = vadd.f32 %v2868_v50, %v2779_v61  ;;  %v12386_v25 = vld [vmem:[#allocation74_spill] sm:$0xff]  ;;  %v2861_v61 = vadd.f32 %v2860_v44, %v2771_v38  ;;  %v10014_v38 = vpop.eup %7371  ;;  %v12392_v44 = vld [vmem:[#allocation59_spill] sm:$0xff] }
 0x581   : > { %v10018_v12 = vadd.f32 %v12392_v44, %v2861_v61  ;;  %v4249_v61 = vmul.f32 %v10014_v38, %v9969_v2 }
 0x583   : > { %vm4283_vm2 = vweird.f32 %v10018_v12 }
 0x584   : > { %v9917_v43 = vpop.f32.mrf.mxu1 }
 0x585   : > { %12364 = vst [vmem:[#allocation31_spill] sm:$0xff] %v9917_v43 }
 0x586   : > { %v9931_v54 = vpop.f32.mrf.mxu0 }
 0x587   : > { %3035 = vmatmul.bf16.gmra.mxu1 %v12365_v22  ;;  %12371 = vst [vmem:[#allocation15_spill] sm:$0xff] %v9931_v54 }
 0x58c   : > { %v9922_v16 = vpop.f32.mrf.mxu1 }
 0x58d   : > { %12366 = vst [vmem:[#allocation84_spill] sm:$0xff] %v9922_v16  ;;  %v12399_v16 = vld [vmem:[#allocation36_spill] sm:$0xff] }
 0x58e   : > { %v9935_v39 = vpop.f32.mrf.mxu0 }
 0x58f   : > { %12373 = vst [vmem:[#allocation35_spill] sm:$0xff] %v9935_v39  ;;  %v9964_v39 = vpop.permute.xlu1 %3843 }
 0x590   : > { %12381 = vst [vmem:[#allocation7_spill] sm:$0xff] %v9964_v39  ;;  %v9972_v54 = vadd.f32 %v9964_v39, %v2836_v15  ;;  %v2866_v15 = vadd.f32 %v2865_v19, %v2776_v40 }
 0x592   : > { %7373 = vrcp.f32 %v9972_v54 }
 0x594   : > { %v9926_v6 = vpop.f32.mrf.mxu1 }
 0x595   : > { %12368 = vst [vmem:[#allocation33_spill] sm:$0xff] %v9926_v6  ;;  %v12398_v6 = vld [vmem:[#allocation29_spill] sm:$0xff] }
 0x596   : > { %v9945_v28 = vpop.f32.mrf.mxu0  ;;  %v10078_v39 = vadd.f32 %v12399_v16, %v12398_v6  ;;  %v4259_v16 = vand.u32 2147483648, %v9969_v2 }
 0x597   : > { %3040 = vmatmul.bf16.gmra.mxu1 %v12369_v17  ;;  %12376 = vst [vmem:[#allocation9_spill] sm:$0xff] %v9945_v28  ;;  %v12380_v28 = vld [vmem:[#allocation82_spill] sm:$0xff] }
 0x59c   : > { %v9929_v55 = vpop.f32.mrf.mxu1 }
 0x59d   : > { %12370 = vst [vmem:[#allocation8_spill] sm:$0xff] %v9929_v55 }
 0x59e   : > { %v9951_v22 = vpop.f32.mrf.mxu0 }
 0x59f   : > { %12377 = vst [vmem:[#allocation40_spill] sm:$0xff] %v9951_v22  ;;  %v2864_v22 = vadd.f32 %v2863_v5, %v2774_v3  ;;  %v12385_v3 = vld [vmem:[#allocation64_spill] sm:$0xff] }
 0x5a1   : > { %v9984_v5 = vadd.f32 %v12385_v3, %v2864_v22  ;;  %v12388_v22 = vld [vmem:[#allocation73_spill] sm:$0xff] }
 0x5a3   : > { %vm4313_vm4 = vweird.f32 %v9984_v5 }
 0x5a4   : > { %v9933_v56 = vpop.f32.mrf.mxu1 }
 0x5a5   : > { %12372 = vst [vmem:[#allocation5_spill] sm:$0xff] %v9933_v56 }
 0x5a6   : > { %v9981_v0 = vpop.f32.mrf.mxu0 }
 0x5a7   : > { %3045 = vmatmul.bf16.gmra.mxu1 %v12374_v46  ;;  %v7266_v46 = vld [vmem:[%s11948_s8 + $0x8] sm:$0xff]  ;;  %12384 = vst [vmem:[#allocation11_spill] sm:$0xff] %v9981_v0 }
 0x5a8   : > { %6913 = vmatmul.msk.bf16.gmra.mxu2 %vm1069_vm3, %v7266_v46  ;;  %6922 = vmatmul.msk.bf16.gmra.mxu3 %vm1069_vm3, %v7266_v46 }
 0x5ac   : > { %v9938_v41 = vpop.f32.mrf.mxu1 }
 0x5ad   : > { %12375 = vst [vmem:[#allocation88_spill] sm:$0xff] %v9938_v41 }
 0x5b4   : > { %v9947_v4 = vpop.f32.mrf.mxu1 }
 0x5b7   : > { %6874 = vmatmul.msk.bf16.vlgmr.msra.gmra.mxu1 %vm3105_vm13, %v9754_v10  ;;  %v2841_v10 = vadd.f32 %v9516_v1, %v12380_v28  ;;  %v2856_v1 = vadd.f32 %v2855_v48, %v2766_v32  ;;  %v9987_v28 = vadd.f32 %v12386_v25, %v2846_v21  ;;  %v2781_v32 = vpop.f32.mrf.mxu2  ;;  %v2870_v48 = vpop.f32.mrf.mxu3  ;;  %v12389_v21 = vld [vmem:[#allocation42_spill] sm:$0xff] }
 0x5b8   : > { %v10002_v40 = vadd.f32 %v12389_v21, %v2869_v24  ;;  %v2871_v46 = vadd.f32 %v2870_v48, %v2781_v32  ;;  %v10031_v48 = vpop.f32.mrf.mxu0 }
 0x5b9   : > { %v9979_v26 = vadd.f32 %v9739_v27, %v2841_v10  ;;  %v9998_v50 = vadd.f32 %v12388_v22, %v2856_v1  ;;  %v7267_v10 = vld [vmem:[%s11948_s8 + $0x10] sm:$0xff]  ;;  %v10020_v1 = vpop.eup %7373  ;;  %12394 = vst [vmem:[#allocation85_spill] sm:$0xff] %v10031_v48 }
 0x5ba   : > { %6914 = vmatmul.msk.bf16.gmra.mxu2 %vm1069_vm3, %v7267_v10  ;;  %6923 = vmatmul.msk.bf16.gmra.mxu3 %vm1069_vm3, %v7267_v10  ;;  %v3979_v22 = vmul.f32 %v10020_v1, %v9972_v54  ;;  %vm4373_vm9 = vweird.f32 %v10002_v40 }
 0x5bb   : > { %7375 = vrcp.f32 %v9979_v26 }
 0x5bc   : > { %v9953_v17 = vpop.f32.mrf.mxu1  ;;  %7377 = vrcp.f32 %v9984_v5  ;;  %v3980_v43 = vsub.f32 1.0, %v3979_v22 }
 0x5bd   : > { %7379 = vrcp.f32 %v9987_v28 }
 0x5be   : > { %7381 = vrcp.f32 %v9994_v45 }
 0x5bf   : > { %7383 = vrcp.f32 %v9998_v50 }
 0x5c0   : > { %7385 = vrcp.f32 %v10002_v40  ;;  %v10080_v18 = vpop.f32.mrf.mxu0 }
 0x5c1   : > { %v10025_v24 = vpop.eup %7375 }
 0x5c2   : > { %v10033_v21 = vpop.eup %7377  ;;  %v4039_v7 = vmul.f32 %v10025_v24, %v9979_v26 }
 0x5c3   : > { %v10037_v0 = vpop.eup %7379  ;;  %v4309_v3 = vmul.f32 %v10033_v21, %v9984_v5  ;;  %vm4314_vm14 = vweird.f32 %v10033_v21 }
 0x5c4   : > { %v9976_v9 = vpop.f32.mrf.mxu1  ;;  %v4099_v25 = vmul.f32 %v10037_v0, %v9987_v28  ;;  %vm10141_vm6 = vmor %vm4313_vm4, %vm4314_vm14 }
 0x5c5   : > { %12383 = vst [vmem:[#allocation52_spill] sm:$0xff] %v9976_v9  ;;  %v4310_v33 = vsub.f32 1.0, %v4309_v3  ;;  %v4040_v3 = vsub.f32 1.0, %v4039_v7 }
 0x5c6   : > { %v4100_v13 = vsub.f32 1.0, %v4099_v25 }
 0x5c7   : > { %6875 = vmatmul.msk.bf16.gmra.mxu1 %vm3105_vm13, %v9817_v53  ;;  %v12390_v53 = vld [vmem:[#allocation47_spill] sm:$0xff]  ;;  %v4311_v6 = vmul.f32 %v10033_v21, %v4310_v33  ;;  %vm4254_vm13 = vweird.f32 %v10014_v38  ;;  %v10107_v33 = vmul.f32 %v10025_v24, %v4040_v3 }
 0x5c8   : > { %v10006_v19 = vadd.f32 %v12390_v53, %v2866_v15  ;;  %v12393_v15 = vld [vmem:[#allocation56_spill] sm:$0xff]  ;;  %v10040_v53 = vpop.eup %7381  ;;  %vm10128_vm15 = vmor %vm4253_vm12, %vm4254_vm13  ;;  %vm4223_vm13 = vweird.f32 %v9998_v50 }
 0x5c9   : > { %v10029_v32 = vadd.f32 %v12393_v15, %v2871_v46  ;;  %v10042_v10 = vpop.eup %7383  ;;  %v4250_v15 = vsub.f32 1.0, %v4249_v61  ;;  %v4159_v62 = vmul.f32 %v10040_v53, %v9994_v45  ;;  %v4312_v3 = vadd.f32 %v10033_v21, %v4311_v6 }
 0x5ca   : > { %7387 = vrcp.f32 %v10006_v19  ;;  %v10047_v46 = vpop.eup %7385  ;;  %v4219_v61 = vmul.f32 %v10042_v10, %v9998_v50  ;;  %v4317_v6 = vand.u32 2147483647, %v9984_v5  ;;  %vm4343_vm12 = vweird.f32 %v10006_v19 }
 0x5cb   : > { %7389 = vrcp.f32 %v10018_v12  ;;  %v4251_v41 = vmul.f32 %v10014_v38, %v4250_v15  ;;  %v12403_v15 = vld [vmem:[#allocation90_spill] sm:$0xff]  ;;  %v4160_v37 = vsub.f32 1.0, %v4159_v62  ;;  %vm4374_vm7 = vweird.f32 %v10047_v46 }
 0x5cc   : > { %v10009_v59 = vpop.f32.mrf.mxu1  ;;  %7391 = vrcp.f32 %v10029_v32  ;;  %v4220_v8 = vsub.f32 1.0, %v4219_v61  ;;  %v10104_v61 = vmul.f32 %v10020_v1, %v3980_v43  ;;  %vm4318_vm10 = vcmp.eq.f32.partialorder %v4317_v6, 8.507059e+37  ;;  %vm10166_vm14 = vmor %vm4373_vm9, %vm4374_vm7  ;;  %v10185_v6 = vpop.permute.xlu1 %3156 }
 0x5cd   : > { %12391 = vst [vmem:[#allocation41_spill] sm:$0xff] %v10009_v59  ;;  %v12397_v59 = vld [vmem:[#allocation27_spill] sm:$0xff]  ;;  %v4252_v62 = vadd.f32 %v10014_v38, %v4251_v41  ;;  %v4319_v41 = vand.u32 2147483648, %v9984_v5  ;;  %v4316_v5 = vsel %vm10141_vm6, %v10033_v21, %v4312_v3  ;;  %v4347_v3 = vand.u32 2147483647, %v10006_v19 }
 0x5ce   : > { %v10069_v58 = vadd.f32 %v12397_v59, %v12396_v36  ;;  %v10084_v36 = vadd.f32 %v12401_v29, %v12400_v49  ;;  %v12402_v59 = vld [vmem:[#allocation61_spill] sm:$0xff]  ;;  %v7268_v49 = vld [vmem:[%s11948_s8 + $0x18] sm:$0xff]  ;;  %v10121_v43 = vmul.f32 %v10042_v10, %v4220_v8  ;;  %vm4163_vm6 = vweird.f32 %v9994_v45 }
 0x5cf   : > { %v10088_v9 = vadd.f32 %v12403_v15, %v12402_v59  ;;  %v10114_v59 = vmul.f32 %v10040_v53, %v4160_v37  ;;  %6915 = vmatmul.msk.bf16.gmra.mxu2 %vm1069_vm3, %v7268_v49  ;;  %6924 = vmatmul.msk.bf16.gmra.mxu3 %vm1069_vm3, %v7268_v49  ;;  %v4256_v8 = vsel %vm10128_vm15, %v10014_v38, %v4252_v62  ;;  %v4260_v49 = vor.u32 1.1754944e-38, %v4259_v16  ;;  %v10148_v16 = vpop.f32.mrf.mxu0 }
 0x5d0   : > { %v10051_v44 = vpop.eup %7387  ;;  %vm4103_vm7 = vweird.f32 %v9987_v28  ;;  %vm4348_vm9 = vcmp.eq.f32.partialorder %v4347_v3, 8.507059e+37  ;;  %v7269_v3 = vld [vmem:[%s11948_s8 + $0x20] sm:$0xff] }
 0x5d1   : > { %v10061_v27 = vpop.eup %7389  ;;  %v4339_v56 = vmul.f32 %v10051_v44, %v10006_v19  ;;  %vm4344_vm8 = vweird.f32 %v10051_v44 }
 0x5d2   : > { %v10074_v55 = vpop.eup %7391  ;;  %v4279_v30 = vmul.f32 %v10061_v27, %v10018_v12  ;;  %vm4284_vm11 = vweird.f32 %v10061_v27  ;;  %vm10180_vm4 = vmor %vm4343_vm12, %vm4344_vm8  ;;  %vm4403_vm8 = vweird.f32 %v10029_v32  ;;  %vm4043_vm12 = vweird.f32 %v9979_v26 }
 0x5d3   : > { %v4340_v7 = vsub.f32 1.0, %v4339_v56  ;;  %v4399_v22 = vmul.f32 %v10074_v55, %v10029_v32  ;;  %v10110_v56 = vmul.f32 %v10037_v0, %v4100_v13 }
 0x5d4   : > { %v10049_v48 = vpop.f32.mrf.mxu1  ;;  %v4280_v15 = vsub.f32 1.0, %v4279_v30 }
 0x5d5   : > { %12395 = vst [vmem:[#allocation10_spill] sm:$0xff] %v10049_v48  ;;  %v4369_v48 = vmul.f32 %v10047_v46, %v10002_v40  ;;  %v4341_v30 = vmul.f32 %v10051_v44, %v4340_v7  ;;  %v4320_v7 = vor.u32 1.1754944e-38, %v4319_v41 }
 0x5d7   : > { %v4370_v25 = vsub.f32 1.0, %v4369_v48  ;;  %v4257_v48 = vand.u32 2147483647, %v9969_v2  ;;  %v4400_v2 = vsub.f32 1.0, %v4399_v22  ;;  %v4342_v41 = vadd.f32 %v10051_v44, %v4341_v30 }
 0x5d8   : > { %v4407_v30 = vand.u32 2147483647, %v10029_v32 }
 0x5d9   : > { %v4371_v13 = vmul.f32 %v10047_v46, %v4370_v25  ;;  %vm4258_vm5 = vcmp.eq.f32.partialorder %v4257_v48, 8.507059e+37  ;;  %v4281_v25 = vmul.f32 %v10061_v27, %v4280_v15  ;;  %v4379_v48 = vand.u32 2147483648, %v10002_v40 }
 0x5da   : > { %v4261_v62 = vsel %vm4258_vm5, %v4260_v49, %v4256_v8  ;;  %v4401_v15 = vmul.f32 %v10074_v55, %v4400_v2  ;;  %v4409_v2 = vand.u32 2147483648, %v10029_v32  ;;  %vm4404_vm5 = vweird.f32 %v10074_v55  ;;  %v12424_v49 = vld [vmem:[#allocation87_spill] sm:$0xff] }
 0x5db   : > { %v4372_v38 = vadd.f32 %v10047_v46, %v4371_v13  ;;  %v4349_v13 = vand.u32 2147483648, %v10006_v19  ;;  %v4380_v22 = vor.u32 1.1754944e-38, %v4379_v48  ;;  %v4346_v19 = vsel %vm10180_vm4, %v10051_v44, %v4342_v41  ;;  %v12417_v41 = vld [vmem:[#allocation38_spill] sm:$0xff] }
 0x5dc   : > { %v10096_v29 = vpop.f32.mrf.mxu1  ;;  %v4410_v32 = vor.u32 1.1754944e-38, %v4409_v2  ;;  %v4229_v2 = vand.u32 2147483648, %v9998_v50 }
 0x5dd   : > { %12404 = vst [vmem:[#allocation93_spill] sm:$0xff] %v10096_v29  ;;  %v4377_v29 = vand.u32 2147483647, %v10002_v40  ;;  %v4321_v40 = vsel %vm4318_vm10, %v4320_v7, %v4316_v5  ;;  %v4376_v8 = vsel %vm10166_vm14, %v10047_v46, %v4372_v38  ;;  %v4402_v7 = vadd.f32 %v10074_v55, %v4401_v15  ;;  %v10192_v5 = vpop.permute.xlu2 %3166  ;;  %v12415_v46 = vld [vmem:[#allocation92_spill] sm:$0xff]  ;;  %vm10215_vm10 = vmor %vm4283_vm2, %vm4284_vm11 }
 0x5de   : > { %v10197_v38 = vadd.f32 %v9758_v63, %v12415_v46  ;;  %v4350_v48 = vor.u32 1.1754944e-38, %v4349_v13  ;;  %v4289_v15 = vand.u32 2147483648, %v10018_v12  ;;  %v10209_v11 = vmul.f32 %v4321_v40, %v12417_v41  ;;  %vm10222_vm14 = vmor %vm4403_vm8, %vm4404_vm5  ;;  %v12426_v41 = vld [vmem:[#allocation95_spill] sm:$0xff] }
 0x5df   : > { %vm10170_vm15 = vcmp.eq.f32.partialorder %v4377_v29, 8.507059e+37  ;;  %v4282_v29 = vadd.f32 %v10061_v27, %v4281_v25  ;;  %v10201_v25 = vadd.f32 %v10080_v18, %v10185_v6  ;;  %vm4224_vm2 = vweird.f32 %v10042_v10  ;;  %6916 = vmatmul.msk.bf16.gmra.mxu2 %vm1069_vm3, %v7269_v3  ;;  %6925 = vmatmul.msk.bf16.gmra.mxu3 %vm1069_vm3, %v7269_v3 }
 0x5e0   : > { %12416 = vst [vmem:[#allocation20_spill] sm:$0xff] %v10197_v38  ;;  %v4381_v44 = vsel %vm10170_vm15, %v4380_v22, %v4376_v8  ;;  %vm10226_vm15 = vcmp.eq.f32.partialorder %v4407_v30, 8.507059e+37  ;;  %v4351_v13 = vsel %vm4348_vm9, %v4350_v48, %v4346_v19  ;;  %v4406_v8 = vsel %vm10222_vm14, %v10074_v55, %v4402_v7  ;;  %v12425_v19 = vld [vmem:[#allocation70_spill] sm:$0xff]  ;;  %vm10270_vm4 = vmor %vm4223_vm13, %vm4224_vm2 }
 0x5e1   : > { %v4286_v21 = vsel %vm10215_vm10, %v10061_v27, %v4282_v29  ;;  %v4222_v30 = vadd.f32 %v10042_v10, %v10121_v43  ;;  %7393 = vrcp.f32 %v10201_v25  ;;  %v3204_v27 = vpop.f32.mrf.mxu0  ;;  %v10247_v29 = vmul.f32 %v4381_v44, %v12424_v49 }
 0x5e2   : > { %v10250_v46 = vmul.f32 %v4261_v62, %v12425_v19  ;;  %v4290_v48 = vor.u32 1.1754944e-38, %v4289_v15  ;;  %v10254_v55 = vadd.f32 %v9819_v20, %v12426_v41  ;;  %v10258_v43 = vmul.f32 %v4351_v13, %v10084_v36 }
 0x5e3   : > { %v12428_v7 = vand.u32 2147483647, %v10018_v12  ;;  %v4227_v18 = vand.u32 2147483647, %v9998_v50  ;;  %v4411_v62 = vsel %vm10226_vm15, %v4410_v32, %v4406_v8  ;;  %v4162_v12 = vadd.f32 %v10040_v53, %v10114_v59 }
 0x5e4   : > { %v10155_v37 = vpop.f32.mrf.mxu1  ;;  %12427 = vst [vmem:[#allocation53_spill] sm:$0xff] %v10254_v55  ;;  %vm4164_vm5 = vweird.f32 %v10040_v53  ;;  %vm3983_vm8 = vweird.f32 %v9972_v54  ;;  %v4226_v36 = vsel %vm10270_vm4, %v10042_v10, %v4222_v30  ;;  %v4230_v44 = vor.u32 1.1754944e-38, %v4229_v2  ;;  %v12453_v30 = vld [vmem:[#allocation68_spill] sm:$0xff]  ;;  %v12454_v2 = vld [vmem:[#allocation69_spill] sm:$0xff] }
 0x5e5   : > { %vm4288_vm11 = vcmp.eq.f32.partialorder %v12428_v7, 8.507059e+37  ;;  %v4167_v63 = vand.u32 2147483647, %v9994_v45  ;;  %vm4104_vm9 = vweird.f32 %v10037_v0  ;;  %v3012_v50 = vadd.f32 %v9947_v4, %v9777_v57  ;;  %vm10298_vm14 = vmor %vm4163_vm6, %vm4164_vm5 }
 0x5e6   : > { %v4291_v15 = vsel %vm4288_vm11, %v4290_v48, %v4286_v21  ;;  %v4102_v32 = vadd.f32 %v10037_v0, %v10110_v56  ;;  %v4042_v59 = vadd.f32 %v10025_v24, %v10107_v33  ;;  %vm4044_vm13 = vweird.f32 %v10025_v24  ;;  %v10305_v33 = vpop.permute.xlu2 %3161  ;;  %vm10312_vm15 = vmor %vm4103_vm7, %vm4104_vm9 }
 0x5e7   : > { %v10291_v22 = vmul.f32 %v4411_v62, %v10088_v9  ;;  %v10294_v10 = vmul.f32 %v4291_v15, %v10078_v39  ;;  %vm4228_vm10 = vcmp.eq.f32.partialorder %v4227_v18, 8.507059e+37  ;;  %v4169_v57 = vand.u32 2147483648, %v9994_v45  ;;  %v10303_v4 = vpop.eup %7393  ;;  %vm10331_vm7 = vmor %vm4043_vm12, %vm4044_vm13 }
 0x5e8   : > { %v4231_v56 = vsel %vm4228_vm10, %v4230_v44, %v4226_v36  ;;  %v4166_v9 = vsel %vm10298_vm14, %v10040_v53, %v4162_v12  ;;  %v4109_v21 = vand.u32 2147483648, %v9987_v28  ;;  %v4049_v3 = vand.u32 2147483648, %v9979_v26  ;;  %v12466_v12 = vld [vmem:[#allocation84_spill] sm:$0xff] }
 0x5e9   : > { %v10320_v45 = vadd.f32 %v10148_v16, %v10305_v33  ;;  %vm10322_vm6 = vcmp.eq.f32.partialorder %v4167_v63, 8.507059e+37  ;;  %v4107_v53 = vand.u32 2147483647, %v9987_v28  ;;  %v4047_v49 = vand.u32 2147483647, %v9979_v26 }
 0x5ea   : > { %v10337_v16 = vadd.f32 %v9786_v31, %v3012_v50  ;;  %v4106_v28 = vsel %vm10312_vm15, %v10037_v0, %v4102_v32  ;;  %v4046_v48 = vsel %vm10331_vm7, %v10025_v24, %v4042_v59  ;;  %v10349_v41 = vadd.f32 %v3204_v27, %v10192_v5  ;;  %v10359_v27 = vpop.permute.xlu0 %3171 }
 0x5eb   : > { %v4445_v26 = vmul.f32 %v10303_v4, %v10201_v25  ;;  %v3982_v31 = vadd.f32 %v10020_v1, %v10104_v61  ;;  %vm3984_vm12 = vweird.f32 %v10020_v1  ;;  %v4170_v7 = vor.u32 1.1754944e-38, %v4169_v57  ;;  %v10392_v57 = vpop.f32.mrf.mxu2 }
 0x5ec   : > { %v10233_v40 = vpop.f32.mrf.mxu1  ;;  %12439 = vst [vmem:[#allocation89_spill] sm:$0xff] %v10337_v16  ;;  %v4110_v18 = vor.u32 1.1754944e-38, %v4109_v21  ;;  %v4050_v62 = vor.u32 1.1754944e-38, %v4049_v3  ;;  %v3989_v0 = vand.u32 2147483648, %v9972_v54  ;;  %7395 = vrcp.f32 %v10320_v45  ;;  %vm10368_vm4 = vmor %vm3983_vm8, %vm3984_vm12 }
 0x5ed   : > { %vm4108_vm2 = vcmp.eq.f32.partialorder %v4107_v53, 8.507059e+37  ;;  %vm4048_vm11 = vcmp.eq.f32.partialorder %v4047_v49, 8.507059e+37  ;;  %v3987_v24 = vand.u32 2147483647, %v9972_v54  ;;  %7397 = vrcp.f32 %v10337_v16  ;;  %v12455_v49 = vld [vmem:[#allocation52_spill] sm:$0xff] }
 0x5ee   : > { %v4171_v61 = vsel %vm10322_vm6, %v4170_v7, %v4166_v9  ;;  %v4111_v15 = vsel %vm4108_vm2, %v4110_v18, %v4106_v28  ;;  %v4051_v20 = vsel %vm4048_vm11, %v4050_v62, %v4046_v48  ;;  %7399 = vrcp.f32 %v10349_v41  ;;  %v12458_v48 = vld [vmem:[#allocation44_spill] sm:$0xff]  ;;  %v12462_v62 = vld [vmem:[#allocation31_spill] sm:$0xff] }
 0x5ef   : > { %v4446_v36 = vsub.f32 1.0, %v4445_v26  ;;  %v3986_v63 = vsel %vm10368_vm4, %v10020_v1, %v3982_v31  ;;  %v10381_v50 = vadd.f32 %v9843_v35, %v9506_v14  ;;  %v3014_v54 = vadd.f32 %v9953_v17, %v9812_v52  ;;  %v7270_v14 = vld [vmem:[%s11948_s8 + $0x28] sm:$0xff]  ;;  %v12444_v35 = vld [vmem:[#allocation67_spill] sm:$0xff]  ;;  %v12445_v52 = vld [vmem:[#allocation49_spill] sm:$0xff] }
 0x5f0   : > { %v10386_v32 = vmul.f32 %v4231_v56, %v10069_v58  ;;  %v3990_v59 = vor.u32 1.1754944e-38, %v3989_v0  ;;  %v10390_v13 = vadd.f32 %v9865_v23, %v9518_v60  ;;  %v10400_v1 = vmul.f32 %v4171_v61, %v12444_v35  ;;  %v12448_v60 = vld [vmem:[#allocation4_spill] sm:$0xff]  ;;  %v12449_v56 = vld [vmem:[#allocation57_spill] sm:$0xff]  ;;  %6917 = vmatmul.msk.bf16.gmra.mxu2 %vm1069_vm3, %v7270_v14  ;;  %6926 = vmatmul.msk.bf16.gmra.mxu3 %vm1069_vm3, %v7270_v14  ;;  %v12459_v31 = vld [vmem:[#allocation78_spill] sm:$0xff] }
 0x5f1   : > { %12442 = vst [vmem:[#allocation18_spill] sm:$0xff] %v10381_v50  ;;  %v10403_v17 = vmul.f32 %v4111_v15, %v12445_v52  ;;  %vm3988_vm5 = vcmp.eq.f32.partialorder %v3987_v24, 8.507059e+37  ;;  %v10407_v58 = vadd.f32 %v9888_v34, %v9535_v47  ;;  %v10411_v23 = vadd.f32 %v12448_v60, %v9556_v42  ;;  %v12457_v34 = vld [vmem:[#allocation77_spill] sm:$0xff]  ;;  %v12461_v18 = vld [vmem:[#allocation80_spill] sm:$0xff]  ;;  %v12463_v24 = vld [vmem:[#allocation7_spill] sm:$0xff] }
 0x5f2   : > { %12443 = vst [vmem:[#allocation12_spill] sm:$0xff] %v10390_v13  ;;  %v10414_v39 = vmul.f32 %v4051_v20, %v12449_v56  ;;  %v10416_v21 = vsel %vm3988_vm5, %v3990_v59, %v3986_v63  ;;  %v10418_v3 = vpop.eup %7395  ;;  %v3017_v28 = vadd.f32 %v12455_v49, %v12454_v2  ;;  %v4447_v47 = vmul.f32 %v10303_v4, %v4446_v36  ;;  %v12465_v20 = vld [vmem:[#allocation54_spill] sm:$0xff]  ;;  %v12467_v63 = vld [vmem:[#allocation51_spill] sm:$0xff]  ;;  %v12468_v59 = vld [vmem:[#allocation33_spill] sm:$0xff] }
 0x5f3   : > { %12446 = vst [vmem:[#allocation26_spill] sm:$0xff] %v10403_v17  ;;  %v10430_v42 = vpop.eup %7397  ;;  %v10434_v26 = vadd.f32 %v12458_v48, %v12457_v34  ;;  %v10442_v0 = vadd.f32 %v12462_v62, %v12461_v18  ;;  %v10445_v61 = vadd.f32 %v12463_v24, %v3014_v54  ;;  %v10451_v36 = vadd.f32 %v12466_v12, %v12465_v20  ;;  %v12469_v35 = vld [vmem:[#allocation25_spill] sm:$0xff]  ;;  %v12470_v52 = vld [vmem:[#allocation8_spill] sm:$0xff]  ;;  %v12473_v2 = vld [vmem:[#allocation66_spill] sm:$0xff]  ;;  %v10513_v55 = vpop.f32.mrf.mxu2 }
 0x5f4   : > { %v3031_v8 = vpop.f32.mrf.mxu1  ;;  %12447 = vst [vmem:[#allocation22_spill] sm:$0xff] %v10407_v58  ;;  %v10447_v15 = vpop.eup %7399  ;;  %v10455_v14 = vadd.f32 %v12468_v59, %v12467_v63  ;;  %v10459_v60 = vadd.f32 %v12470_v52, %v12469_v35  ;;  %v4453_v56 = vand.u32 2147483647, %v10201_v25  ;;  %v12474_v49 = vld [vmem:[#allocation88_spill] sm:$0xff]  ;;  %vm4450_vm8 = vweird.f32 %v10303_v4  ;;  %v12477_v24 = vld [vmem:[#allocation34_spill] sm:$0xff]  ;;  %v12478_v20 = vld [vmem:[#allocation41_spill] sm:$0xff] }
 0x5f5   : > { %v10340_v19 = vadd.f32 %v3031_v8, %v9920_v51  ;;  %v3206_v51 = vpop.f32.mrf.mxu0  ;;  %12450 = vst [vmem:[#allocation19_spill] sm:$0xff] %v10414_v39  ;;  %v12452_v8 = vld [vmem:[#allocation81_spill] sm:$0xff]  ;;  %v10468_v34 = vadd.f32 %v12474_v49, %v12473_v2  ;;  %v4475_v48 = vmul.f32 %v10418_v3, %v10320_v45  ;;  %v4448_v62 = vadd.f32 %v10303_v4, %v4447_v47  ;;  %v12490_v58 = vld [vmem:[#allocation6_spill] sm:$0xff] }
 0x5f6   : > { %v10374_v44 = vadd.f32 %v3206_v51, %v10359_v27  ;;  %12451 = vst [vmem:[#allocation60_spill] sm:$0xff] %v10416_v21  ;;  %v10422_v53 = vadd.f32 %v12453_v30, %v12452_v8  ;;  %v12460_v51 = vld [vmem:[#allocation46_spill] sm:$0xff]  ;;  %v12471_v8 = vld [vmem:[#allocation17_spill] sm:$0xff]  ;;  %v3019_v12 = vadd.f32 %v12478_v20, %v12477_v24  ;;  %vm4449_vm9 = vweird.f32 %v10201_v25  ;;  %v12485_v20 = vld [vmem:[#allocation16_spill] sm:$0xff] }
 0x5f7   : > { %12456 = vst [vmem:[#allocation13_spill] sm:$0xff] %v10430_v42  ;;  %v10438_v7 = vadd.f32 %v12460_v51, %v12459_v31  ;;  %v12472_v30 = vld [vmem:[#allocation5_spill] sm:$0xff]  ;;  %v3964_v31 = vmul.f32 %v10430_v42, %v10337_v16  ;;  %v12475_v51 = vld [vmem:[#allocation76_spill] sm:$0xff]  ;;  %v4455_v63 = vand.u32 2147483648, %v10201_v25  ;;  %v4505_v59 = vmul.f32 %v10447_v15, %v10349_v41  ;;  %vm10498_vm10 = vmor %vm4449_vm9, %vm4450_vm8 }
 0x5f8   : > { %7401 = vrcp.f32 %v10374_v44  ;;  %12464 = vst [vmem:[#allocation21_spill] sm:$0xff] %v10445_v61  ;;  %v10464_v54 = vadd.f32 %v12472_v30, %v12471_v8  ;;  %v10476_v18 = vadd.f32 %v12475_v51, %v3017_v28  ;;  %vm10489_vm13 = vcmp.eq.f32.partialorder %v4453_v56, 8.507059e+37  ;;  %v12481_v8 = vld [vmem:[#allocation48_spill] sm:$0xff]  ;;  %v12482_v30 = vld [vmem:[#allocation10_spill] sm:$0xff]  ;;  %v12486_v56 = vld [vmem:[#allocation93_spill] sm:$0xff] }
 0x5f9   : > { %7403 = vrcp.f32 %v10445_v61  ;;  %v4483_v47 = vand.u32 2147483647, %v10320_v45  ;;  %v3022_v2 = vadd.f32 %v12482_v30, %v12481_v8  ;;  %v4476_v51 = vsub.f32 1.0, %v4475_v48  ;;  %v12487_v21 = vld [vmem:[#allocation15_spill] sm:$0xff]  ;;  %v12488_v30 = vld [vmem:[#allocation2_spill] sm:$0xff]  ;;  %v12492_v25 = vld [vmem:[#allocation72_spill] sm:$0xff] }
 0x5fa   : > { %12476 = vst [vmem:[#allocation62_spill] sm:$0xff] %v10476_v18  ;;  %v4485_v24 = vand.u32 2147483648, %v10320_v45  ;;  %v3024_v52 = vadd.f32 %v12486_v56, %v12485_v20  ;;  %v3965_v39 = vsub.f32 1.0, %v3964_v31  ;;  %7405 = vrcp.f32 %v10476_v18  ;;  %v12495_v16 = vld [vmem:[#allocation74_spill] sm:$0xff] }
 0x5fb   : > { %v4452_v8 = vsel %vm10498_vm10, %v10303_v4, %v4448_v62  ;;  %v10511_v50 = vadd.f32 %v12488_v30, %v3019_v12  ;;  %v4506_v48 = vsub.f32 1.0, %v4505_v59  ;;  %v3027_v20 = vadd.f32 %v10155_v37, %v12490_v58  ;;  %v12493_v62 = vld [vmem:[#allocation39_spill] sm:$0xff]  ;;  %v12497_v58 = vld [vmem:[#allocation50_spill] sm:$0xff] }
 0x5fc   : > { %v10394_v9 = vpop.f32.mrf.mxu1  ;;  %vm4479_vm14 = vweird.f32 %v10320_v45  ;;  %v10524_v4 = vadd.f32 %v12492_v25, %v3022_v2  ;;  %v3029_v12 = vadd.f32 %v10233_v40, %v12493_v62  ;;  %v4477_v59 = vmul.f32 %v10418_v3, %v4476_v51  ;;  %v12500_v2 = vld [vmem:[#allocation75_spill] sm:$0xff] }
 0x5fd   : > { %12489 = vst [vmem:[#allocation58_spill] sm:$0xff] %v10511_v50  ;;  %v4486_v30 = vor.u32 1.1754944e-38, %v4485_v24  ;;  %v10532_v13 = vadd.f32 %v12495_v16, %v3024_v52  ;;  %v10536_v37 = vmul.f32 %v10430_v42, %v3965_v39  ;;  %vm4480_vm15 = vweird.f32 %v10418_v3  ;;  %v12510_v45 = vld [vmem:[#allocation59_spill] sm:$0xff] }
 0x5fe   : > { %v10486_v35 = vpop.eup %7401  ;;  %v3034_v40 = vadd.f32 %v10394_v9, %v12497_v58  ;;  %vm10544_vm6 = vcmp.eq.f32.partialorder %v4483_v47, 8.507059e+37  ;;  %v4507_v16 = vmul.f32 %v10447_v15, %v4506_v48  ;;  %v10550_v39 = vadd.f32 %v12500_v2, %v3027_v20  ;;  %v12502_v9 = vld [vmem:[#allocation71_spill] sm:$0xff]  ;;  %v12503_v48 = vld [vmem:[#allocation65_spill] sm:$0xff]  ;;  %vm10594_vm2 = vmor %vm4479_vm14, %vm4480_vm15 }
 0x5ff   : > { %v4535_v17 = vmul.f32 %v10486_v35, %v10374_v44  ;;  %v10528_v56 = vpop.eup %7403  ;;  %12496 = vst [vmem:[#allocation37_spill] sm:$0xff] %v10536_v37  ;;  %vm4509_vm7 = vweird.f32 %v10349_v41  ;;  %v10559_v47 = vadd.f32 %v12502_v9, %v3029_v12  ;;  %v10568_v20 = vadd.f32 %v12503_v48, %v10340_v19  ;;  %v12506_v58 = vld [vmem:[#allocation73_spill] sm:$0xff] }
 0x600   : > { %12494 = vst [vmem:[#allocation32_spill] sm:$0xff] %v10528_v56  ;;  %v10552_v51 = vpop.eup %7405  ;;  %v3994_v28 = vmul.f32 %v10528_v56, %v10445_v61  ;;  %v4513_v62 = vand.u32 2147483647, %v10349_v41  ;;  %v4515_v12 = vand.u32 2147483648, %v10349_v41  ;;  %v10577_v2 = vadd.f32 %v12506_v58, %v3034_v40 }
 0x601   : > { %v4536_v52 = vsub.f32 1.0, %v4535_v17  ;;  %12501 = vst [vmem:[#allocation86_spill] sm:$0xff] %v10552_v51  ;;  %v7271_v17 = vld [vmem:[%s11948_s8 + $0x30] sm:$0xff]  ;;  %v4508_v19 = vadd.f32 %v10447_v15, %v4507_v16  ;;  %vm4510_vm12 = vweird.f32 %v10447_v15  ;;  %v3126_v16 = vpop.f32.mrf.mxu2  ;;  %vm4540_vm5 = vweird.f32 %v10486_v35 }
 0x602   : > { %6918 = vmatmul.msk.bf16.gmra.mxu2 %vm1069_vm3, %v7271_v17  ;;  %6927 = vmatmul.msk.bf16.gmra.mxu3 %vm1069_vm3, %v7271_v17  ;;  %v3995_v17 = vsub.f32 1.0, %v3994_v28  ;;  %vm10616_vm11 = vmor %vm4509_vm7, %vm4510_vm12  ;;  %vm10620_vm4 = vcmp.eq.f32.partialorder %v4513_v62, 8.507059e+37  ;;  %vm4539_vm8 = vweird.f32 %v10374_v44  ;;  %v12521_v28 = vld [vmem:[#allocation64_spill] sm:$0xff]  ;;  %vm4208_vm7 = vweird.f32 %v10568_v20 }
 0x603   : > { %v4512_v9 = vsel %vm10616_vm11, %v10447_v15, %v4508_v19  ;;  %v12516_v19 = vld [vmem:[#allocation9_spill] sm:$0xff]  ;;  %vm10656_vm9 = vmor %vm4539_vm8, %vm4540_vm5 }
 0x604   : > { %v3036_v49 = vpop.f32.mrf.mxu1  ;;  %v10648_v40 = vmul.f32 %v10528_v56, %v3995_v17 }
 0x605   : > { %v3037_v38 = vadd.f32 %v3036_v49, %v12487_v21  ;;  %v12491_v21 = vld [vmem:[#allocation55_spill] sm:$0xff]  ;;  %v4456_v49 = vor.u32 1.1754944e-38, %v4455_v63 }
 0x606   : > { %12517 = vst [vmem:[#allocation24_spill] sm:$0xff] %v10648_v40 }
 0x607   : > { %v10520_v31 = vadd.f32 %v12491_v21, %v3037_v38  ;;  %v4457_v38 = vsel %vm10489_vm13, %v4456_v49, %v4452_v8  ;;  %v4478_v8 = vadd.f32 %v10418_v3, %v4477_v59  ;;  %v12504_v21 = vld [vmem:[#allocation35_spill] sm:$0xff] }
 0x608   : > { %v10572_v25 = vmul.f32 %v4457_v38, %v10392_v57  ;;  %v4537_v57 = vmul.f32 %v10486_v35, %v4536_v52  ;;  %v4024_v38 = vmul.f32 %v10552_v51, %v10476_v18 }
 0x609   : > { %7407 = vrcp.f32 %v10520_v31  ;;  %v4482_v48 = vsel %vm10594_vm2, %v10418_v3, %v4478_v8  ;;  %v4516_v3 = vor.u32 1.1754944e-38, %v4515_v12  ;;  %vm4268_vm14 = vweird.f32 %v10520_v31 }
 0x60a   : > { %7409 = vrcp.f32 %v10511_v50  ;;  %12505 = vst [vmem:[#allocation91_spill] sm:$0xff] %v10572_v25  ;;  %v4538_v41 = vadd.f32 %v10486_v35, %v4537_v57  ;;  %v4025_v62 = vsub.f32 1.0, %v4024_v38  ;;  %v4487_v12 = vsel %vm10544_vm6, %v4486_v30, %v4482_v48 }
 0x60b   : > { %7411 = vrcp.f32 %v10524_v4  ;;  %v4517_v30 = vsel %vm10620_vm4, %v4516_v3, %v4512_v9 }
 0x60c   : > { %v3038_v24 = vpop.f32.mrf.mxu1  ;;  %7413 = vrcp.f32 %v10532_v13  ;;  %v4542_v17 = vsel %vm10656_vm9, %v10486_v35, %v4538_v41  ;;  %v10675_v56 = vmul.f32 %v10552_v51, %v4025_v62 }
 0x60d   : > { %v3039_v49 = vadd.f32 %v3038_v24, %v12504_v21  ;;  %7415 = vrcp.f32 %v10550_v39 }
 0x60e   : > { %7417 = vrcp.f32 %v10559_v47  ;;  %12522 = vst [vmem:[#allocation29_spill] sm:$0xff] %v10675_v56 }
 0x60f   : > { %v10581_v59 = vpop.eup %7407  ;;  %7419 = vrcp.f32 %v10568_v20  ;;  %v10608_v21 = vadd.f32 %v12510_v45, %v3039_v49  ;;  %v4543_v45 = vand.u32 2147483647, %v10374_v44 }
 0x610   : > { %v4264_v52 = vmul.f32 %v10581_v59, %v10520_v31  ;;  %v10601_v24 = vpop.eup %7409  ;;  %7421 = vrcp.f32 %v10577_v2  ;;  %vm4269_vm10 = vweird.f32 %v10581_v59 }
 0x611   : > { %12509 = vst [vmem:[#allocation79_spill] sm:$0xff] %v10601_v24  ;;  %v10610_v58 = vpop.eup %7411  ;;  %v4054_v42 = vmul.f32 %v10601_v24, %v10511_v50  ;;  %7423 = vrcp.f32 %v10608_v21  ;;  %vm4544_vm13 = vcmp.eq.f32.partialorder %v4543_v45, 8.507059e+37  ;;  %v3128_v45 = vpop.f32.mrf.mxu2  ;;  %vm10707_vm15 = vmor %vm4268_vm14, %vm4269_vm10  ;;  %vm4298_vm12 = vweird.f32 %v10608_v21 }
 0x612   : > { %v4265_v8 = vsub.f32 1.0, %v4264_v52  ;;  %v10625_v49 = vpop.eup %7413  ;;  %v4545_v52 = vand.u32 2147483648, %v10374_v44  ;;  %v4084_v15 = vmul.f32 %v10610_v58, %v10524_v4 }
 0x613   : > { %12515 = vst [vmem:[#allocation82_spill] sm:$0xff] %v10625_v49  ;;  %v10638_v61 = vpop.eup %7415  ;;  %v4114_v63 = vmul.f32 %v10625_v49, %v10532_v13  ;;  %v4055_v40 = vsub.f32 1.0, %v4054_v42 }
 0x614   : > { %v3041_v37 = vpop.f32.mrf.mxu1  ;;  %v10645_v38 = vpop.eup %7417  ;;  %v4266_v44 = vmul.f32 %v10581_v59, %v4265_v8  ;;  %v4546_v8 = vor.u32 1.1754944e-38, %v4545_v52  ;;  %v4144_v25 = vmul.f32 %v10638_v61, %v10550_v39 }
 0x615   : > { %v3042_v57 = vadd.f32 %v3041_v37, %v12516_v19  ;;  %v10661_v37 = vpop.eup %7419  ;;  %v10664_v19 = vmul.f32 %v4487_v12, %v10513_v55  ;;  %v4085_v55 = vsub.f32 1.0, %v4084_v15  ;;  %v10679_v12 = vmul.f32 %v4517_v30, %v3126_v16 }
 0x616   : > { %v10672_v9 = vpop.eup %7421  ;;  %v4174_v35 = vmul.f32 %v10645_v38, %v10559_v47  ;;  %v4115_v41 = vsub.f32 1.0, %v4114_v63  ;;  %v4267_v48 = vadd.f32 %v10581_v59, %v4266_v44  ;;  %v4204_v16 = vmul.f32 %v10661_v37, %v10568_v20 }
 0x617   : > { %12520 = vst [vmem:[#allocation27_spill] sm:$0xff] %v10664_v19  ;;  %v10670_v3 = vadd.f32 %v12521_v28, %v3042_v57  ;;  %v4547_v57 = vsel %vm4544_vm13, %v4546_v8, %v4542_v17  ;;  %v10686_v42 = vpop.eup %7423  ;;  %v4234_v52 = vmul.f32 %v10672_v9, %v10577_v2  ;;  %v4274_v15 = vand.u32 2147483648, %v10520_v31 }
 0x618   : > { %12523 = vst [vmem:[#allocation36_spill] sm:$0xff] %v10679_v12  ;;  %v10695_v30 = vmul.f32 %v10601_v24, %v4055_v40  ;;  %v4145_v63 = vsub.f32 1.0, %v4144_v25  ;;  %v4272_v17 = vand.u32 2147483647, %v10520_v31  ;;  %v10700_v28 = vmul.f32 %v10610_v58, %v4085_v55  ;;  %v12526_v12 = vld [vmem:[#allocation40_spill] sm:$0xff] }
 0x619   : > { %7425 = vrcp.f32 %v10670_v3  ;;  %v10702_v8 = vmul.f32 %v4547_v57, %v3128_v45  ;;  %v4175_v62 = vsub.f32 1.0, %v4174_v35  ;;  %v10712_v25 = vmul.f32 %v10625_v49, %v4115_v41  ;;  %v12529_v57 = vld [vmem:[#allocation47_spill] sm:$0xff] }
 0x61a   : > { %12524 = vst [vmem:[#allocation30_spill] sm:$0xff] %v10695_v30  ;;  %v4294_v31 = vmul.f32 %v10686_v42, %v10608_v21  ;;  %v4271_v55 = vsel %vm10707_vm15, %v10581_v59, %v4267_v48  ;;  %v4235_v45 = vsub.f32 1.0, %v4234_v52  ;;  %v10724_v24 = vmul.f32 %v10638_v61, %v4145_v63 }
 0x61b   : > { %12525 = vst [vmem:[#allocation83_spill] sm:$0xff] %v10702_v8  ;;  %v4275_v8 = vor.u32 1.1754944e-38, %v4274_v15  ;;  %v4214_v41 = vand.u32 2147483648, %v10568_v20  ;;  %vm4273_vm6 = vcmp.eq.f32.partialorder %v4272_v17, 8.507059e+37  ;;  %v10729_v30 = vmul.f32 %v10645_v38, %v4175_v62 }
 0x61c   : > { %v3043_v44 = vpop.f32.mrf.mxu1  ;;  %v4332_v51 = vand.u32 2147483647, %v10670_v3  ;;  %v4295_v48 = vsub.f32 1.0, %v4294_v31  ;;  %v4302_v52 = vand.u32 2147483647, %v10608_v21  ;;  %v10737_v63 = vmul.f32 %v10672_v9, %v4235_v45 }
 0x61d   : > { %v3044_v19 = vadd.f32 %v3043_v44, %v12526_v12  ;;  %v4205_v12 = vsub.f32 1.0, %v4204_v16  ;;  %v4276_v59 = vsel %vm4273_vm6, %v4275_v8, %v4271_v55  ;;  %v4334_v16 = vand.u32 2147483648, %v10670_v3  ;;  %v12530_v55 = vld [vmem:[#allocation11_spill] sm:$0xff] }
 0x61e   : > { %v4304_v17 = vand.u32 2147483648, %v10608_v21  ;;  %v4212_v62 = vand.u32 2147483647, %v10568_v20  ;;  %vm4328_vm11 = vweird.f32 %v10670_v3  ;;  %vm10746_vm4 = vcmp.eq.f32.partialorder %v4332_v51, 8.507059e+37  ;;  %v12540_v21 = vld [vmem:[#allocation85_spill] sm:$0xff] }
 0x61f   : > { %v7426_v35 = vpop.eup %7425  ;;  %v10721_v44 = vadd.f32 %v12529_v57, %v3044_v19  ;;  %v4206_v15 = vmul.f32 %v10661_v37, %v4205_v12  ;;  %v4296_v56 = vmul.f32 %v10686_v42, %v4295_v48  ;;  %v4335_v18 = vor.u32 1.1754944e-38, %v4334_v16 }
 0x620   : > { %v4324_v40 = vmul.f32 %v7426_v35, %v10670_v3  ;;  %vm4329_vm2 = vweird.f32 %v7426_v35  ;;  %vm10752_vm5 = vcmp.eq.f32.partialorder %v4302_v52, 8.507059e+37  ;;  %v4305_v51 = vor.u32 1.1754944e-38, %v4304_v17 }
 0x621   : > { %7427 = vrcp.f32 %v10721_v44  ;;  %v4362_v57 = vand.u32 2147483647, %v10721_v44  ;;  %vm4330_vm8 = vmor %vm4328_vm11, %vm4329_vm2  ;;  %v4364_v3 = vand.u32 2147483648, %v10721_v44  ;;  %vm10760_vm9 = vcmp.eq.f32.partialorder %v4212_v62, 8.507059e+37 }
 0x622   : > { %v4325_v19 = vsub.f32 1.0, %v4324_v40  ;;  %v4277_v40 = vmul.f32 %v4276_v59, %v10442_v0  ;;  %v12535_v0 = vld [vmem:[#allocation42_spill] sm:$0xff]  ;;  %vm4299_vm13 = vweird.f32 %v10686_v42  ;;  %vm4358_vm10 = vweird.f32 %v10721_v44 }
 0x623   : > { %vm10769_vm14 = vcmp.eq.f32.partialorder %v4362_v57, 8.507059e+37  ;;  %v4215_v17 = vor.u32 1.1754944e-38, %v4214_v41  ;;  %vm4209_vm15 = vweird.f32 %v10661_v37  ;;  %vm4300_vm6 = vmor %vm4298_vm12, %vm4299_vm13  ;;  %v4207_v45 = vadd.f32 %v10661_v37, %v4206_v15 }
 0x624   : > { %v4326_v8 = vmul.f32 %v7426_v35, %v4325_v19  ;;  %v3046_v31 = vpop.f32.mrf.mxu1  ;;  %v4438_v16 = vpack.c.bf16 %v4277_v40, %v10250_v46  ;;  %v4365_v46 = vor.u32 1.1754944e-38, %v4364_v3  ;;  %v4152_v40 = vand.u32 2147483647, %v10550_v39  ;;  %vm10799_vm12 = vmor %vm4208_vm7, %vm4209_vm15 }
 0x625   : > { %v3047_v12 = vadd.f32 %v3046_v31, %v12530_v55  ;;  %vm4238_vm11 = vweird.f32 %v10577_v2  ;;  %v4244_v19 = vand.u32 2147483648, %v10577_v2 }
 0x626   : > { %v4327_v50 = vadd.f32 %v7426_v35, %v4326_v8 }
 0x627   : > { %v7428_v49 = vpop.eup %7427  ;;  %v10757_v59 = vadd.f32 %v12535_v0, %v3047_v12  ;;  %v4297_v12 = vadd.f32 %v10686_v42, %v4296_v56 }
 0x628   : > { %v4354_v48 = vmul.f32 %v7428_v49, %v10721_v44  ;;  %v4331_v8 = vsel %vm4330_vm8, %v7426_v35, %v4327_v50  ;;  %v4242_v35 = vand.u32 2147483647, %v10577_v2  ;;  %vm4359_vm2 = vweird.f32 %v7428_v49 }
 0x629   : > { %7429 = vrcp.f32 %v10757_v59  ;;  %v4336_v55 = vsel %vm10746_vm4, %v4335_v18, %v4331_v8  ;;  %v7272_v18 = vld [vmem:[%s11948_s8 + $0x38] sm:$0xff]  ;;  %v4301_v56 = vsel %vm4300_vm6, %v10686_v42, %v4297_v12  ;;  %vm4388_vm4 = vweird.f32 %v10757_v59  ;;  %vm4360_vm7 = vmor %vm4358_vm10, %vm4359_vm2 }
 0x62a   : > { %v4355_v62 = vsub.f32 1.0, %v4354_v48  ;;  %v4337_v50 = vmul.f32 %v4336_v55, %v10455_v14  ;;  %v4392_v14 = vand.u32 2147483647, %v10757_v59  ;;  %v4306_v48 = vsel %vm10752_vm5, %v4305_v51, %v4301_v56  ;;  %6919 = vmatmul.msk.bf16.gmra.mxu2 %vm1069_vm3, %v7272_v18  ;;  %6928 = vmatmul.msk.bf16.gmra.mxu3 %vm1069_vm3, %v7272_v18 }
 0x62b   : > { %v4307_v8 = vmul.f32 %v4306_v48, %v10451_v36  ;;  %v4394_v20 = vand.u32 2147483648, %v10757_v59  ;;  %v12544_v36 = vand.u32 2147483648, %v10550_v39  ;;  %v4684_v44 = vunpack.c.l.b16 %v4438_v16 }
 0x62c   : > { %v4356_v57 = vmul.f32 %v7428_v49, %v4355_v62  ;;  %v3048_v41 = vpop.f32.mrf.mxu1  ;;  %v10791_v3 = vpack.c.bf16 %v4337_v50, %v10209_v11  ;;  %v4211_v11 = vsel %vm10799_vm12, %v10661_v37, %v4207_v45  ;;  %v12543_v62 = vld [vmem:[#allocation56_spill] sm:$0xff]  ;;  %vm10826_vm5 = vcmp.eq.f32.partialorder %v4392_v14, 8.507059e+37 }
 0x62d   : > { %v3049_v0 = vadd.f32 %v3048_v41, %v12540_v21  ;;  %v10820_v12 = vor.u32 1.1754944e-38, %v12544_v36  ;;  %v4216_v41 = vsel %vm10760_vm9, %v4215_v17, %v4211_v11  ;;  %v4685_v56 = vunpack.c.h.b16 %v4438_v16 }
 0x62e   : > { %v4357_v15 = vadd.f32 %v7428_v49, %v4356_v57  ;;  %v4439_v57 = vpack.c.bf16 %v4307_v8, %v10294_v10  ;;  %vm4148_vm8 = vweird.f32 %v10550_v39  ;;  %v4395_v10 = vor.u32 1.1754944e-38, %v4394_v20  ;;  %v12547_v8 = vld [vmem:[#allocation14_spill] sm:$0xff] }
 0x62f   : > { %v7430_v51 = vpop.eup %7429  ;;  %v10813_v55 = vadd.f32 %v12543_v62, %v3049_v0  ;;  %v4217_v31 = vmul.f32 %v4216_v41, %v10434_v26  ;;  %vm4239_vm9 = vweird.f32 %v10672_v9  ;;  %v4237_v16 = vadd.f32 %v10672_v9, %v10737_v63 }
 0x630   : > { %v4384_v37 = vmul.f32 %v7430_v51, %v10757_v59  ;;  %v4361_v50 = vsel %vm4360_vm7, %v7428_v49, %v4357_v15  ;;  %v4686_v49 = vunpack.c.l.b16 %v4439_v57  ;;  %v4687_v0 = vunpack.c.h.b16 %v4439_v57 }
 0x631   : > { %7431 = vrcp.f32 %v10813_v55  ;;  %v4366_v21 = vsel %vm10769_vm14, %v4365_v46, %v4361_v50  ;;  %vm4389_vm13 = vweird.f32 %v7430_v51  ;;  %v4424_v52 = vand.u32 2147483648, %v10813_v55  ;;  %vm10857_vm14 = vmor %vm4238_vm11, %vm4239_vm9 }
 0x632   : > { %v4385_v45 = vsub.f32 1.0, %v4384_v37  ;;  %v10836_v48 = vpack.c.b16 %v4686_v49, %v4684_v44  ;;  %v10838_v42 = vpack.c.b16 %v4687_v0, %v4685_v56  ;;  %v4367_v15 = vmul.f32 %v4366_v21, %v10459_v60  ;;  %vm4390_vm6 = vmor %vm4388_vm4, %vm4389_vm13 }
 0x633   : > { %v10848_v26 = vpack.c.bf16 %v4217_v31, %v12547_v8  ;;  %vm10850_vm10 = vcmp.eq.f32.partialorder %v4152_v40, 8.507059e+37  ;;  %v4688_v62 = vunpack.c.l.b16 %v10791_v3  ;;  %vm10861_vm15 = vcmp.eq.f32.partialorder %v4242_v35, 8.507059e+37 }
 0x634   : > { %v4386_v17 = vmul.f32 %v7430_v51, %v4385_v45  ;;  %v3218_v14 = vpop.f32.mrf.mxu1  ;;  %v4245_v60 = vor.u32 1.1754944e-38, %v4244_v19  ;;  %v4422_v40 = vand.u32 2147483647, %v10813_v55  ;;  %v4689_v2 = vunpack.c.h.b16 %v10791_v3  ;;  %v12590_v3 = vld [vmem:[#allocation29_spill] sm:$0xff] }
 0x635   : > { %v10844_v46 = vadd.f32 %v3218_v14, %v10185_v6  ;;  %v4241_v37 = vsel %vm10857_vm14, %v10672_v9, %v4237_v16  ;;  %v4147_v19 = vadd.f32 %v10638_v61, %v10724_v24  ;;  %vm4149_vm2 = vweird.f32 %v10638_v61 }
 0x636   : > { %v4387_v20 = vadd.f32 %v7430_v51, %v4386_v17  ;;  %vm4418_vm11 = vweird.f32 %v10813_v55  ;;  %v4425_v59 = vor.u32 1.1754944e-38, %v4424_v52  ;;  %v10882_v41 = vpack.c.bf16 %v4367_v15, %v10258_v43  ;;  %vm10897_vm7 = vmor %vm4148_vm8, %vm4149_vm2 }
 0x637   : > { %v7432_v36 = vpop.eup %7431  ;;  %7433 = vrcp.f32 %v10844_v46  ;;  %v4470_v9 = vand.u32 2147483648, %v10844_v46  ;;  %vm4178_vm12 = vweird.f32 %v10559_v47  ;;  %v4468_v24 = vand.u32 2147483647, %v10844_v46 }
 0x638   : > { %v4414_v35 = vmul.f32 %v7432_v36, %v10813_v55  ;;  %v4391_v50 = vsel %vm4390_vm6, %v7430_v51, %v4387_v20  ;;  %v4246_v51 = vsel %vm10861_vm15, %v4245_v60, %v4241_v37  ;;  %vm10890_vm4 = vcmp.eq.f32.partialorder %v4422_v40, 8.507059e+37  ;;  %v3140_v60 = vpop.f32.mrf.mxu3 }
 0x639   : > { %v4396_v57 = vsel %vm10826_vm5, %v4395_v10, %v4391_v50  ;;  %v4247_v18 = vmul.f32 %v4246_v51, %v10438_v7  ;;  %vm4179_vm5 = vweird.f32 %v10645_v38  ;;  %vm4419_vm13 = vweird.f32 %v7432_v36 }
 0x63a   : > { %v4415_v44 = vsub.f32 1.0, %v4414_v35  ;;  %v4397_v56 = vmul.f32 %v4396_v57, %v10464_v54  ;;  %v4151_v0 = vsel %vm10897_vm7, %v10638_v61, %v4147_v19  ;;  %vm4464_vm8 = vweird.f32 %v10844_v46  ;;  %vm4420_vm9 = vmor %vm4418_vm11, %vm4419_vm13 }
 0x63b   : > { %v4690_v39 = vunpack.c.l.b16 %v10882_v41  ;;  %v4437_v31 = vpack.c.bf16 %v4247_v18, %v10386_v32  ;;  %v4471_v16 = vor.u32 1.1754944e-38, %v4470_v9  ;;  %vm10919_vm14 = vcmp.eq.f32.partialorder %v4468_v24, 8.507059e+37  ;;  %vm10945_vm6 = vmor %vm4178_vm12, %vm4179_vm5 }
 0x63c   : > { %v4416_v54 = vmul.f32 %v7432_v36, %v4415_v44  ;;  %v3220_v21 = vpop.f32.mrf.mxu1  ;;  %v4442_v49 = vpack.c.bf16 %v4397_v56, %v10247_v29  ;;  %v4156_v29 = vsel %vm10850_vm10, %v10820_v12, %v4151_v0  ;;  %v4691_v61 = vunpack.c.h.b16 %v10882_v41  ;;  %v12562_v41 = vld [vmem:[#allocation3_spill] sm:$0xff] }
 0x63d   : > { %v7434_v10 = vpop.eup %7433  ;;  %v10907_v7 = vadd.f32 %v3220_v21, %v10305_v33  ;;  %v4680_v32 = vunpack.c.l.b16 %v10848_v26  ;;  %v4681_v52 = vunpack.c.h.b16 %v10848_v26  ;;  %v4682_v20 = vunpack.c.l.b16 %v4437_v31 }
 0x63e   : > { %v4417_v17 = vadd.f32 %v7432_v36, %v4416_v54  ;;  %v4460_v14 = vmul.f32 %v7434_v10, %v10844_v46  ;;  %v4177_v12 = vadd.f32 %v10645_v38, %v10729_v30  ;;  %v4683_v11 = vunpack.c.h.b16 %v4437_v31 }
 0x63f   : > { %7435 = vrcp.f32 %v10907_v7  ;;  %v4157_v63 = vmul.f32 %v4156_v29, %v10411_v23  ;;  %v4182_v6 = vand.u32 2147483647, %v10559_v47  ;;  %vm4088_vm10 = vweird.f32 %v10524_v4  ;;  %v10995_v29 = vpop.f32.mrf.mxu2 }
 0x640   : > { %v4461_v15 = vsub.f32 1.0, %v4460_v14  ;;  %v4421_v8 = vsel %vm4420_vm9, %v7432_v36, %v4417_v17  ;;  %vm4465_vm15 = vweird.f32 %v7434_v10  ;;  %v10934_v36 = vpack.c.b16 %v4682_v20, %v4680_v32 }
 0x641   : > { %v4426_v55 = vsel %vm10890_vm4, %v4425_v59, %v4421_v8  ;;  %v4692_v37 = vunpack.c.l.b16 %v4442_v49  ;;  %v4693_v35 = vunpack.c.h.b16 %v4442_v49  ;;  %v10936_v30 = vpack.c.b16 %v4683_v11, %v4681_v52  ;;  %vm10960_vm2 = vmor %vm4464_vm8, %vm4465_vm15  ;;  %v3142_v52 = vpop.f32.mrf.mxu3  ;;  %v12595_v11 = vld [vmem:[#allocation79_spill] sm:$0xff] }
 0x642   : > { %v4462_v40 = vmul.f32 %v7434_v10, %v4461_v15  ;;  %v4427_v26 = vmul.f32 %v4426_v55, %v10468_v34  ;;  %v4184_v50 = vand.u32 2147483648, %v10559_v47  ;;  %v4498_v57 = vand.u32 2147483647, %v10907_v7  ;;  %v12600_v34 = vld [vmem:[#allocation37_spill] sm:$0xff] }
 0x643   : > { %v10950_v44 = vpack.c.bf16 %v4157_v63, %v12562_v41  ;;  %v4500_v47 = vand.u32 2147483648, %v10907_v7  ;;  %v4181_v51 = vsel %vm10945_vm6, %v10645_v38, %v4177_v12  ;;  %vm10968_vm11 = vcmp.eq.f32.partialorder %v4182_v6, 8.507059e+37  ;;  %v12574_v6 = vld [vmem:[#allocation82_spill] sm:$0xff] }
 0x644   : > { %v3223_v19 = vpop.f32.mrf.mxu1  ;;  %v4463_v59 = vadd.f32 %v7434_v10, %v4462_v40  ;;  %v4443_v23 = vpack.c.bf16 %v4427_v26, %v10291_v22  ;;  %v4185_v54 = vor.u32 1.1754944e-38, %v4184_v50  ;;  %v4087_v38 = vadd.f32 %v10610_v58, %v10700_v28  ;;  %v12575_v40 = vld [vmem:[#allocation62_spill] sm:$0xff] }
 0x645   : > { %v10952_v9 = vpop.eup %7435  ;;  %v10955_v56 = vadd.f32 %v3223_v19, %v10192_v5  ;;  %v7273_v5 = vld [vmem:[%s11948_s8 + $0x40] sm:$0xff]  ;;  %vm4089_vm12 = vweird.f32 %v10610_v58  ;;  %vm4118_vm4 = vweird.f32 %v10532_v13  ;;  %v4708_v31 = vpack.c.b16 %v4690_v39, %v4688_v62  ;;  %v12576_v19 = vld [vmem:[#allocation12_spill] sm:$0xff] }
 0x646   : > { %v4467_v46 = vsel %vm10960_vm2, %v7434_v10, %v4463_v59  ;;  %v4694_v45 = vunpack.c.l.b16 %v4443_v23  ;;  %v4695_v18 = vunpack.c.h.b16 %v4443_v23  ;;  %v4490_v43 = vmul.f32 %v10952_v9, %v10907_v7  ;;  %6920 = vmatmul.msk.bf16.gmra.mxu2 %vm1069_vm3, %v7273_v5  ;;  %6929 = vmatmul.msk.bf16.gmra.mxu3 %vm1069_vm3, %v7273_v5  ;;  %vm11010_vm13 = vmor %vm4088_vm10, %vm4089_vm12  ;;  %v12581_v5 = vld [vmem:[#allocation91_spill] sm:$0xff] }
 0x647   : > { %7437 = vrcp.f32 %v10955_v56  ;;  %v4472_v21 = vsel %vm10919_vm14, %v4471_v16, %v4467_v46  ;;  %v4709_v28 = vpack.c.b16 %v4691_v61, %v4689_v2  ;;  %v4186_v17 = vsel %vm10968_vm11, %v4185_v54, %v4181_v51  ;;  %v12580_v51 = vld [vmem:[#allocation63_spill] sm:$0xff]  ;;  %v12592_v61 = vld [vmem:[#allocation26_spill] sm:$0xff] }
 0x648   : > { %v4710_v49 = vpack.c.b16 %v4694_v45, %v4692_v37  ;;  %v4711_v0 = vpack.c.b16 %v4695_v18, %v4693_v35  ;;  %v4491_v10 = vsub.f32 1.0, %v4490_v43  ;;  %v4092_v14 = vand.u32 2147483647, %v10524_v4  ;;  %v11071_v18 = vpop.f32.mrf.mxu2 }
 0x649   : > { %vm4494_vm3 = vweird.f32 %v10907_v7  ;;  %vm4495_vm7 = vweird.f32 %v10952_v9  ;;  %v4187_v62 = vmul.f32 %v4186_v17, %v10422_v53  ;;  %v4473_v39 = vmul.f32 %v4472_v21, %v3140_v60 }
 0x64a   : > { %5199 = vmatpush.bf16.msrb.mxu1 %v4710_v49  ;;  %5361 = vmatpush.bf16.msra.mxu0 %v4711_v0  ;;  %v4492_v16 = vmul.f32 %v10952_v9, %v4491_v10  ;;  %vm11001_vm5 = vcmp.eq.f32.partialorder %v4498_v57, 8.507059e+37  ;;  %v4501_v2 = vor.u32 1.1754944e-38, %v4500_v47  ;;  %v4528_v33 = vand.u32 2147483647, %v10955_v56  ;;  %vm11028_vm9 = vmor %vm4494_vm3, %vm4495_vm7 }
 0x64b   : > { %vm4524_vm8 = vweird.f32 %v10955_v56  ;;  %v4435_v15 = vpack.c.bf16 %v4187_v62, %v10400_v1  ;;  %v4676_v8 = vunpack.c.l.b16 %v10950_v44  ;;  %v4091_v20 = vsel %vm11010_vm13, %v10610_v58, %v4087_v38 }
 0x64c   : > { %v3225_v32 = vpop.f32.mrf.mxu1  ;;  %v4493_v53 = vadd.f32 %v10952_v9, %v4492_v16  ;;  %vm4093_vm14 = vcmp.eq.f32.partialorder %v4092_v14, 8.507059e+37  ;;  %v12573_v1 = vand.u32 2147483648, %v10524_v4  ;;  %v4117_v60 = vadd.f32 %v12574_v6, %v10712_v25  ;;  %v12587_v14 = vld [vmem:[#allocation22_spill] sm:$0xff] }
 0x64d   : > { %v7438_v12 = vpop.eup %7437  ;;  %v11022_v55 = vadd.f32 %v3225_v32, %v10359_v27  ;;  %v4678_v7 = vunpack.c.l.b16 %v4435_v15  ;;  %vm4119_vm10 = vweird.f32 %v12574_v6  ;;  %vm4028_vm15 = vweird.f32 %v12575_v40 }
 0x64e   : > { %v4095_v63 = vor.u32 1.1754944e-38, %v12573_v1  ;;  %5200 = vmatpush.bf16.msrb.mxu1 %v4708_v31  ;;  %5362 = vmatpush.bf16.msra.mxu0 %v4709_v28  ;;  %v4497_v27 = vsel %vm11028_vm9, %v10952_v9, %v4493_v53  ;;  %v4520_v58 = vmul.f32 %v7438_v12, %v10955_v56  ;;  %v4677_v4 = vunpack.c.h.b16 %v10950_v44  ;;  %vm11050_vm6 = vmor %vm4118_vm4, %vm4119_vm10  ;;  %v12579_v9 = vld [vmem:[#allocation58_spill] sm:$0xff]  ;;  %v12586_v31 = vld [vmem:[#allocation89_spill] sm:$0xff]  ;;  %v3145_v28 = vpop.f32.mrf.mxu3 }
 0x64f   : > { %7439 = vrcp.f32 %v11022_v55  ;;  %v4679_v26 = vunpack.c.h.b16 %v4435_v15  ;;  %v4530_v35 = vand.u32 2147483648, %v10955_v56  ;;  %v4702_v50 = vpack.c.b16 %v4678_v7, %v4676_v8  ;;  %v12616_v7 = vld [vmem:[#allocation23_spill] sm:$0xff] }
 0x650   : > { %v4096_v37 = vsel %vm4093_vm14, %v4095_v63, %v4091_v20  ;;  %v4521_v25 = vsub.f32 1.0, %v4520_v58  ;;  %v4502_v23 = vsel %vm11001_vm5, %v4501_v2, %v4497_v27  ;;  %v4122_v41 = vand.u32 2147483647, %v10532_v13  ;;  %v12591_v2 = vld [vmem:[#allocation86_spill] sm:$0xff]  ;;  %v12596_v63 = vld [vmem:[#allocation21_spill] sm:$0xff] }
 0x651   : > { %v4097_v59 = vmul.f32 %v4096_v37, %v12576_v19  ;;  %v4703_v57 = vpack.c.b16 %v4679_v26, %v4677_v4  ;;  %v4124_v44 = vand.u32 2147483648, %v10532_v13  ;;  %vm4058_vm2 = vweird.f32 %v12579_v9  ;;  %v11123_v26 = vpop.f32.mrf.mxu2 }
 0x652   : > { %5201 = vmatpush.bf16.msrb.mxu1 %v10836_v48  ;;  %5363 = vmatpush.bf16.msra.mxu0 %v10838_v42  ;;  %v4522_v22 = vmul.f32 %v7438_v12, %v4521_v25  ;;  %vm4525_vm11 = vweird.f32 %v7438_v12  ;;  %v4121_v47 = vsel %vm11050_vm6, %v12574_v6, %v4117_v60  ;;  %v11064_v46 = vpack.c.bf16 %v4473_v39, %v12581_v5  ;;  %v12603_v5 = vld [vmem:[#allocation43_spill] sm:$0xff] }
 0x653   : > { %v4432_v24 = vpack.c.bf16 %v4097_v59, %v12580_v51  ;;  %vm11066_vm12 = vcmp.eq.f32.partialorder %v4528_v33, 8.507059e+37  ;;  %v4125_v13 = vor.u32 1.1754944e-38, %v4124_v44  ;;  %v4558_v48 = vand.u32 2147483647, %v11022_v55  ;;  %vm11080_vm3 = vmor %vm4524_vm8, %vm4525_vm11  ;;  %v12599_v59 = vld [vmem:[#allocation53_spill] sm:$0xff] }
 0x654   : > { %v4523_v42 = vadd.f32 %v7438_v12, %v4522_v22  ;;  %v4531_v43 = vor.u32 1.1754944e-38, %v4530_v35  ;;  %vm4123_vm4 = vcmp.eq.f32.partialorder %v4122_v41, 8.507059e+37  ;;  %v4560_v54 = vand.u32 2147483648, %v11022_v55  ;;  %v12601_v41 = vld [vmem:[#allocation13_spill] sm:$0xff] }
 0x655   : > { %v11074_v38 = vpop.eup %7439  ;;  %v11076_v21 = vmul.f32 %v4502_v23, %v3142_v52  ;;  %v4126_v0 = vsel %vm4123_vm4, %v4125_v13, %v4121_v47  ;;  %v4672_v10 = vunpack.c.l.b16 %v4432_v24  ;;  %vm4554_vm7 = vweird.f32 %v11022_v55  ;;  %v12605_v13 = vld [vmem:[#allocation32_spill] sm:$0xff] }
 0x656   : > { %vm3968_vm5 = vweird.f32 %v12586_v31  ;;  %5202 = vmatpush.bf16.msrb.mxu1 %v10934_v36  ;;  %5364 = vmatpush.bf16.msra.mxu0 %v10936_v30  ;;  %v4527_v17 = vsel %vm11080_vm3, %v7438_v12, %v4523_v42  ;;  %v4127_v56 = vmul.f32 %v4126_v0, %v12587_v14  ;;  %v4673_v16 = vunpack.c.h.b16 %v4432_v24  ;;  %v12594_v12 = vld [vmem:[#allocation30_spill] sm:$0xff]  ;;  %v3147_v42 = vpop.f32.mrf.mxu3 }
 0x657   : > { %v4550_v62 = vmul.f32 %v11074_v38, %v11022_v55  ;;  %vm11093_vm13 = vcmp.eq.f32.partialorder %v4558_v48, 8.507059e+37  ;;  %v4027_v33 = vadd.f32 %v12591_v2, %v12590_v3  ;;  %vm4029_vm8 = vweird.f32 %v12591_v2  ;;  %v12604_v55 = vld [vmem:[#allocation24_spill] sm:$0xff] }
 0x658   : > { %v4032_v36 = vand.u32 2147483647, %v12575_v40  ;;  %v4532_v30 = vsel %vm11066_vm12, %v4531_v43, %v4527_v17  ;;  %v4433_v32 = vpack.c.bf16 %v4127_v56, %v12592_v61  ;;  %v4561_v53 = vor.u32 1.1754944e-38, %v4560_v54  ;;  %vm4030_vm9 = vmor %vm4028_vm15, %vm4029_vm8  ;;  %v12606_v54 = vld [vmem:[#allocation18_spill] sm:$0xff]  ;;  %v12608_v17 = vld [vmem:[#allocation36_spill] sm:$0xff] }
 0x659   : > { %v4551_v52 = vsub.f32 1.0, %v4550_v62  ;;  %v4031_v15 = vsel %vm4030_vm9, %v12591_v2, %v4027_v33  ;;  %v12593_v8 = vand.u32 2147483648, %v12575_v40  ;;  %v4057_v1 = vadd.f32 %v12595_v11, %v12594_v12  ;;  %v12609_v62 = vld [vmem:[#allocation19_spill] sm:$0xff]  ;;  %v12610_v3 = vld [vmem:[#allocation20_spill] sm:$0xff] }
 0x65a   : > { %vm4059_vm14 = vweird.f32 %v12595_v11  ;;  %vm3998_vm10 = vweird.f32 %v12596_v63  ;;  %5203 = vmatpush.bf16.msrb.mxu1 %v4702_v50  ;;  %5365 = vmatpush.bf16.msra.mxu0 %v4703_v57  ;;  %v4674_v6 = vunpack.c.l.b16 %v4433_v32  ;;  %v4675_v60 = vunpack.c.h.b16 %v4433_v32 }
 0x65b   : > { %v4035_v20 = vor.u32 1.1754944e-38, %v12593_v8  ;;  %v4552_v27 = vmul.f32 %v11074_v38, %v4551_v52  ;;  %vm4033_vm6 = vcmp.eq.f32.partialorder %v4032_v36, 8.507059e+37  ;;  %vm4555_vm15 = vweird.f32 %v11074_v38  ;;  %vm11117_vm11 = vmor %vm4058_vm2, %vm4059_vm14  ;;  %v12611_v36 = vld [vmem:[#allocation83_spill] sm:$0xff] }
 0x65c   : > { %v4062_v40 = vand.u32 2147483647, %v12579_v9  ;;  %v4064_v4 = vand.u32 2147483648, %v12579_v9  ;;  %v4533_v37 = vmul.f32 %v4532_v30, %v3145_v28  ;;  %v4700_v25 = vpack.c.b16 %v4674_v6, %v4672_v10  ;;  %vm4556_vm12 = vmor %vm4554_vm7, %vm4555_vm15  ;;  %v7239_v10 = vld [vmem:[%s11947_s7 + $0x8] sm:$0xf0] }
 0x65d   : > { %v4036_v58 = vsel %vm4033_vm6, %v4035_v20, %v4031_v15  ;;  %v4701_v35 = vpack.c.b16 %v4675_v60, %v4673_v16  ;;  %v4061_v50 = vsel %vm11117_vm11, %v12595_v11, %v4057_v1  ;;  %v4553_v19 = vadd.f32 %v11074_v38, %v4552_v27  ;;  %v12614_v60 = vld [vmem:[#allocation28_spill] sm:$0xff] }
 0x65e   : > { %v4037_v23 = vmul.f32 %v4036_v58, %v12599_v59  ;;  %vm4063_vm2 = vcmp.eq.f32.partialorder %v4062_v40, 8.507059e+37  ;;  %v4065_v57 = vor.u32 1.1754944e-38, %v4064_v4  ;;  %5204 = vmatpush.bf16.msrb.mxu1 %v4700_v25  ;;  %v3967_v44 = vadd.f32 %v12601_v41, %v12600_v34  ;;  %v12615_v58 = vld [vmem:[#allocation94_spill] sm:$0xff] }
 0x65f   : > { %5366 = vmatpush.bf16.msra.mxu0 %v4701_v35  ;;  %vm3969_vm4 = vweird.f32 %v12601_v41  ;;  %v3972_v9 = vand.u32 2147483647, %v12586_v31  ;;  %v12602_v22 = vand.u32 2147483648, %v12586_v31  ;;  %v4557_v51 = vsel %vm4556_vm12, %v11074_v38, %v4553_v19  ;;  %v6932_v38 = vld [vmem:[%s11947_s7] sm:$0xf]  ;;  %v12607_v31 = vld [vmem:[#allocation27_spill] sm:$0xff] }
 0x660   : > { %v4066_v24 = vsel %vm4063_vm2, %v4065_v57, %v4061_v50  ;;  %v4430_v45 = vpack.c.bf16 %v4037_v23, %v12603_v5  ;;  %vm3970_vm3 = vmor %vm3968_vm5, %vm3969_vm4  ;;  %v3997_v48 = vadd.f32 %v12605_v13, %v12604_v55  ;;  %v4562_v43 = vsel %vm11093_vm13, %v4561_v53, %v4557_v51  ;;  %v11173_v53 = vpop.f32.mrf.mxu2  ;;  %v12617_v50 = vld [vmem:[#allocation45_spill] sm:$0xff]  ;;  %v12618_v19 = vld [vmem:[#allocation60_spill] sm:$0xff] }
 0x661   : > { %v3975_v47 = vor.u32 1.1754944e-38, %v12602_v22  ;;  %v4067_v49 = vmul.f32 %v4066_v24, %v12606_v54  ;;  %v3971_v0 = vsel %vm3970_vm3, %v12601_v41, %v3967_v44  ;;  %vm3973_vm7 = vcmp.eq.f32.partialorder %v3972_v9, 8.507059e+37  ;;  %v6940_v44 = vld [vmem:[%s11947_s7 + $0x8] sm:$0xf]  ;;  %v7240_v9 = vld [vmem:[%s11947_s7 + $0x10] sm:$0xf0] }
 0x662   : > { %v11158_v28 = vpack.c.bf16 %v11076_v21, %v12607_v31  ;;  %v4566_v14 = vpack.c.bf16 %v4533_v37, %v12608_v17  ;;  %v4563_v56 = vmul.f32 %v4562_v43, %v3147_v42  ;;  %vm3999_vm5 = vweird.f32 %v12605_v13 }
 0x663   : > { %v3976_v16 = vsel %vm3973_vm7, %v3975_v47, %v3971_v0  ;;  %v4431_v39 = vpack.c.bf16 %v4067_v49, %v12609_v62  ;;  %v4002_v33 = vand.u32 2147483647, %v12596_v63  ;;  %v4668_v61 = vunpack.c.l.b16 %v4430_v45  ;;  %vm11168_vm13 = vmor %vm3998_vm10, %vm3999_vm5  ;;  %v6944_v0 = vld [vmem:[%s11947_s7 + $0x18] sm:$0xf]  ;;  %v7241_v62 = vld [vmem:[%s11947_s7 + $0x1c] sm:$0xf] }
 0x664   : > { %v3977_v2 = vmul.f32 %v3976_v16, %v12610_v3  ;;  %v4567_v30 = vpack.c.bf16 %v4563_v56, %v12611_v36  ;;  %v4004_v32 = vand.u32 2147483648, %v12596_v63  ;;  %v6933_v52 = vor.u32 %v7239_v10, %v6932_v38  ;;  %v7242_v38 = vld [vmem:[%s11947_s7 + $0x20] sm:$0xf0]  ;;  %v7245_v36 = vld [vmem:[%s11947_s7 + $0x38] sm:$0xf0] }
 0x665   : > { %v4670_v15 = vunpack.c.l.b16 %v4431_v39  ;;  %v4669_v8 = vunpack.c.h.b16 %v4430_v45  ;;  %v4671_v20 = vunpack.c.h.b16 %v4431_v39  ;;  %v4001_v12 = vsel %vm11168_vm13, %v12605_v13, %v3997_v48  ;;  %v7238_v13 = vld [vmem:[%s11947_s7 + $0x4] sm:$0xf]  ;;  %v6934_v48 = vld [vmem:[%s11947_s7 + $0xc] sm:$0xf0]  ;;  %v6946_v39 = vld [vmem:[%s11947_s7 + $0x24] sm:$0xf0] }
 0x666   : > { %v4736_v11 = vunpack.c.l.b16 %v4566_v14  ;;  %v4738_v1 = vunpack.c.l.b16 %v4567_v30  ;;  %v4005_v6 = vor.u32 1.1754944e-38, %v4004_v32  ;;  %v4428_v27 = vpack.c.bf16 %v3977_v2, %v12614_v60  ;;  %5153 = vmatmul.bf16.vlgmr.msrb.gmra.mxu0 %v6933_v52  ;;  %5315 = vmatmul.bf16.vlgmr.msra.gmra.mxu3 %v6933_v52  ;;  %v6964_v32 = vld [vmem:[%s11947_s7 + $0x38] sm:$0xf]  ;;  %v7246_v52 = vld [vmem:[%s11947_s7 + $0x40] sm:$0xf0] }
 0x667   : > { %v2974_v63 = vadd.f32 %v12616_v7, %v12615_v58  ;;  %v4698_v40 = vpack.c.b16 %v4670_v15, %v4668_v61  ;;  %v4699_v4 = vpack.c.b16 %v4671_v20, %v4669_v8  ;;  %vm4003_vm8 = vcmp.eq.f32.partialorder %v4002_v33, 8.507059e+37  ;;  %v6956_v33 = vld [vmem:[%s11947_s7 + $0x30] sm:$0xf]  ;;  %v7244_v15 = vld [vmem:[%s11947_s7 + $0x34] sm:$0xf] }
 0x668   : > { %v4734_v37 = vunpack.c.l.b16 %v11158_v28  ;;  %v4006_v25 = vsel %vm4003_vm8, %v4005_v6, %v4001_v12  ;;  %v4742_v35 = vpack.c.b16 %v4738_v1, %v4736_v11  ;;  %v3992_v59 = vmul.f32 %v12618_v19, %v12617_v50  ;;  %v11191_v51 = vpop.f32.mrf.mxu2  ;;  %v6958_v8 = vld [vmem:[%s11947_s7 + $0x3c] sm:$0xf0]  ;;  %v6968_v12 = vld [vmem:[%s11947_s7 + $0x48] sm:$0xf]  ;;  %v7248_v11 = vld [vmem:[%s11947_s7 + $0x50] sm:$0xf0] }
 0x669   : > { %5205 = vmatpush.bf16.msrb.mxu1 %v4698_v40  ;;  %5367 = vmatpush.bf16.msra.mxu0 %v4699_v4  ;;  %v4007_v23 = vmul.f32 %v4006_v25, %v2974_v63  ;;  %v4732_v57 = vunpack.c.l.b16 %v11064_v46  ;;  %v4739_v34 = vunpack.c.h.b16 %v4567_v30  ;;  %v4737_v22 = vunpack.c.h.b16 %v4566_v14  ;;  %v7249_v58 = vld [vmem:[%s11947_s7 + $0x58] sm:$0xf0]  ;;  %v7247_v63 = vld [vmem:[%s11947_s7 + $0x4c] sm:$0xf]  ;;  %v6970_v40 = vld [vmem:[%s11947_s7 + $0x54] sm:$0xf0] }
 0x66a   : > { %5259 = vmatpush.bf16.msra.mxu2 %v4742_v35  ;;  %v4664_v24 = vunpack.c.l.b16 %v4428_v27  ;;  %v4665_v45 = vunpack.c.h.b16 %v4428_v27  ;;  %v11199_v43 = vor.u32 %v7240_v9, %v6940_v44  ;;  %vm5117_vm9 = vcmask 261120   ;;  %v6976_v27 = vld [vmem:[%s11947_s7 + $0x50] sm:$0xf]  ;;  %v7251_v25 = vld [vmem:[%s11947_s7 + $0x68] sm:$0xf0] }
 0x66b   : > { %v4429_v41 = vpack.c.bf16 %v4007_v23, %v3992_v59  ;;  %v4740_v47 = vpack.c.b16 %v4734_v37, %v4732_v57  ;;  %v4743_v42 = vpack.c.b16 %v4739_v34, %v4737_v22  ;;  %v4735_v10 = vunpack.c.h.b16 %v11158_v28  ;;  %v6952_v28 = vld [vmem:[%s11947_s7 + $0x20] sm:$0xf]  ;;  %v6988_v59 = vld [vmem:[%s11947_s7 + $0x68] sm:$0xf]  ;;  %v7252_v23 = vld [vmem:[%s11947_s7 + $0x70] sm:$0xf0] }
 0x66c   : > { %v11208_v31 = vor.u32 %v7238_v13, %v6934_v48  ;;  %v4733_v17 = vunpack.c.h.b16 %v11064_v46  ;;  %v6945_v14 = vor.u32 %v7242_v38, %v6944_v0  ;;  %v7243_v46 = vld [vmem:[%s11947_s7 + $0x28] sm:$0xf0]  ;;  %v11238_v30 = vor.u32 %v7241_v62, %v6946_v39  ;;  %v6980_v37 = vld [vmem:[%s11947_s7 + $0x60] sm:$0xf]  ;;  %v7250_v57 = vld [vmem:[%s11947_s7 + $0x64] sm:$0xf] }
 0x66d   : > { %v4666_v5 = vunpack.c.l.b16 %v4429_v41  ;;  %v4667_v55 = vunpack.c.h.b16 %v4429_v41  ;;  %v11230_v2 = vor.u32 %v7243_v46, %v6952_v28  ;;  %v6957_v61 = vor.u32 %v7245_v36, %v6956_v33  ;;  %v6982_v34 = vld [vmem:[%s11947_s7 + $0x6c] sm:$0xf0]  ;;  %v6992_v44 = vld [vmem:[%s11947_s7 + $0x78] sm:$0xf]  ;;  %v7254_v9 = vld [vmem:[%s11947_s7 + $0x80] sm:$0xf0] }
 0x66e   : > { %5260 = vmatpush.bf16.msra.mxu2 %v4740_v47  ;;  %v4741_v56 = vpack.c.b16 %v4735_v10, %v4733_v17  ;;  %v11257_v20 = vor.u32 %v7246_v52, %v6964_v32  ;;  %v11265_v1 = vor.u32 %v7244_v15, %v6958_v8  ;;  %v6969_v60 = vor.u32 %v7248_v11, %v6968_v12  ;;  %v7253_v13 = vld [vmem:[%s11947_s7 + $0x7c] sm:$0xf]  ;;  %v6994_v48 = vld [vmem:[%s11947_s7 + $0x84] sm:$0xf0]  ;;  %v11363_v17 = vpop.f32.mrf.mxu3  ;;  %v7256_v28 = vld [vmem:[%s11947_s7 + $0x94] sm:$0xf] }
 0x66f   : > { %v4696_v54 = vpack.c.b16 %v4666_v5, %v4664_v24  ;;  %v4697_v49 = vpack.c.b16 %v4667_v55, %v4665_v45  ;;  %v11286_v4 = vor.u32 %v7249_v58, %v6976_v27  ;;  %v11294_v35 = vor.u32 %v7247_v63, %v6970_v40  ;;  %v7000_v45 = vld [vmem:[%s11947_s7 + $0x80] sm:$0xf]  ;;  %v7255_v55 = vld [vmem:[%s11947_s7 + $0x88] sm:$0xf0]  ;;  %v7016_v33 = vld [vmem:[%s11947_s7 + $0xa8] sm:$0xf] }
 0x670   : > { %v11214_v16 = vpop.f32.mrf.mxu2  ;;  %v6981_v50 = vor.u32 %v7251_v25, %v6980_v37  ;;  %v11313_v41 = vor.u32 %v7252_v23, %v6988_v59  ;;  %v11323_v47 = vor.u32 %v7250_v57, %v6982_v34  ;;  %v11327_v24 = vor.u32 %v7254_v9, %v6992_v44  ;;  %v7006_v46 = vld [vmem:[%s11947_s7 + $0x9c] sm:$0xf0]  ;;  %v7260_v36 = vld [vmem:[%s11947_s7 + $0xb0] sm:$0xf0]  ;;  %v7024_v8 = vld [vmem:[%s11947_s7 + $0xb0] sm:$0xf] }
 0x671   : > { %5206 = vmatpush.bf16.msrb.mxu1 %v4696_v54  ;;  %5368 = vmatpush.bf16.msra.mxu0 %v4697_v49  ;;  %v7004_v54 = vld [vmem:[%s11947_s7 + $0x90] sm:$0xf]  ;;  %v7257_v49 = vld [vmem:[%s11947_s7 + $0x98] sm:$0xf0]  ;;  %v11353_v0 = vor.u32 %v7253_v13, %v6994_v48  ;;  %v11391_v32 = vor.u32 %v7260_v36, %v7016_v33  ;;  %v7259_v27 = vld [vmem:[%s11947_s7 + $0xac] sm:$0xf] }
 0x672   : > { %7038 = vmatmul.msk.bf16.vlgmr.msra.gmra.mxu2 %vm5117_vm9, %v11199_v43  ;;  %v11357_v38 = vor.u32 %v7257_v49, %v7004_v54  ;;  %v7261_v12 = vld [vmem:[%s11947_s7 + $0xb8] sm:$0xf0]  ;;  %v7028_v63 = vld [vmem:[%s11947_s7 + $0xc0] sm:$0xf]  ;;  %v7263_v40 = vld [vmem:[%s11947_s7 + $0xc8] sm:$0xf0] }
 0x673   : > { %v11413_v58 = vor.u32 %v7261_v12, %v7024_v8  ;;  %v11427_v59 = vor.u32 %v7263_v40, %v7028_v63  ;;  %v7036_v9 = vld [vmem:[%s11947_s7 + $0xc8] sm:$0xf]  ;;  %v7262_v13 = vld [vmem:[%s11947_s7 + $0xc4] sm:$0xf]  ;;  %vm5745_vm14 = vcmask 130048   ;;  %vm5974_vm10 = vcmask 1043456  }
 0x674   : > { %5207 = vmatmul.bf16.vlgmr.msrb.gmra.mxu1 %v11208_v31  ;;  %vm5964_vm6 = vcmask 588800   ;;  %vm6060_vm15 = vcmask 293888   ;;  %vm6123_vm11 = vcmask 1040384  }
 0x675   : > { %5421 = vmatpush.bf16.msra.mxu1 %v4743_v42  ;;  %v11345_v42 = vor.u32 %v7255_v55, %v7000_v45  ;;  %v7264_v45 = vld [vmem:[%s11947_s7 + $0xd0] sm:$0xf0] }
 0x676   : > { %5158 = vmatmul.bf16.gmra.mxu0 %v6945_v14  ;;  %5320 = vmatmul.bf16.gmra.mxu3 %v6945_v14  ;;  %v7012_v14 = vld [vmem:[%s11947_s7 + $0x98] sm:$0xf]  ;;  %v11394_v52 = vpop.f32.mrf.mxu3  ;;  %v11449_v48 = vor.u32 %v7264_v45, %v7036_v9 }
 0x677   : > { %12619 = vst [vmem:[#allocation61_spill] sm:$0xff] %v11394_v52 }
 0x678   : > { %v11228_v3 = vpop.f32.mrf.mxu2  ;;  %12624 = vst [vmem:[#allocation70_spill] sm:$0xff] %v11449_v48 }
 0x679   : > { %5422 = vmatpush.bf16.msra.mxu1 %v4741_v56  ;;  %v7258_v56 = vld [vmem:[%s11947_s7 + $0xa0] sm:$0xf0] }
 0x67a   : > { %v11379_v39 = vor.u32 %v7258_v56, %v7012_v14 }
 0x67e   : > { %v11405_v11 = vpop.f32.mrf.mxu3 }
 0x67f   : > { %12620 = vst [vmem:[#allocation90_spill] sm:$0xff] %v11405_v11 }
 0x680   : > { %v11243_v21 = vpop.f32.mrf.mxu2 }
 0x682   : > { %7039 = vmatmul.msk.bf16.gmra.mxu2 %vm5117_vm9, %v11230_v2 }
 0x684   : > { %5212 = vmatmul.bf16.gmra.mxu1 %v11238_v30 }
 0x686   : > { %5163 = vmatmul.bf16.gmra.mxu0 %v6957_v61  ;;  %5325 = vmatmul.bf16.gmra.mxu3 %v6957_v61  ;;  %v11387_v61 = vor.u32 %v7256_v28, %v7006_v46  ;;  %v11430_v57 = vpop.f32.mrf.mxu3 }
 0x687   : > { %12621 = vst [vmem:[#allocation92_spill] sm:$0xff] %v11430_v57 }
 0x688   : > { %v11267_v6 = vpop.f32.mrf.mxu2 }
 0x68e   : > { %v11441_v55 = vpop.f32.mrf.mxu3 }
 0x68f   : > { %12623 = vst [vmem:[#allocation87_spill] sm:$0xff] %v11441_v55 }
 0x690   : > { %v11278_v7 = vpop.f32.mrf.mxu2 }
 0x692   : > { %7040 = vmatmul.msk.bf16.gmra.mxu2 %vm5117_vm9, %v11257_v20 }
 0x694   : > { %5217 = vmatmul.bf16.gmra.mxu1 %v11265_v1 }
 0x696   : > { %5168 = vmatmul.bf16.gmra.mxu0 %v6969_v60  ;;  %5330 = vmatmul.bf16.gmra.mxu3 %v6969_v60  ;;  %v7018_v60 = vld [vmem:[%s11947_s7 + $0xb4] sm:$0xf0]  ;;  %v11457_v46 = vpop.f32.mrf.mxu3 }
 0x697   : > { %v11421_v37 = vor.u32 %v7259_v27, %v7018_v60  ;;  %12625 = vst [vmem:[#allocation95_spill] sm:$0xff] %v11457_v46 }
 0x698   : > { %v11299_v19 = vpop.f32.mrf.mxu2 }
 0x69e   : > { %v11466_v60 = vpop.f32.mrf.mxu3 }
 0x69f   : > { %12626 = vst [vmem:[#allocation67_spill] sm:$0xff] %v11466_v60 }
 0x6a0   : > { %v11321_v22 = vpop.f32.mrf.mxu2 }
 0x6a2   : > { %7041 = vmatmul.msk.bf16.gmra.mxu2 %vm5117_vm9, %v11286_v4 }
 0x6a4   : > { %5222 = vmatmul.bf16.gmra.mxu1 %v11294_v35 }
 0x6a6   : > { %5173 = vmatmul.bf16.gmra.mxu0 %v6981_v50  ;;  %5335 = vmatmul.bf16.gmra.mxu3 %v6981_v50  ;;  %v7030_v50 = vld [vmem:[%s11947_s7 + $0xcc] sm:$0xf0]  ;;  %v11473_v45 = vpop.f32.mrf.mxu3 }
 0x6a7   : > { %v11452_v49 = vor.u32 %v7262_v13, %v7030_v50  ;;  %12627 = vst [vmem:[#allocation49_spill] sm:$0xff] %v11473_v45 }
 0x6a8   : > { %v11331_v5 = vpop.f32.mrf.mxu2 }
 0x6b0   : > { %v11359_v10 = vpop.f32.mrf.mxu2 }
 0x6b2   : > { %7042 = vmatmul.msk.bf16.gmra.mxu2 %vm5117_vm9, %v11313_v41 }
 0x6b4   : > { %5227 = vmatmul.bf16.gmra.mxu1 %v11323_v47 }
 0x6b6   : > { %5178 = vmatmul.bf16.gmra.mxu0 %v11327_v24  ;;  %5340 = vmatmul.bf16.gmra.mxu3 %v11327_v24 }
 0x6b8   : > { %v11377_v62 = vpop.f32.mrf.mxu2 }
 0x6c0   : > { %v11397_v15 = vpop.f32.mrf.mxu2 }
 0x6c2   : > { %7043 = vmatmul.msk.bf16.gmra.mxu2 %vm5117_vm9, %v11345_v42 }
 0x6c4   : > { %5232 = vmatmul.bf16.gmra.mxu1 %v11353_v0 }
 0x6c6   : > { %5183 = vmatmul.bf16.gmra.mxu0 %v11357_v38  ;;  %5345 = vmatmul.bf16.gmra.mxu3 %v11357_v38 }
 0x6c9   : > { %v11423_v25 = vpop.f32.mrf.mxu2 }
 0x6d1   : > { %v11433_v34 = vpop.f32.mrf.mxu2 }
 0x6d2   : > { %7044 = vmatmul.msk.bf16.gmra.mxu2 %vm5117_vm9, %v11379_v39  ;;  %12622 = vst [vmem:[#allocation38_spill] sm:$0xff] %v11433_v34 }
 0x6d4   : > { %5237 = vmatmul.bf16.gmra.mxu1 %v11387_v61 }
 0x6d6   : > { %5188 = vmatmul.bf16.gmra.mxu0 %v11391_v32 }
 0x6e2   : > { %7045 = vmatmul.msk.bf16.gmra.mxu2 %vm5117_vm9, %v11413_v58 }
 0x6e3   : > { %v5154_v23 = vpop.f32.mrf.mxu0 }
 0x6e4   : > { %5242 = vmatmul.bf16.gmra.mxu1 %v11421_v37  ;;  %v5155_v54 = vadd.f32 %v5154_v23, %v10995_v29 }
 0x6e6   : > { %5193 = vmatmul.bf16.gmra.mxu0 %v11427_v59 }
 0x6eb   : > { %v5156_v44 = vpop.f32.mrf.mxu0 }
 0x6ec   : > { %v5157_v29 = vadd.f32 %v5156_v44, %v11071_v18 }
 0x6f1   : > { %v5208_v14 = vpop.f32.mrf.mxu1 }
 0x6f2   : > { %v5209_v56 = vadd.f32 %v5208_v14, %v5155_v54  ;;  %7046 = vmatmul.msk.bf16.gmra.mxu2 %vm5117_vm9, %v11449_v48  ;;  %v11482_v54 = vpop.f32.mrf.mxu3 }
 0x6f3   : > { %v5159_v28 = vpop.f32.mrf.mxu0  ;;  %12628 = vst [vmem:[#allocation4_spill] sm:$0xff] %v11482_v54 }
 0x6f4   : > { %5247 = vmatmul.bf16.gmra.mxu1 %v11452_v49  ;;  %v5160_v40 = vadd.f32 %v5159_v28, %v11123_v26 }
 0x6f5   : > { %v5262_v33 = vpop.f32.mrf.mxu2 }
 0x6f6   : > { %v11460_v36 = vadd.f32 %v5262_v33, %v5209_v56  ;;  %5369 = vmatmul.bf16.vlgmr.msra.gmra.mxu0 %v11208_v31 }
 0x6f9   : > { %v5210_v8 = vpop.f32.mrf.mxu1 }
 0x6fa   : > { %v11464_v12 = vadd.f32 %v5210_v8, %v5157_v29  ;;  %v11489_v33 = vpop.f32.mrf.mxu3  ;;  %5350 = vmatmul.bf16.gmra.mxu3 %v11391_v32 }
 0x6fb   : > { %v5161_v27 = vpop.f32.mrf.mxu0  ;;  %12629 = vst [vmem:[#allocation57_spill] sm:$0xff] %v11489_v33 }
 0x6fc   : > { %v5162_v44 = vadd.f32 %v5161_v27, %v11173_v53 }
 0x6fd   : > { %v11468_v63 = vpop.f32.mrf.mxu2 }
 0x701   : > { %v5213_v23 = vpop.f32.mrf.mxu1 }
 0x702   : > { %v5214_v9 = vadd.f32 %v5213_v23, %v5160_v40  ;;  %v11498_v40 = vpop.f32.mrf.mxu3 }
 0x703   : > { %v5164_v24 = vpop.f32.mrf.mxu0  ;;  %12630 = vst [vmem:[#allocation81_spill] sm:$0xff] %v11498_v40 }
 0x704   : > { %7047 = vmatmul.msk.bf16.vlgmr.msra.gmra.mxu1 %vm5117_vm9, %v11199_v43  ;;  %v5165_v43 = vadd.f32 %v5164_v24, %v11191_v51 }
 0x705   : > { %v5267_v18 = vpop.f32.mrf.mxu2 }
 0x706   : > { %v11476_v31 = vadd.f32 %v5267_v18, %v5214_v9  ;;  %5374 = vmatmul.bf16.gmra.mxu0 %v11238_v30 }
 0x709   : > { %v5215_v13 = vpop.f32.mrf.mxu1 }
 0x70a   : > { %v11480_v50 = vadd.f32 %v5215_v13, %v5162_v44  ;;  %v11505_v18 = vpop.f32.mrf.mxu3  ;;  %5355 = vmatmul.bf16.gmra.mxu3 %v11427_v59 }
 0x70b   : > { %v5166_v26 = vpop.f32.mrf.mxu0  ;;  %12631 = vst [vmem:[#allocation68_spill] sm:$0xff] %v11505_v18 }
 0x70c   : > { %v5167_v29 = vadd.f32 %v5166_v26, %v11214_v16 }
 0x70d   : > { %v11484_v14 = vpop.f32.mrf.mxu2 }
 0x70e   : > { %v5270_v34 = vadd.f32 %v11484_v14, %v11480_v50 }
 0x711   : > { %v5218_v56 = vpop.f32.mrf.mxu1 }
 0x712   : > { %v5219_v28 = vadd.f32 %v5218_v56, %v5165_v43 }
 0x713   : > { %v5169_v38 = vpop.f32.mrf.mxu0 }
 0x714   : > { %7048 = vmatmul.msk.bf16.gmra.mxu1 %vm5117_vm9, %v11230_v2  ;;  %v5170_v2 = vadd.f32 %v5169_v38, %v11228_v3  ;;  %v11512_v3 = vpop.f32.mrf.mxu3 }
 0x715   : > { %v5272_v53 = vpop.f32.mrf.mxu2  ;;  %12632 = vst [vmem:[#allocation69_spill] sm:$0xff] %v11512_v3 }
 0x716   : > { %v11492_v30 = vadd.f32 %v5272_v53, %v5219_v28  ;;  %5379 = vmatmul.bf16.gmra.mxu0 %v11265_v1 }
 0x719   : > { %v5220_v8 = vpop.f32.mrf.mxu1 }
 0x71a   : > { %v11496_v27 = vadd.f32 %v5220_v8, %v5167_v29 }
 0x71b   : > { %v5171_v51 = vpop.f32.mrf.mxu0 }
 0x71c   : > { %v5172_v44 = vadd.f32 %v5171_v51, %v11243_v21  ;;  %v11519_v59 = vpop.f32.mrf.mxu3 }
 0x71d   : > { %v11500_v23 = vpop.f32.mrf.mxu2  ;;  %12633 = vst [vmem:[#allocation52_spill] sm:$0xff] %v11519_v59 }
 0x721   : > { %v5223_v9 = vpop.f32.mrf.mxu1 }
 0x722   : > { %v5224_v24 = vadd.f32 %v5223_v9, %v5170_v2  ;;  %v11532_v9 = vpop.permute.xlu0 %5541 }
 0x723   : > { %v5174_v32 = vpop.f32.mrf.mxu0 }
 0x724   : > { %7049 = vmatmul.msk.bf16.gmra.mxu1 %vm5117_vm9, %v11257_v20  ;;  %v5175_v28 = vadd.f32 %v5174_v32, %v11267_v6  ;;  %v11526_v51 = vpop.f32.mrf.mxu3 }
 0x725   : > { %v5277_v16 = vpop.f32.mrf.mxu2  ;;  %12634 = vst [vmem:[#allocation77_spill] sm:$0xff] %v11526_v51 }
 0x726   : > { %v5278_v1 = vadd.f32 %v5277_v16, %v5224_v24  ;;  %5384 = vmatmul.bf16.gmra.mxu0 %v11294_v35 }
 0x729   : > { %v5225_v13 = vpop.f32.mrf.mxu1 }
 0x72a   : > { %v5226_v26 = vadd.f32 %v5225_v13, %v5172_v44  ;;  %v11543_v13 = vpop.permute.xlu0 %5536 }
 0x72b   : > { %v11510_v43 = vpop.f32.mrf.mxu0 }
 0x72c   : > { %v11538_v32 = vpop.f32.mrf.mxu3 }
 0x72d   : > { %v5279_v56 = vpop.f32.mrf.mxu2  ;;  %12635 = vst [vmem:[#allocation44_spill] sm:$0xff] %v11538_v32 }
 0x731   : > { %v5228_v20 = vpop.f32.mrf.mxu1 }
 0x732   : > { %v5229_v38 = vadd.f32 %v5228_v20, %v5175_v28  ;;  %v11547_v20 = vpop.permute.xlu2 %5531 }
 0x733   : > { %v11515_v53 = vpop.f32.mrf.mxu0 }
 0x734   : > { %7050 = vmatmul.msk.bf16.gmra.mxu1 %vm5117_vm9, %v11286_v4  ;;  %v11534_v4 = vpop.permute.xlu1 %5546  ;;  %v11545_v28 = vpop.f32.mrf.mxu3 }
 0x735   : > { %v5282_v35 = vpop.f32.mrf.mxu2  ;;  %12636 = vst [vmem:[#allocation78_spill] sm:$0xff] %v11545_v28 }
 0x736   : > { %v11521_v21 = vadd.f32 %v5282_v35, %v5229_v38  ;;  %5389 = vmatmul.bf16.gmra.mxu0 %v11323_v47 }
 0x739   : > { %v11524_v29 = vpop.f32.mrf.mxu1 }
 0x73a   : > { %v11558_v33 = vpop.permute.xlu2 %5526 }
 0x73b   : > { %v5181_v8 = vpop.f32.mrf.mxu0 }
 0x73c   : > { %v11549_v35 = vpop.permute.xlu1 %5521 }
 0x73d   : > { %v11528_v6 = vpop.f32.mrf.mxu2 }
 0x741   : > { %v11530_v2 = vpop.f32.mrf.mxu1 }
 0x742   : > { %v11564_v51 = vpop.permute.xlu2 %5501 }
 0x743   : > { %v5184_v24 = vpop.f32.mrf.mxu0  ;;  %v5571_v11 = vadd.f32 %v11564_v51, %v5278_v1 }
 0x744   : > { %7051 = vmatmul.msk.bf16.gmra.mxu1 %vm5117_vm9, %v11313_v41  ;;  %v11553_v41 = vpop.f32.mrf.mxu3  ;;  %v11560_v28 = vpop.permute.xlu1 %5516 }
 0x745   : > { %v11540_v47 = vpop.f32.mrf.mxu2  ;;  %12637 = vst [vmem:[#allocation46_spill] sm:$0xff] %v11553_v41  ;;  %v5607_v50 = vmax.f32 %v5571_v11, 0.0 }
 0x746   : > { %5394 = vmatmul.bf16.gmra.mxu0 %v11353_v0  ;;  %v11555_v0 = vpop.permute.xlu0 %5511 }
 0x747   : > { %12638 = vst [vmem:[#allocation80_spill] sm:$0xff] %v11555_v0 }
 0x749   : > { %v5235_v16 = vpop.f32.mrf.mxu1 }
 0x74a   : > { %v11587_v1 = vpop.permute.xlu2 %5496 }
 0x74b   : > { %v5186_v44 = vpop.f32.mrf.mxu0 }
 0x74c   : > { %v5316_v32 = vpop.f32.mrf.mxu3  ;;  %v11566_v41 = vpop.permute.xlu1 %5491 }
 0x74d   : > { %v5289_v38 = vpop.f32.mrf.mxu2  ;;  %v5567_v11 = vadd.f32 %v11566_v41, %v11492_v30 }
 0x74e   : > { %v11562_v59 = vpop.permute.xlu0 %5506 }
 0x74f   : > { %12639 = vst [vmem:[#allocation31_spill] sm:$0xff] %v11562_v59 }
 0x751   : > { %v5238_v52 = vpop.f32.mrf.mxu1 }
 0x753   : > { %v5189_v57 = vpop.f32.mrf.mxu0 }
 0x754   : > { %7052 = vmatmul.msk.bf16.gmra.mxu1 %vm5117_vm9, %v11345_v42  ;;  %v5280_v42 = vadd.f32 %v5279_v56, %v5226_v26  ;;  %v5190_v55 = vadd.f32 %v5189_v57, %v11377_v62  ;;  %v11575_v48 = vpop.f32.mrf.mxu3  ;;  %v5187_v26 = vadd.f32 %v5186_v44, %v11359_v10  ;;  %v5185_v62 = vadd.f32 %v5184_v24, %v11331_v5 }
 0x755   : > { %v5292_v46 = vpop.f32.mrf.mxu2  ;;  %12640 = vst [vmem:[#allocation7_spill] sm:$0xff] %v11575_v48  ;;  %v5182_v10 = vadd.f32 %v5181_v8, %v11321_v22 }
 0x756   : > { %5399 = vmatmul.bf16.gmra.mxu0 %v11387_v61  ;;  %v5573_v61 = vadd.f32 %v11562_v59, %v5280_v42  ;;  %v11583_v59 = vpop.permute.xlu0 %5481  ;;  %v5239_v14 = vadd.f32 %v5238_v52, %v5185_v62 }
 0x757   : > { %12641 = vst [vmem:[#allocation54_spill] sm:$0xff] %v11583_v59  ;;  %v5563_v52 = vadd.f32 %v11583_v59, %v11476_v31 }
 0x758   : > { %v5609_v0 = vmax.f32 %v5573_v61, 0.0 }
 0x759   : > { %v5240_v40 = vpop.f32.mrf.mxu1 }
 0x75a   : > { %v11601_v61 = vpack.c.bf16 %v5609_v0, %v5607_v50 }
 0x75b   : > { %v5191_v18 = vpop.f32.mrf.mxu0 }
 0x75c   : > { %v5192_v57 = vadd.f32 %v5191_v18, %v11397_v15  ;;  %v5180_v15 = vadd.f32 %v11515_v53, %v11299_v19  ;;  %v5293_v18 = vadd.f32 %v5292_v46, %v5239_v14  ;;  %v11599_v24 = vpop.f32.mrf.mxu3  ;;  %v5265_v46 = vadd.f32 %v11468_v63, %v11464_v12 }
 0x75d   : > { %v5294_v3 = vpop.f32.mrf.mxu2  ;;  %v5603_v12 = vmax.f32 %v5567_v11, 0.0 }
 0x75e   : > { %v5234_v19 = vadd.f32 %v11530_v2, %v5180_v15  ;;  %v5317_v2 = vadd.f32 %v5316_v32, %v11363_v17 }
 0x761   : > { %v5243_v45 = vpop.f32.mrf.mxu1 }
 0x762   : > { %v5244_v56 = vadd.f32 %v5243_v45, %v5190_v55  ;;  %v11592_v45 = vpop.permute.xlu1 %5486 }
 0x763   : > { %v11568_v54 = vpop.f32.mrf.mxu0  ;;  %v5565_v44 = vadd.f32 %v11592_v45, %v5270_v34  ;;  %v5177_v34 = vadd.f32 %v11510_v43, %v11278_v7 }
 0x764   : > { %7053 = vmatmul.msk.bf16.gmra.mxu1 %vm5117_vm9, %v11379_v39  ;;  %v5275_v39 = vadd.f32 %v11500_v23, %v11496_v27 }
 0x765   : > { %v5297_v60 = vpop.f32.mrf.mxu2  ;;  %v5231_v31 = vadd.f32 %v11524_v29, %v5177_v34 }
 0x766   : > { %5404 = vmatmul.bf16.gmra.mxu0 %v11421_v37  ;;  %v5241_v37 = vadd.f32 %v5240_v40, %v5187_v26  ;;  %v5298_v48 = vadd.f32 %v5297_v60, %v5244_v56  ;;  %v5569_v5 = vadd.f32 %v11587_v1, %v5275_v39  ;;  %v5236_v60 = vadd.f32 %v5235_v16, %v5182_v10 }
 0x767   : > { %v5601_v16 = vmax.f32 %v5565_v44, 0.0  ;;  %v5288_v26 = vadd.f32 %v11540_v47, %v5234_v19  ;;  %v5583_v56 = vadd.f32 %v11547_v20, %v5293_v18  ;;  %v5599_v39 = vmax.f32 %v5563_v52, 0.0 }
 0x768   : > { %v5295_v27 = vadd.f32 %v5294_v3, %v5241_v37  ;;  %v5587_v22 = vadd.f32 %v11532_v9, %v5298_v48  ;;  %v5290_v48 = vadd.f32 %v5289_v38, %v5236_v60  ;;  %v5605_v0 = vmax.f32 %v5569_v5, 0.0 }
 0x769   : > { %v5245_v42 = vpop.f32.mrf.mxu1  ;;  %v5285_v63 = vadd.f32 %v11528_v6, %v5231_v31  ;;  %v5579_v17 = vadd.f32 %v11549_v35, %v5288_v26  ;;  %v5619_v50 = vmax.f32 %v5583_v56, 0.0  ;;  %v5195_v6 = vadd.f32 %v11568_v54, %v11423_v25 }
 0x76a   : > { %v5246_v23 = vadd.f32 %v5245_v42, %v5192_v57  ;;  %v5585_v3 = vadd.f32 %v11543_v13, %v5295_v27  ;;  %v5623_v7 = vmax.f32 %v5587_v22, 0.0  ;;  %v11619_v42 = vpop.permute.xlu0 %5476  ;;  %v5581_v62 = vadd.f32 %v11558_v33, %v5290_v48  ;;  %v11624_v57 = vpop.permute.xlu2 %5471  ;;  %v12644_v22 = vld [vmem:[#allocation80_spill] sm:$0xff] }
 0x76b   : > { %v11590_v55 = vpop.f32.mrf.mxu0  ;;  %12642 = vst [vmem:[#allocation84_spill] sm:$0xff] %v11619_v42  ;;  %v5561_v10 = vadd.f32 %v11619_v42, %v5265_v46  ;;  %v5644_v14 = vpack.c.bf16 %v5605_v0, %v5603_v12  ;;  %v5642_v27 = vpack.c.bf16 %v5601_v16, %v5599_v39  ;;  %v5577_v44 = vadd.f32 %v11560_v28, %v5285_v63  ;;  %v11642_v48 = vpop.permute.xlu1 %5551  ;;  %v12647_v39 = vld [vmem:[#allocation90_spill] sm:$0xff]  ;;  %v7274_v63 = vld [vmem:[%s11949_s9 + $0x4] sm:$0xf]  ;;  %v12670_v42 = vld [vmem:[#allocation68_spill] sm:$0xff] }
 0x76c   : > { %v5621_v37 = vmax.f32 %v5585_v3, 0.0  ;;  %12643 = vst [vmem:[#allocation51_spill] sm:$0xff] %v11624_v57  ;;  %v5617_v5 = vmax.f32 %v5581_v62, 0.0  ;;  %v5575_v25 = vadd.f32 %v12644_v22, %v11521_v21  ;;  %v5615_v54 = vmax.f32 %v5579_v17, 0.0 }
 0x76d   : > { %v5299_v40 = vpop.f32.mrf.mxu2  ;;  %v5613_v34 = vmax.f32 %v5577_v44, 0.0  ;;  %v5322_v12 = vadd.f32 %v11599_v24, %v12647_v39  ;;  %v7279_v39 = vld [vmem:[%s11949_s9 + $0x24] sm:$0xf0] }
 0x76e   : > { %v5300_v8 = vadd.f32 %v5299_v40, %v5246_v23  ;;  %v11633_v23 = vpop.f32.mrf.mxu3  ;;  %v5652_v60 = vpack.c.bf16 %v5621_v37, %v5619_v50  ;;  %v5597_v40 = vmax.f32 %v5561_v10, 0.0  ;;  %v5650_v46 = vpack.c.bf16 %v5617_v5, %v5615_v54  ;;  %v12648_v37 = vld [vmem:[#allocation70_spill] sm:$0xff]  ;;  %v7058_v50 = vld [vmem:[%s11949_s9] sm:$0xf] }
 0x770   : > { %v5589_v53 = vadd.f32 %v11534_v4, %v5300_v8  ;;  %v12645_v8 = vld [vmem:[#allocation38_spill] sm:$0xff] }
 0x771   : > { %v5248_v30 = vpop.f32.mrf.mxu1 }
 0x772   : > { %v5625_v43 = vmax.f32 %v5589_v53, 0.0  ;;  %v5249_v15 = vadd.f32 %v5248_v30, %v5195_v6  ;;  %v5611_v53 = vmax.f32 %v5575_v25, 0.0  ;;  %v11645_v31 = vpop.permute.xlu2 %5556 }
 0x773   : > { %v5370_v38 = vpop.f32.mrf.mxu0 }
 0x774   : > { %7054 = vmatmul.msk.bf16.gmra.mxu1 %vm5117_vm9, %v11413_v58  ;;  %v5654_v29 = vpack.c.bf16 %v5625_v43, %v5623_v7  ;;  %v5371_v47 = vadd.f32 %v5370_v38, %v5317_v2  ;;  %v5559_v58 = vadd.f32 %v11624_v57, %v11460_v36  ;;  %v5648_v26 = vpack.c.bf16 %v5613_v34, %v5611_v53  ;;  %v7060_v38 = vld [vmem:[%s11949_s9 + $0x8] sm:$0xf0] }
 0x775   : > { %v5302_v32 = vpop.f32.mrf.mxu2  ;;  %v11660_v10 = vor.u32 %v7274_v63, %v7060_v38 }
 0x776   : > { %5761 = vmatpush.bf16.msrb.mxu2 %v5654_v29  ;;  %5409 = vmatmul.bf16.gmra.mxu0 %v11452_v49  ;;  %v5197_v49 = vadd.f32 %v11590_v55, %v12645_v8  ;;  %v5303_v52 = vadd.f32 %v5302_v32, %v5249_v15  ;;  %v5595_v36 = vmax.f32 %v5559_v58, 0.0  ;;  %v5326_v56 = vpop.f32.mrf.mxu3  ;;  %v7068_v15 = vld [vmem:[%s11949_s9 + $0x18] sm:$0xf0] }
 0x777   : > { %12649 = vst [vmem:[#allocation25_spill] sm:$0xff] %v11660_v10 }
 0x778   : > { %v5591_v16 = vadd.f32 %v11642_v48, %v5303_v52  ;;  %v5640_v21 = vpack.c.bf16 %v5597_v40, %v5595_v36  ;;  %v7277_v52 = vld [vmem:[%s11949_s9 + $0x14] sm:$0xf0] }
 0x779   : > { %v5250_v18 = vpop.f32.mrf.mxu1 }
 0x77a   : > { %5762 = vmatpush.bf16.msrb.mxu2 %v5652_v60  ;;  %v5251_v19 = vadd.f32 %v5250_v18, %v5197_v49  ;;  %v5627_v7 = vmax.f32 %v5591_v16, 0.0  ;;  %v7066_v49 = vld [vmem:[%s11949_s9 + $0x10] sm:$0xf]  ;;  %v7278_v16 = vld [vmem:[%s11949_s9 + $0x24] sm:$0xf] }
 0x77b   : > { %v11640_v11 = vpop.f32.mrf.mxu0 }
 0x77d   : > { %v5304_v3 = vpop.f32.mrf.mxu2 }
 0x77e   : > { %v5305_v0 = vadd.f32 %v5304_v3, %v5251_v19  ;;  %5763 = vmatpush.bf16.msrb.mxu2 %v5650_v46  ;;  %v11669_v32 = vpop.f32.mrf.mxu3  ;;  %v11703_v19 = vor.u32 %v7277_v52, %v7066_v49  ;;  %v12655_v3 = vld [vmem:[#allocation67_spill] sm:$0xff] }
 0x77f   : > { %v7082_v52 = vld [vmem:[%s11949_s9 + $0x30] sm:$0xf] }
 0x780   : > { %v5593_v55 = vadd.f32 %v11645_v31, %v5305_v0  ;;  %12654 = vst [vmem:[#allocation66_spill] sm:$0xff] %v11703_v19  ;;  %v7076_v0 = vld [vmem:[%s11949_s9 + $0x28] sm:$0xf0] }
 0x781   : > { %v5424_v30 = vpop.f32.mrf.mxu1 }
 0x782   : > { %v11648_v43 = vadd.f32 %v5424_v30, %v5371_v47  ;;  %v5629_v2 = vmax.f32 %v5593_v55, 0.0  ;;  %5764 = vmatpush.bf16.msrb.mxu2 %v5648_v26  ;;  %v11715_v26 = vor.u32 %v7278_v16, %v7076_v0 }
 0x783   : > { %v5375_v62 = vpop.f32.mrf.mxu0 }
 0x784   : > { %12646 = vst [vmem:[#allocation33_spill] sm:$0xff] %v11648_v43  ;;  %7055 = vmatmul.msk.bf16.gmra.mxu1 %vm5117_vm9, %v12648_v37  ;;  %v5656_v29 = vpack.c.bf16 %v5629_v2, %v5627_v7  ;;  %v5376_v47 = vadd.f32 %v5375_v62, %v5322_v12  ;;  %v7074_v2 = vld [vmem:[%s11949_s9 + $0x20] sm:$0xf]  ;;  %v12658_v62 = vld [vmem:[#allocation4_spill] sm:$0xff]  ;;  %vm6239_vm9 = vcmask 7168  }
 0x785   : > { %12656 = vst [vmem:[#allocation88_spill] sm:$0xff] %v11715_v26  ;;  %v11727_v63 = vor.u32 %v7279_v39, %v7074_v2 }
 0x786   : > { %5765 = vmatpush.bf16.msrb.mxu2 %v11601_v61  ;;  %5801 = vmatpush.bf16.msrb.mxu3 %v5656_v29  ;;  %v7275_v61 = vld [vmem:[%s11949_s9 + $0x4] sm:$0xf0]  ;;  %v5331_v18 = vpop.f32.mrf.mxu3  ;;  %v7280_v29 = vld [vmem:[%s11949_s9 + $0x34] sm:$0xf] }
 0x787   : > { %v11677_v58 = vor.u32 %v7275_v61, %v7058_v50  ;;  %v5332_v53 = vadd.f32 %v5331_v18, %v12655_v3  ;;  %12657 = vst [vmem:[#allocation76_spill] sm:$0xff] %v11727_v63 }
 0x789   : > { %v11663_v24 = vpop.f32.mrf.mxu1  ;;  %7088 = vmatmul.msk.bf16.vlgmr.msrb.gmra.mxu3 %vm5745_vm14, %v11660_v10  ;;  %12650 = vst [vmem:[#allocation8_spill] sm:$0xff] %v11677_v58 }
 0x78a   : > { %5766 = vmatpush.bf16.msrb.mxu2 %v5644_v14  ;;  %v12652_v14 = vld [vmem:[#allocation87_spill] sm:$0xff] }
 0x78b   : > { %v11667_v17 = vpop.f32.mrf.mxu0  ;;  %v5327_v5 = vadd.f32 %v5326_v56, %v12652_v14 }
 0x78e   : > { %5767 = vmatpush.bf16.msrb.mxu2 %v5642_v27  ;;  %v7276_v27 = vld [vmem:[%s11949_s9 + $0x14] sm:$0xf]  ;;  %v5333_v36 = vpop.f32.mrf.mxu3 }
 0x78f   : > { %v11689_v25 = vor.u32 %v7276_v27, %v7068_v15 }
 0x791   : > { %v5429_v6 = vpop.f32.mrf.mxu1  ;;  %12653 = vst [vmem:[#allocation5_spill] sm:$0xff] %v11689_v25 }
 0x792   : > { %v11679_v44 = vadd.f32 %v5429_v6, %v5376_v47  ;;  %5768 = vmatpush.bf16.msrb.mxu2 %v5640_v21  ;;  %v7084_v47 = vld [vmem:[%s11949_s9 + $0x38] sm:$0xf0] }
 0x793   : > { %v5380_v60 = vpop.f32.mrf.mxu0  ;;  %v11739_v14 = vor.u32 %v7280_v29, %v7084_v47 }
 0x794   : > { %12651 = vst [vmem:[#allocation17_spill] sm:$0xff] %v11679_v44  ;;  %v5381_v40 = vadd.f32 %v5380_v60, %v5327_v5  ;;  %v12660_v5 = vld [vmem:[#allocation49_spill] sm:$0xff] }
 0x795   : > { %5769 = vmatmul.bf16.vlgmr.msrb.gmra.mxu2 %v11677_v58  ;;  %12659 = vst [vmem:[#allocation34_spill] sm:$0xff] %v11739_v14  ;;  %v5334_v27 = vadd.f32 %v5333_v36, %v12660_v5  ;;  %v5639_v36 = vld [vmem:[%s11949_s9 + $0x40] sm:$0xff] }
 0x796   : > { %v5336_v56 = vpop.f32.mrf.mxu3  ;;  %v5729_v16 = vunpack.c.h.b16 %v5639_v36  ;;  %v5728_v39 = vunpack.c.l.b16 %v5639_v36  ;;  %v12668_v58 = vld [vmem:[#allocation69_spill] sm:$0xff] }
 0x797   : > { %v5337_v37 = vadd.f32 %v5336_v56, %v12658_v62 }
 0x799   : > { %v11691_v54 = vpop.f32.mrf.mxu1  ;;  %7089 = vmatmul.msk.bf16.gmra.mxu3 %vm5745_vm14, %v11689_v25 }
 0x79b   : > { %v11695_v8 = vpop.f32.mrf.mxu0 }
 0x79e   : > { %v11736_v61 = vpop.f32.mrf.mxu3 }
 0x7a1   : > { %v5434_v34 = vpop.f32.mrf.mxu1 }
 0x7a2   : > { %v11705_v46 = vadd.f32 %v5434_v34, %v5381_v40  ;;  %v7281_v34 = vld [vmem:[%s11949_s9 + $0x34] sm:$0xf0] }
 0x7a3   : > { %v5385_v21 = vpop.f32.mrf.mxu0 }
 0x7a4   : > { %v5386_v55 = vadd.f32 %v5385_v21, %v5332_v53  ;;  %v11753_v53 = vor.u32 %v7281_v34, %v7082_v52 }
 0x7a5   : > { %5774 = vmatmul.bf16.gmra.mxu2 %v11703_v19 }
 0x7a6   : > { %v5341_v49 = vpop.f32.mrf.mxu3  ;;  %12661 = vst [vmem:[#allocation41_spill] sm:$0xff] %v11753_v53 }
 0x7a9   : > { %v11717_v30 = vpop.f32.mrf.mxu1  ;;  %7090 = vmatmul.msk.bf16.gmra.mxu3 %vm5745_vm14, %v11715_v26  ;;  %v12667_v26 = vld [vmem:[#allocation52_spill] sm:$0xff] }
 0x7ab   : > { %v5387_v7 = vpop.f32.mrf.mxu0 }
 0x7ac   : > { %v5388_v15 = vadd.f32 %v5387_v7, %v5334_v27 }
 0x7ae   : > { %v5343_v56 = vpop.f32.mrf.mxu3 }
 0x7b1   : > { %v5439_v12 = vpop.f32.mrf.mxu1 }
 0x7b2   : > { %v5440_v38 = vadd.f32 %v5439_v12, %v5386_v55  ;;  %v11758_v55 = vpack.c.b16 %v5729_v16, %v5729_v16 }
 0x7b3   : > { %v5390_v50 = vpop.f32.mrf.mxu0 }
 0x7b4   : > { %v5391_v6 = vadd.f32 %v5390_v50, %v5337_v37  ;;  %12662 = vst [vmem:[#allocation48_spill] sm:$0xff] %v11758_v55  ;;  %v11762_v37 = vpack.c.b16 %v5728_v39, %v5728_v39 }
 0x7b5   : > { %5779 = vmatmul.bf16.gmra.mxu2 %v11727_v63  ;;  %v12666_v63 = vld [vmem:[#allocation77_spill] sm:$0xff] }
 0x7b6   : > { %v5346_v62 = vpop.f32.mrf.mxu3  ;;  %12663 = vst [vmem:[#allocation10_spill] sm:$0xff] %v11762_v37 }
 0x7b7   : > { %v5347_v57 = vadd.f32 %v5346_v62, %v12668_v58 }
 0x7b9   : > { %v5441_v60 = vpop.f32.mrf.mxu1  ;;  %7091 = vmatmul.msk.bf16.gmra.mxu3 %vm5745_vm14, %v11739_v14 }
 0x7ba   : > { %v5442_v40 = vadd.f32 %v5441_v60, %v5388_v15  ;;  %v12664_v60 = vld [vmem:[#allocation31_spill] sm:$0xff] }
 0x7bb   : > { %v5392_v18 = vpop.f32.mrf.mxu0 }
 0x7bc   : > { %v5574_v52 = vadd.f32 %v12664_v60, %v5442_v40  ;;  %v12669_v40 = vld [vmem:[#allocation44_spill] sm:$0xff] }
 0x7be   : > { %v5348_v50 = vpop.f32.mrf.mxu3  ;;  %v5610_v16 = vmax.f32 %v5574_v52, 0.0 }
 0x7bf   : > { %v5349_v19 = vadd.f32 %v5348_v50, %v12667_v26  ;;  %v12672_v50 = vld [vmem:[#allocation57_spill] sm:$0xff] }
 0x7c0   : > { %v5339_v58 = vadd.f32 %v11736_v61, %v12672_v50 }
 0x7c1   : > { %v5444_v3 = vpop.f32.mrf.mxu1 }
 0x7c2   : > { %v11755_v0 = vadd.f32 %v5444_v3, %v5391_v6  ;;  %v5572_v3 = vadd.f32 %v11564_v51, %v5440_v38  ;;  %v5344_v51 = vadd.f32 %v5343_v56, %v12670_v42 }
 0x7c3   : > { %v5395_v21 = vpop.f32.mrf.mxu0 }
 0x7c4   : > { %v5608_v36 = vmax.f32 %v5572_v3, 0.0 }
 0x7c5   : > { %5784 = vmatmul.bf16.gmra.mxu2 %v11753_v53 }
 0x7c6   : > { %v5351_v27 = vpop.f32.mrf.mxu3  ;;  %v11767_v53 = vpack.c.bf16 %v5610_v16, %v5608_v36  ;;  %v12671_v16 = vld [vmem:[#allocation81_spill] sm:$0xff] }
 0x7c7   : > { %v5342_v36 = vadd.f32 %v5341_v49, %v12671_v16 }
 0x7c8   : > { %12665 = vst [vmem:[#allocation16_spill] sm:$0xff] %v11767_v53 }
 0x7c9   : > { %v5446_v7 = vpop.f32.mrf.mxu1  ;;  %7092 = vmatmul.msk.bf16.gmra.mxu3 %vm5745_vm14, %v11758_v55 }
 0x7cb   : > { %v5397_v2 = vpop.f32.mrf.mxu0 }
 0x7cc   : > { %v5398_v44 = vadd.f32 %v5397_v2, %v5344_v51 }
 0x7ce   : > { %v5353_v55 = vpop.f32.mrf.mxu3 }
 0x7cf   : > { %v5354_v60 = vadd.f32 %v5353_v55, %v12669_v40 }
 0x7d1   : > { %v5449_v12 = vpop.f32.mrf.mxu1 }
 0x7d3   : > { %v5400_v29 = vpop.f32.mrf.mxu0 }
 0x7d4   : > { %v5401_v38 = vadd.f32 %v5400_v29, %v5347_v57 }
 0x7d5   : > { %5789 = vmatmul.bf16.gmra.mxu2 %v11762_v37  ;;  %v5352_v37 = vadd.f32 %v5351_v27, %v12666_v63 }
 0x7d6   : > { %v5356_v59 = vpop.f32.mrf.mxu3 }
 0x7d9   : > { %v5451_v47 = vpop.f32.mrf.mxu1 }
 0x7da   : > { %v5452_v55 = vadd.f32 %v5451_v47, %v5398_v44  ;;  %v12673_v44 = vld [vmem:[#allocation78_spill] sm:$0xff] }
 0x7db   : > { %v5402_v6 = vpop.f32.mrf.mxu0  ;;  %v5357_v47 = vadd.f32 %v5356_v59, %v12673_v44 }
 0x7dc   : > { %v5403_v43 = vadd.f32 %v5402_v6, %v5349_v19  ;;  %v5396_v19 = vadd.f32 %v5395_v21, %v5342_v36  ;;  %v12678_v36 = vld [vmem:[#allocation7_spill] sm:$0xff] }
 0x7e1   : > { %v5454_v5 = vpop.f32.mrf.mxu1 }
 0x7e2   : > { %v5455_v63 = vadd.f32 %v5454_v5, %v5401_v38 }
 0x7e3   : > { %v5405_v15 = vpop.f32.mrf.mxu0 }
 0x7e4   : > { %v5406_v25 = vadd.f32 %v5405_v15, %v5352_v37  ;;  %v5584_v49 = vadd.f32 %v11547_v20, %v5455_v63 }
 0x7e6   : > { %v5620_v21 = vmax.f32 %v5584_v49, 0.0 }
 0x7e9   : > { %v5456_v34 = vpop.f32.mrf.mxu1 }
 0x7ea   : > { %v5457_v52 = vadd.f32 %v5456_v34, %v5403_v43  ;;  %v5393_v43 = vadd.f32 %v5392_v18, %v5339_v58  ;;  %v5358_v18 = vpop.f32.mrf.mxu3  ;;  %v12675_v34 = vld [vmem:[#allocation46_spill] sm:$0xff] }
 0x7eb   : > { %v5407_v14 = vpop.f32.mrf.mxu0 }
 0x7ec   : > { %v5408_v3 = vadd.f32 %v5407_v14, %v5354_v60  ;;  %v5586_v42 = vadd.f32 %v11543_v13, %v5457_v52  ;;  %v5450_v14 = vadd.f32 %v5449_v12, %v5396_v19  ;;  %v5447_v62 = vadd.f32 %v5446_v7, %v5393_v43  ;;  %v12674_v13 = vld [vmem:[#allocation95_spill] sm:$0xff]  ;;  %v11786_v12 = vpop.permute.xlu1 %5690  ;;  %v12679_v43 = vld [vmem:[#allocation17_spill] sm:$0xff] }
 0x7ee   : > { %v5580_v61 = vadd.f32 %v11549_v35, %v5450_v14  ;;  %v5578_v20 = vadd.f32 %v11560_v28, %v5447_v62  ;;  %v5576_v35 = vadd.f32 %v12644_v22, %v11755_v0  ;;  %v12677_v0 = vld [vmem:[#allocation61_spill] sm:$0xff] }
 0x7ef   : > { %v5319_v63 = vadd.f32 %v12678_v36, %v12677_v0 }
 0x7f0   : > { %v5616_v15 = vmax.f32 %v5580_v61, 0.0  ;;  %v5614_v28 = vmax.f32 %v5578_v20, 0.0  ;;  %v11825_v20 = vpop.permute.xlu0 %5700 }
 0x7f1   : > { %v5459_v39 = vpop.f32.mrf.mxu1 }
 0x7f2   : > { %v5460_v10 = vadd.f32 %v5459_v39, %v5406_v25  ;;  %v5359_v39 = vadd.f32 %v5358_v18, %v12675_v34 }
 0x7f3   : > { %v5410_v25 = vpop.f32.mrf.mxu0 }
 0x7f4   : > { %v5588_v26 = vadd.f32 %v11532_v9, %v5460_v10  ;;  %v5582_v9 = vadd.f32 %v11558_v33, %v5452_v55  ;;  %v5622_v10 = vmax.f32 %v5586_v42, 0.0  ;;  %v5411_v6 = vadd.f32 %v5410_v25, %v5357_v47  ;;  %v11805_v25 = vpop.permute.xlu1 %5685 }
 0x7f6   : > { %v5624_v56 = vmax.f32 %v5588_v26, 0.0  ;;  %v5618_v7 = vmax.f32 %v5582_v9, 0.0  ;;  %v5653_v33 = vpack.c.bf16 %v5622_v10, %v5620_v21  ;;  %v11800_v26 = vpop.permute.xlu2 %5695  ;;  %v12683_v9 = vld [vmem:[#allocation25_spill] sm:$0xff]  ;;  %v12685_v10 = vld [vmem:[#allocation51_spill] sm:$0xff] }
 0x7f8   : > { %v5651_v38 = vpack.c.bf16 %v5618_v7, %v5616_v15 }
 0x7f9   : > { %v5461_v53 = vpop.f32.mrf.mxu1 }
 0x7fa   : > { %v5462_v37 = vadd.f32 %v5461_v53, %v5408_v3  ;;  %v5612_v3 = vmax.f32 %v5576_v35, 0.0 }
 0x7fb   : > { %v5412_v27 = vpop.f32.mrf.mxu0 }
 0x7fc   : > { %v5590_v57 = vadd.f32 %v11534_v4, %v5462_v37  ;;  %v5329_v4 = vadd.f32 %v11669_v32, %v12674_v13  ;;  %v12676_v32 = vld [vmem:[#allocation92_spill] sm:$0xff]  ;;  %v5413_v51 = vadd.f32 %v5412_v27, %v5359_v39  ;;  %v5649_v50 = vpack.c.bf16 %v5614_v28, %v5612_v3  ;;  %v11822_v61 = vpop.permute.xlu1 %5660  ;;  %v12688_v3 = vld [vmem:[#allocation66_spill] sm:$0xff] }
 0x7fd   : > { %v5324_v40 = vadd.f32 %v11633_v23, %v12676_v32  ;;  %v12686_v27 = vld [vmem:[#allocation8_spill] sm:$0xff]  ;;  %v12687_v32 = vld [vmem:[#allocation5_spill] sm:$0xff] }
 0x7fe   : > { %v5626_v2 = vmax.f32 %v5590_v57, 0.0  ;;  %v5383_v5 = vadd.f32 %v11695_v8, %v5329_v4 }
 0x7ff   : > { %v5378_v8 = vadd.f32 %v11667_v17, %v5324_v40  ;;  %v5373_v17 = vadd.f32 %v11640_v11, %v5319_v63  ;;  %v12682_v11 = vld [vmem:[#allocation84_spill] sm:$0xff]  ;;  %v11833_v40 = vpop.permute.xlu0 %5680 }
 0x800   : > { %v5655_v53 = vpack.c.bf16 %v5626_v2, %v5624_v56  ;;  %v5437_v60 = vadd.f32 %v11717_v30, %v5383_v5  ;;  %v12681_v56 = vld [vmem:[#allocation16_spill] sm:$0xff] }
 0x801   : > { %v5464_v29 = vpop.f32.mrf.mxu1  ;;  %v5432_v23 = vadd.f32 %v11691_v54, %v5378_v8  ;;  %v5427_v42 = vadd.f32 %v11663_v24, %v5373_v17  ;;  %v11818_v24 = vpop.permute.xlu2 %5670 }
 0x802   : > { %5827 = vmatpush.bf16.msrb.mxu0 %v5655_v53  ;;  %v5465_v59 = vadd.f32 %v5464_v29, %v5411_v6  ;;  %v5570_v30 = vadd.f32 %v11587_v1, %v5437_v60 }
 0x803   : > { %v5566_v54 = vadd.f32 %v11592_v45, %v5432_v23  ;;  %v5562_v2 = vadd.f32 %v12682_v11, %v5427_v42  ;;  %v12684_v45 = vld [vmem:[#allocation33_spill] sm:$0xff] }
 0x804   : > { %v5592_v16 = vadd.f32 %v11642_v48, %v5465_v59  ;;  %v5568_v48 = vadd.f32 %v11566_v41, %v11705_v46  ;;  %v5606_v57 = vmax.f32 %v5570_v30, 0.0  ;;  %v5560_v53 = vadd.f32 %v12685_v10, %v12684_v45  ;;  %v12689_v30 = vld [vmem:[#allocation88_spill] sm:$0xff] }
 0x805   : > { %v5602_v62 = vmax.f32 %v5566_v54, 0.0  ;;  %v5598_v21 = vmax.f32 %v5562_v2, 0.0 }
 0x806   : > { %5828 = vmatpush.bf16.msrb.mxu0 %v5653_v33  ;;  %v5628_v19 = vmax.f32 %v5592_v16, 0.0  ;;  %v5604_v49 = vmax.f32 %v5568_v48, 0.0  ;;  %v5596_v4 = vmax.f32 %v5560_v53, 0.0  ;;  %v12690_v48 = vld [vmem:[#allocation76_spill] sm:$0xff] }
 0x808   : > { %v5645_v41 = vpack.c.bf16 %v5606_v57, %v5604_v49  ;;  %v5641_v7 = vpack.c.bf16 %v5598_v21, %v5596_v4 }
 0x809   : > { %v5466_v52 = vpop.f32.mrf.mxu1  ;;  %v11827_v33 = vpop.permute.xlu2 %5665 }
 0x80a   : > { %v5467_v22 = vadd.f32 %v5466_v52, %v5413_v51  ;;  %5829 = vmatpush.bf16.msrb.mxu0 %v5651_v38  ;;  %v11836_v52 = vpop.permute.xlu0 %5675 }
 0x80c   : > { %v5594_v37 = vadd.f32 %v11645_v31, %v5467_v22  ;;  %v5803_v58 = vpop.f32.mrf.mxu3  ;;  %v12680_v31 = vld [vmem:[#allocation54_spill] sm:$0xff] }
 0x80d   : > { %v5564_v14 = vadd.f32 %v12680_v31, %v12679_v43  ;;  %v12693_v31 = vld [vmem:[#allocation48_spill] sm:$0xff] }
 0x80e   : > { %v5630_v55 = vmax.f32 %v5594_v37, 0.0  ;;  %5830 = vmatpush.bf16.msrb.mxu0 %v5649_v50 }
 0x80f   : > { %v5600_v29 = vmax.f32 %v5564_v14, 0.0 }
 0x810   : > { %v5657_v1 = vpack.c.bf16 %v5630_v55, %v5628_v19  ;;  %v12691_v55 = vld [vmem:[#allocation34_spill] sm:$0xff] }
 0x811   : > { %v5643_v44 = vpack.c.bf16 %v5602_v62, %v5600_v29 }
 0x812   : > { %5831 = vmatpush.bf16.msrb.mxu0 %v12681_v56  ;;  %5867 = vmatpush.bf16.msrb.mxu1 %v5657_v1  ;;  %v12692_v1 = vld [vmem:[#allocation41_spill] sm:$0xff] }
 0x814   : > { %v5805_v46 = vpop.f32.mrf.mxu3 }
 0x815   : > { %7093 = vmatmul.msk.bf16.vlgmr.msrb.gmra.mxu1 %vm5745_vm14, %v12683_v9 }
 0x816   : > { %5832 = vmatpush.bf16.msrb.mxu0 %v5645_v41 }
 0x818   : > { %v5770_v47 = vpop.f32.mrf.mxu2 }
 0x819   : > { %v5771_v13 = vadd.f32 %v5770_v47, %v11822_v61 }
 0x81a   : > { %5833 = vmatpush.bf16.msrb.mxu0 %v5643_v44  ;;  %v12694_v44 = vld [vmem:[#allocation10_spill] sm:$0xff] }
 0x81b   : > { %v5804_v18 = vadd.f32 %v5803_v58, %v5771_v13 }
 0x81c   : > { %v5808_v6 = vpop.f32.mrf.mxu3 }
 0x81d   : > { %v5893_v34 = vmax.f32 %v5804_v18, 0.0 }
 0x81e   : > { %5834 = vmatpush.bf16.msrb.mxu0 %v5641_v7 }
 0x820   : > { %v5772_v5 = vpop.f32.mrf.mxu2 }
 0x821   : > { %5835 = vmatmul.bf16.vlgmr.msrb.gmra.mxu0 %v12686_v27  ;;  %v5773_v35 = vadd.f32 %v5772_v5, %v11827_v33  ;;  %v11858_v27 = vld [vmem:[%s11950_s10] sm:$0xff] }
 0x823   : > { %v5806_v15 = vadd.f32 %v5805_v46, %v5773_v35  ;;  %v11865_v35 = vld [vmem:[%s11950_s10 + $0x8] sm:$0xff] }
 0x824   : > { %v5810_v59 = vpop.f32.mrf.mxu3 }
 0x825   : > { %v5895_v39 = vmax.f32 %v5806_v15, 0.0  ;;  %7094 = vmatmul.msk.bf16.gmra.mxu1 %vm5745_vm14, %v12687_v32  ;;  %v5915_v15 = vld [vmem:[%s11950_s10 + $0x10] sm:$0x3] }
 0x827   : > { %v5916_v60 = vpack.c.bf16 %v5895_v39, %v5893_v34 }
 0x828   : > { %v5775_v28 = vpop.f32.mrf.mxu2 }
 0x829   : > { %v5776_v38 = vadd.f32 %v5775_v28, %v11818_v24 }
 0x82b   : > { %v5809_v16 = vadd.f32 %v5808_v6, %v5776_v38 }
 0x82c   : > { %v5813_v51 = vpop.f32.mrf.mxu3 }
 0x82d   : > { %v5897_v63 = vmax.f32 %v5809_v16, 0.0 }
 0x830   : > { %v5777_v8 = vpop.f32.mrf.mxu2 }
 0x831   : > { %5840 = vmatmul.bf16.gmra.mxu0 %v12688_v3  ;;  %v5778_v22 = vadd.f32 %v5777_v8, %v11836_v52 }
 0x833   : > { %v5811_v0 = vadd.f32 %v5810_v59, %v5778_v22  ;;  %v5960_v59 = vunpack.c.l.b16 %v5915_v15 }
 0x834   : > { %v5815_v36 = vpop.f32.mrf.mxu3 }
 0x835   : > { %v5899_v23 = vmax.f32 %v5811_v0, 0.0  ;;  %7095 = vmatmul.msk.bf16.gmra.mxu1 %vm5745_vm14, %v12689_v30  ;;  %v11872_v34 = vpack.c.b16 %v5960_v59, %v5960_v59  ;;  %v5944_v59 = vpop.permute.xlu2 %5943 }
 0x837   : > { %v5918_v37 = vpack.c.bf16 %v5899_v23, %v5897_v63 }
 0x838   : > { %v5780_v50 = vpop.f32.mrf.mxu2 }
 0x839   : > { %v5781_v9 = vadd.f32 %v5780_v50, %v11833_v40 }
 0x83b   : > { %v5814_v13 = vadd.f32 %v5813_v51, %v5781_v9 }
 0x83c   : > { %v5818_v58 = vpop.f32.mrf.mxu3 }
 0x83d   : > { %v5901_v6 = vmax.f32 %v5814_v13, 0.0 }
 0x840   : > { %v5782_v17 = vpop.f32.mrf.mxu2 }
 0x841   : > { %5845 = vmatmul.bf16.gmra.mxu0 %v12690_v48  ;;  %v5783_v62 = vadd.f32 %v5782_v17, %v11805_v25 }
 0x843   : > { %v5816_v53 = vadd.f32 %v5815_v36, %v5783_v62 }
 0x844   : > { %v5820_v19 = vpop.f32.mrf.mxu3 }
 0x845   : > { %7096 = vmatmul.msk.bf16.gmra.mxu1 %vm5745_vm14, %v12691_v55  ;;  %v5903_v18 = vmax.f32 %v5816_v53, 0.0 }
 0x847   : > { %v5920_v5 = vpack.c.bf16 %v5903_v18, %v5901_v6  ;;  %v5939_v6 = vpop.permute.xlu1 %5938 }
 0x848   : > { %v5785_v42 = vpop.f32.mrf.mxu2 }
 0x849   : > { %v5786_v11 = vadd.f32 %v5785_v42, %v11786_v12 }
 0x84b   : > { %v5819_v45 = vadd.f32 %v5818_v58, %v5786_v11 }
 0x84c   : > { %v5823_v54 = vpop.f32.mrf.mxu3 }
 0x84d   : > { %v5905_v4 = vmax.f32 %v5819_v45, 0.0 }
 0x850   : > { %v5787_v57 = vpop.f32.mrf.mxu2 }
 0x851   : > { %5850 = vmatmul.bf16.gmra.mxu0 %v12692_v1  ;;  %v5788_v14 = vadd.f32 %v5787_v57, %v11800_v26 }
 0x853   : > { %v5821_v41 = vadd.f32 %v5820_v19, %v5788_v14 }
 0x854   : > { %v5825_v43 = vpop.f32.mrf.mxu3 }
 0x855   : > { %7097 = vmatmul.msk.bf16.gmra.mxu1 %vm5745_vm14, %v12693_v31  ;;  %v5907_v29 = vmax.f32 %v5821_v41, 0.0  ;;  %vm6241_vm14 = vcmask 15360  }
 0x857   : > { %v5922_v7 = vpack.c.bf16 %v5907_v29, %v5905_v4 }
 0x858   : > { %v5790_v49 = vpop.f32.mrf.mxu2 }
 0x859   : > { %v5791_v56 = vadd.f32 %v5790_v49, %v11825_v20 }
 0x85b   : > { %v5824_v2 = vadd.f32 %v5823_v54, %v5791_v56 }
 0x85d   : > { %v5909_v46 = vmax.f32 %v5824_v2, 0.0 }
 0x85f   : > { %v5924_v10 = vpack.c.bf16 %v5909_v46, %v5909_v46 }
 0x860   : > { %v5792_v21 = vpop.f32.mrf.mxu2 }
 0x861   : > { %5855 = vmatmul.bf16.gmra.mxu0 %v12694_v44  ;;  %v5976_v47 = vsel %vm5974_vm10, %v5924_v10, 0 }
 0x862   : > { %5984 = vmatpush.bf16.msra.mxu2 %v5976_v47 }
 0x866   : > { %5985 = vmatpush.bf16.msra.mxu2 %v5922_v7 }
 0x86a   : > { %5986 = vmatpush.bf16.msra.mxu2 %v5920_v5  ;;  %v5949_v5 = vpop.permute.xlu0 %5948 }
 0x86e   : > { %5987 = vmatpush.bf16.msra.mxu2 %v5918_v37 }
 0x872   : > { %5988 = vmatpush.bf16.msra.mxu2 %v5916_v60 }
 0x875   : > { %7106 = vmatmul.msk.bf16.vlgmr.msra.gmra.mxu2 %vm5964_vm6, %v11858_v27 }
 0x885   : > { %7107 = vmatmul.msk.bf16.gmra.mxu2 %vm5964_vm6, %v11865_v35 }
 0x892   : > { %v5869_v39 = vpop.f32.mrf.mxu1 }
 0x895   : > { %7108 = vmatmul.msk.bf16.gmra.mxu2 %vm5964_vm6, %v11872_v34 }
 0x89a   : > { %v5871_v32 = vpop.f32.mrf.mxu1 }
 0x89e   : > { %v5836_v60 = vpop.f32.mrf.mxu0 }
 0x89f   : > { %v5837_v28 = vadd.f32 %v5836_v60, %v11822_v61 }
 0x8a1   : > { %v5870_v51 = vadd.f32 %v5869_v39, %v5837_v28 }
 0x8a2   : > { %v5874_v38 = vpop.f32.mrf.mxu1 }
 0x8a3   : > { %v5894_v0 = vmax.f32 %v5870_v51, 0.0  ;;  %v5934_v51 = vpop.permute.xlu1 %5933 }
 0x8a6   : > { %v5838_v8 = vpop.f32.mrf.mxu0 }
 0x8a7   : > { %v5839_v3 = vadd.f32 %v5838_v8, %v11827_v33 }
 0x8a9   : > { %v5872_v16 = vadd.f32 %v5871_v32, %v5839_v3  ;;  %v5929_v3 = vpop.permute.xlu0 %5928 }
 0x8aa   : > { %v5876_v22 = vpop.f32.mrf.mxu1 }
 0x8ab   : > { %v5896_v36 = vmax.f32 %v5872_v16, 0.0 }
 0x8ad   : > { %v5917_v63 = vpack.c.bf16 %v5896_v36, %v5894_v0 }
 0x8ae   : > { %v5841_v23 = vpop.f32.mrf.mxu0 }
 0x8af   : > { %v5842_v37 = vadd.f32 %v5841_v23, %v11818_v24 }
 0x8b1   : > { %v5875_v58 = vadd.f32 %v5874_v38, %v5842_v37 }
 0x8b2   : > { %v5879_v30 = vpop.f32.mrf.mxu1 }
 0x8b3   : > { %v5898_v19 = vmax.f32 %v5875_v58, 0.0 }
 0x8b6   : > { %v5843_v50 = vpop.f32.mrf.mxu0 }
 0x8b7   : > { %v5844_v17 = vadd.f32 %v5843_v50, %v11836_v52 }
 0x8b9   : > { %v5877_v48 = vadd.f32 %v5876_v22, %v5844_v17 }
 0x8ba   : > { %v5881_v61 = vpop.f32.mrf.mxu1 }
 0x8bb   : > { %v5900_v55 = vmax.f32 %v5877_v48, 0.0 }
 0x8bd   : > { %v5919_v42 = vpack.c.bf16 %v5900_v55, %v5898_v19 }
 0x8be   : > { %v5846_v54 = vpop.f32.mrf.mxu0 }
 0x8bf   : > { %v5847_v9 = vadd.f32 %v5846_v54, %v11833_v40 }
 0x8c2   : > { %v5884_v33 = vpop.f32.mrf.mxu1 }
 0x8c6   : > { %v5848_v57 = vpop.f32.mrf.mxu0 }
 0x8c7   : > { %v5849_v62 = vadd.f32 %v5848_v57, %v11805_v25 }
 0x8c9   : > { %v5882_v53 = vadd.f32 %v5881_v61, %v5849_v62 }
 0x8ca   : > { %v5886_v1 = vpop.f32.mrf.mxu1 }
 0x8ce   : > { %v5851_v43 = vpop.f32.mrf.mxu0 }
 0x8cf   : > { %v5852_v52 = vadd.f32 %v5851_v43, %v11786_v12 }
 0x8d1   : > { %v5885_v45 = vadd.f32 %v5884_v33, %v5852_v52 }
 0x8d2   : > { %v5889_v31 = vpop.f32.mrf.mxu1 }
 0x8d3   : > { %v5906_v47 = vmax.f32 %v5885_v45, 0.0 }
 0x8d6   : > { %v5853_v14 = vpop.f32.mrf.mxu0 }
 0x8d7   : > { %v5854_v56 = vadd.f32 %v5853_v14, %v11800_v26  ;;  %v5880_v26 = vadd.f32 %v5879_v30, %v5847_v9  ;;  %v7284_v30 = vld [vmem:[%s11951_s11] sm:$0x10] }
 0x8d9   : > { %v5887_v41 = vadd.f32 %v5886_v1, %v5854_v56  ;;  %v5902_v12 = vmax.f32 %v5880_v26, 0.0 }
 0x8da   : > { %v5891_v49 = vpop.f32.mrf.mxu1 }
 0x8db   : > { %v5908_v29 = vmax.f32 %v5887_v41, 0.0 }
 0x8dd   : > { %v5923_v13 = vpack.c.bf16 %v5908_v29, %v5906_v47 }
 0x8de   : > { %v5856_v24 = vpop.f32.mrf.mxu0 }
 0x8df   : > { %v5857_v11 = vadd.f32 %v5856_v24, %v11825_v20  ;;  %v5904_v20 = vmax.f32 %v5882_v53, 0.0  ;;  %v6048_v24 = vpop.permute.xlu2 %6047 }
 0x8e1   : > { %v5890_v2 = vadd.f32 %v5889_v31, %v5857_v11  ;;  %v5921_v4 = vpack.c.bf16 %v5904_v20, %v5902_v12 }
 0x8e3   : > { %v5910_v46 = vmax.f32 %v5890_v2, 0.0 }
 0x8e5   : > { %v5925_v10 = vpack.c.bf16 %v5910_v46, %v5910_v46 }
 0x8e6   : > { %v5858_v21 = vpop.f32.mrf.mxu0 }
 0x8e7   : > { %v5979_v44 = vsel %vm5974_vm10, %v5925_v10, 0  ;;  %vm6243_vm10 = vcmask 23552  }
 0x8e8   : > { %6007 = vmatpush.bf16.msra.mxu3 %v5979_v44 }
 0x8ec   : > { %6008 = vmatpush.bf16.msra.mxu3 %v5923_v13 }
 0x8f0   : > { %6009 = vmatpush.bf16.msra.mxu3 %v5921_v4 }
 0x8f4   : > { %6010 = vmatpush.bf16.msra.mxu3 %v5919_v42 }
 0x8f8   : > { %6011 = vmatpush.bf16.msra.mxu3 %v5917_v63  ;;  %v5990_v25 = vpop.f32.mrf.mxu2 }
 0x8fb   : > { %7109 = vmatmul.msk.bf16.vlgmr.msra.gmra.mxu3 %vm5964_vm6, %v11858_v27 }
 0x900   : > { %v5992_v40 = vpop.f32.mrf.mxu2 }
 0x901   : > { %v5993_v27 = vadd.f32 %v5992_v40, %v5934_v51 }
 0x903   : > { %v6029_v36 = vmax.f32 %v5993_v27, 0.0 }
 0x908   : > { %v5995_v18 = vpop.f32.mrf.mxu2 }
 0x909   : > { %v5996_v28 = vadd.f32 %v5995_v18, %v5939_v6 }
 0x90b   : > { %7110 = vmatmul.msk.bf16.gmra.mxu3 %vm5964_vm6, %v11865_v35  ;;  %v5991_v35 = vadd.f32 %v5990_v25, %v5929_v3  ;;  %v6031_v22 = vmax.f32 %v5996_v28, 0.0  ;;  %v6126_v25 = vlaneseq }
 0x90d   : > { %v6027_v23 = vmax.f32 %v5991_v35, 0.0 }
 0x90f   : > { %v6039_v37 = vpack.c.bf16 %v6029_v36, %v6027_v23 }
 0x910   : > { %v5997_v7 = vpop.f32.mrf.mxu2 }
 0x911   : > { %v5998_v32 = vadd.f32 %v5997_v7, %v5944_v59 }
 0x913   : > { %v6033_v8 = vmax.f32 %v5998_v32, 0.0 }
 0x915   : > { %v6041_v63 = vpack.c.bf16 %v6033_v8, %v6031_v22 }
 0x918   : > { %v6000_v15 = vpop.f32.mrf.mxu2 }
 0x919   : > { %v6001_v39 = vadd.f32 %v6000_v15, %v5949_v5 }
 0x91b   : > { %7111 = vmatmul.msk.bf16.gmra.mxu3 %vm5964_vm6, %v11872_v34  ;;  %v6035_v60 = vmax.f32 %v6001_v39, 0.0  ;;  %v7114_v34 = vld [vmem:[%s11951_s11] sm:$0xf] }
 0x91c   : > { %v7115_v50 = vor.u32 %v7284_v30, %v7114_v34 }
 0x91d   : > { %v6043_v38 = vpack.c.bf16 %v6035_v60, %v6035_v60 }
 0x91f   : > { %v6065_v16 = vsel %vm696_vm0, %v6043_v38, 0 }
 0x920   : > { %6075 = vmatpush.bf16.msra.mxu0 %v6065_v16  ;;  %v6002_v0 = vpop.f32.mrf.mxu2 }
 0x924   : > { %6076 = vmatpush.bf16.msra.mxu0 %v6041_v63 }
 0x928   : > { %6077 = vmatpush.bf16.msra.mxu0 %v6039_v37 }
 0x92b   : > { %7116 = vmatmul.msk.bf16.vlgmr.msra.gmra.mxu0 %vm6060_vm15, %v7115_v50 }
 0x97e   : > { %v6013_v58 = vpop.f32.mrf.mxu3 }
 0x97f   : > { %v6014_v14 = vadd.f32 %v6013_v58, %v5929_v3 }
 0x981   : > { %v6028_v41 = vmax.f32 %v6014_v14, 0.0 }
 0x986   : > { %v6015_v17 = vpop.f32.mrf.mxu3 }
 0x987   : > { %v6016_v1 = vadd.f32 %v6015_v17, %v5934_v51 }
 0x989   : > { %v6030_v11 = vmax.f32 %v6016_v1, 0.0 }
 0x98b   : > { %v6040_v9 = vpack.c.bf16 %v6030_v11, %v6028_v41 }
 0x98e   : > { %v6018_v48 = vpop.f32.mrf.mxu3 }
 0x98f   : > { %v6019_v33 = vadd.f32 %v6018_v48, %v5939_v6 }
 0x991   : > { %v6032_v49 = vmax.f32 %v6019_v33, 0.0 }
 0x996   : > { %v6020_v61 = vpop.f32.mrf.mxu3 }
 0x997   : > { %v6021_v42 = vadd.f32 %v6020_v61, %v5944_v59 }
 0x999   : > { %v6034_v43 = vmax.f32 %v6021_v42, 0.0 }
 0x99b   : > { %v6042_v52 = vpack.c.bf16 %v6034_v43, %v6032_v49 }
 0x99e   : > { %v6023_v19 = vpop.f32.mrf.mxu3 }
 0x99f   : > { %v6024_v55 = vadd.f32 %v6023_v19, %v5949_v5  ;;  %v6053_v5 = vpop.permute.xlu0 %6052 }
 0x9a1   : > { %v6036_v54 = vmax.f32 %v6024_v55, 0.0 }
 0x9a3   : > { %v6044_v57 = vpack.c.bf16 %v6036_v54, %v6036_v54 }
 0x9a5   : > { %v6068_v31 = vsel %vm696_vm0, %v6044_v57, 0  ;;  %vm11902_vm0 = vcmp.lt.s32.totalorder %v6126_v25, 256 }
 0x9a6   : > { %6089 = vmatpush.bf16.msra.mxu1 %v6068_v31  ;;  %v6025_v56 = vpop.f32.mrf.mxu3 }
 0x9a8   : > { %v6079_v2 = vpop.f32.mrf.mxu0 }
 0x9a9   : > { %v6080_v62 = vadd.f32 %v6079_v2, %v6048_v24 }
 0x9aa   : > { %6090 = vmatpush.bf16.msra.mxu1 %v6042_v52 }
 0x9ab   : > { %v6100_v46 = vrot.slane %v6080_v62, 1  ;;  %v6106_v45 = vrot.slane %v6080_v62, 2 }
 0x9ad   : > { %v6104_v10 = vmax.f32 %v6080_v62, %v6100_v46 }
 0x9ae   : > { %6091 = vmatpush.bf16.msra.mxu1 %v6040_v9 }
 0x9af   : > { %v6110_v53 = vmax.f32 %v6104_v10, %v6106_v45 }
 0x9b0   : > { %v6081_v40 = vpop.f32.mrf.mxu0 }
 0x9b1   : > { %7117 = vmatmul.msk.bf16.vlgmr.msra.gmra.mxu1 %vm6060_vm15, %v7115_v50  ;;  %6131 = vst [vmem:[#allocation1] sm:$0xff] %v6110_v53  ;;  %v6147_v29 = vrot.slane %v6110_v53, 3  ;;  %v6082_v59 = vadd.f32 %v6081_v40, %v6053_v5 }
 0x9b3   : > { %v6151_v21 = vsub.f32 %v6110_v53, %v6147_v29  ;;  %v6114_v3 = vrot.slane %v6082_v59, 2 }
 0x9b5   : > { %v7120_v44 = vmul.f32 -1.442695, %v6151_v21  ;;  %v6118_v0 = vmax.f32 %v6104_v10, %v6114_v3 }
 0x9b7   : > { %7441 = vpow2.f32 %v7120_v44 }
 0x9bd   : > { %v7442_v26 = vpop.eup %7441 }
 0x9be   : > { %v6159_v47 = vadd.f32 1.0, %v7442_v26 }
 0x9c0   : > { %7443 = vrcp.f32 %v6159_v47  ;;  %v6172_v34 = vand.u32 2147483648, %v6159_v47  ;;  %vm6166_vm12 = vweird.f32 %v6159_v47  ;;  %v6170_v30 = vand.u32 2147483647, %v6159_v47 }
 0x9c2   : > { %v6173_v17 = vor.u32 1.1754944e-38, %v6172_v34  ;;  %vm6171_vm3 = vcmp.eq.f32.partialorder %v6170_v30, 8.507059e+37 }
 0x9c6   : > { %v7444_v12 = vpop.eup %7443 }
 0x9c7   : > { %v6162_v6 = vmul.f32 %v7444_v12, %v6159_v47  ;;  %vm6167_vm2 = vweird.f32 %v7444_v12 }
 0x9c8   : > { %vm6168_vm4 = vmor %vm6166_vm12, %vm6167_vm2 }
 0x9c9   : > { %v6163_v38 = vsub.f32 1.0, %v6162_v6 }
 0x9cb   : > { %v6164_v22 = vmul.f32 %v7444_v12, %v6163_v38 }
 0x9cd   : > { %v6165_v23 = vadd.f32 %v7444_v12, %v6164_v22 }
 0x9cf   : > { %v6169_v50 = vsel %vm6168_vm4, %v7444_v12, %v6165_v23 }
 0x9d0   : > { %v6174_v48 = vsel %vm6171_vm3, %v6173_v17, %v6169_v50 }
 0x9d1   : > { %v7122_v19 = vadd.f32 -0.25, %v6174_v48  ;;  %v7124_v55 = vadd.f32 -0.75, %v6174_v48 }
 0x9d3   : > { %v6195_v33 = vmul.f32 %v7122_v19, %v7122_v19  ;;  %v6203_v57 = vmul.f32 %v7124_v55, %v7124_v55 }
 0x9d5   : > { %v6197_v49 = vmul.f32 -64.0, %v6195_v33  ;;  %v6205_v56 = vmul.f32 -64.0, %v6203_v57 }
 0x9d7   : > { %v6199_v2 = vmul.f32 1.442695, %v6197_v49  ;;  %v6207_v41 = vmul.f32 1.442695, %v6205_v56 }
 0xa2e   : > { %v6093_v20 = vpop.f32.mrf.mxu1 }
 0xa2f   : > { %v6094_v13 = vadd.f32 %v6093_v20, %v6048_v24 }
 0xa31   : > { %v6101_v4 = vrot.slane %v6094_v13, 1  ;;  %v6107_v18 = vrot.slane %v6094_v13, 2 }
 0xa33   : > { %v6105_v7 = vmax.f32 %v6094_v13, %v6101_v4 }
 0xa35   : > { %v6111_v15 = vmax.f32 %v6105_v7, %v6107_v18 }
 0xa36   : > { %v6095_v39 = vpop.f32.mrf.mxu1 }
 0xa37   : > { %v6096_v60 = vadd.f32 %v6095_v39, %v6053_v5  ;;  %v6122_v28 = vrot.slane %v6111_v15, 7  ;;  %6132 = vst [vmem:[#allocation1 + $0x9] sm:$0xff] %v6111_v15  ;;  %v6148_v51 = vrot.slane %v6111_v15, 3 }
 0xa39   : > { %v6124_v27 = vsel %vm6123_vm11, %v6110_v53, %v6122_v28  ;;  %v6152_v8 = vsub.f32 %v6111_v15, %v6148_v51  ;;  %v6115_v16 = vrot.slane %v6096_v60, 2 }
 0xa3a   : > { %6130 = vst.msk [vmem:[%s11911_s20] ss:$4 sm:$0x3] %vm11902_vm0, %v6124_v27 }
 0xa3b   : > { %v7121_v35 = vmul.f32 -1.442695, %v6152_v8  ;;  %v6119_v63 = vmax.f32 %v6105_v7, %v6115_v16 }
 0xa3d   : > { %7445 = vpow2.f32 %v7121_v35 }
 0xa3e   : > { %v6134_v36 = vld [vmem:[#allocation1 + $0x3] ss:$9 sm:$0xff] }
 0xa3f   : > { %7118 = vst.msk [vmem:[%s11911_s20 + $0x1] ss:$4 sm:$0x3] %vm11902_vm0, %v6134_v36 }
 0xa40   : > { %6140 = vst [vmem:[#allocation1] sm:$0xff] %v6118_v0 }
 0xa41   : > { %6141 = vst [vmem:[#allocation1 + $0x9] sm:$0xff] %v6119_v63 }
 0xa43   : > { %v7446_v37 = vpop.eup %7445 }
 0xa44   : > { %v6160_v58 = vadd.f32 1.0, %v7446_v37 }
 0xa46   : > { %7447 = vrcp.f32 %v6160_v58  ;;  %v6187_v43 = vand.u32 2147483648, %v6160_v58  ;;  %v6185_v14 = vand.u32 2147483647, %v6160_v58  ;;  %vm6181_vm5 = vweird.f32 %v6160_v58 }
 0xa47   : > { %7449 = vpow2.f32 %v6199_v2 }
 0xa48   : > { %v6143_v61 = vld [vmem:[#allocation1 + $0x6] ss:$9 sm:$0xff]  ;;  %v6188_v11 = vor.u32 1.1754944e-38, %v6187_v43  ;;  %vm6186_vm8 = vcmp.eq.f32.partialorder %v6185_v14, 8.507059e+37  ;;  %7451 = vpow2.f32 %v6207_v41 }
 0xa49   : > { %7119 = vst.msk [vmem:[%s11911_s20 + $0x2] ss:$4 sm:$0x3] %vm11902_vm0, %v6143_v61 }
 0xa4c   : > { %v7448_v42 = vpop.eup %7447 }
 0xa4d   : > { %v6177_v54 = vmul.f32 %v7448_v42, %v6160_v58  ;;  %vm6182_vm7 = vweird.f32 %v7448_v42  ;;  %v7450_v26 = vpop.eup %7449 }
 0xa4e   : > { %vm6183_vm13 = vmor %vm6181_vm5, %vm6182_vm7  ;;  %v7452_v47 = vpop.eup %7451  ;;  %v6211_v20 = vmul.f32 %v7450_v26, %v7450_v26  ;;  %v6224_v25 = vsel %vm6123_vm11, %v7450_v26, 0.0 }
 0xa4f   : > { %v6178_v1 = vsub.f32 1.0, %v6177_v54  ;;  %v6213_v13 = vmul.f32 %v7452_v47, %v7452_v47  ;;  %v6234_v3 = vsel %vm6123_vm11, %v7452_v47, 0.0 }
 0xa50   : > { %v6215_v7 = vmul.f32 %v6211_v20, %v6211_v20 }
 0xa51   : > { %v6179_v31 = vmul.f32 %v7448_v42, %v6178_v1  ;;  %v6217_v15 = vmul.f32 %v6213_v13, %v6213_v13 }
 0xa52   : > { %v6219_v32 = vsel %vm6123_vm11, %v6215_v7, 0.0 }
 0xa53   : > { %v6180_v24 = vadd.f32 %v7448_v42, %v6179_v31  ;;  %v6229_v28 = vsel %vm6123_vm11, %v6217_v15, 0.0 }
 0xa55   : > { %v6184_v52 = vsel %vm6183_vm13, %v7448_v42, %v6180_v24 }
 0xa56   : > { %v6189_v62 = vsel %vm6186_vm8, %v6188_v11, %v6184_v52 }
 0xa57   : > { %v7123_v46 = vadd.f32 -0.25, %v6189_v62  ;;  %v7125_v9 = vadd.f32 -0.75, %v6189_v62 }
 0xa59   : > { %v6196_v45 = vmul.f32 %v7123_v46, %v7123_v46  ;;  %v6204_v10 = vmul.f32 %v7125_v9, %v7125_v9 }
 0xa5b   : > { %v6198_v53 = vmul.f32 -64.0, %v6196_v45  ;;  %v6206_v29 = vmul.f32 -64.0, %v6204_v10 }
 0xa5d   : > { %v6201_v21 = vmul.f32 1.442695, %v6198_v53  ;;  %v6209_v44 = vmul.f32 1.442695, %v6206_v29 }
 0xa5f   : > { %7453 = vpow2.f32 %v6201_v21 }
 0xa60   : > { %7455 = vpow2.f32 %v6209_v44 }
 0xa65   : > { %v7454_v12 = vpop.eup %7453 }
 0xa66   : > { %v7456_v4 = vpop.eup %7455  ;;  %v6225_v40 = vsel %vm6123_vm11, %v7454_v12, 0.0  ;;  %v6212_v18 = vmul.f32 %v7454_v12, %v7454_v12 }
 0xa67   : > { %v6226_v6 = vadd.f32 %v6225_v40, %v6224_v25  ;;  %v6214_v5 = vmul.f32 %v7456_v4, %v7456_v4  ;;  %v6235_v8 = vsel %vm6123_vm11, %v7456_v4, 0.0 }
 0xa68   : > { %v6216_v59 = vmul.f32 %v6212_v18, %v6212_v18  ;;  %v6236_v16 = vadd.f32 %v6235_v8, %v6234_v3 }
 0xa69   : > { %6227 = vadd.xlane.f32.xlu2 %v6226_v6  ;;  %v6218_v39 = vmul.f32 %v6214_v5, %v6214_v5 }
 0xa6a   : > { %v6220_v60 = vsel %vm6123_vm11, %v6216_v59, 0.0 }
 0xa6b   : > { %v6230_v51 = vsel %vm6123_vm11, %v6218_v39, 0.0  ;;  %v6221_v38 = vadd.f32 %v6220_v60, %v6219_v32 }
 0xa6c   : > { %v6231_v27 = vadd.f32 %v6230_v51, %v6229_v28 }
 0xa6d   : > { %6222 = vadd.xlane.f32.xlu1 %v6221_v38 }
 0xa6e   : > { %6232 = vadd.xlane.f32.xlu0 %v6231_v27 }
 0xa71   : > { %6237 = vadd.xlane.f32.xlu2 %v6236_v16 }
 0xadc   : > { %v6228_v35 = vpop.xlane.xlu2 %6227 }
 0xae0   : > { %v6223_v22 = vpop.xlane.xlu1 %6222 }
 0xae1   : > { %v6233_v0 = vpop.xlane.xlu0 %6232  ;;  %v6240_v36 = vsel %vm6239_vm9, %v6223_v22, %v6228_v35 }
 0xae2   : > { %v6242_v23 = vsel %vm6241_vm14, %v6240_v36, %v6233_v0 }
 0xae4   : > { %v6238_v63 = vpop.xlane.xlu2 %6237 }
 0xae5   : > { %v6244_v34 = vsel %vm6243_vm10, %v6242_v23, %v6238_v63 }
 0xae6   : > { %v6245_v30 = vperm.slane %v6244_v34, 0 }
 0xae8   : > { %6246 = vst.msk [vmem:[%s481_s24] sm:$0xff] %vm677_vm1, %v6245_v30 }
 0xae9 PF: > { %s25_s29 = sadd.s32 1, %s7463_s29  }
 0xaea   : > { %p22_p5 = scmp.ge.s32.totalorder %s25_s29, 4  }
 0xaec   :  { %24 = sbr.rel (!%p22_p5) target bundleno = 1 (0x1), region = 118 }

</bundles_post_ra>
